<compile_context>
chip_gen: v7x
topology: tpu7x:2x2x1
jax: 0.10.0
libtpu: 0.0.40
codegen_flags: <defaults>
</compile_context>

<pallas_src>
import functools

import jax
import jax.numpy as jnp
from jax.experimental import pallas as pl
from jax.experimental.pallas import tpu as pltpu

LR_DILATIONS = (1, 2, 4, 8, 16, 1)  # build_lr_net(layer=5): d=1, 2,4,8,16, 1 (+ final 1x1)
VMEM_LIMIT = 32 * 1024 * 1024


def _pick_tile(n, target):
    """Full-extent block when small; otherwise a lane-dense tile (target is 8/128-aligned)."""
    return n if n <= target else target


# ----------------------------------------------------------------------------
# Kernel 1: fused guided_map  (1x1 conv 3->15 + shift + LeakyReLU + 1x1 conv 15->3 + bias)
# ----------------------------------------------------------------------------
def _guided_map_kernel(x_ref, w1_ref, s1_ref, w2_ref, s2_ref, o_ref):
    xb = x_ref[...].astype(jnp.bfloat16)                               # (3, TM)
    h1 = jnp.dot(w1_ref[...], xb, preferred_element_type=jnp.float32) + s1_ref[...]
    h1 = jnp.where(h1 >= 0.0, h1, 0.2 * h1).astype(jnp.bfloat16)       # 15-ch stays in VMEM
    y = jnp.dot(w2_ref[...], h1, preferred_element_type=jnp.float32) + s2_ref[...]
    o_ref[...] = y.astype(o_ref.dtype)


def apply_guided_map(p, x_nchw, *, out_dtype, tm_target=65536):
    b, c, h, w = x_nchw.shape
    m = h * w
    tm = _pick_tile(m, tm_target)
    out = pl.pallas_call(
        _guided_map_kernel,
        grid=(b, pl.cdiv(m, tm)),
        in_specs=[
            pl.BlockSpec((None, c, tm), lambda bi, mi: (bi, 0, mi)),
            pl.BlockSpec((15, c), lambda bi, mi: (0, 0)),
            pl.BlockSpec((15, 1), lambda bi, mi: (0, 0)),
            pl.BlockSpec((3, 15), lambda bi, mi: (0, 0)),
            pl.BlockSpec((3, 1), lambda bi, mi: (0, 0)),
        ],
        out_specs=pl.BlockSpec((None, 3, tm), lambda bi, mi: (bi, 0, mi)),
        out_shape=jax.ShapeDtypeStruct((b, 3, m), out_dtype),
        compiler_params=pltpu.CompilerParams(
            dimension_semantics=("parallel", "parallel"),
            vmem_limit_bytes=VMEM_LIMIT),
    )(x_nchw.reshape(b, c, m), p["gm_w1"], p["gm_shift1"], p["gm_w2"], p["gm_shift2"])
    return out.reshape(b, 3, h, w)


# ----------------------------------------------------------------------------
# Kernel 2: 3x3 dilated conv for lr_net, taps formed in-kernel (no 9x im2col in HBM)
# ----------------------------------------------------------------------------
def _lr_conv_kernel(x_ref, w_ref, s_ref, o_ref, *, offsets, cin, tm):
    # x: (Cin, L) bf16 flat padded image, w: (Cout, 9*Cin) bf16, s: (Cout, 1) f32,
    # o: (Cout, M_out) bf16 where M_out = H * Wp (padded-width flat layout).
    cout, m_out = o_ref.shape
    for start in range(0, m_out, tm):                 # static unrolled pixel tiles
        size = min(tm, m_out - start)
        acc = jnp.zeros((cout, size), jnp.float32)
        for t, off in enumerate(offsets):             # 9 taps, all-static slices
            tap = x_ref[:, start + off:start + off + size]            # (Cin, size)
            wt = w_ref[:, t * cin:(t + 1) * cin]                      # (Cout, Cin)
            acc = acc + jnp.dot(wt, tap, preferred_element_type=jnp.float32)
        y = acc + s_ref[...]
        y = jnp.where(y >= 0.0, y, 0.2 * y)           # AdaptiveNorm shift + LeakyReLU(0.2)
        o_ref[:, start:start + size] = y.astype(o_ref.dtype)


def lr_conv_layer(x, w_mat, shift, d, *, tm_target=8192):
    # x: (B, Cin, H, W) bf16 -> (B, 24, H, W) bf16. Dilation/padding = d (zero pad).
    b, c, h, w = x.shape
    wp = w + 2 * d
    # Pad (d, d+1) rows / (d, d) cols so every flat tap slice stays in bounds (Wp >= 2d).
    xp = jnp.pad(x, ((0, 0), (0, 0), (d, d + 1), (d, d)))
    flat_len = xp.shape[2] * wp
    xp = xp.reshape(b, c, flat_len)
    m_out = h * wp
    offsets = tuple(ky * d * wp + kx * d for ky in range(3) for kx in range(3))
    cout = w_mat.shape[0]
    kernel = functools.partial(_lr_conv_kernel, offsets=offsets, cin=c,
                               tm=_pick_tile(m_out, tm_target))
    out = pl.pallas_call(
        kernel,
        grid=(b,),
        in_specs=[
            pl.BlockSpec((None, c, flat_len), lambda bi: (bi, 0, 0)),
            pl.BlockSpec((cout, 9 * c), lambda bi: (0, 0)),
            pl.BlockSpec((cout, 1), lambda bi: (0, 0)),
        ],
        out_specs=pl.BlockSpec((None, cout, m_out), lambda bi: (bi, 0, 0)),
        out_shape=jax.ShapeDtypeStruct((b, cout, m_out), jnp.bfloat16),
        compiler_params=pltpu.CompilerParams(
            dimension_semantics=("parallel",), vmem_limit_bytes=VMEM_LIMIT),
    )(xp, w_mat, shift)
    # Drop the width-padding junk columns (small LR-sized copy).
    return out.reshape(b, cout, h, wp)[:, :, :, :w]


# ----------------------------------------------------------------------------
# Kernel 3: generic 1x1 conv matmul (final 24->3 projection of lr_net)
# ----------------------------------------------------------------------------
def _conv1x1_kernel(x_ref, w_ref, s_ref, o_ref, *, leaky):
    y = jnp.dot(w_ref[...], x_ref[...].astype(w_ref.dtype),
                preferred_element_type=jnp.float32) + s_ref[...]
    if leaky is not None:
        y = jnp.where(y >= 0.0, y, leaky * y)
    o_ref[...] = y.astype(o_ref.dtype)


def conv1x1(x, w, s, *, leaky=None, out_dtype=jnp.float32, tm_target=32768):
    b, k, m = x.shape
    cout = w.shape[0]
    tm = _pick_tile(m, tm_target)
    kernel = functools.partial(_conv1x1_kernel, leaky=leaky)
    return pl.pallas_call(
        kernel,
        grid=(b, pl.cdiv(m, tm)),
        in_specs=[
            pl.BlockSpec((None, k, tm), lambda bi, mi: (bi, 0, mi)),
            pl.BlockSpec((cout, k), lambda bi, mi: (0, 0)),
            pl.BlockSpec((cout, 1), lambda bi, mi: (0, 0)),
        ],
        out_specs=pl.BlockSpec((None, cout, tm), lambda bi, mi: (bi, 0, mi)),
        out_shape=jax.ShapeDtypeStruct((b, cout, m), out_dtype),
        compiler_params=pltpu.CompilerParams(
            dimension_semantics=("parallel", "parallel"),
            vmem_limit_bytes=VMEM_LIMIT),
    )(x, w, s)


def apply_lr_net(p, x_lr):
    b, c, h, w = x_lr.shape
    x = x_lr.astype(jnp.bfloat16)
    for i, d in enumerate(LR_DILATIONS):
        x = lr_conv_layer(x, p["lr_w"][i], p["lr_shift"][i], d)
    y = conv1x1(x.reshape(b, 24, h * w), p["lr_w_out"], p["lr_shift_out"],
                leaky=None, out_dtype=jnp.float32)
    return y.reshape(b, 3, h, w)


# ----------------------------------------------------------------------------
# Kernel 4: FastGuidedFilter low-res statistics (box filter = shifted adds, f32 for var/cov)
# ----------------------------------------------------------------------------
def _gf_lr_kernel(xp_ref, yp_ref, invn_ref, a_ref, b_ref, *, r, eps):
    c, h, w = a_ref.shape
    xp = xp_ref[...]          # (C, h+2r, w+2r), zero padded
    yp = yp_ref[...]
    inv_n = invn_ref[...]     # (h, w)

    def box(zp):              # separable (2r+1)-tap sum == cumsum+diff of the reference
        acc = zp[:, 0:h, :]
        for s in range(1, 2 * r + 1):
            acc = acc + zp[:, s:s + h, :]
        out = acc[:, :, 0:w]
        for t in range(1, 2 * r + 1):
            out = out + acc[:, :, t:t + w]
        return out

    mean_x = box(xp) * inv_n
    mean_y = box(yp) * inv_n
    cov_xy = box(xp * yp) * inv_n - mean_x * mean_y
    var_x = box(xp * xp) * inv_n - mean_x * mean_x
    aa = cov_xy / (var_x + eps)
    a_ref[...] = aa
    b_ref[...] = mean_y - aa * mean_x


def guided_filter_lr(lr_x, lr_y, r=1, eps=1e-5):
    b, c, h, w = lr_x.shape
    xp = jnp.pad(lr_x, ((0, 0), (0, 0), (r, r), (r, r)))
    yp = jnp.pad(lr_y, ((0, 0), (0, 0), (r, r), (r, r)))
    idx_h = jnp.arange(h)
    idx_w = jnp.arange(w)
    cnt_h = (jnp.minimum(idx_h + r, h - 1) - jnp.maximum(idx_h - r, 0) + 1).astype(jnp.float32)
    cnt_w = (jnp.minimum(idx_w + r, w - 1) - jnp.maximum(idx_w - r, 0) + 1).astype(jnp.float32)
    inv_n = 1.0 / jnp.outer(cnt_h, cnt_w)

    pad_spec = pl.BlockSpec((None, c, h + 2 * r, w + 2 * r), lambda bi: (bi, 0, 0, 0))
    out_spec = pl.BlockSpec((None, c, h, w), lambda bi: (bi, 0, 0, 0))
    n_spec = pl.BlockSpec((h, w), lambda bi: (0, 0))
    kernel = functools.partial(_gf_lr_kernel, r=r, eps=eps)
    return pl.pallas_call(
        kernel,
        grid=(b,),
        in_specs=[pad_spec, pad_spec, n_spec],
        out_specs=(out_spec, out_spec),
        out_shape=(jax.ShapeDtypeStruct((b, c, h, w), jnp.float32),
                   jax.ShapeDtypeStruct((b, c, h, w), jnp.float32)),
        compiler_params=pltpu.CompilerParams(dimension_semantics=("parallel",)),
    )(xp, yp, inv_n)


# ----------------------------------------------------------------------------
# Kernel 5: separable bilinear downsample (bf16 operands, f32 accumulation)
# ----------------------------------------------------------------------------
def bilinear_matrix(in_size, out_size):
    # Matches F.interpolate(mode='bilinear', align_corners=False) per axis.
    scale = in_size / out_size
    dst = jnp.arange(out_size, dtype=jnp.float32)
    src = jnp.maximum((dst + 0.5) * scale - 0.5, 0.0)
    i0 = jnp.clip(jnp.floor(src).astype(jnp.int32), 0, in_size - 1)
    i1 = jnp.minimum(i0 + 1, in_size - 1)
    frac = src - i0.astype(jnp.float32)
    rows = jnp.arange(out_size)
    m = jnp.zeros((out_size, in_size), jnp.float32)
    m = m.at[rows, i0].add(1.0 - frac)
    m = m.at[rows, i1].add(frac)
    return m


def _resize_w_kernel(x_ref, rt_ref, o_ref):
    o_ref[...] = jnp.dot(x_ref[...].astype(jnp.bfloat16), rt_ref[...],
                         preferred_element_type=jnp.float32).astype(o_ref.dtype)


def _resize_h_kernel(y_ref, l_ref, o_ref):
    o_ref[...] = jnp.dot(l_ref[...], y_ref[...], preferred_element_type=jnp.float32)


def bilinear_resize(x_nchw, out_h, out_w, *, row_strip=256):
    b, c, h, w = x_nchw.shape
    rmat_t = bilinear_matrix(w, out_w).T.astype(jnp.bfloat16)   # (W, out_w)
    lmat = bilinear_matrix(h, out_h).astype(jnp.bfloat16)       # (out_h, H)

    # pass 1: width downsample, rows independent -> cdiv row strips (no pad of the image)
    rows = c * h
    ts = _pick_tile(rows, row_strip)
    y1 = pl.pallas_call(
        _resize_w_kernel,
        grid=(b, pl.cdiv(rows, ts)),
        in_specs=[pl.BlockSpec((None, ts, w), lambda bi, si: (bi, si, 0)),
                  pl.BlockSpec((w, out_w), lambda bi, si: (0, 0))],
        out_specs=pl.BlockSpec((None, ts, out_w), lambda bi, si: (bi, si, 0)),
        out_shape=jax.ShapeDtypeStruct((b, rows, out_w), jnp.bfloat16),
        compiler_params=pltpu.CompilerParams(
            dimension_semantics=("parallel", "parallel")),
    )(x_nchw.reshape(b, rows, w), rmat_t)

    # pass 2: height downsample, tiled per (batch, channel)
    y1 = y1.reshape(b * c, h, out_w)
    y2 = pl.pallas_call(
        _resize_h_kernel,
        grid=(b * c,),
        in_specs=[pl.BlockSpec((None, h, out_w), lambda i: (i, 0, 0)),
                  pl.BlockSpec((out_h, h), lambda i: (0, 0))],
        out_specs=pl.BlockSpec((None, out_h, out_w), lambda i: (i, 0, 0)),
        out_shape=jax.ShapeDtypeStruct((b * c, out_h, out_w), jnp.float32),
        compiler_params=pltpu.CompilerParams(dimension_semantics=("parallel",)),
    )(y1, lmat)
    return y2.reshape(b, c, out_h, out_w)


# ----------------------------------------------------------------------------
# Kernel 6: upsample A,b (height-then-width) + A*x + b + clamp, strip-tiled over HR rows
# ----------------------------------------------------------------------------
def _fuse_kernel(a_ref, b_ref, hr_ref, uh_ref, uwt_ref, o_ref):
    uh = uh_ref[...]                                   # (TS, h) bf16
    uwt = uwt_ref[...]                                 # (w, W) bf16
    for ci in range(o_ref.shape[0]):
        a_lr = a_ref[ci].astype(jnp.bfloat16)          # (h, w)
        b_lr = b_ref[ci].astype(jnp.bfloat16)
        ta = jnp.dot(uh, a_lr, preferred_element_type=jnp.float32).astype(jnp.bfloat16)
        tb = jnp.dot(uh, b_lr, preferred_element_type=jnp.float32).astype(jnp.bfloat16)
        ua = jnp.dot(ta, uwt, preferred_element_type=jnp.float32)   # (TS, W) f32
        ub = jnp.dot(tb, uwt, preferred_element_type=jnp.float32)
        o_ref[ci] = jnp.clip(ua * hr_ref[ci].astype(jnp.float32) + ub, 0.0, 1.0)


def fuse_upsample(a, bvals, hr_x, *, row_strip=128):
    b, c, h, w = a.shape
    _, _, hh, ww = hr_x.shape
    ts = _pick_tile(hh, row_strip)
    ns = pl.cdiv(hh, ts)
    uh = bilinear_matrix(h, hh)                                    # (H, h)
    uh = jnp.pad(uh, ((0, ns * ts - hh), (0, 0))).astype(jnp.bfloat16)
    uwt = bilinear_matrix(w, ww).T.astype(jnp.bfloat16)            # (w, W)
    return pl.pallas_call(
        _fuse_kernel,
        grid=(b, ns),
        in_specs=[
            pl.BlockSpec((None, c, h, w), lambda bi, si: (bi, 0, 0, 0)),
            pl.BlockSpec((None, c, h, w), lambda bi, si: (bi, 0, 0, 0)),
            pl.BlockSpec((None, c, ts, ww), lambda bi, si: (bi, 0, si, 0)),
            pl.BlockSpec((ts, h), lambda bi, si: (si, 0)),
            pl.BlockSpec((w, ww), lambda bi, si: (0, 0)),
        ],
        out_specs=pl.BlockSpec((None, c, ts, ww), lambda bi, si: (bi, 0, si, 0)),
        out_shape=jax.ShapeDtypeStruct((b, c, hh, ww), jnp.float32),
        compiler_params=pltpu.CompilerParams(
            dimension_semantics=("parallel", "parallel"),
            vmem_limit_bytes=VMEM_LIMIT),
    )(a, bvals, hr_x, uh, uwt)


# ----------------------------------------------------------------------------
# Parameters (deterministic, synthetic) with AdaptiveNorm scale folded into W
# ----------------------------------------------------------------------------
def init_params(key):
    ks = jax.random.split(key, 12)
    p = {}

    def conv_w(k, ksize, cin, cout):
        # PyTorch layout (cout, cin, kh, kw) -> matmul layout (cout, kh*kw*cin),
        # K order = (ky, kx, cin) matching the in-kernel tap order.
        fan_in = ksize * ksize * cin
        w = jax.random.normal(k, (cout, cin, ksize, ksize), jnp.float32) * (2.0 / fan_in) ** 0.5
        return jnp.transpose(w, (0, 2, 3, 1)).reshape(cout, ksize * ksize * cin)

    def fold_norm(w_mat, n, w0=1.0, w1=0.1, eps=1e-3):
        # AdaptiveNorm(x) = w0*x + w1*BN(x); eval-mode BN (running stats, eps=0.001).
        gamma = jnp.ones((n,), jnp.float32)
        beta = jnp.zeros((n,), jnp.float32)
        rmean = jnp.zeros((n,), jnp.float32)
        rvar = jnp.ones((n,), jnp.float32)
        inv = gamma / jnp.sqrt(rvar + eps)
        scale = w0 + w1 * inv
        shift = w1 * (beta - rmean * inv)
        return (w_mat * scale[:, None]).astype(jnp.bfloat16), shift[:, None]

    # guided_map: Conv2d(3,15,1,bias=False) -> AdaptiveNorm(15) -> LeakyReLU(0.2) -> Conv2d(15,3,1)
    p["gm_w1"], p["gm_shift1"] = fold_norm(conv_w(ks[0], 1, 3, 15), 15)
    p["gm_w2"] = conv_w(ks[1], 1, 15, 3).astype(jnp.bfloat16)
    p["gm_shift2"] = (0.01 * jax.random.normal(ks[2], (3,), jnp.float32))[:, None]

    # lr net: 6 x (3x3 dilated conv no-bias + AdaptiveNorm(24) + LeakyReLU) + Conv2d(24,3,1)
    cins = [3, 24, 24, 24, 24, 24]
    p["lr_w"], p["lr_shift"] = [], []
    for i, cin in enumerate(cins):
        wf, sf = fold_norm(conv_w(ks[3 + i], 3, cin, 24), 24)
        p["lr_w"].append(wf)
        p["lr_shift"].append(sf)
    p["lr_w_out"] = conv_w(ks[9], 1, 24, 3).astype(jnp.bfloat16)
    p["lr_shift_out"] = (0.01 * jax.random.normal(ks[10], (3,), jnp.float32))[:, None]
    return p


# ----------------------------------------------------------------------------
# Full DeepGuidedFilter forward
# ----------------------------------------------------------------------------
def deep_guided_filter_forward(params, x_hr):
    b, c, hh, ww = x_hr.shape
    h, w = hh // 8, ww // 8
    x_lr = bilinear_resize(x_hr, h, w)                                  # F.interpolate /8
    lr_x = apply_guided_map(params, x_lr, out_dtype=jnp.float32)        # guided_map(x_lr)
    lr_y = apply_lr_net(params, x_lr)                                   # lr(x_lr)
    hr_x = apply_guided_map(params, x_hr, out_dtype=jnp.bfloat16)       # guided_map(x_hr)
    a, bb = guided_filter_lr(lr_x, lr_y, r=1, eps=1e-5)                 # FastGuidedFilter LR
    return fuse_upsample(a, bb, hr_x)                                   # upsample + A*x+b + clamp


if __name__ == "__main__":
    key = jax.random.PRNGKey(0)
    pkey, xkey = jax.random.split(key)
    params = init_params(pkey)
    x_hr = jax.random.uniform(xkey, (2, 3, 64, 64), dtype=jnp.float32)

    fwd = jax.jit(functools.partial(deep_guided_filter_forward, params))
    out = jax.block_until_ready(fwd(x_hr))

    assert out.shape == (2, 3, 64, 64), out.shape
    assert out.dtype == jnp.float32
    assert bool(jnp.all(jnp.isfinite(out)))
    assert bool(jnp.all((out >= 0.0) & (out <= 1.0)))
    print("KERNEL_OK")
</pallas_src>

<mosaic_0001>
module attributes {stable_mosaic.version = 11 : i64} {
  func.func private @main(%arg0: i32) attributes {dimension_semantics = [#tpu.dimension_semantics<core_parallel>], iteration_bounds = array<i64: 2>, tpu.core_type = #tpu.core_type<sc_scalar_subcore>, window_params = []} {
    return
  }
}

module attributes {stable_mosaic.version = 11 : i64} {
  func.func private @main(%arg0: i32) attributes {dimension_semantics = [#tpu.dimension_semantics<core_parallel>], iteration_bounds = array<i64: 2>, tpu.core_type = #tpu.core_type<sc_scalar_subcore>, window_params = []} {
    return
  }
}

module attributes {stable_mosaic.version = 11 : i64} {
  func.func @_resize_h_kernel(%arg0: i32, %arg1: memref<1x64x8xbf16, #tpu.memory_space<vmem>>, %arg2: memref<8x64xbf16, #tpu.memory_space<vmem>>, %arg3: memref<1x8x8xf32, #tpu.memory_space<vmem>>) attributes {dimension_semantics = [#tpu.dimension_semantics<parallel>], iteration_bounds = array<i64: 6>, scalar_prefetch = 0 : i64, scratch_operands = 0 : i64, tpu.core_type = #tpu.core_type<tc>, window_params = [{transform_indices = @transform_0, window_bounds = array<i64: 1, 64, 8>}, {pipeline_mode = #tpu.pipeline_mode<synchronous>, transform_indices = @transform_1, window_bounds = array<i64: 8, 64>}, {transform_indices = @transform_2, window_bounds = array<i64: 1, 8, 8>}]} {
    %c0 = arith.constant 0 : index
    %c0_0 = arith.constant 0 : index
    %0 = vector.load %arg2[%c0, %c0_0] : memref<8x64xbf16, #tpu.memory_space<vmem>>, vector<8x64xbf16>
    %c0_1 = arith.constant 0 : index
    %c0_2 = arith.constant 0 : index
    %c0_3 = arith.constant 0 : index
    %1 = vector.load %arg1[%c0_1, %c0_2, %c0_3] : memref<1x64x8xbf16, #tpu.memory_space<vmem>>, vector<1x64x8xbf16>
    %2 = vector.shape_cast %1 : vector<1x64x8xbf16> to vector<64x8xbf16>
    %cst = arith.constant dense<0.000000e+00> : vector<8x8xf32>
    %3 = tpu.matmul %0, %2, %cst {dimension_numbers = #tpu.dot_dimension_numbers<[1], [0], [0], [1], [0, 0, 1, 1], [], []>} : vector<8x64xbf16>, vector<64x8xbf16>, vector<8x8xf32> -> vector<8x8xf32>
    %c0_4 = arith.constant 0 : index
    %c0_5 = arith.constant 0 : index
    %c0_6 = arith.constant 0 : index
    %4 = vector.load %arg3[%c0_4, %c0_5, %c0_6] : memref<1x8x8xf32, #tpu.memory_space<vmem>>, vector<1x8x8xf32>
    %5 = vector.shape_cast %4 : vector<1x8x8xf32> to vector<8x8xf32>
    %6 = vector.shape_cast %3 : vector<8x8xf32> to vector<1x8x8xf32>
    tpu.vector_store %arg3[%c0_4, %c0_5, %c0_6], %6 {strides = array<i32>} : memref<1x8x8xf32, #tpu.memory_space<vmem>>, vector<1x8x8xf32>,
    return
  }
  func.func @transform_0(%arg0: i32) -> (i32, i32, i32) {
    %c0_i32 = arith.constant 0 : i32
    %c0_i32_0 = arith.constant 0 : i32
    %c0_i32_1 = arith.constant 0 : i32
    return %arg0, %c0_i32, %c0_i32_0 : i32, i32, i32
  }
  func.func @transform_1(%arg0: i32) -> (i32, i32) {
    %c0_i32 = arith.constant 0 : i32
    %c0_i32_0 = arith.constant 0 : i32
    %c0_i32_1 = arith.constant 0 : i32
    return %c0_i32, %c0_i32_0 : i32, i32
  }
  func.func @transform_2(%arg0: i32) -> (i32, i32, i32) {
    %c0_i32 = arith.constant 0 : i32
    %c0_i32_0 = arith.constant 0 : i32
    %c0_i32_1 = arith.constant 0 : i32
    return %arg0, %c0_i32, %c0_i32_0 : i32, i32, i32
  }
}

module attributes {stable_mosaic.version = 11 : i64} {
  func.func @_resize_w_kernel(%arg0: i32, %arg1: i32, %arg2: memref<1x192x64xf32, #tpu.memory_space<vmem>>, %arg3: memref<64x8xbf16, #tpu.memory_space<vmem>>, %arg4: memref<1x192x8xbf16, #tpu.memory_space<vmem>>) attributes {dimension_semantics = [#tpu.dimension_semantics<parallel>, #tpu.dimension_semantics<parallel>], iteration_bounds = array<i64: 2, 1>, scalar_prefetch = 0 : i64, scratch_operands = 0 : i64, tpu.core_type = #tpu.core_type<tc>, window_params = [{transform_indices = @transform_0, window_bounds = array<i64: 1, 192, 64>}, {pipeline_mode = #tpu.pipeline_mode<synchronous>, transform_indices = @transform_1, window_bounds = array<i64: 64, 8>}, {transform_indices = @transform_2, window_bounds = array<i64: 1, 192, 8>}]} {
    %c0 = arith.constant 0 : index
    %c0_0 = arith.constant 0 : index
    %c0_1 = arith.constant 0 : index
    %0 = vector.load %arg2[%c0, %c0_0, %c0_1] : memref<1x192x64xf32, #tpu.memory_space<vmem>>, vector<1x192x64xf32>
    %1 = vector.shape_cast %0 : vector<1x192x64xf32> to vector<192x64xf32>
    %2 = arith.truncf %1 : vector<192x64xf32> to vector<192x64xbf16>
    %c0_2 = arith.constant 0 : index
    %c0_3 = arith.constant 0 : index
    %3 = vector.load %arg3[%c0_2, %c0_3] : memref<64x8xbf16, #tpu.memory_space<vmem>>, vector<64x8xbf16>
    %cst = arith.constant dense<0.000000e+00> : vector<192x8xf32>
    %4 = tpu.matmul %2, %3, %cst {dimension_numbers = #tpu.dot_dimension_numbers<[1], [0], [0], [1], [0, 0, 1, 1], [], []>} : vector<192x64xbf16>, vector<64x8xbf16>, vector<192x8xf32> -> vector<192x8xf32>
    %5 = arith.truncf %4 : vector<192x8xf32> to vector<192x8xbf16>
    %c0_4 = arith.constant 0 : index
    %c0_5 = arith.constant 0 : index
    %c0_6 = arith.constant 0 : index
    %6 = vector.load %arg4[%c0_4, %c0_5, %c0_6] : memref<1x192x8xbf16, #tpu.memory_space<vmem>>, vector<1x192x8xbf16>
    %7 = vector.shape_cast %6 : vector<1x192x8xbf16> to vector<192x8xbf16>
    %8 = vector.shape_cast %5 : vector<192x8xbf16> to vector<1x192x8xbf16>
    tpu.vector_store %arg4[%c0_4, %c0_5, %c0_6], %8 {strides = array<i32>} : memref<1x192x8xbf16, #tpu.memory_space<vmem>>, vector<1x192x8xbf16>,
    return
  }
  func.func @transform_0(%arg0: i32, %arg1: i32) -> (i32, i32, i32) {
    %c0_i32 = arith.constant 0 : i32
    %c0_i32_0 = arith.constant 0 : i32
    return %arg0, %arg1, %c0_i32 : i32, i32, i32
  }
  func.func @transform_1(%arg0: i32, %arg1: i32) -> (i32, i32) {
    %c0_i32 = arith.constant 0 : i32
    %c0_i32_0 = arith.constant 0 : i32
    %c0_i32_1 = arith.constant 0 : i32
    return %c0_i32, %c0_i32_0 : i32, i32
  }
  func.func @transform_2(%arg0: i32, %arg1: i32) -> (i32, i32, i32) {
    %c0_i32 = arith.constant 0 : i32
    %c0_i32_0 = arith.constant 0 : i32
    return %arg0, %arg1, %c0_i32 : i32, i32, i32
  }
}

module attributes {stable_mosaic.version = 11 : i64} {
  func.func @_lr_conv_kernel(%arg0: i32, %arg1: memref<1x3x110xbf16, #tpu.memory_space<vmem>>, %arg2: memref<24x27xbf16, #tpu.memory_space<vmem>>, %arg3: memref<24x1xf32, #tpu.memory_space<vmem>>, %arg4: memref<1x24x80xbf16, #tpu.memory_space<vmem>>) attributes {dimension_semantics = [#tpu.dimension_semantics<parallel>], iteration_bounds = array<i64: 2>, scalar_prefetch = 0 : i64, scratch_operands = 0 : i64, tpu.core_type = #tpu.core_type<tc>, window_params = [{transform_indices = @transform_0, window_bounds = array<i64: 1, 3, 110>}, {pipeline_mode = #tpu.pipeline_mode<synchronous>, transform_indices = @transform_1, window_bounds = array<i64: 24, 27>}, {pipeline_mode = #tpu.pipeline_mode<synchronous>, transform_indices = @transform_2, window_bounds = array<i64: 24, 1>}, {transform_indices = @transform_3, window_bounds = array<i64: 1, 24, 80>}]} {
    %cst = arith.constant 0.000000e+00 : f32
    %0 = vector.broadcast %cst : f32 to vector<24x80xf32>
    %c0 = arith.constant 0 : index
    %c0_0 = arith.constant 0 : index
    %c0_1 = arith.constant 0 : index
    %1 = vector.load %arg1[%c0, %c0_0, %c0_1] : memref<1x3x110xbf16, #tpu.memory_space<vmem>>, vector<1x3x80xbf16>
    %2 = vector.shape_cast %1 : vector<1x3x80xbf16> to vector<3x80xbf16>
    %c0_2 = arith.constant 0 : index
    %c0_3 = arith.constant 0 : index
    %3 = vector.load %arg2[%c0_2, %c0_3] : memref<24x27xbf16, #tpu.memory_space<vmem>>, vector<24x3xbf16>
    %cst_4 = arith.constant dense<0.000000e+00> : vector<24x80xf32>
    %4 = tpu.matmul %3, %2, %cst_4 {dimension_numbers = #tpu.dot_dimension_numbers<[1], [0], [0], [1], [0, 0, 1, 1], [], []>} : vector<24x3xbf16>, vector<3x80xbf16>, vector<24x80xf32> -> vector<24x80xf32>
    %5 = arith.addf %0, %4 : vector<24x80xf32>
    %c0_5 = arith.constant 0 : index
    %c0_6 = arith.constant 0 : index
    %c1 = arith.constant 1 : index
    %6 = vector.load %arg1[%c0_5, %c0_6, %c1] : memref<1x3x110xbf16, #tpu.memory_space<vmem>>, vector<1x3x80xbf16>
    %7 = vector.shape_cast %6 : vector<1x3x80xbf16> to vector<3x80xbf16>
    %c0_7 = arith.constant 0 : index
    %c3 = arith.constant 3 : index
    %8 = vector.load %arg2[%c0_7, %c3] : memref<24x27xbf16, #tpu.memory_space<vmem>>, vector<24x3xbf16>
    %cst_8 = arith.constant dense<0.000000e+00> : vector<24x80xf32>
    %9 = tpu.matmul %8, %7, %cst_8 {dimension_numbers = #tpu.dot_dimension_numbers<[1], [0], [0], [1], [0, 0, 1, 1], [], []>} : vector<24x3xbf16>, vector<3x80xbf16>, vector<24x80xf32> -> vector<24x80xf32>
    %10 = arith.addf %5, %9 : vector<24x80xf32>
    %c0_9 = arith.constant 0 : index
    %c0_10 = arith.constant 0 : index
    %c2 = arith.constant 2 : index
    %11 = vector.load %arg1[%c0_9, %c0_10, %c2] : memref<1x3x110xbf16, #tpu.memory_space<vmem>>, vector<1x3x80xbf16>
    %12 = vector.shape_cast %11 : vector<1x3x80xbf16> to vector<3x80xbf16>
    %c0_11 = arith.constant 0 : index
    %c6 = arith.constant 6 : index
    %13 = vector.load %arg2[%c0_11, %c6] : memref<24x27xbf16, #tpu.memory_space<vmem>>, vector<24x3xbf16>
    %cst_12 = arith.constant dense<0.000000e+00> : vector<24x80xf32>
    %14 = tpu.matmul %13, %12, %cst_12 {dimension_numbers = #tpu.dot_dimension_numbers<[1], [0], [0], [1], [0, 0, 1, 1], [], []>} : vector<24x3xbf16>, vector<3x80xbf16>, vector<24x80xf32> -> vector<24x80xf32>
    %15 = arith.addf %10, %14 : vector<24x80xf32>
    %c0_13 = arith.constant 0 : index
    %c0_14 = arith.constant 0 : index
    %c10 = arith.constant 10 : index
    %16 = vector.load %arg1[%c0_13, %c0_14, %c10] : memref<1x3x110xbf16, #tpu.memory_space<vmem>>, vector<1x3x80xbf16>
    %17 = vector.shape_cast %16 : vector<1x3x80xbf16> to vector<3x80xbf16>
    %c0_15 = arith.constant 0 : index
    %c9 = arith.constant 9 : index
    %18 = vector.load %arg2[%c0_15, %c9] : memref<24x27xbf16, #tpu.memory_space<vmem>>, vector<24x3xbf16>
    %cst_16 = arith.constant dense<0.000000e+00> : vector<24x80xf32>
    %19 = tpu.matmul %18, %17, %cst_16 {dimension_numbers = #tpu.dot_dimension_numbers<[1], [0], [0], [1], [0, 0, 1, 1], [], []>} : vector<24x3xbf16>, vector<3x80xbf16>, vector<24x80xf32> -> vector<24x80xf32>
    %20 = arith.addf %15, %19 : vector<24x80xf32>
    %c0_17 = arith.constant 0 : index
    %c0_18 = arith.constant 0 : index
    %c11 = arith.constant 11 : index
    %21 = vector.load %arg1[%c0_17, %c0_18, %c11] : memref<1x3x110xbf16, #tpu.memory_space<vmem>>, vector<1x3x80xbf16>
    %22 = vector.shape_cast %21 : vector<1x3x80xbf16> to vector<3x80xbf16>
    %c0_19 = arith.constant 0 : index
    %c12 = arith.constant 12 : index
    %23 = vector.load %arg2[%c0_19, %c12] : memref<24x27xbf16, #tpu.memory_space<vmem>>, vector<24x3xbf16>
    %cst_20 = arith.constant dense<0.000000e+00> : vector<24x80xf32>
    %24 = tpu.matmul %23, %22, %cst_20 {dimension_numbers = #tpu.dot_dimension_numbers<[1], [0], [0], [1], [0, 0, 1, 1], [], []>} : vector<24x3xbf16>, vector<3x80xbf16>, vector<24x80xf32> -> vector<24x80xf32>
    %25 = arith.addf %20, %24 : vector<24x80xf32>
    %c0_21 = arith.constant 0 : index
    %c0_22 = arith.constant 0 : index
    %c12_23 = arith.constant 12 : index
    %26 = vector.load %arg1[%c0_21, %c0_22, %c12_23] : memref<1x3x110xbf16, #tpu.memory_space<vmem>>, vector<1x3x80xbf16>
    %27 = vector.shape_cast %26 : vector<1x3x80xbf16> to vector<3x80xbf16>
    %c0_24 = arith.constant 0 : index
    %c15 = arith.constant 15 : index
    %28 = vector.load %arg2[%c0_24, %c15] : memref<24x27xbf16, #tpu.memory_space<vmem>>, vector<24x3xbf16>
    %cst_25 = arith.constant dense<0.000000e+00> : vector<24x80xf32>
    %29 = tpu.matmul %28, %27, %cst_25 {dimension_numbers = #tpu.dot_dimension_numbers<[1], [0], [0], [1], [0, 0, 1, 1], [], []>} : vector<24x3xbf16>, vector<3x80xbf16>, vector<24x80xf32> -> vector<24x80xf32>
    %30 = arith.addf %25, %29 : vector<24x80xf32>
    %c0_26 = arith.constant 0 : index
    %c0_27 = arith.constant 0 : index
    %c20 = arith.constant 20 : index
    %31 = vector.load %arg1[%c0_26, %c0_27, %c20] : memref<1x3x110xbf16, #tpu.memory_space<vmem>>, vector<1x3x80xbf16>
    %32 = vector.shape_cast %31 : vector<1x3x80xbf16> to vector<3x80xbf16>
    %c0_28 = arith.constant 0 : index
    %c18 = arith.constant 18 : index
    %33 = vector.load %arg2[%c0_28, %c18] : memref<24x27xbf16, #tpu.memory_space<vmem>>, vector<24x3xbf16>
    %cst_29 = arith.constant dense<0.000000e+00> : vector<24x80xf32>
    %34 = tpu.matmul %33, %32, %cst_29 {dimension_numbers = #tpu.dot_dimension_numbers<[1], [0], [0], [1], [0, 0, 1, 1], [], []>} : vector<24x3xbf16>, vector<3x80xbf16>, vector<24x80xf32> -> vector<24x80xf32>
    %35 = arith.addf %30, %34 : vector<24x80xf32>
    %c0_30 = arith.constant 0 : index
    %c0_31 = arith.constant 0 : index
    %c21 = arith.constant 21 : index
    %36 = vector.load %arg1[%c0_30, %c0_31, %c21] : memref<1x3x110xbf16, #tpu.memory_space<vmem>>, vector<1x3x80xbf16>
    %37 = vector.shape_cast %36 : vector<1x3x80xbf16> to vector<3x80xbf16>
    %c0_32 = arith.constant 0 : index
    %c21_33 = arith.constant 21 : index
    %38 = vector.load %arg2[%c0_32, %c21_33] : memref<24x27xbf16, #tpu.memory_space<vmem>>, vector<24x3xbf16>
    %cst_34 = arith.constant dense<0.000000e+00> : vector<24x80xf32>
    %39 = tpu.matmul %38, %37, %cst_34 {dimension_numbers = #tpu.dot_dimension_numbers<[1], [0], [0], [1], [0, 0, 1, 1], [], []>} : vector<24x3xbf16>, vector<3x80xbf16>, vector<24x80xf32> -> vector<24x80xf32>
    %40 = arith.addf %35, %39 : vector<24x80xf32>
    %c0_35 = arith.constant 0 : index
    %c0_36 = arith.constant 0 : index
    %c22 = arith.constant 22 : index
    %41 = vector.load %arg1[%c0_35, %c0_36, %c22] : memref<1x3x110xbf16, #tpu.memory_space<vmem>>, vector<1x3x80xbf16>
    %42 = vector.shape_cast %41 : vector<1x3x80xbf16> to vector<3x80xbf16>
    %c0_37 = arith.constant 0 : index
    %c24 = arith.constant 24 : index
    %43 = vector.load %arg2[%c0_37, %c24] : memref<24x27xbf16, #tpu.memory_space<vmem>>, vector<24x3xbf16>
    %cst_38 = arith.constant dense<0.000000e+00> : vector<24x80xf32>
    %44 = tpu.matmul %43, %42, %cst_38 {dimension_numbers = #tpu.dot_dimension_numbers<[1], [0], [0], [1], [0, 0, 1, 1], [], []>} : vector<24x3xbf16>, vector<3x80xbf16>, vector<24x80xf32> -> vector<24x80xf32>
    %45 = arith.addf %40, %44 : vector<24x80xf32>
    %c0_39 = arith.constant 0 : index
    %c0_40 = arith.constant 0 : index
    %46 = vector.load %arg3[%c0_39, %c0_40] : memref<24x1xf32, #tpu.memory_space<vmem>>, vector<24x1xf32>
    %47 = vector.broadcast %46 : vector<24x1xf32> to vector<24x80xf32>
    %48 = arith.addf %45, %47 : vector<24x80xf32>
    %cst_41 = arith.constant 0.000000e+00 : f32
    %49 = vector.broadcast %cst_41 : f32 to vector<24x80xf32>
    %50 = arith.cmpf oge, %48, %49 : vector<24x80xf32>
    %cst_42 = arith.constant 2.000000e-01 : f32
    %51 = vector.broadcast %cst_42 : f32 to vector<24x80xf32>
    %52 = arith.mulf %51, %48 : vector<24x80xf32>
    %53 = arith.select %50, %48, %52 : vector<24x80xi1>, vector<24x80xf32>
    %54 = arith.truncf %53 : vector<24x80xf32> to vector<24x80xbf16>
    %c0_43 = arith.constant 0 : index
    %c0_44 = arith.constant 0 : index
    %c0_45 = arith.constant 0 : index
    %55 = vector.load %arg4[%c0_43, %c0_44, %c0_45] : memref<1x24x80xbf16, #tpu.memory_space<vmem>>, vector<1x24x80xbf16>
    %56 = vector.shape_cast %55 : vector<1x24x80xbf16> to vector<24x80xbf16>
    %57 = vector.shape_cast %54 : vector<24x80xbf16> to vector<1x24x80xbf16>
    tpu.vector_store %arg4[%c0_43, %c0_44, %c0_45], %57 {strides = array<i32>} : memref<1x24x80xbf16, #tpu.memory_space<vmem>>, vector<1x24x80xbf16>,
    return
  }
  func.func @transform_0(%arg0: i32) -> (i32, i32, i32) {
    %c0_i32 = arith.constant 0 : i32
    %c0_i32_0 = arith.constant 0 : i32
    %c0_i32_1 = arith.constant 0 : i32
    return %arg0, %c0_i32, %c0_i32_0 : i32, i32, i32
  }
  func.func @transform_1(%arg0: i32) -> (i32, i32) {
    %c0_i32 = arith.constant 0 : i32
    %c0_i32_0 = arith.constant 0 : i32
    %c0_i32_1 = arith.constant 0 : i32
    return %c0_i32, %c0_i32_0 : i32, i32
  }
  func.func @transform_2(%arg0: i32) -> (i32, i32) {
    %c0_i32 = arith.constant 0 : i32
    %c0_i32_0 = arith.constant 0 : i32
    %c0_i32_1 = arith.constant 0 : i32
    return %c0_i32, %c0_i32_0 : i32, i32
  }
  func.func @transform_3(%arg0: i32) -> (i32, i32, i32) {
    %c0_i32 = arith.constant 0 : i32
    %c0_i32_0 = arith.constant 0 : i32
    %c0_i32_1 = arith.constant 0 : i32
    return %arg0, %c0_i32, %c0_i32_0 : i32, i32, i32
  }
}

module attributes {stable_mosaic.version = 11 : i64} {
  func.func @_lr_conv_kernel(%arg0: i32, %arg1: memref<1x24x156xbf16, #tpu.memory_space<vmem>>, %arg2: memref<24x216xbf16, #tpu.memory_space<vmem>>, %arg3: memref<24x1xf32, #tpu.memory_space<vmem>>, %arg4: memref<1x24x96xbf16, #tpu.memory_space<vmem>>) attributes {dimension_semantics = [#tpu.dimension_semantics<parallel>], iteration_bounds = array<i64: 2>, scalar_prefetch = 0 : i64, scratch_operands = 0 : i64, tpu.core_type = #tpu.core_type<tc>, window_params = [{transform_indices = @transform_0, window_bounds = array<i64: 1, 24, 156>}, {pipeline_mode = #tpu.pipeline_mode<synchronous>, transform_indices = @transform_1, window_bounds = array<i64: 24, 216>}, {pipeline_mode = #tpu.pipeline_mode<synchronous>, transform_indices = @transform_2, window_bounds = array<i64: 24, 1>}, {transform_indices = @transform_3, window_bounds = array<i64: 1, 24, 96>}]} {
    %cst = arith.constant 0.000000e+00 : f32
    %0 = vector.broadcast %cst : f32 to vector<24x96xf32>
    %c0 = arith.constant 0 : index
    %c0_0 = arith.constant 0 : index
    %c0_1 = arith.constant 0 : index
    %1 = vector.load %arg1[%c0, %c0_0, %c0_1] : memref<1x24x156xbf16, #tpu.memory_space<vmem>>, vector<1x24x96xbf16>
    %2 = vector.shape_cast %1 : vector<1x24x96xbf16> to vector<24x96xbf16>
    %c0_2 = arith.constant 0 : index
    %c0_3 = arith.constant 0 : index
    %3 = vector.load %arg2[%c0_2, %c0_3] : memref<24x216xbf16, #tpu.memory_space<vmem>>, vector<24x24xbf16>
    %cst_4 = arith.constant dense<0.000000e+00> : vector<24x96xf32>
    %4 = tpu.matmul %3, %2, %cst_4 {dimension_numbers = #tpu.dot_dimension_numbers<[1], [0], [0], [1], [0, 0, 1, 1], [], []>} : vector<24x24xbf16>, vector<24x96xbf16>, vector<24x96xf32> -> vector<24x96xf32>
    %5 = arith.addf %0, %4 : vector<24x96xf32>
    %c0_5 = arith.constant 0 : index
    %c0_6 = arith.constant 0 : index
    %c2 = arith.constant 2 : index
    %6 = vector.load %arg1[%c0_5, %c0_6, %c2] : memref<1x24x156xbf16, #tpu.memory_space<vmem>>, vector<1x24x96xbf16>
    %7 = vector.shape_cast %6 : vector<1x24x96xbf16> to vector<24x96xbf16>
    %c0_7 = arith.constant 0 : index
    %c24 = arith.constant 24 : index
    %8 = vector.load %arg2[%c0_7, %c24] : memref<24x216xbf16, #tpu.memory_space<vmem>>, vector<24x24xbf16>
    %cst_8 = arith.constant dense<0.000000e+00> : vector<24x96xf32>
    %9 = tpu.matmul %8, %7, %cst_8 {dimension_numbers = #tpu.dot_dimension_numbers<[1], [0], [0], [1], [0, 0, 1, 1], [], []>} : vector<24x24xbf16>, vector<24x96xbf16>, vector<24x96xf32> -> vector<24x96xf32>
    %10 = arith.addf %5, %9 : vector<24x96xf32>
    %c0_9 = arith.constant 0 : index
    %c0_10 = arith.constant 0 : index
    %c4 = arith.constant 4 : index
    %11 = vector.load %arg1[%c0_9, %c0_10, %c4] : memref<1x24x156xbf16, #tpu.memory_space<vmem>>, vector<1x24x96xbf16>
    %12 = vector.shape_cast %11 : vector<1x24x96xbf16> to vector<24x96xbf16>
    %c0_11 = arith.constant 0 : index
    %c48 = arith.constant 48 : index
    %13 = vector.load %arg2[%c0_11, %c48] : memref<24x216xbf16, #tpu.memory_space<vmem>>, vector<24x24xbf16>
    %cst_12 = arith.constant dense<0.000000e+00> : vector<24x96xf32>
    %14 = tpu.matmul %13, %12, %cst_12 {dimension_numbers = #tpu.dot_dimension_numbers<[1], [0], [0], [1], [0, 0, 1, 1], [], []>} : vector<24x24xbf16>, vector<24x96xbf16>, vector<24x96xf32> -> vector<24x96xf32>
    %15 = arith.addf %10, %14 : vector<24x96xf32>
    %c0_13 = arith.constant 0 : index
    %c0_14 = arith.constant 0 : index
    %c24_15 = arith.constant 24 : index
    %16 = vector.load %arg1[%c0_13, %c0_14, %c24_15] : memref<1x24x156xbf16, #tpu.memory_space<vmem>>, vector<1x24x96xbf16>
    %17 = vector.shape_cast %16 : vector<1x24x96xbf16> to vector<24x96xbf16>
    %c0_16 = arith.constant 0 : index
    %c72 = arith.constant 72 : index
    %18 = vector.load %arg2[%c0_16, %c72] : memref<24x216xbf16, #tpu.memory_space<vmem>>, vector<24x24xbf16>
    %cst_17 = arith.constant dense<0.000000e+00> : vector<24x96xf32>
    %19 = tpu.matmul %18, %17, %cst_17 {dimension_numbers = #tpu.dot_dimension_numbers<[1], [0], [0], [1], [0, 0, 1, 1], [], []>} : vector<24x24xbf16>, vector<24x96xbf16>, vector<24x96xf32> -> vector<24x96xf32>
    %20 = arith.addf %15, %19 : vector<24x96xf32>
    %c0_18 = arith.constant 0 : index
    %c0_19 = arith.constant 0 : index
    %c26 = arith.constant 26 : index
    %21 = vector.load %arg1[%c0_18, %c0_19, %c26] : memref<1x24x156xbf16, #tpu.memory_space<vmem>>, vector<1x24x96xbf16>
    %22 = vector.shape_cast %21 : vector<1x24x96xbf16> to vector<24x96xbf16>
    %c0_20 = arith.constant 0 : index
    %c96 = arith.constant 96 : index
    %23 = vector.load %arg2[%c0_20, %c96] : memref<24x216xbf16, #tpu.memory_space<vmem>>, vector<24x24xbf16>
    %cst_21 = arith.constant dense<0.000000e+00> : vector<24x96xf32>
    %24 = tpu.matmul %23, %22, %cst_21 {dimension_numbers = #tpu.dot_dimension_numbers<[1], [0], [0], [1], [0, 0, 1, 1], [], []>} : vector<24x24xbf16>, vector<24x96xbf16>, vector<24x96xf32> -> vector<24x96xf32>
    %25 = arith.addf %20, %24 : vector<24x96xf32>
    %c0_22 = arith.constant 0 : index
    %c0_23 = arith.constant 0 : index
    %c28 = arith.constant 28 : index
    %26 = vector.load %arg1[%c0_22, %c0_23, %c28] : memref<1x24x156xbf16, #tpu.memory_space<vmem>>, vector<1x24x96xbf16>
    %27 = vector.shape_cast %26 : vector<1x24x96xbf16> to vector<24x96xbf16>
    %c0_24 = arith.constant 0 : index
    %c120 = arith.constant 120 : index
    %28 = vector.load %arg2[%c0_24, %c120] : memref<24x216xbf16, #tpu.memory_space<vmem>>, vector<24x24xbf16>
    %cst_25 = arith.constant dense<0.000000e+00> : vector<24x96xf32>
    %29 = tpu.matmul %28, %27, %cst_25 {dimension_numbers = #tpu.dot_dimension_numbers<[1], [0], [0], [1], [0, 0, 1, 1], [], []>} : vector<24x24xbf16>, vector<24x96xbf16>, vector<24x96xf32> -> vector<24x96xf32>
    %30 = arith.addf %25, %29 : vector<24x96xf32>
    %c0_26 = arith.constant 0 : index
    %c0_27 = arith.constant 0 : index
    %c48_28 = arith.constant 48 : index
    %31 = vector.load %arg1[%c0_26, %c0_27, %c48_28] : memref<1x24x156xbf16, #tpu.memory_space<vmem>>, vector<1x24x96xbf16>
    %32 = vector.shape_cast %31 : vector<1x24x96xbf16> to vector<24x96xbf16>
    %c0_29 = arith.constant 0 : index
    %c144 = arith.constant 144 : index
    %33 = vector.load %arg2[%c0_29, %c144] : memref<24x216xbf16, #tpu.memory_space<vmem>>, vector<24x24xbf16>
    %cst_30 = arith.constant dense<0.000000e+00> : vector<24x96xf32>
    %34 = tpu.matmul %33, %32, %cst_30 {dimension_numbers = #tpu.dot_dimension_numbers<[1], [0], [0], [1], [0, 0, 1, 1], [], []>} : vector<24x24xbf16>, vector<24x96xbf16>, vector<24x96xf32> -> vector<24x96xf32>
    %35 = arith.addf %30, %34 : vector<24x96xf32>
    %c0_31 = arith.constant 0 : index
    %c0_32 = arith.constant 0 : index
    %c50 = arith.constant 50 : index
    %36 = vector.load %arg1[%c0_31, %c0_32, %c50] : memref<1x24x156xbf16, #tpu.memory_space<vmem>>, vector<1x24x96xbf16>
    %37 = vector.shape_cast %36 : vector<1x24x96xbf16> to vector<24x96xbf16>
    %c0_33 = arith.constant 0 : index
    %c168 = arith.constant 168 : index
    %38 = vector.load %arg2[%c0_33, %c168] : memref<24x216xbf16, #tpu.memory_space<vmem>>, vector<24x24xbf16>
    %cst_34 = arith.constant dense<0.000000e+00> : vector<24x96xf32>
    %39 = tpu.matmul %38, %37, %cst_34 {dimension_numbers = #tpu.dot_dimension_numbers<[1], [0], [0], [1], [0, 0, 1, 1], [], []>} : vector<24x24xbf16>, vector<24x96xbf16>, vector<24x96xf32> -> vector<24x96xf32>
    %40 = arith.addf %35, %39 : vector<24x96xf32>
    %c0_35 = arith.constant 0 : index
    %c0_36 = arith.constant 0 : index
    %c52 = arith.constant 52 : index
    %41 = vector.load %arg1[%c0_35, %c0_36, %c52] : memref<1x24x156xbf16, #tpu.memory_space<vmem>>, vector<1x24x96xbf16>
    %42 = vector.shape_cast %41 : vector<1x24x96xbf16> to vector<24x96xbf16>
    %c0_37 = arith.constant 0 : index
    %c192 = arith.constant 192 : index
    %43 = vector.load %arg2[%c0_37, %c192] : memref<24x216xbf16, #tpu.memory_space<vmem>>, vector<24x24xbf16>
    %cst_38 = arith.constant dense<0.000000e+00> : vector<24x96xf32>
    %44 = tpu.matmul %43, %42, %cst_38 {dimension_numbers = #tpu.dot_dimension_numbers<[1], [0], [0], [1], [0, 0, 1, 1], [], []>} : vector<24x24xbf16>, vector<24x96xbf16>, vector<24x96xf32> -> vector<24x96xf32>
    %45 = arith.addf %40, %44 : vector<24x96xf32>
    %c0_39 = arith.constant 0 : index
    %c0_40 = arith.constant 0 : index
    %46 = vector.load %arg3[%c0_39, %c0_40] : memref<24x1xf32, #tpu.memory_space<vmem>>, vector<24x1xf32>
    %47 = vector.broadcast %46 : vector<24x1xf32> to vector<24x96xf32>
    %48 = arith.addf %45, %47 : vector<24x96xf32>
    %cst_41 = arith.constant 0.000000e+00 : f32
    %49 = vector.broadcast %cst_41 : f32 to vector<24x96xf32>
    %50 = arith.cmpf oge, %48, %49 : vector<24x96xf32>
    %cst_42 = arith.constant 2.000000e-01 : f32
    %51 = vector.broadcast %cst_42 : f32 to vector<24x96xf32>
    %52 = arith.mulf %51, %48 : vector<24x96xf32>
    %53 = arith.select %50, %48, %52 : vector<24x96xi1>, vector<24x96xf32>
    %54 = arith.truncf %53 : vector<24x96xf32> to vector<24x96xbf16>
    %c0_43 = arith.constant 0 : index
    %c0_44 = arith.constant 0 : index
    %c0_45 = arith.constant 0 : index
    %55 = vector.load %arg4[%c0_43, %c0_44, %c0_45] : memref<1x24x96xbf16, #tpu.memory_space<vmem>>, vector<1x24x96xbf16>
    %56 = vector.shape_cast %55 : vector<1x24x96xbf16> to vector<24x96xbf16>
    %57 = vector.shape_cast %54 : vector<24x96xbf16> to vector<1x24x96xbf16>
    tpu.vector_store %arg4[%c0_43, %c0_44, %c0_45], %57 {strides = array<i32>} : memref<1x24x96xbf16, #tpu.memory_space<vmem>>, vector<1x24x96xbf16>,
    return
  }
  func.func @transform_0(%arg0: i32) -> (i32, i32, i32) {
    %c0_i32 = arith.constant 0 : i32
    %c0_i32_0 = arith.constant 0 : i32
    %c0_i32_1 = arith.constant 0 : i32
    return %arg0, %c0_i32, %c0_i32_0 : i32, i32, i32
  }
  func.func @transform_1(%arg0: i32) -> (i32, i32) {
    %c0_i32 = arith.constant 0 : i32
    %c0_i32_0 = arith.constant 0 : i32
    %c0_i32_1 = arith.constant 0 : i32
    return %c0_i32, %c0_i32_0 : i32, i32
  }
  func.func @transform_2(%arg0: i32) -> (i32, i32) {
    %c0_i32 = arith.constant 0 : i32
    %c0_i32_0 = arith.constant 0 : i32
    %c0_i32_1 = arith.constant 0 : i32
    return %c0_i32, %c0_i32_0 : i32, i32
  }
  func.func @transform_3(%arg0: i32) -> (i32, i32, i32) {
    %c0_i32 = arith.constant 0 : i32
    %c0_i32_0 = arith.constant 0 : i32
    %c0_i32_1 = arith.constant 0 : i32
    return %arg0, %c0_i32, %c0_i32_0 : i32, i32, i32
  }
}

module attributes {stable_mosaic.version = 11 : i64} {
  func.func @_lr_conv_kernel(%arg0: i32, %arg1: memref<1x24x272xbf16, #tpu.memory_space<vmem>>, %arg2: memref<24x216xbf16, #tpu.memory_space<vmem>>, %arg3: memref<24x1xf32, #tpu.memory_space<vmem>>, %arg4: memref<1x24x128xbf16, #tpu.memory_space<vmem>>) attributes {dimension_semantics = [#tpu.dimension_semantics<parallel>], iteration_bounds = array<i64: 2>, scalar_prefetch = 0 : i64, scratch_operands = 0 : i64, tpu.core_type = #tpu.core_type<tc>, window_params = [{transform_indices = @transform_0, window_bounds = array<i64: 1, 24, 272>}, {pipeline_mode = #tpu.pipeline_mode<synchronous>, transform_indices = @transform_1, window_bounds = array<i64: 24, 216>}, {pipeline_mode = #tpu.pipeline_mode<synchronous>, transform_indices = @transform_2, window_bounds = array<i64: 24, 1>}, {transform_indices = @transform_3, window_bounds = array<i64: 1, 24, 128>}]} {
    %cst = arith.constant 0.000000e+00 : f32
    %0 = vector.broadcast %cst : f32 to vector<24x128xf32>
    %c0 = arith.constant 0 : index
    %c0_0 = arith.constant 0 : index
    %c0_1 = arith.constant 0 : index
    %1 = vector.load %arg1[%c0, %c0_0, %c0_1] : memref<1x24x272xbf16, #tpu.memory_space<vmem>>, vector<1x24x128xbf16>
    %2 = vector.shape_cast %1 : vector<1x24x128xbf16> to vector<24x128xbf16>
    %c0_2 = arith.constant 0 : index
    %c0_3 = arith.constant 0 : index
    %3 = vector.load %arg2[%c0_2, %c0_3] : memref<24x216xbf16, #tpu.memory_space<vmem>>, vector<24x24xbf16>
    %cst_4 = arith.constant dense<0.000000e+00> : vector<24x128xf32>
    %4 = tpu.matmul %3, %2, %cst_4 {dimension_numbers = #tpu.dot_dimension_numbers<[1], [0], [0], [1], [0, 0, 1, 1], [], []>} : vector<24x24xbf16>, vector<24x128xbf16>, vector<24x128xf32> -> vector<24x128xf32>
    %5 = arith.addf %0, %4 : vector<24x128xf32>
    %c0_5 = arith.constant 0 : index
    %c0_6 = arith.constant 0 : index
    %c4 = arith.constant 4 : index
    %6 = vector.load %arg1[%c0_5, %c0_6, %c4] : memref<1x24x272xbf16, #tpu.memory_space<vmem>>, vector<1x24x128xbf16>
    %7 = vector.shape_cast %6 : vector<1x24x128xbf16> to vector<24x128xbf16>
    %c0_7 = arith.constant 0 : index
    %c24 = arith.constant 24 : index
    %8 = vector.load %arg2[%c0_7, %c24] : memref<24x216xbf16, #tpu.memory_space<vmem>>, vector<24x24xbf16>
    %cst_8 = arith.constant dense<0.000000e+00> : vector<24x128xf32>
    %9 = tpu.matmul %8, %7, %cst_8 {dimension_numbers = #tpu.dot_dimension_numbers<[1], [0], [0], [1], [0, 0, 1, 1], [], []>} : vector<24x24xbf16>, vector<24x128xbf16>, vector<24x128xf32> -> vector<24x128xf32>
    %10 = arith.addf %5, %9 : vector<24x128xf32>
    %c0_9 = arith.constant 0 : index
    %c0_10 = arith.constant 0 : index
    %c8 = arith.constant 8 : index
    %11 = vector.load %arg1[%c0_9, %c0_10, %c8] : memref<1x24x272xbf16, #tpu.memory_space<vmem>>, vector<1x24x128xbf16>
    %12 = vector.shape_cast %11 : vector<1x24x128xbf16> to vector<24x128xbf16>
    %c0_11 = arith.constant 0 : index
    %c48 = arith.constant 48 : index
    %13 = vector.load %arg2[%c0_11, %c48] : memref<24x216xbf16, #tpu.memory_space<vmem>>, vector<24x24xbf16>
    %cst_12 = arith.constant dense<0.000000e+00> : vector<24x128xf32>
    %14 = tpu.matmul %13, %12, %cst_12 {dimension_numbers = #tpu.dot_dimension_numbers<[1], [0], [0], [1], [0, 0, 1, 1], [], []>} : vector<24x24xbf16>, vector<24x128xbf16>, vector<24x128xf32> -> vector<24x128xf32>
    %15 = arith.addf %10, %14 : vector<24x128xf32>
    %c0_13 = arith.constant 0 : index
    %c0_14 = arith.constant 0 : index
    %c64 = arith.constant 64 : index
    %16 = vector.load %arg1[%c0_13, %c0_14, %c64] : memref<1x24x272xbf16, #tpu.memory_space<vmem>>, vector<1x24x128xbf16>
    %17 = vector.shape_cast %16 : vector<1x24x128xbf16> to vector<24x128xbf16>
    %c0_15 = arith.constant 0 : index
    %c72 = arith.constant 72 : index
    %18 = vector.load %arg2[%c0_15, %c72] : memref<24x216xbf16, #tpu.memory_space<vmem>>, vector<24x24xbf16>
    %cst_16 = arith.constant dense<0.000000e+00> : vector<24x128xf32>
    %19 = tpu.matmul %18, %17, %cst_16 {dimension_numbers = #tpu.dot_dimension_numbers<[1], [0], [0], [1], [0, 0, 1, 1], [], []>} : vector<24x24xbf16>, vector<24x128xbf16>, vector<24x128xf32> -> vector<24x128xf32>
    %20 = arith.addf %15, %19 : vector<24x128xf32>
    %c0_17 = arith.constant 0 : index
    %c0_18 = arith.constant 0 : index
    %c68 = arith.constant 68 : index
    %21 = vector.load %arg1[%c0_17, %c0_18, %c68] : memref<1x24x272xbf16, #tpu.memory_space<vmem>>, vector<1x24x128xbf16>
    %22 = vector.shape_cast %21 : vector<1x24x128xbf16> to vector<24x128xbf16>
    %c0_19 = arith.constant 0 : index
    %c96 = arith.constant 96 : index
    %23 = vector.load %arg2[%c0_19, %c96] : memref<24x216xbf16, #tpu.memory_space<vmem>>, vector<24x24xbf16>
    %cst_20 = arith.constant dense<0.000000e+00> : vector<24x128xf32>
    %24 = tpu.matmul %23, %22, %cst_20 {dimension_numbers = #tpu.dot_dimension_numbers<[1], [0], [0], [1], [0, 0, 1, 1], [], []>} : vector<24x24xbf16>, vector<24x128xbf16>, vector<24x128xf32> -> vector<24x128xf32>
    %25 = arith.addf %20, %24 : vector<24x128xf32>
    %c0_21 = arith.constant 0 : index
    %c0_22 = arith.constant 0 : index
    %c72_23 = arith.constant 72 : index
    %26 = vector.load %arg1[%c0_21, %c0_22, %c72_23] : memref<1x24x272xbf16, #tpu.memory_space<vmem>>, vector<1x24x128xbf16>
    %27 = vector.shape_cast %26 : vector<1x24x128xbf16> to vector<24x128xbf16>
    %c0_24 = arith.constant 0 : index
    %c120 = arith.constant 120 : index
    %28 = vector.load %arg2[%c0_24, %c120] : memref<24x216xbf16, #tpu.memory_space<vmem>>, vector<24x24xbf16>
    %cst_25 = arith.constant dense<0.000000e+00> : vector<24x128xf32>
    %29 = tpu.matmul %28, %27, %cst_25 {dimension_numbers = #tpu.dot_dimension_numbers<[1], [0], [0], [1], [0, 0, 1, 1], [], []>} : vector<24x24xbf16>, vector<24x128xbf16>, vector<24x128xf32> -> vector<24x128xf32>
    %30 = arith.addf %25, %29 : vector<24x128xf32>
    %c0_26 = arith.constant 0 : index
    %c0_27 = arith.constant 0 : index
    %c128 = arith.constant 128 : index
    %31 = vector.load %arg1[%c0_26, %c0_27, %c128] : memref<1x24x272xbf16, #tpu.memory_space<vmem>>, vector<1x24x128xbf16>
    %32 = vector.shape_cast %31 : vector<1x24x128xbf16> to vector<24x128xbf16>
    %c0_28 = arith.constant 0 : index
    %c144 = arith.constant 144 : index
    %33 = vector.load %arg2[%c0_28, %c144] : memref<24x216xbf16, #tpu.memory_space<vmem>>, vector<24x24xbf16>
    %cst_29 = arith.constant dense<0.000000e+00> : vector<24x128xf32>
    %34 = tpu.matmul %33, %32, %cst_29 {dimension_numbers = #tpu.dot_dimension_numbers<[1], [0], [0], [1], [0, 0, 1, 1], [], []>} : vector<24x24xbf16>, vector<24x128xbf16>, vector<24x128xf32> -> vector<24x128xf32>
    %35 = arith.addf %30, %34 : vector<24x128xf32>
    %c0_30 = arith.constant 0 : index
    %c0_31 = arith.constant 0 : index
    %c132 = arith.constant 132 : index
    %36 = vector.load %arg1[%c0_30, %c0_31, %c132] : memref<1x24x272xbf16, #tpu.memory_space<vmem>>, vector<1x24x128xbf16>
    %37 = vector.shape_cast %36 : vector<1x24x128xbf16> to vector<24x128xbf16>
    %c0_32 = arith.constant 0 : index
    %c168 = arith.constant 168 : index
    %38 = vector.load %arg2[%c0_32, %c168] : memref<24x216xbf16, #tpu.memory_space<vmem>>, vector<24x24xbf16>
    %cst_33 = arith.constant dense<0.000000e+00> : vector<24x128xf32>
    %39 = tpu.matmul %38, %37, %cst_33 {dimension_numbers = #tpu.dot_dimension_numbers<[1], [0], [0], [1], [0, 0, 1, 1], [], []>} : vector<24x24xbf16>, vector<24x128xbf16>, vector<24x128xf32> -> vector<24x128xf32>
    %40 = arith.addf %35, %39 : vector<24x128xf32>
    %c0_34 = arith.constant 0 : index
    %c0_35 = arith.constant 0 : index
    %c136 = arith.constant 136 : index
    %41 = vector.load %arg1[%c0_34, %c0_35, %c136] : memref<1x24x272xbf16, #tpu.memory_space<vmem>>, vector<1x24x128xbf16>
    %42 = vector.shape_cast %41 : vector<1x24x128xbf16> to vector<24x128xbf16>
    %c0_36 = arith.constant 0 : index
    %c192 = arith.constant 192 : index
    %43 = vector.load %arg2[%c0_36, %c192] : memref<24x216xbf16, #tpu.memory_space<vmem>>, vector<24x24xbf16>
    %cst_37 = arith.constant dense<0.000000e+00> : vector<24x128xf32>
    %44 = tpu.matmul %43, %42, %cst_37 {dimension_numbers = #tpu.dot_dimension_numbers<[1], [0], [0], [1], [0, 0, 1, 1], [], []>} : vector<24x24xbf16>, vector<24x128xbf16>, vector<24x128xf32> -> vector<24x128xf32>
    %45 = arith.addf %40, %44 : vector<24x128xf32>
    %c0_38 = arith.constant 0 : index
    %c0_39 = arith.constant 0 : index
    %46 = vector.load %arg3[%c0_38, %c0_39] : memref<24x1xf32, #tpu.memory_space<vmem>>, vector<24x1xf32>
    %47 = vector.broadcast %46 : vector<24x1xf32> to vector<24x128xf32>
    %48 = arith.addf %45, %47 : vector<24x128xf32>
    %cst_40 = arith.constant 0.000000e+00 : f32
    %49 = vector.broadcast %cst_40 : f32 to vector<24x128xf32>
    %50 = arith.cmpf oge, %48, %49 : vector<24x128xf32>
    %cst_41 = arith.constant 2.000000e-01 : f32
    %51 = vector.broadcast %cst_41 : f32 to vector<24x128xf32>
    %52 = arith.mulf %51, %48 : vector<24x128xf32>
    %53 = arith.select %50, %48, %52 : vector<24x128xi1>, vector<24x128xf32>
    %54 = arith.truncf %53 : vector<24x128xf32> to vector<24x128xbf16>
    %c0_42 = arith.constant 0 : index
    %c0_43 = arith.constant 0 : index
    %c0_44 = arith.constant 0 : index
    %55 = vector.load %arg4[%c0_42, %c0_43, %c0_44] : memref<1x24x128xbf16, #tpu.memory_space<vmem>>, vector<1x24x128xbf16>
    %56 = vector.shape_cast %55 : vector<1x24x128xbf16> to vector<24x128xbf16>
    %57 = vector.shape_cast %54 : vector<24x128xbf16> to vector<1x24x128xbf16>
    tpu.vector_store %arg4[%c0_42, %c0_43, %c0_44], %57 {strides = array<i32>} : memref<1x24x128xbf16, #tpu.memory_space<vmem>>, vector<1x24x128xbf16>,
    return
  }
  func.func @transform_0(%arg0: i32) -> (i32, i32, i32) {
    %c0_i32 = arith.constant 0 : i32
    %c0_i32_0 = arith.constant 0 : i32
    %c0_i32_1 = arith.constant 0 : i32
    return %arg0, %c0_i32, %c0_i32_0 : i32, i32, i32
  }
  func.func @transform_1(%arg0: i32) -> (i32, i32) {
    %c0_i32 = arith.constant 0 : i32
    %c0_i32_0 = arith.constant 0 : i32
    %c0_i32_1 = arith.constant 0 : i32
    return %c0_i32, %c0_i32_0 : i32, i32
  }
  func.func @transform_2(%arg0: i32) -> (i32, i32) {
    %c0_i32 = arith.constant 0 : i32
    %c0_i32_0 = arith.constant 0 : i32
    %c0_i32_1 = arith.constant 0 : i32
    return %c0_i32, %c0_i32_0 : i32, i32
  }
  func.func @transform_3(%arg0: i32) -> (i32, i32, i32) {
    %c0_i32 = arith.constant 0 : i32
    %c0_i32_0 = arith.constant 0 : i32
    %c0_i32_1 = arith.constant 0 : i32
    return %arg0, %c0_i32, %c0_i32_0 : i32, i32, i32
  }
}

module attributes {stable_mosaic.version = 11 : i64} {
  func.func @_lr_conv_kernel(%arg0: i32, %arg1: memref<1x24x600xbf16, #tpu.memory_space<vmem>>, %arg2: memref<24x216xbf16, #tpu.memory_space<vmem>>, %arg3: memref<24x1xf32, #tpu.memory_space<vmem>>, %arg4: memref<1x24x192xbf16, #tpu.memory_space<vmem>>) attributes {dimension_semantics = [#tpu.dimension_semantics<parallel>], iteration_bounds = array<i64: 2>, scalar_prefetch = 0 : i64, scratch_operands = 0 : i64, tpu.core_type = #tpu.core_type<tc>, window_params = [{transform_indices = @transform_0, window_bounds = array<i64: 1, 24, 600>}, {pipeline_mode = #tpu.pipeline_mode<synchronous>, transform_indices = @transform_1, window_bounds = array<i64: 24, 216>}, {pipeline_mode = #tpu.pipeline_mode<synchronous>, transform_indices = @transform_2, window_bounds = array<i64: 24, 1>}, {transform_indices = @transform_3, window_bounds = array<i64: 1, 24, 192>}]} {
    %cst = arith.constant 0.000000e+00 : f32
    %0 = vector.broadcast %cst : f32 to vector<24x192xf32>
    %c0 = arith.constant 0 : index
    %c0_0 = arith.constant 0 : index
    %c0_1 = arith.constant 0 : index
    %1 = vector.load %arg1[%c0, %c0_0, %c0_1] : memref<1x24x600xbf16, #tpu.memory_space<vmem>>, vector<1x24x192xbf16>
    %2 = vector.shape_cast %1 : vector<1x24x192xbf16> to vector<24x192xbf16>
    %c0_2 = arith.constant 0 : index
    %c0_3 = arith.constant 0 : index
    %3 = vector.load %arg2[%c0_2, %c0_3] : memref<24x216xbf16, #tpu.memory_space<vmem>>, vector<24x24xbf16>
    %cst_4 = arith.constant dense<0.000000e+00> : vector<24x192xf32>
    %4 = tpu.matmul %3, %2, %cst_4 {dimension_numbers = #tpu.dot_dimension_numbers<[1], [0], [0], [1], [0, 0, 1, 1], [], []>} : vector<24x24xbf16>, vector<24x192xbf16>, vector<24x192xf32> -> vector<24x192xf32>
    %5 = arith.addf %0, %4 : vector<24x192xf32>
    %c0_5 = arith.constant 0 : index
    %c0_6 = arith.constant 0 : index
    %c8 = arith.constant 8 : index
    %6 = vector.load %arg1[%c0_5, %c0_6, %c8] : memref<1x24x600xbf16, #tpu.memory_space<vmem>>, vector<1x24x192xbf16>
    %7 = vector.shape_cast %6 : vector<1x24x192xbf16> to vector<24x192xbf16>
    %c0_7 = arith.constant 0 : index
    %c24 = arith.constant 24 : index
    %8 = vector.load %arg2[%c0_7, %c24] : memref<24x216xbf16, #tpu.memory_space<vmem>>, vector<24x24xbf16>
    %cst_8 = arith.constant dense<0.000000e+00> : vector<24x192xf32>
    %9 = tpu.matmul %8, %7, %cst_8 {dimension_numbers = #tpu.dot_dimension_numbers<[1], [0], [0], [1], [0, 0, 1, 1], [], []>} : vector<24x24xbf16>, vector<24x192xbf16>, vector<24x192xf32> -> vector<24x192xf32>
    %10 = arith.addf %5, %9 : vector<24x192xf32>
    %c0_9 = arith.constant 0 : index
    %c0_10 = arith.constant 0 : index
    %c16 = arith.constant 16 : index
    %11 = vector.load %arg1[%c0_9, %c0_10, %c16] : memref<1x24x600xbf16, #tpu.memory_space<vmem>>, vector<1x24x192xbf16>
    %12 = vector.shape_cast %11 : vector<1x24x192xbf16> to vector<24x192xbf16>
    %c0_11 = arith.constant 0 : index
    %c48 = arith.constant 48 : index
    %13 = vector.load %arg2[%c0_11, %c48] : memref<24x216xbf16, #tpu.memory_space<vmem>>, vector<24x24xbf16>
    %cst_12 = arith.constant dense<0.000000e+00> : vector<24x192xf32>
    %14 = tpu.matmul %13, %12, %cst_12 {dimension_numbers = #tpu.dot_dimension_numbers<[1], [0], [0], [1], [0, 0, 1, 1], [], []>} : vector<24x24xbf16>, vector<24x192xbf16>, vector<24x192xf32> -> vector<24x192xf32>
    %15 = arith.addf %10, %14 : vector<24x192xf32>
    %c0_13 = arith.constant 0 : index
    %c0_14 = arith.constant 0 : index
    %c192 = arith.constant 192 : index
    %16 = vector.load %arg1[%c0_13, %c0_14, %c192] : memref<1x24x600xbf16, #tpu.memory_space<vmem>>, vector<1x24x192xbf16>
    %17 = vector.shape_cast %16 : vector<1x24x192xbf16> to vector<24x192xbf16>
    %c0_15 = arith.constant 0 : index
    %c72 = arith.constant 72 : index
    %18 = vector.load %arg2[%c0_15, %c72] : memref<24x216xbf16, #tpu.memory_space<vmem>>, vector<24x24xbf16>
    %cst_16 = arith.constant dense<0.000000e+00> : vector<24x192xf32>
    %19 = tpu.matmul %18, %17, %cst_16 {dimension_numbers = #tpu.dot_dimension_numbers<[1], [0], [0], [1], [0, 0, 1, 1], [], []>} : vector<24x24xbf16>, vector<24x192xbf16>, vector<24x192xf32> -> vector<24x192xf32>
    %20 = arith.addf %15, %19 : vector<24x192xf32>
    %c0_17 = arith.constant 0 : index
    %c0_18 = arith.constant 0 : index
    %c200 = arith.constant 200 : index
    %21 = vector.load %arg1[%c0_17, %c0_18, %c200] : memref<1x24x600xbf16, #tpu.memory_space<vmem>>, vector<1x24x192xbf16>
    %22 = vector.shape_cast %21 : vector<1x24x192xbf16> to vector<24x192xbf16>
    %c0_19 = arith.constant 0 : index
    %c96 = arith.constant 96 : index
    %23 = vector.load %arg2[%c0_19, %c96] : memref<24x216xbf16, #tpu.memory_space<vmem>>, vector<24x24xbf16>
    %cst_20 = arith.constant dense<0.000000e+00> : vector<24x192xf32>
    %24 = tpu.matmul %23, %22, %cst_20 {dimension_numbers = #tpu.dot_dimension_numbers<[1], [0], [0], [1], [0, 0, 1, 1], [], []>} : vector<24x24xbf16>, vector<24x192xbf16>, vector<24x192xf32> -> vector<24x192xf32>
    %25 = arith.addf %20, %24 : vector<24x192xf32>
    %c0_21 = arith.constant 0 : index
    %c0_22 = arith.constant 0 : index
    %c208 = arith.constant 208 : index
    %26 = vector.load %arg1[%c0_21, %c0_22, %c208] : memref<1x24x600xbf16, #tpu.memory_space<vmem>>, vector<1x24x192xbf16>
    %27 = vector.shape_cast %26 : vector<1x24x192xbf16> to vector<24x192xbf16>
    %c0_23 = arith.constant 0 : index
    %c120 = arith.constant 120 : index
    %28 = vector.load %arg2[%c0_23, %c120] : memref<24x216xbf16, #tpu.memory_space<vmem>>, vector<24x24xbf16>
    %cst_24 = arith.constant dense<0.000000e+00> : vector<24x192xf32>
    %29 = tpu.matmul %28, %27, %cst_24 {dimension_numbers = #tpu.dot_dimension_numbers<[1], [0], [0], [1], [0, 0, 1, 1], [], []>} : vector<24x24xbf16>, vector<24x192xbf16>, vector<24x192xf32> -> vector<24x192xf32>
    %30 = arith.addf %25, %29 : vector<24x192xf32>
    %c0_25 = arith.constant 0 : index
    %c0_26 = arith.constant 0 : index
    %c384 = arith.constant 384 : index
    %31 = vector.load %arg1[%c0_25, %c0_26, %c384] : memref<1x24x600xbf16, #tpu.memory_space<vmem>>, vector<1x24x192xbf16>
    %32 = vector.shape_cast %31 : vector<1x24x192xbf16> to vector<24x192xbf16>
    %c0_27 = arith.constant 0 : index
    %c144 = arith.constant 144 : index
    %33 = vector.load %arg2[%c0_27, %c144] : memref<24x216xbf16, #tpu.memory_space<vmem>>, vector<24x24xbf16>
    %cst_28 = arith.constant dense<0.000000e+00> : vector<24x192xf32>
    %34 = tpu.matmul %33, %32, %cst_28 {dimension_numbers = #tpu.dot_dimension_numbers<[1], [0], [0], [1], [0, 0, 1, 1], [], []>} : vector<24x24xbf16>, vector<24x192xbf16>, vector<24x192xf32> -> vector<24x192xf32>
    %35 = arith.addf %30, %34 : vector<24x192xf32>
    %c0_29 = arith.constant 0 : index
    %c0_30 = arith.constant 0 : index
    %c392 = arith.constant 392 : index
    %36 = vector.load %arg1[%c0_29, %c0_30, %c392] : memref<1x24x600xbf16, #tpu.memory_space<vmem>>, vector<1x24x192xbf16>
    %37 = vector.shape_cast %36 : vector<1x24x192xbf16> to vector<24x192xbf16>
    %c0_31 = arith.constant 0 : index
    %c168 = arith.constant 168 : index
    %38 = vector.load %arg2[%c0_31, %c168] : memref<24x216xbf16, #tpu.memory_space<vmem>>, vector<24x24xbf16>
    %cst_32 = arith.constant dense<0.000000e+00> : vector<24x192xf32>
    %39 = tpu.matmul %38, %37, %cst_32 {dimension_numbers = #tpu.dot_dimension_numbers<[1], [0], [0], [1], [0, 0, 1, 1], [], []>} : vector<24x24xbf16>, vector<24x192xbf16>, vector<24x192xf32> -> vector<24x192xf32>
    %40 = arith.addf %35, %39 : vector<24x192xf32>
    %c0_33 = arith.constant 0 : index
    %c0_34 = arith.constant 0 : index
    %c400 = arith.constant 400 : index
    %41 = vector.load %arg1[%c0_33, %c0_34, %c400] : memref<1x24x600xbf16, #tpu.memory_space<vmem>>, vector<1x24x192xbf16>
    %42 = vector.shape_cast %41 : vector<1x24x192xbf16> to vector<24x192xbf16>
    %c0_35 = arith.constant 0 : index
    %c192_36 = arith.constant 192 : index
    %43 = vector.load %arg2[%c0_35, %c192_36] : memref<24x216xbf16, #tpu.memory_space<vmem>>, vector<24x24xbf16>
    %cst_37 = arith.constant dense<0.000000e+00> : vector<24x192xf32>
    %44 = tpu.matmul %43, %42, %cst_37 {dimension_numbers = #tpu.dot_dimension_numbers<[1], [0], [0], [1], [0, 0, 1, 1], [], []>} : vector<24x24xbf16>, vector<24x192xbf16>, vector<24x192xf32> -> vector<24x192xf32>
    %45 = arith.addf %40, %44 : vector<24x192xf32>
    %c0_38 = arith.constant 0 : index
    %c0_39 = arith.constant 0 : index
    %46 = vector.load %arg3[%c0_38, %c0_39] : memref<24x1xf32, #tpu.memory_space<vmem>>, vector<24x1xf32>
    %47 = vector.broadcast %46 : vector<24x1xf32> to vector<24x192xf32>
    %48 = arith.addf %45, %47 : vector<24x192xf32>
    %cst_40 = arith.constant 0.000000e+00 : f32
    %49 = vector.broadcast %cst_40 : f32 to vector<24x192xf32>
    %50 = arith.cmpf oge, %48, %49 : vector<24x192xf32>
    %cst_41 = arith.constant 2.000000e-01 : f32
    %51 = vector.broadcast %cst_41 : f32 to vector<24x192xf32>
    %52 = arith.mulf %51, %48 : vector<24x192xf32>
    %53 = arith.select %50, %48, %52 : vector<24x192xi1>, vector<24x192xf32>
    %54 = arith.truncf %53 : vector<24x192xf32> to vector<24x192xbf16>
    %c0_42 = arith.constant 0 : index
    %c0_43 = arith.constant 0 : index
    %c0_44 = arith.constant 0 : index
    %55 = vector.load %arg4[%c0_42, %c0_43, %c0_44] : memref<1x24x192xbf16, #tpu.memory_space<vmem>>, vector<1x24x192xbf16>
    %56 = vector.shape_cast %55 : vector<1x24x192xbf16> to vector<24x192xbf16>
    %57 = vector.shape_cast %54 : vector<24x192xbf16> to vector<1x24x192xbf16>
    tpu.vector_store %arg4[%c0_42, %c0_43, %c0_44], %57 {strides = array<i32>} : memref<1x24x192xbf16, #tpu.memory_space<vmem>>, vector<1x24x192xbf16>,
    return
  }
  func.func @transform_0(%arg0: i32) -> (i32, i32, i32) {
    %c0_i32 = arith.constant 0 : i32
    %c0_i32_0 = arith.constant 0 : i32
    %c0_i32_1 = arith.constant 0 : i32
    return %arg0, %c0_i32, %c0_i32_0 : i32, i32, i32
  }
  func.func @transform_1(%arg0: i32) -> (i32, i32) {
    %c0_i32 = arith.constant 0 : i32
    %c0_i32_0 = arith.constant 0 : i32
    %c0_i32_1 = arith.constant 0 : i32
    return %c0_i32, %c0_i32_0 : i32, i32
  }
  func.func @transform_2(%arg0: i32) -> (i32, i32) {
    %c0_i32 = arith.constant 0 : i32
    %c0_i32_0 = arith.constant 0 : i32
    %c0_i32_1 = arith.constant 0 : i32
    return %c0_i32, %c0_i32_0 : i32, i32
  }
  func.func @transform_3(%arg0: i32) -> (i32, i32, i32) {
    %c0_i32 = arith.constant 0 : i32
    %c0_i32_0 = arith.constant 0 : i32
    %c0_i32_1 = arith.constant 0 : i32
    return %arg0, %c0_i32, %c0_i32_0 : i32, i32, i32
  }
}

module attributes {stable_mosaic.version = 11 : i64} {
  func.func @_lr_conv_kernel(%arg0: i32, %arg1: memref<1x24x1640xbf16, #tpu.memory_space<vmem>>, %arg2: memref<24x216xbf16, #tpu.memory_space<vmem>>, %arg3: memref<24x1xf32, #tpu.memory_space<vmem>>, %arg4: memref<1x24x320xbf16, #tpu.memory_space<vmem>>) attributes {dimension_semantics = [#tpu.dimension_semantics<parallel>], iteration_bounds = array<i64: 2>, scalar_prefetch = 0 : i64, scratch_operands = 0 : i64, tpu.core_type = #tpu.core_type<tc>, window_params = [{transform_indices = @transform_0, window_bounds = array<i64: 1, 24, 1640>}, {pipeline_mode = #tpu.pipeline_mode<synchronous>, transform_indices = @transform_1, window_bounds = array<i64: 24, 216>}, {pipeline_mode = #tpu.pipeline_mode<synchronous>, transform_indices = @transform_2, window_bounds = array<i64: 24, 1>}, {transform_indices = @transform_3, window_bounds = array<i64: 1, 24, 320>}]} {
    %cst = arith.constant 0.000000e+00 : f32
    %0 = vector.broadcast %cst : f32 to vector<24x320xf32>
    %c0 = arith.constant 0 : index
    %c0_0 = arith.constant 0 : index
    %c0_1 = arith.constant 0 : index
    %1 = vector.load %arg1[%c0, %c0_0, %c0_1] : memref<1x24x1640xbf16, #tpu.memory_space<vmem>>, vector<1x24x320xbf16>
    %2 = vector.shape_cast %1 : vector<1x24x320xbf16> to vector<24x320xbf16>
    %c0_2 = arith.constant 0 : index
    %c0_3 = arith.constant 0 : index
    %3 = vector.load %arg2[%c0_2, %c0_3] : memref<24x216xbf16, #tpu.memory_space<vmem>>, vector<24x24xbf16>
    %cst_4 = arith.constant dense<0.000000e+00> : vector<24x320xf32>
    %4 = tpu.matmul %3, %2, %cst_4 {dimension_numbers = #tpu.dot_dimension_numbers<[1], [0], [0], [1], [0, 0, 1, 1], [], []>} : vector<24x24xbf16>, vector<24x320xbf16>, vector<24x320xf32> -> vector<24x320xf32>
    %5 = arith.addf %0, %4 : vector<24x320xf32>
    %c0_5 = arith.constant 0 : index
    %c0_6 = arith.constant 0 : index
    %c16 = arith.constant 16 : index
    %6 = vector.load %arg1[%c0_5, %c0_6, %c16] : memref<1x24x1640xbf16, #tpu.memory_space<vmem>>, vector<1x24x320xbf16>
    %7 = vector.shape_cast %6 : vector<1x24x320xbf16> to vector<24x320xbf16>
    %c0_7 = arith.constant 0 : index
    %c24 = arith.constant 24 : index
    %8 = vector.load %arg2[%c0_7, %c24] : memref<24x216xbf16, #tpu.memory_space<vmem>>, vector<24x24xbf16>
    %cst_8 = arith.constant dense<0.000000e+00> : vector<24x320xf32>
    %9 = tpu.matmul %8, %7, %cst_8 {dimension_numbers = #tpu.dot_dimension_numbers<[1], [0], [0], [1], [0, 0, 1, 1], [], []>} : vector<24x24xbf16>, vector<24x320xbf16>, vector<24x320xf32> -> vector<24x320xf32>
    %10 = arith.addf %5, %9 : vector<24x320xf32>
    %c0_9 = arith.constant 0 : index
    %c0_10 = arith.constant 0 : index
    %c32 = arith.constant 32 : index
    %11 = vector.load %arg1[%c0_9, %c0_10, %c32] : memref<1x24x1640xbf16, #tpu.memory_space<vmem>>, vector<1x24x320xbf16>
    %12 = vector.shape_cast %11 : vector<1x24x320xbf16> to vector<24x320xbf16>
    %c0_11 = arith.constant 0 : index
    %c48 = arith.constant 48 : index
    %13 = vector.load %arg2[%c0_11, %c48] : memref<24x216xbf16, #tpu.memory_space<vmem>>, vector<24x24xbf16>
    %cst_12 = arith.constant dense<0.000000e+00> : vector<24x320xf32>
    %14 = tpu.matmul %13, %12, %cst_12 {dimension_numbers = #tpu.dot_dimension_numbers<[1], [0], [0], [1], [0, 0, 1, 1], [], []>} : vector<24x24xbf16>, vector<24x320xbf16>, vector<24x320xf32> -> vector<24x320xf32>
    %15 = arith.addf %10, %14 : vector<24x320xf32>
    %c0_13 = arith.constant 0 : index
    %c0_14 = arith.constant 0 : index
    %c640 = arith.constant 640 : index
    %16 = vector.load %arg1[%c0_13, %c0_14, %c640] : memref<1x24x1640xbf16, #tpu.memory_space<vmem>>, vector<1x24x320xbf16>
    %17 = vector.shape_cast %16 : vector<1x24x320xbf16> to vector<24x320xbf16>
    %c0_15 = arith.constant 0 : index
    %c72 = arith.constant 72 : index
    %18 = vector.load %arg2[%c0_15, %c72] : memref<24x216xbf16, #tpu.memory_space<vmem>>, vector<24x24xbf16>
    %cst_16 = arith.constant dense<0.000000e+00> : vector<24x320xf32>
    %19 = tpu.matmul %18, %17, %cst_16 {dimension_numbers = #tpu.dot_dimension_numbers<[1], [0], [0], [1], [0, 0, 1, 1], [], []>} : vector<24x24xbf16>, vector<24x320xbf16>, vector<24x320xf32> -> vector<24x320xf32>
    %20 = arith.addf %15, %19 : vector<24x320xf32>
    %c0_17 = arith.constant 0 : index
    %c0_18 = arith.constant 0 : index
    %c656 = arith.constant 656 : index
    %21 = vector.load %arg1[%c0_17, %c0_18, %c656] : memref<1x24x1640xbf16, #tpu.memory_space<vmem>>, vector<1x24x320xbf16>
    %22 = vector.shape_cast %21 : vector<1x24x320xbf16> to vector<24x320xbf16>
    %c0_19 = arith.constant 0 : index
    %c96 = arith.constant 96 : index
    %23 = vector.load %arg2[%c0_19, %c96] : memref<24x216xbf16, #tpu.memory_space<vmem>>, vector<24x24xbf16>
    %cst_20 = arith.constant dense<0.000000e+00> : vector<24x320xf32>
    %24 = tpu.matmul %23, %22, %cst_20 {dimension_numbers = #tpu.dot_dimension_numbers<[1], [0], [0], [1], [0, 0, 1, 1], [], []>} : vector<24x24xbf16>, vector<24x320xbf16>, vector<24x320xf32> -> vector<24x320xf32>
    %25 = arith.addf %20, %24 : vector<24x320xf32>
    %c0_21 = arith.constant 0 : index
    %c0_22 = arith.constant 0 : index
    %c672 = arith.constant 672 : index
    %26 = vector.load %arg1[%c0_21, %c0_22, %c672] : memref<1x24x1640xbf16, #tpu.memory_space<vmem>>, vector<1x24x320xbf16>
    %27 = vector.shape_cast %26 : vector<1x24x320xbf16> to vector<24x320xbf16>
    %c0_23 = arith.constant 0 : index
    %c120 = arith.constant 120 : index
    %28 = vector.load %arg2[%c0_23, %c120] : memref<24x216xbf16, #tpu.memory_space<vmem>>, vector<24x24xbf16>
    %cst_24 = arith.constant dense<0.000000e+00> : vector<24x320xf32>
    %29 = tpu.matmul %28, %27, %cst_24 {dimension_numbers = #tpu.dot_dimension_numbers<[1], [0], [0], [1], [0, 0, 1, 1], [], []>} : vector<24x24xbf16>, vector<24x320xbf16>, vector<24x320xf32> -> vector<24x320xf32>
    %30 = arith.addf %25, %29 : vector<24x320xf32>
    %c0_25 = arith.constant 0 : index
    %c0_26 = arith.constant 0 : index
    %c1280 = arith.constant 1280 : index
    %31 = vector.load %arg1[%c0_25, %c0_26, %c1280] : memref<1x24x1640xbf16, #tpu.memory_space<vmem>>, vector<1x24x320xbf16>
    %32 = vector.shape_cast %31 : vector<1x24x320xbf16> to vector<24x320xbf16>
    %c0_27 = arith.constant 0 : index
    %c144 = arith.constant 144 : index
    %33 = vector.load %arg2[%c0_27, %c144] : memref<24x216xbf16, #tpu.memory_space<vmem>>, vector<24x24xbf16>
    %cst_28 = arith.constant dense<0.000000e+00> : vector<24x320xf32>
    %34 = tpu.matmul %33, %32, %cst_28 {dimension_numbers = #tpu.dot_dimension_numbers<[1], [0], [0], [1], [0, 0, 1, 1], [], []>} : vector<24x24xbf16>, vector<24x320xbf16>, vector<24x320xf32> -> vector<24x320xf32>
    %35 = arith.addf %30, %34 : vector<24x320xf32>
    %c0_29 = arith.constant 0 : index
    %c0_30 = arith.constant 0 : index
    %c1296 = arith.constant 1296 : index
    %36 = vector.load %arg1[%c0_29, %c0_30, %c1296] : memref<1x24x1640xbf16, #tpu.memory_space<vmem>>, vector<1x24x320xbf16>
    %37 = vector.shape_cast %36 : vector<1x24x320xbf16> to vector<24x320xbf16>
    %c0_31 = arith.constant 0 : index
    %c168 = arith.constant 168 : index
    %38 = vector.load %arg2[%c0_31, %c168] : memref<24x216xbf16, #tpu.memory_space<vmem>>, vector<24x24xbf16>
    %cst_32 = arith.constant dense<0.000000e+00> : vector<24x320xf32>
    %39 = tpu.matmul %38, %37, %cst_32 {dimension_numbers = #tpu.dot_dimension_numbers<[1], [0], [0], [1], [0, 0, 1, 1], [], []>} : vector<24x24xbf16>, vector<24x320xbf16>, vector<24x320xf32> -> vector<24x320xf32>
    %40 = arith.addf %35, %39 : vector<24x320xf32>
    %c0_33 = arith.constant 0 : index
    %c0_34 = arith.constant 0 : index
    %c1312 = arith.constant 1312 : index
    %41 = vector.load %arg1[%c0_33, %c0_34, %c1312] : memref<1x24x1640xbf16, #tpu.memory_space<vmem>>, vector<1x24x320xbf16>
    %42 = vector.shape_cast %41 : vector<1x24x320xbf16> to vector<24x320xbf16>
    %c0_35 = arith.constant 0 : index
    %c192 = arith.constant 192 : index
    %43 = vector.load %arg2[%c0_35, %c192] : memref<24x216xbf16, #tpu.memory_space<vmem>>, vector<24x24xbf16>
    %cst_36 = arith.constant dense<0.000000e+00> : vector<24x320xf32>
    %44 = tpu.matmul %43, %42, %cst_36 {dimension_numbers = #tpu.dot_dimension_numbers<[1], [0], [0], [1], [0, 0, 1, 1], [], []>} : vector<24x24xbf16>, vector<24x320xbf16>, vector<24x320xf32> -> vector<24x320xf32>
    %45 = arith.addf %40, %44 : vector<24x320xf32>
    %c0_37 = arith.constant 0 : index
    %c0_38 = arith.constant 0 : index
    %46 = vector.load %arg3[%c0_37, %c0_38] : memref<24x1xf32, #tpu.memory_space<vmem>>, vector<24x1xf32>
    %47 = vector.broadcast %46 : vector<24x1xf32> to vector<24x320xf32>
    %48 = arith.addf %45, %47 : vector<24x320xf32>
    %cst_39 = arith.constant 0.000000e+00 : f32
    %49 = vector.broadcast %cst_39 : f32 to vector<24x320xf32>
    %50 = arith.cmpf oge, %48, %49 : vector<24x320xf32>
    %cst_40 = arith.constant 2.000000e-01 : f32
    %51 = vector.broadcast %cst_40 : f32 to vector<24x320xf32>
    %52 = arith.mulf %51, %48 : vector<24x320xf32>
    %53 = arith.select %50, %48, %52 : vector<24x320xi1>, vector<24x320xf32>
    %54 = arith.truncf %53 : vector<24x320xf32> to vector<24x320xbf16>
    %c0_41 = arith.constant 0 : index
    %c0_42 = arith.constant 0 : index
    %c0_43 = arith.constant 0 : index
    %55 = vector.load %arg4[%c0_41, %c0_42, %c0_43] : memref<1x24x320xbf16, #tpu.memory_space<vmem>>, vector<1x24x320xbf16>
    %56 = vector.shape_cast %55 : vector<1x24x320xbf16> to vector<24x320xbf16>
    %57 = vector.shape_cast %54 : vector<24x320xbf16> to vector<1x24x320xbf16>
    tpu.vector_store %arg4[%c0_41, %c0_42, %c0_43], %57 {strides = array<i32>} : memref<1x24x320xbf16, #tpu.memory_space<vmem>>, vector<1x24x320xbf16>,
    return
  }
  func.func @transform_0(%arg0: i32) -> (i32, i32, i32) {
    %c0_i32 = arith.constant 0 : i32
    %c0_i32_0 = arith.constant 0 : i32
    %c0_i32_1 = arith.constant 0 : i32
    return %arg0, %c0_i32, %c0_i32_0 : i32, i32, i32
  }
  func.func @transform_1(%arg0: i32) -> (i32, i32) {
    %c0_i32 = arith.constant 0 : i32
    %c0_i32_0 = arith.constant 0 : i32
    %c0_i32_1 = arith.constant 0 : i32
    return %c0_i32, %c0_i32_0 : i32, i32
  }
  func.func @transform_2(%arg0: i32) -> (i32, i32) {
    %c0_i32 = arith.constant 0 : i32
    %c0_i32_0 = arith.constant 0 : i32
    %c0_i32_1 = arith.constant 0 : i32
    return %c0_i32, %c0_i32_0 : i32, i32
  }
  func.func @transform_3(%arg0: i32) -> (i32, i32, i32) {
    %c0_i32 = arith.constant 0 : i32
    %c0_i32_0 = arith.constant 0 : i32
    %c0_i32_1 = arith.constant 0 : i32
    return %arg0, %c0_i32, %c0_i32_0 : i32, i32, i32
  }
}

module attributes {stable_mosaic.version = 11 : i64} {
  func.func @_lr_conv_kernel(%arg0: i32, %arg1: memref<1x24x110xbf16, #tpu.memory_space<vmem>>, %arg2: memref<24x216xbf16, #tpu.memory_space<vmem>>, %arg3: memref<24x1xf32, #tpu.memory_space<vmem>>, %arg4: memref<1x24x80xbf16, #tpu.memory_space<vmem>>) attributes {dimension_semantics = [#tpu.dimension_semantics<parallel>], iteration_bounds = array<i64: 2>, scalar_prefetch = 0 : i64, scratch_operands = 0 : i64, tpu.core_type = #tpu.core_type<tc>, window_params = [{transform_indices = @transform_0, window_bounds = array<i64: 1, 24, 110>}, {pipeline_mode = #tpu.pipeline_mode<synchronous>, transform_indices = @transform_1, window_bounds = array<i64: 24, 216>}, {pipeline_mode = #tpu.pipeline_mode<synchronous>, transform_indices = @transform_2, window_bounds = array<i64: 24, 1>}, {transform_indices = @transform_3, window_bounds = array<i64: 1, 24, 80>}]} {
    %cst = arith.constant 0.000000e+00 : f32
    %0 = vector.broadcast %cst : f32 to vector<24x80xf32>
    %c0 = arith.constant 0 : index
    %c0_0 = arith.constant 0 : index
    %c0_1 = arith.constant 0 : index
    %1 = vector.load %arg1[%c0, %c0_0, %c0_1] : memref<1x24x110xbf16, #tpu.memory_space<vmem>>, vector<1x24x80xbf16>
    %2 = vector.shape_cast %1 : vector<1x24x80xbf16> to vector<24x80xbf16>
    %c0_2 = arith.constant 0 : index
    %c0_3 = arith.constant 0 : index
    %3 = vector.load %arg2[%c0_2, %c0_3] : memref<24x216xbf16, #tpu.memory_space<vmem>>, vector<24x24xbf16>
    %cst_4 = arith.constant dense<0.000000e+00> : vector<24x80xf32>
    %4 = tpu.matmul %3, %2, %cst_4 {dimension_numbers = #tpu.dot_dimension_numbers<[1], [0], [0], [1], [0, 0, 1, 1], [], []>} : vector<24x24xbf16>, vector<24x80xbf16>, vector<24x80xf32> -> vector<24x80xf32>
    %5 = arith.addf %0, %4 : vector<24x80xf32>
    %c0_5 = arith.constant 0 : index
    %c0_6 = arith.constant 0 : index
    %c1 = arith.constant 1 : index
    %6 = vector.load %arg1[%c0_5, %c0_6, %c1] : memref<1x24x110xbf16, #tpu.memory_space<vmem>>, vector<1x24x80xbf16>
    %7 = vector.shape_cast %6 : vector<1x24x80xbf16> to vector<24x80xbf16>
    %c0_7 = arith.constant 0 : index
    %c24 = arith.constant 24 : index
    %8 = vector.load %arg2[%c0_7, %c24] : memref<24x216xbf16, #tpu.memory_space<vmem>>, vector<24x24xbf16>
    %cst_8 = arith.constant dense<0.000000e+00> : vector<24x80xf32>
    %9 = tpu.matmul %8, %7, %cst_8 {dimension_numbers = #tpu.dot_dimension_numbers<[1], [0], [0], [1], [0, 0, 1, 1], [], []>} : vector<24x24xbf16>, vector<24x80xbf16>, vector<24x80xf32> -> vector<24x80xf32>
    %10 = arith.addf %5, %9 : vector<24x80xf32>
    %c0_9 = arith.constant 0 : index
    %c0_10 = arith.constant 0 : index
    %c2 = arith.constant 2 : index
    %11 = vector.load %arg1[%c0_9, %c0_10, %c2] : memref<1x24x110xbf16, #tpu.memory_space<vmem>>, vector<1x24x80xbf16>
    %12 = vector.shape_cast %11 : vector<1x24x80xbf16> to vector<24x80xbf16>
    %c0_11 = arith.constant 0 : index
    %c48 = arith.constant 48 : index
    %13 = vector.load %arg2[%c0_11, %c48] : memref<24x216xbf16, #tpu.memory_space<vmem>>, vector<24x24xbf16>
    %cst_12 = arith.constant dense<0.000000e+00> : vector<24x80xf32>
    %14 = tpu.matmul %13, %12, %cst_12 {dimension_numbers = #tpu.dot_dimension_numbers<[1], [0], [0], [1], [0, 0, 1, 1], [], []>} : vector<24x24xbf16>, vector<24x80xbf16>, vector<24x80xf32> -> vector<24x80xf32>
    %15 = arith.addf %10, %14 : vector<24x80xf32>
    %c0_13 = arith.constant 0 : index
    %c0_14 = arith.constant 0 : index
    %c10 = arith.constant 10 : index
    %16 = vector.load %arg1[%c0_13, %c0_14, %c10] : memref<1x24x110xbf16, #tpu.memory_space<vmem>>, vector<1x24x80xbf16>
    %17 = vector.shape_cast %16 : vector<1x24x80xbf16> to vector<24x80xbf16>
    %c0_15 = arith.constant 0 : index
    %c72 = arith.constant 72 : index
    %18 = vector.load %arg2[%c0_15, %c72] : memref<24x216xbf16, #tpu.memory_space<vmem>>, vector<24x24xbf16>
    %cst_16 = arith.constant dense<0.000000e+00> : vector<24x80xf32>
    %19 = tpu.matmul %18, %17, %cst_16 {dimension_numbers = #tpu.dot_dimension_numbers<[1], [0], [0], [1], [0, 0, 1, 1], [], []>} : vector<24x24xbf16>, vector<24x80xbf16>, vector<24x80xf32> -> vector<24x80xf32>
    %20 = arith.addf %15, %19 : vector<24x80xf32>
    %c0_17 = arith.constant 0 : index
    %c0_18 = arith.constant 0 : index
    %c11 = arith.constant 11 : index
    %21 = vector.load %arg1[%c0_17, %c0_18, %c11] : memref<1x24x110xbf16, #tpu.memory_space<vmem>>, vector<1x24x80xbf16>
    %22 = vector.shape_cast %21 : vector<1x24x80xbf16> to vector<24x80xbf16>
    %c0_19 = arith.constant 0 : index
    %c96 = arith.constant 96 : index
    %23 = vector.load %arg2[%c0_19, %c96] : memref<24x216xbf16, #tpu.memory_space<vmem>>, vector<24x24xbf16>
    %cst_20 = arith.constant dense<0.000000e+00> : vector<24x80xf32>
    %24 = tpu.matmul %23, %22, %cst_20 {dimension_numbers = #tpu.dot_dimension_numbers<[1], [0], [0], [1], [0, 0, 1, 1], [], []>} : vector<24x24xbf16>, vector<24x80xbf16>, vector<24x80xf32> -> vector<24x80xf32>
    %25 = arith.addf %20, %24 : vector<24x80xf32>
    %c0_21 = arith.constant 0 : index
    %c0_22 = arith.constant 0 : index
    %c12 = arith.constant 12 : index
    %26 = vector.load %arg1[%c0_21, %c0_22, %c12] : memref<1x24x110xbf16, #tpu.memory_space<vmem>>, vector<1x24x80xbf16>
    %27 = vector.shape_cast %26 : vector<1x24x80xbf16> to vector<24x80xbf16>
    %c0_23 = arith.constant 0 : index
    %c120 = arith.constant 120 : index
    %28 = vector.load %arg2[%c0_23, %c120] : memref<24x216xbf16, #tpu.memory_space<vmem>>, vector<24x24xbf16>
    %cst_24 = arith.constant dense<0.000000e+00> : vector<24x80xf32>
    %29 = tpu.matmul %28, %27, %cst_24 {dimension_numbers = #tpu.dot_dimension_numbers<[1], [0], [0], [1], [0, 0, 1, 1], [], []>} : vector<24x24xbf16>, vector<24x80xbf16>, vector<24x80xf32> -> vector<24x80xf32>
    %30 = arith.addf %25, %29 : vector<24x80xf32>
    %c0_25 = arith.constant 0 : index
    %c0_26 = arith.constant 0 : index
    %c20 = arith.constant 20 : index
    %31 = vector.load %arg1[%c0_25, %c0_26, %c20] : memref<1x24x110xbf16, #tpu.memory_space<vmem>>, vector<1x24x80xbf16>
    %32 = vector.shape_cast %31 : vector<1x24x80xbf16> to vector<24x80xbf16>
    %c0_27 = arith.constant 0 : index
    %c144 = arith.constant 144 : index
    %33 = vector.load %arg2[%c0_27, %c144] : memref<24x216xbf16, #tpu.memory_space<vmem>>, vector<24x24xbf16>
    %cst_28 = arith.constant dense<0.000000e+00> : vector<24x80xf32>
    %34 = tpu.matmul %33, %32, %cst_28 {dimension_numbers = #tpu.dot_dimension_numbers<[1], [0], [0], [1], [0, 0, 1, 1], [], []>} : vector<24x24xbf16>, vector<24x80xbf16>, vector<24x80xf32> -> vector<24x80xf32>
    %35 = arith.addf %30, %34 : vector<24x80xf32>
    %c0_29 = arith.constant 0 : index
    %c0_30 = arith.constant 0 : index
    %c21 = arith.constant 21 : index
    %36 = vector.load %arg1[%c0_29, %c0_30, %c21] : memref<1x24x110xbf16, #tpu.memory_space<vmem>>, vector<1x24x80xbf16>
    %37 = vector.shape_cast %36 : vector<1x24x80xbf16> to vector<24x80xbf16>
    %c0_31 = arith.constant 0 : index
    %c168 = arith.constant 168 : index
    %38 = vector.load %arg2[%c0_31, %c168] : memref<24x216xbf16, #tpu.memory_space<vmem>>, vector<24x24xbf16>
    %cst_32 = arith.constant dense<0.000000e+00> : vector<24x80xf32>
    %39 = tpu.matmul %38, %37, %cst_32 {dimension_numbers = #tpu.dot_dimension_numbers<[1], [0], [0], [1], [0, 0, 1, 1], [], []>} : vector<24x24xbf16>, vector<24x80xbf16>, vector<24x80xf32> -> vector<24x80xf32>
    %40 = arith.addf %35, %39 : vector<24x80xf32>
    %c0_33 = arith.constant 0 : index
    %c0_34 = arith.constant 0 : index
    %c22 = arith.constant 22 : index
    %41 = vector.load %arg1[%c0_33, %c0_34, %c22] : memref<1x24x110xbf16, #tpu.memory_space<vmem>>, vector<1x24x80xbf16>
    %42 = vector.shape_cast %41 : vector<1x24x80xbf16> to vector<24x80xbf16>
    %c0_35 = arith.constant 0 : index
    %c192 = arith.constant 192 : index
    %43 = vector.load %arg2[%c0_35, %c192] : memref<24x216xbf16, #tpu.memory_space<vmem>>, vector<24x24xbf16>
    %cst_36 = arith.constant dense<0.000000e+00> : vector<24x80xf32>
    %44 = tpu.matmul %43, %42, %cst_36 {dimension_numbers = #tpu.dot_dimension_numbers<[1], [0], [0], [1], [0, 0, 1, 1], [], []>} : vector<24x24xbf16>, vector<24x80xbf16>, vector<24x80xf32> -> vector<24x80xf32>
    %45 = arith.addf %40, %44 : vector<24x80xf32>
    %c0_37 = arith.constant 0 : index
    %c0_38 = arith.constant 0 : index
    %46 = vector.load %arg3[%c0_37, %c0_38] : memref<24x1xf32, #tpu.memory_space<vmem>>, vector<24x1xf32>
    %47 = vector.broadcast %46 : vector<24x1xf32> to vector<24x80xf32>
    %48 = arith.addf %45, %47 : vector<24x80xf32>
    %cst_39 = arith.constant 0.000000e+00 : f32
    %49 = vector.broadcast %cst_39 : f32 to vector<24x80xf32>
    %50 = arith.cmpf oge, %48, %49 : vector<24x80xf32>
    %cst_40 = arith.constant 2.000000e-01 : f32
    %51 = vector.broadcast %cst_40 : f32 to vector<24x80xf32>
    %52 = arith.mulf %51, %48 : vector<24x80xf32>
    %53 = arith.select %50, %48, %52 : vector<24x80xi1>, vector<24x80xf32>
    %54 = arith.truncf %53 : vector<24x80xf32> to vector<24x80xbf16>
    %c0_41 = arith.constant 0 : index
    %c0_42 = arith.constant 0 : index
    %c0_43 = arith.constant 0 : index
    %55 = vector.load %arg4[%c0_41, %c0_42, %c0_43] : memref<1x24x80xbf16, #tpu.memory_space<vmem>>, vector<1x24x80xbf16>
    %56 = vector.shape_cast %55 : vector<1x24x80xbf16> to vector<24x80xbf16>
    %57 = vector.shape_cast %54 : vector<24x80xbf16> to vector<1x24x80xbf16>
    tpu.vector_store %arg4[%c0_41, %c0_42, %c0_43], %57 {strides = array<i32>} : memref<1x24x80xbf16, #tpu.memory_space<vmem>>, vector<1x24x80xbf16>,
    return
  }
  func.func @transform_0(%arg0: i32) -> (i32, i32, i32) {
    %c0_i32 = arith.constant 0 : i32
    %c0_i32_0 = arith.constant 0 : i32
    %c0_i32_1 = arith.constant 0 : i32
    return %arg0, %c0_i32, %c0_i32_0 : i32, i32, i32
  }
  func.func @transform_1(%arg0: i32) -> (i32, i32) {
    %c0_i32 = arith.constant 0 : i32
    %c0_i32_0 = arith.constant 0 : i32
    %c0_i32_1 = arith.constant 0 : i32
    return %c0_i32, %c0_i32_0 : i32, i32
  }
  func.func @transform_2(%arg0: i32) -> (i32, i32) {
    %c0_i32 = arith.constant 0 : i32
    %c0_i32_0 = arith.constant 0 : i32
    %c0_i32_1 = arith.constant 0 : i32
    return %c0_i32, %c0_i32_0 : i32, i32
  }
  func.func @transform_3(%arg0: i32) -> (i32, i32, i32) {
    %c0_i32 = arith.constant 0 : i32
    %c0_i32_0 = arith.constant 0 : i32
    %c0_i32_1 = arith.constant 0 : i32
    return %arg0, %c0_i32, %c0_i32_0 : i32, i32, i32
  }
}

module attributes {stable_mosaic.version = 11 : i64} {
  func.func @_conv1x1_kernel(%arg0: i32, %arg1: i32, %arg2: memref<1x24x64xbf16, #tpu.memory_space<vmem>>, %arg3: memref<3x24xbf16, #tpu.memory_space<vmem>>, %arg4: memref<3x1xf32, #tpu.memory_space<vmem>>, %arg5: memref<1x3x64xf32, #tpu.memory_space<vmem>>) attributes {dimension_semantics = [#tpu.dimension_semantics<parallel>, #tpu.dimension_semantics<parallel>], iteration_bounds = array<i64: 2, 1>, scalar_prefetch = 0 : i64, scratch_operands = 0 : i64, tpu.core_type = #tpu.core_type<tc>, window_params = [{transform_indices = @transform_0, window_bounds = array<i64: 1, 24, 64>}, {pipeline_mode = #tpu.pipeline_mode<synchronous>, transform_indices = @transform_1, window_bounds = array<i64: 3, 24>}, {pipeline_mode = #tpu.pipeline_mode<synchronous>, transform_indices = @transform_2, window_bounds = array<i64: 3, 1>}, {transform_indices = @transform_3, window_bounds = array<i64: 1, 3, 64>}]} {
    %c0 = arith.constant 0 : index
    %c0_0 = arith.constant 0 : index
    %0 = vector.load %arg3[%c0, %c0_0] : memref<3x24xbf16, #tpu.memory_space<vmem>>, vector<3x24xbf16>
    %c0_1 = arith.constant 0 : index
    %c0_2 = arith.constant 0 : index
    %c0_3 = arith.constant 0 : index
    %1 = vector.load %arg2[%c0_1, %c0_2, %c0_3] : memref<1x24x64xbf16, #tpu.memory_space<vmem>>, vector<1x24x64xbf16>
    %2 = vector.shape_cast %1 : vector<1x24x64xbf16> to vector<24x64xbf16>
    %cst = arith.constant dense<0.000000e+00> : vector<3x64xf32>
    %3 = tpu.matmul %0, %2, %cst {dimension_numbers = #tpu.dot_dimension_numbers<[1], [0], [0], [1], [0, 0, 1, 1], [], []>} : vector<3x24xbf16>, vector<24x64xbf16>, vector<3x64xf32> -> vector<3x64xf32>
    %c0_4 = arith.constant 0 : index
    %c0_5 = arith.constant 0 : index
    %4 = vector.load %arg4[%c0_4, %c0_5] : memref<3x1xf32, #tpu.memory_space<vmem>>, vector<3x1xf32>
    %5 = vector.broadcast %4 : vector<3x1xf32> to vector<3x64xf32>
    %6 = arith.addf %3, %5 : vector<3x64xf32>
    %c0_6 = arith.constant 0 : index
    %c0_7 = arith.constant 0 : index
    %c0_8 = arith.constant 0 : index
    %7 = vector.load %arg5[%c0_6, %c0_7, %c0_8] : memref<1x3x64xf32, #tpu.memory_space<vmem>>, vector<1x3x64xf32>
    %8 = vector.shape_cast %7 : vector<1x3x64xf32> to vector<3x64xf32>
    %9 = vector.shape_cast %6 : vector<3x64xf32> to vector<1x3x64xf32>
    tpu.vector_store %arg5[%c0_6, %c0_7, %c0_8], %9 {strides = array<i32>} : memref<1x3x64xf32, #tpu.memory_space<vmem>>, vector<1x3x64xf32>,
    return
  }
  func.func @transform_0(%arg0: i32, %arg1: i32) -> (i32, i32, i32) {
    %c0_i32 = arith.constant 0 : i32
    %c0_i32_0 = arith.constant 0 : i32
    return %arg0, %c0_i32, %arg1 : i32, i32, i32
  }
  func.func @transform_1(%arg0: i32, %arg1: i32) -> (i32, i32) {
    %c0_i32 = arith.constant 0 : i32
    %c0_i32_0 = arith.constant 0 : i32
    %c0_i32_1 = arith.constant 0 : i32
    return %c0_i32, %c0_i32_0 : i32, i32
  }
  func.func @transform_2(%arg0: i32, %arg1: i32) -> (i32, i32) {
    %c0_i32 = arith.constant 0 : i32
    %c0_i32_0 = arith.constant 0 : i32
    %c0_i32_1 = arith.constant 0 : i32
    return %c0_i32, %c0_i32_0 : i32, i32
  }
  func.func @transform_3(%arg0: i32, %arg1: i32) -> (i32, i32, i32) {
    %c0_i32 = arith.constant 0 : i32
    %c0_i32_0 = arith.constant 0 : i32
    return %arg0, %c0_i32, %arg1 : i32, i32, i32
  }
}

module attributes {stable_mosaic.version = 11 : i64} {
  func.func @_guided_map_kernel(%arg0: i32, %arg1: i32, %arg2: memref<1x3x64xf32, #tpu.memory_space<vmem>>, %arg3: memref<15x3xbf16, #tpu.memory_space<vmem>>, %arg4: memref<15x1xf32, #tpu.memory_space<vmem>>, %arg5: memref<3x15xbf16, #tpu.memory_space<vmem>>, %arg6: memref<3x1xf32, #tpu.memory_space<vmem>>, %arg7: memref<1x3x64xf32, #tpu.memory_space<vmem>>) attributes {dimension_semantics = [#tpu.dimension_semantics<parallel>, #tpu.dimension_semantics<parallel>], iteration_bounds = array<i64: 2, 1>, scalar_prefetch = 0 : i64, scratch_operands = 0 : i64, tpu.core_type = #tpu.core_type<tc>, window_params = [{transform_indices = @transform_0, window_bounds = array<i64: 1, 3, 64>}, {pipeline_mode = #tpu.pipeline_mode<synchronous>, transform_indices = @transform_1, window_bounds = array<i64: 15, 3>}, {pipeline_mode = #tpu.pipeline_mode<synchronous>, transform_indices = @transform_2, window_bounds = array<i64: 15, 1>}, {pipeline_mode = #tpu.pipeline_mode<synchronous>, transform_indices = @transform_3, window_bounds = array<i64: 3, 15>}, {pipeline_mode = #tpu.pipeline_mode<synchronous>, transform_indices = @transform_4, window_bounds = array<i64: 3, 1>}, {transform_indices = @transform_5, window_bounds = array<i64: 1, 3, 64>}]} {
    %c0 = arith.constant 0 : index
    %c0_0 = arith.constant 0 : index
    %c0_1 = arith.constant 0 : index
    %0 = vector.load %arg2[%c0, %c0_0, %c0_1] : memref<1x3x64xf32, #tpu.memory_space<vmem>>, vector<1x3x64xf32>
    %1 = vector.shape_cast %0 : vector<1x3x64xf32> to vector<3x64xf32>
    %2 = arith.truncf %1 : vector<3x64xf32> to vector<3x64xbf16>
    %c0_2 = arith.constant 0 : index
    %c0_3 = arith.constant 0 : index
    %3 = vector.load %arg3[%c0_2, %c0_3] : memref<15x3xbf16, #tpu.memory_space<vmem>>, vector<15x3xbf16>
    %cst = arith.constant dense<0.000000e+00> : vector<15x64xf32>
    %4 = tpu.matmul %3, %2, %cst {dimension_numbers = #tpu.dot_dimension_numbers<[1], [0], [0], [1], [0, 0, 1, 1], [], []>} : vector<15x3xbf16>, vector<3x64xbf16>, vector<15x64xf32> -> vector<15x64xf32>
    %c0_4 = arith.constant 0 : index
    %c0_5 = arith.constant 0 : index
    %5 = vector.load %arg4[%c0_4, %c0_5] : memref<15x1xf32, #tpu.memory_space<vmem>>, vector<15x1xf32>
    %6 = vector.broadcast %5 : vector<15x1xf32> to vector<15x64xf32>
    %7 = arith.addf %4, %6 : vector<15x64xf32>
    %cst_6 = arith.constant 0.000000e+00 : f32
    %8 = vector.broadcast %cst_6 : f32 to vector<15x64xf32>
    %9 = arith.cmpf oge, %7, %8 : vector<15x64xf32>
    %cst_7 = arith.constant 2.000000e-01 : f32
    %10 = vector.broadcast %cst_7 : f32 to vector<15x64xf32>
    %11 = arith.mulf %10, %7 : vector<15x64xf32>
    %12 = arith.select %9, %7, %11 : vector<15x64xi1>, vector<15x64xf32>
    %13 = arith.truncf %12 : vector<15x64xf32> to vector<15x64xbf16>
    %c0_8 = arith.constant 0 : index
    %c0_9 = arith.constant 0 : index
    %14 = vector.load %arg5[%c0_8, %c0_9] : memref<3x15xbf16, #tpu.memory_space<vmem>>, vector<3x15xbf16>
    %cst_10 = arith.constant dense<0.000000e+00> : vector<3x64xf32>
    %15 = tpu.matmul %14, %13, %cst_10 {dimension_numbers = #tpu.dot_dimension_numbers<[1], [0], [0], [1], [0, 0, 1, 1], [], []>} : vector<3x15xbf16>, vector<15x64xbf16>, vector<3x64xf32> -> vector<3x64xf32>
    %c0_11 = arith.constant 0 : index
    %c0_12 = arith.constant 0 : index
    %16 = vector.load %arg6[%c0_11, %c0_12] : memref<3x1xf32, #tpu.memory_space<vmem>>, vector<3x1xf32>
    %17 = vector.broadcast %16 : vector<3x1xf32> to vector<3x64xf32>
    %18 = arith.addf %15, %17 : vector<3x64xf32>
    %c0_13 = arith.constant 0 : index
    %c0_14 = arith.constant 0 : index
    %c0_15 = arith.constant 0 : index
    %19 = vector.load %arg7[%c0_13, %c0_14, %c0_15] : memref<1x3x64xf32, #tpu.memory_space<vmem>>, vector<1x3x64xf32>
    %20 = vector.shape_cast %19 : vector<1x3x64xf32> to vector<3x64xf32>
    %21 = vector.shape_cast %18 : vector<3x64xf32> to vector<1x3x64xf32>
    tpu.vector_store %arg7[%c0_13, %c0_14, %c0_15], %21 {strides = array<i32>} : memref<1x3x64xf32, #tpu.memory_space<vmem>>, vector<1x3x64xf32>,
    return
  }
  func.func @transform_0(%arg0: i32, %arg1: i32) -> (i32, i32, i32) {
    %c0_i32 = arith.constant 0 : i32
    %c0_i32_0 = arith.constant 0 : i32
    return %arg0, %c0_i32, %arg1 : i32, i32, i32
  }
  func.func @transform_1(%arg0: i32, %arg1: i32) -> (i32, i32) {
    %c0_i32 = arith.constant 0 : i32
    %c0_i32_0 = arith.constant 0 : i32
    %c0_i32_1 = arith.constant 0 : i32
    return %c0_i32, %c0_i32_0 : i32, i32
  }
  func.func @transform_2(%arg0: i32, %arg1: i32) -> (i32, i32) {
    %c0_i32 = arith.constant 0 : i32
    %c0_i32_0 = arith.constant 0 : i32
    %c0_i32_1 = arith.constant 0 : i32
    return %c0_i32, %c0_i32_0 : i32, i32
  }
  func.func @transform_3(%arg0: i32, %arg1: i32) -> (i32, i32) {
    %c0_i32 = arith.constant 0 : i32
    %c0_i32_0 = arith.constant 0 : i32
    %c0_i32_1 = arith.constant 0 : i32
    return %c0_i32, %c0_i32_0 : i32, i32
  }
  func.func @transform_4(%arg0: i32, %arg1: i32) -> (i32, i32) {
    %c0_i32 = arith.constant 0 : i32
    %c0_i32_0 = arith.constant 0 : i32
    %c0_i32_1 = arith.constant 0 : i32
    return %c0_i32, %c0_i32_0 : i32, i32
  }
  func.func @transform_5(%arg0: i32, %arg1: i32) -> (i32, i32, i32) {
    %c0_i32 = arith.constant 0 : i32
    %c0_i32_0 = arith.constant 0 : i32
    return %arg0, %c0_i32, %arg1 : i32, i32, i32
  }
}

module attributes {stable_mosaic.version = 11 : i64} {
  func.func @_guided_map_kernel(%arg0: i32, %arg1: i32, %arg2: memref<1x3x4096xf32, #tpu.memory_space<vmem>>, %arg3: memref<15x3xbf16, #tpu.memory_space<vmem>>, %arg4: memref<15x1xf32, #tpu.memory_space<vmem>>, %arg5: memref<3x15xbf16, #tpu.memory_space<vmem>>, %arg6: memref<3x1xf32, #tpu.memory_space<vmem>>, %arg7: memref<1x3x4096xbf16, #tpu.memory_space<vmem>>) attributes {dimension_semantics = [#tpu.dimension_semantics<parallel>, #tpu.dimension_semantics<parallel>], iteration_bounds = array<i64: 2, 1>, scalar_prefetch = 0 : i64, scratch_operands = 0 : i64, tpu.core_type = #tpu.core_type<tc>, window_params = [{transform_indices = @transform_0, window_bounds = array<i64: 1, 3, 4096>}, {pipeline_mode = #tpu.pipeline_mode<synchronous>, transform_indices = @transform_1, window_bounds = array<i64: 15, 3>}, {pipeline_mode = #tpu.pipeline_mode<synchronous>, transform_indices = @transform_2, window_bounds = array<i64: 15, 1>}, {pipeline_mode = #tpu.pipeline_mode<synchronous>, transform_indices = @transform_3, window_bounds = array<i64: 3, 15>}, {pipeline_mode = #tpu.pipeline_mode<synchronous>, transform_indices = @transform_4, window_bounds = array<i64: 3, 1>}, {transform_indices = @transform_5, window_bounds = array<i64: 1, 3, 4096>}]} {
    %c0 = arith.constant 0 : index
    %c0_0 = arith.constant 0 : index
    %c0_1 = arith.constant 0 : index
    %0 = vector.load %arg2[%c0, %c0_0, %c0_1] : memref<1x3x4096xf32, #tpu.memory_space<vmem>>, vector<1x3x4096xf32>
    %1 = vector.shape_cast %0 : vector<1x3x4096xf32> to vector<3x4096xf32>
    %2 = arith.truncf %1 : vector<3x4096xf32> to vector<3x4096xbf16>
    %c0_2 = arith.constant 0 : index
    %c0_3 = arith.constant 0 : index
    %3 = vector.load %arg3[%c0_2, %c0_3] : memref<15x3xbf16, #tpu.memory_space<vmem>>, vector<15x3xbf16>
    %cst = arith.constant dense<0.000000e+00> : vector<15x4096xf32>
    %4 = tpu.matmul %3, %2, %cst {dimension_numbers = #tpu.dot_dimension_numbers<[1], [0], [0], [1], [0, 0, 1, 1], [], []>} : vector<15x3xbf16>, vector<3x4096xbf16>, vector<15x4096xf32> -> vector<15x4096xf32>
    %c0_4 = arith.constant 0 : index
    %c0_5 = arith.constant 0 : index
    %5 = vector.load %arg4[%c0_4, %c0_5] : memref<15x1xf32, #tpu.memory_space<vmem>>, vector<15x1xf32>
    %6 = vector.broadcast %5 : vector<15x1xf32> to vector<15x4096xf32>
    %7 = arith.addf %4, %6 : vector<15x4096xf32>
    %cst_6 = arith.constant 0.000000e+00 : f32
    %8 = vector.broadcast %cst_6 : f32 to vector<15x4096xf32>
    %9 = arith.cmpf oge, %7, %8 : vector<15x4096xf32>
    %cst_7 = arith.constant 2.000000e-01 : f32
    %10 = vector.broadcast %cst_7 : f32 to vector<15x4096xf32>
    %11 = arith.mulf %10, %7 : vector<15x4096xf32>
    %12 = arith.select %9, %7, %11 : vector<15x4096xi1>, vector<15x4096xf32>
    %13 = arith.truncf %12 : vector<15x4096xf32> to vector<15x4096xbf16>
    %c0_8 = arith.constant 0 : index
    %c0_9 = arith.constant 0 : index
    %14 = vector.load %arg5[%c0_8, %c0_9] : memref<3x15xbf16, #tpu.memory_space<vmem>>, vector<3x15xbf16>
    %cst_10 = arith.constant dense<0.000000e+00> : vector<3x4096xf32>
    %15 = tpu.matmul %14, %13, %cst_10 {dimension_numbers = #tpu.dot_dimension_numbers<[1], [0], [0], [1], [0, 0, 1, 1], [], []>} : vector<3x15xbf16>, vector<15x4096xbf16>, vector<3x4096xf32> -> vector<3x4096xf32>
    %c0_11 = arith.constant 0 : index
    %c0_12 = arith.constant 0 : index
    %16 = vector.load %arg6[%c0_11, %c0_12] : memref<3x1xf32, #tpu.memory_space<vmem>>, vector<3x1xf32>
    %17 = vector.broadcast %16 : vector<3x1xf32> to vector<3x4096xf32>
    %18 = arith.addf %15, %17 : vector<3x4096xf32>
    %19 = arith.truncf %18 : vector<3x4096xf32> to vector<3x4096xbf16>
    %c0_13 = arith.constant 0 : index
    %c0_14 = arith.constant 0 : index
    %c0_15 = arith.constant 0 : index
    %20 = vector.load %arg7[%c0_13, %c0_14, %c0_15] : memref<1x3x4096xbf16, #tpu.memory_space<vmem>>, vector<1x3x4096xbf16>
    %21 = vector.shape_cast %20 : vector<1x3x4096xbf16> to vector<3x4096xbf16>
    %22 = vector.shape_cast %19 : vector<3x4096xbf16> to vector<1x3x4096xbf16>
    tpu.vector_store %arg7[%c0_13, %c0_14, %c0_15], %22 {strides = array<i32>} : memref<1x3x4096xbf16, #tpu.memory_space<vmem>>, vector<1x3x4096xbf16>,
    return
  }
  func.func @transform_0(%arg0: i32, %arg1: i32) -> (i32, i32, i32) {
    %c0_i32 = arith.constant 0 : i32
    %c0_i32_0 = arith.constant 0 : i32
    return %arg0, %c0_i32, %arg1 : i32, i32, i32
  }
  func.func @transform_1(%arg0: i32, %arg1: i32) -> (i32, i32) {
    %c0_i32 = arith.constant 0 : i32
    %c0_i32_0 = arith.constant 0 : i32
    %c0_i32_1 = arith.constant 0 : i32
    return %c0_i32, %c0_i32_0 : i32, i32
  }
  func.func @transform_2(%arg0: i32, %arg1: i32) -> (i32, i32) {
    %c0_i32 = arith.constant 0 : i32
    %c0_i32_0 = arith.constant 0 : i32
    %c0_i32_1 = arith.constant 0 : i32
    return %c0_i32, %c0_i32_0 : i32, i32
  }
  func.func @transform_3(%arg0: i32, %arg1: i32) -> (i32, i32) {
    %c0_i32 = arith.constant 0 : i32
    %c0_i32_0 = arith.constant 0 : i32
    %c0_i32_1 = arith.constant 0 : i32
    return %c0_i32, %c0_i32_0 : i32, i32
  }
  func.func @transform_4(%arg0: i32, %arg1: i32) -> (i32, i32) {
    %c0_i32 = arith.constant 0 : i32
    %c0_i32_0 = arith.constant 0 : i32
    %c0_i32_1 = arith.constant 0 : i32
    return %c0_i32, %c0_i32_0 : i32, i32
  }
  func.func @transform_5(%arg0: i32, %arg1: i32) -> (i32, i32, i32) {
    %c0_i32 = arith.constant 0 : i32
    %c0_i32_0 = arith.constant 0 : i32
    return %arg0, %c0_i32, %arg1 : i32, i32, i32
  }
}

module attributes {stable_mosaic.version = 11 : i64} {
  func.func @_gf_lr_kernel(%arg0: i32, %arg1: memref<1x3x10x10xf32, #tpu.memory_space<vmem>>, %arg2: memref<1x3x10x10xf32, #tpu.memory_space<vmem>>, %arg3: memref<8x8xf32, #tpu.memory_space<vmem>>, %arg4: memref<1x3x8x8xf32, #tpu.memory_space<vmem>>, %arg5: memref<1x3x8x8xf32, #tpu.memory_space<vmem>>) attributes {dimension_semantics = [#tpu.dimension_semantics<parallel>], iteration_bounds = array<i64: 2>, scalar_prefetch = 0 : i64, scratch_operands = 0 : i64, tpu.core_type = #tpu.core_type<tc>, window_params = [{transform_indices = @transform_0, window_bounds = array<i64: 1, 3, 10, 10>}, {transform_indices = @transform_1, window_bounds = array<i64: 1, 3, 10, 10>}, {pipeline_mode = #tpu.pipeline_mode<synchronous>, transform_indices = @transform_2, window_bounds = array<i64: 8, 8>}, {transform_indices = @transform_3, window_bounds = array<i64: 1, 3, 8, 8>}, {transform_indices = @transform_4, window_bounds = array<i64: 1, 3, 8, 8>}]} {
    %c0 = arith.constant 0 : index
    %c0_0 = arith.constant 0 : index
    %c0_1 = arith.constant 0 : index
    %c0_2 = arith.constant 0 : index
    %0 = vector.load %arg1[%c0, %c0_0, %c0_1, %c0_2] : memref<1x3x10x10xf32, #tpu.memory_space<vmem>>, vector<1x3x10x10xf32>
    %1 = vector.shape_cast %0 : vector<1x3x10x10xf32> to vector<3x10x10xf32>
    %c0_3 = arith.constant 0 : index
    %c0_4 = arith.constant 0 : index
    %c0_5 = arith.constant 0 : index
    %c0_6 = arith.constant 0 : index
    %2 = vector.load %arg2[%c0_3, %c0_4, %c0_5, %c0_6] : memref<1x3x10x10xf32, #tpu.memory_space<vmem>>, vector<1x3x10x10xf32>
    %3 = vector.shape_cast %2 : vector<1x3x10x10xf32> to vector<3x10x10xf32>
    %c0_7 = arith.constant 0 : index
    %c0_8 = arith.constant 0 : index
    %4 = vector.load %arg3[%c0_7, %c0_8] : memref<8x8xf32, #tpu.memory_space<vmem>>, vector<8x8xf32>
    %5 = vector.extract_strided_slice %1 {offsets = [0, 0, 0], sizes = [3, 8, 10], strides = [1, 1, 1]} : vector<3x10x10xf32> to vector<3x8x10xf32>
    %6 = vector.extract_strided_slice %1 {offsets = [0, 1, 0], sizes = [3, 8, 10], strides = [1, 1, 1]} : vector<3x10x10xf32> to vector<3x8x10xf32>
    %7 = arith.addf %5, %6 : vector<3x8x10xf32>
    %8 = vector.extract_strided_slice %1 {offsets = [0, 2, 0], sizes = [3, 8, 10], strides = [1, 1, 1]} : vector<3x10x10xf32> to vector<3x8x10xf32>
    %9 = arith.addf %7, %8 : vector<3x8x10xf32>
    %10 = vector.extract_strided_slice %9 {offsets = [0, 0, 0], sizes = [3, 8, 8], strides = [1, 1, 1]} : vector<3x8x10xf32> to vector<3x8x8xf32>
    %11 = vector.extract_strided_slice %9 {offsets = [0, 0, 1], sizes = [3, 8, 8], strides = [1, 1, 1]} : vector<3x8x10xf32> to vector<3x8x8xf32>
    %12 = arith.addf %10, %11 : vector<3x8x8xf32>
    %13 = vector.extract_strided_slice %9 {offsets = [0, 0, 2], sizes = [3, 8, 8], strides = [1, 1, 1]} : vector<3x8x10xf32> to vector<3x8x8xf32>
    %14 = arith.addf %12, %13 : vector<3x8x8xf32>
    %15 = vector.shape_cast %4 : vector<8x8xf32> to vector<1x8x8xf32>
    %16 = vector.broadcast %15 : vector<1x8x8xf32> to vector<3x8x8xf32>
    %17 = arith.mulf %14, %16 : vector<3x8x8xf32>
    %18 = vector.extract_strided_slice %3 {offsets = [0, 0, 0], sizes = [3, 8, 10], strides = [1, 1, 1]} : vector<3x10x10xf32> to vector<3x8x10xf32>
    %19 = vector.extract_strided_slice %3 {offsets = [0, 1, 0], sizes = [3, 8, 10], strides = [1, 1, 1]} : vector<3x10x10xf32> to vector<3x8x10xf32>
    %20 = arith.addf %18, %19 : vector<3x8x10xf32>
    %21 = vector.extract_strided_slice %3 {offsets = [0, 2, 0], sizes = [3, 8, 10], strides = [1, 1, 1]} : vector<3x10x10xf32> to vector<3x8x10xf32>
    %22 = arith.addf %20, %21 : vector<3x8x10xf32>
    %23 = vector.extract_strided_slice %22 {offsets = [0, 0, 0], sizes = [3, 8, 8], strides = [1, 1, 1]} : vector<3x8x10xf32> to vector<3x8x8xf32>
    %24 = vector.extract_strided_slice %22 {offsets = [0, 0, 1], sizes = [3, 8, 8], strides = [1, 1, 1]} : vector<3x8x10xf32> to vector<3x8x8xf32>
    %25 = arith.addf %23, %24 : vector<3x8x8xf32>
    %26 = vector.extract_strided_slice %22 {offsets = [0, 0, 2], sizes = [3, 8, 8], strides = [1, 1, 1]} : vector<3x8x10xf32> to vector<3x8x8xf32>
    %27 = arith.addf %25, %26 : vector<3x8x8xf32>
    %28 = vector.shape_cast %4 : vector<8x8xf32> to vector<1x8x8xf32>
    %29 = vector.broadcast %28 : vector<1x8x8xf32> to vector<3x8x8xf32>
    %30 = arith.mulf %27, %29 : vector<3x8x8xf32>
    %31 = arith.mulf %1, %3 : vector<3x10x10xf32>
    %32 = vector.extract_strided_slice %31 {offsets = [0, 0, 0], sizes = [3, 8, 10], strides = [1, 1, 1]} : vector<3x10x10xf32> to vector<3x8x10xf32>
    %33 = vector.extract_strided_slice %31 {offsets = [0, 1, 0], sizes = [3, 8, 10], strides = [1, 1, 1]} : vector<3x10x10xf32> to vector<3x8x10xf32>
    %34 = arith.addf %32, %33 : vector<3x8x10xf32>
    %35 = vector.extract_strided_slice %31 {offsets = [0, 2, 0], sizes = [3, 8, 10], strides = [1, 1, 1]} : vector<3x10x10xf32> to vector<3x8x10xf32>
    %36 = arith.addf %34, %35 : vector<3x8x10xf32>
    %37 = vector.extract_strided_slice %36 {offsets = [0, 0, 0], sizes = [3, 8, 8], strides = [1, 1, 1]} : vector<3x8x10xf32> to vector<3x8x8xf32>
    %38 = vector.extract_strided_slice %36 {offsets = [0, 0, 1], sizes = [3, 8, 8], strides = [1, 1, 1]} : vector<3x8x10xf32> to vector<3x8x8xf32>
    %39 = arith.addf %37, %38 : vector<3x8x8xf32>
    %40 = vector.extract_strided_slice %36 {offsets = [0, 0, 2], sizes = [3, 8, 8], strides = [1, 1, 1]} : vector<3x8x10xf32> to vector<3x8x8xf32>
    %41 = arith.addf %39, %40 : vector<3x8x8xf32>
    %42 = vector.shape_cast %4 : vector<8x8xf32> to vector<1x8x8xf32>
    %43 = vector.broadcast %42 : vector<1x8x8xf32> to vector<3x8x8xf32>
    %44 = arith.mulf %41, %43 : vector<3x8x8xf32>
    %45 = arith.mulf %17, %30 : vector<3x8x8xf32>
    %46 = arith.subf %44, %45 : vector<3x8x8xf32>
    %47 = arith.mulf %1, %1 : vector<3x10x10xf32>
    %48 = vector.extract_strided_slice %47 {offsets = [0, 0, 0], sizes = [3, 8, 10], strides = [1, 1, 1]} : vector<3x10x10xf32> to vector<3x8x10xf32>
    %49 = vector.extract_strided_slice %47 {offsets = [0, 1, 0], sizes = [3, 8, 10], strides = [1, 1, 1]} : vector<3x10x10xf32> to vector<3x8x10xf32>
    %50 = arith.addf %48, %49 : vector<3x8x10xf32>
    %51 = vector.extract_strided_slice %47 {offsets = [0, 2, 0], sizes = [3, 8, 10], strides = [1, 1, 1]} : vector<3x10x10xf32> to vector<3x8x10xf32>
    %52 = arith.addf %50, %51 : vector<3x8x10xf32>
    %53 = vector.extract_strided_slice %52 {offsets = [0, 0, 0], sizes = [3, 8, 8], strides = [1, 1, 1]} : vector<3x8x10xf32> to vector<3x8x8xf32>
    %54 = vector.extract_strided_slice %52 {offsets = [0, 0, 1], sizes = [3, 8, 8], strides = [1, 1, 1]} : vector<3x8x10xf32> to vector<3x8x8xf32>
    %55 = arith.addf %53, %54 : vector<3x8x8xf32>
    %56 = vector.extract_strided_slice %52 {offsets = [0, 0, 2], sizes = [3, 8, 8], strides = [1, 1, 1]} : vector<3x8x10xf32> to vector<3x8x8xf32>
    %57 = arith.addf %55, %56 : vector<3x8x8xf32>
    %58 = vector.shape_cast %4 : vector<8x8xf32> to vector<1x8x8xf32>
    %59 = vector.broadcast %58 : vector<1x8x8xf32> to vector<3x8x8xf32>
    %60 = arith.mulf %57, %59 : vector<3x8x8xf32>
    %61 = arith.mulf %17, %17 : vector<3x8x8xf32>
    %62 = arith.subf %60, %61 : vector<3x8x8xf32>
    %cst = arith.constant 9.99999974E-6 : f32
    %63 = vector.broadcast %cst : f32 to vector<3x8x8xf32>
    %64 = arith.addf %62, %63 : vector<3x8x8xf32>
    %65 = arith.divf %46, %64 : vector<3x8x8xf32>
    %c0_9 = arith.constant 0 : index
    %c0_10 = arith.constant 0 : index
    %c0_11 = arith.constant 0 : index
    %c0_12 = arith.constant 0 : index
    %66 = vector.load %arg4[%c0_9, %c0_10, %c0_11, %c0_12] : memref<1x3x8x8xf32, #tpu.memory_space<vmem>>, vector<1x3x8x8xf32>
    %67 = vector.shape_cast %66 : vector<1x3x8x8xf32> to vector<3x8x8xf32>
    %68 = vector.shape_cast %65 : vector<3x8x8xf32> to vector<1x3x8x8xf32>
    tpu.vector_store %arg4[%c0_9, %c0_10, %c0_11, %c0_12], %68 {strides = array<i32>} : memref<1x3x8x8xf32, #tpu.memory_space<vmem>>, vector<1x3x8x8xf32>,
    %69 = arith.mulf %65, %17 : vector<3x8x8xf32>
    %70 = arith.subf %30, %69 : vector<3x8x8xf32>
    %c0_13 = arith.constant 0 : index
    %c0_14 = arith.constant 0 : index
    %c0_15 = arith.constant 0 : index
    %c0_16 = arith.constant 0 : index
    %71 = vector.load %arg5[%c0_13, %c0_14, %c0_15, %c0_16] : memref<1x3x8x8xf32, #tpu.memory_space<vmem>>, vector<1x3x8x8xf32>
    %72 = vector.shape_cast %71 : vector<1x3x8x8xf32> to vector<3x8x8xf32>
    %73 = vector.shape_cast %70 : vector<3x8x8xf32> to vector<1x3x8x8xf32>
    tpu.vector_store %arg5[%c0_13, %c0_14, %c0_15, %c0_16], %73 {strides = array<i32>} : memref<1x3x8x8xf32, #tpu.memory_space<vmem>>, vector<1x3x8x8xf32>,
    return
  }
  func.func @transform_0(%arg0: i32) -> (i32, i32, i32, i32) {
    %c0_i32 = arith.constant 0 : i32
    %c0_i32_0 = arith.constant 0 : i32
    %c0_i32_1 = arith.constant 0 : i32
    %c0_i32_2 = arith.constant 0 : i32
    return %arg0, %c0_i32, %c0_i32_0, %c0_i32_1 : i32, i32, i32, i32
  }
  func.func @transform_1(%arg0: i32) -> (i32, i32, i32, i32) {
    %c0_i32 = arith.constant 0 : i32
    %c0_i32_0 = arith.constant 0 : i32
    %c0_i32_1 = arith.constant 0 : i32
    %c0_i32_2 = arith.constant 0 : i32
    return %arg0, %c0_i32, %c0_i32_0, %c0_i32_1 : i32, i32, i32, i32
  }
  func.func @transform_2(%arg0: i32) -> (i32, i32) {
    %c0_i32 = arith.constant 0 : i32
    %c0_i32_0 = arith.constant 0 : i32
    %c0_i32_1 = arith.constant 0 : i32
    return %c0_i32, %c0_i32_0 : i32, i32
  }
  func.func @transform_3(%arg0: i32) -> (i32, i32, i32, i32) {
    %c0_i32 = arith.constant 0 : i32
    %c0_i32_0 = arith.constant 0 : i32
    %c0_i32_1 = arith.constant 0 : i32
    %c0_i32_2 = arith.constant 0 : i32
    return %arg0, %c0_i32, %c0_i32_0, %c0_i32_1 : i32, i32, i32, i32
  }
  func.func @transform_4(%arg0: i32) -> (i32, i32, i32, i32) {
    %c0_i32 = arith.constant 0 : i32
    %c0_i32_0 = arith.constant 0 : i32
    %c0_i32_1 = arith.constant 0 : i32
    %c0_i32_2 = arith.constant 0 : i32
    return %arg0, %c0_i32, %c0_i32_0, %c0_i32_1 : i32, i32, i32, i32
  }
}

module attributes {stable_mosaic.version = 11 : i64} {
  func.func @_fuse_kernel(%arg0: i32, %arg1: i32, %arg2: memref<1x3x8x8xf32, #tpu.memory_space<vmem>>, %arg3: memref<1x3x8x8xf32, #tpu.memory_space<vmem>>, %arg4: memref<1x3x64x64xbf16, #tpu.memory_space<vmem>>, %arg5: memref<64x8xbf16, #tpu.memory_space<vmem>>, %arg6: memref<8x64xbf16, #tpu.memory_space<vmem>>, %arg7: memref<1x3x64x64xf32, #tpu.memory_space<vmem>>) attributes {dimension_semantics = [#tpu.dimension_semantics<parallel>, #tpu.dimension_semantics<parallel>], iteration_bounds = array<i64: 2, 1>, scalar_prefetch = 0 : i64, scratch_operands = 0 : i64, tpu.core_type = #tpu.core_type<tc>, window_params = [{transform_indices = @transform_0, window_bounds = array<i64: 1, 3, 8, 8>}, {transform_indices = @transform_1, window_bounds = array<i64: 1, 3, 8, 8>}, {transform_indices = @transform_2, window_bounds = array<i64: 1, 3, 64, 64>}, {transform_indices = @transform_3, window_bounds = array<i64: 64, 8>}, {pipeline_mode = #tpu.pipeline_mode<synchronous>, transform_indices = @transform_4, window_bounds = array<i64: 8, 64>}, {transform_indices = @transform_5, window_bounds = array<i64: 1, 3, 64, 64>}]} {
    %c0 = arith.constant 0 : index
    %c0_0 = arith.constant 0 : index
    %0 = vector.load %arg5[%c0, %c0_0] : memref<64x8xbf16, #tpu.memory_space<vmem>>, vector<64x8xbf16>
    %c0_1 = arith.constant 0 : index
    %c0_2 = arith.constant 0 : index
    %1 = vector.load %arg6[%c0_1, %c0_2] : memref<8x64xbf16, #tpu.memory_space<vmem>>, vector<8x64xbf16>
    %c0_3 = arith.constant 0 : index
    %c0_4 = arith.constant 0 : index
    %c0_5 = arith.constant 0 : index
    %c0_6 = arith.constant 0 : index
    %2 = vector.load %arg2[%c0_3, %c0_4, %c0_5, %c0_6] : memref<1x3x8x8xf32, #tpu.memory_space<vmem>>, vector<1x1x8x8xf32>
    %3 = vector.shape_cast %2 : vector<1x1x8x8xf32> to vector<8x8xf32>
    %4 = arith.truncf %3 : vector<8x8xf32> to vector<8x8xbf16>
    %c0_7 = arith.constant 0 : index
    %c0_8 = arith.constant 0 : index
    %c0_9 = arith.constant 0 : index
    %c0_10 = arith.constant 0 : index
    %5 = vector.load %arg3[%c0_7, %c0_8, %c0_9, %c0_10] : memref<1x3x8x8xf32, #tpu.memory_space<vmem>>, vector<1x1x8x8xf32>
    %6 = vector.shape_cast %5 : vector<1x1x8x8xf32> to vector<8x8xf32>
    %7 = arith.truncf %6 : vector<8x8xf32> to vector<8x8xbf16>
    %cst = arith.constant dense<0.000000e+00> : vector<64x8xf32>
    %8 = tpu.matmul %0, %4, %cst {dimension_numbers = #tpu.dot_dimension_numbers<[1], [0], [0], [1], [0, 0, 1, 1], [], []>} : vector<64x8xbf16>, vector<8x8xbf16>, vector<64x8xf32> -> vector<64x8xf32>
    %9 = arith.truncf %8 : vector<64x8xf32> to vector<64x8xbf16>
    %cst_11 = arith.constant dense<0.000000e+00> : vector<64x8xf32>
    %10 = tpu.matmul %0, %7, %cst_11 {dimension_numbers = #tpu.dot_dimension_numbers<[1], [0], [0], [1], [0, 0, 1, 1], [], []>} : vector<64x8xbf16>, vector<8x8xbf16>, vector<64x8xf32> -> vector<64x8xf32>
    %11 = arith.truncf %10 : vector<64x8xf32> to vector<64x8xbf16>
    %cst_12 = arith.constant dense<0.000000e+00> : vector<64x64xf32>
    %12 = tpu.matmul %9, %1, %cst_12 {dimension_numbers = #tpu.dot_dimension_numbers<[1], [0], [0], [1], [0, 0, 1, 1], [], []>} : vector<64x8xbf16>, vector<8x64xbf16>, vector<64x64xf32> -> vector<64x64xf32>
    %cst_13 = arith.constant dense<0.000000e+00> : vector<64x64xf32>
    %13 = tpu.matmul %11, %1, %cst_13 {dimension_numbers = #tpu.dot_dimension_numbers<[1], [0], [0], [1], [0, 0, 1, 1], [], []>} : vector<64x8xbf16>, vector<8x64xbf16>, vector<64x64xf32> -> vector<64x64xf32>
    %c0_14 = arith.constant 0 : index
    %c0_15 = arith.constant 0 : index
    %c0_16 = arith.constant 0 : index
    %c0_17 = arith.constant 0 : index
    %14 = vector.load %arg4[%c0_14, %c0_15, %c0_16, %c0_17] : memref<1x3x64x64xbf16, #tpu.memory_space<vmem>>, vector<1x1x64x64xbf16>
    %15 = vector.shape_cast %14 : vector<1x1x64x64xbf16> to vector<64x64xbf16>
    %16 = arith.extf %15 : vector<64x64xbf16> to vector<64x64xf32>
    %17 = arith.mulf %12, %16 : vector<64x64xf32>
    %18 = arith.addf %17, %13 : vector<64x64xf32>
    %cst_18 = arith.constant 0.000000e+00 : f32
    %cst_19 = arith.constant 1.000000e+00 : f32
    %19 = vector.broadcast %cst_18 : f32 to vector<64x64xf32>
    %20 = arith.maximumf %19, %18 : vector<64x64xf32>
    %21 = vector.broadcast %cst_19 : f32 to vector<64x64xf32>
    %22 = arith.minimumf %21, %20 : vector<64x64xf32>
    %c0_20 = arith.constant 0 : index
    %c0_21 = arith.constant 0 : index
    %c0_22 = arith.constant 0 : index
    %c0_23 = arith.constant 0 : index
    %23 = vector.load %arg7[%c0_20, %c0_21, %c0_22, %c0_23] : memref<1x3x64x64xf32, #tpu.memory_space<vmem>>, vector<1x1x64x64xf32>
    %24 = vector.shape_cast %23 : vector<1x1x64x64xf32> to vector<64x64xf32>
    %25 = vector.shape_cast %22 : vector<64x64xf32> to vector<1x1x64x64xf32>
    tpu.vector_store %arg7[%c0_20, %c0_21, %c0_22, %c0_23], %25 {strides = array<i32>} : memref<1x3x64x64xf32, #tpu.memory_space<vmem>>, vector<1x1x64x64xf32>,
    %c0_24 = arith.constant 0 : index
    %c1 = arith.constant 1 : index
    %c0_25 = arith.constant 0 : index
    %c0_26 = arith.constant 0 : index
    %26 = vector.load %arg2[%c0_24, %c1, %c0_25, %c0_26] : memref<1x3x8x8xf32, #tpu.memory_space<vmem>>, vector<1x1x8x8xf32>
    %27 = vector.shape_cast %26 : vector<1x1x8x8xf32> to vector<8x8xf32>
    %28 = arith.truncf %27 : vector<8x8xf32> to vector<8x8xbf16>
    %c0_27 = arith.constant 0 : index
    %c1_28 = arith.constant 1 : index
    %c0_29 = arith.constant 0 : index
    %c0_30 = arith.constant 0 : index
    %29 = vector.load %arg3[%c0_27, %c1_28, %c0_29, %c0_30] : memref<1x3x8x8xf32, #tpu.memory_space<vmem>>, vector<1x1x8x8xf32>
    %30 = vector.shape_cast %29 : vector<1x1x8x8xf32> to vector<8x8xf32>
    %31 = arith.truncf %30 : vector<8x8xf32> to vector<8x8xbf16>
    %cst_31 = arith.constant dense<0.000000e+00> : vector<64x8xf32>
    %32 = tpu.matmul %0, %28, %cst_31 {dimension_numbers = #tpu.dot_dimension_numbers<[1], [0], [0], [1], [0, 0, 1, 1], [], []>} : vector<64x8xbf16>, vector<8x8xbf16>, vector<64x8xf32> -> vector<64x8xf32>
    %33 = arith.truncf %32 : vector<64x8xf32> to vector<64x8xbf16>
    %cst_32 = arith.constant dense<0.000000e+00> : vector<64x8xf32>
    %34 = tpu.matmul %0, %31, %cst_32 {dimension_numbers = #tpu.dot_dimension_numbers<[1], [0], [0], [1], [0, 0, 1, 1], [], []>} : vector<64x8xbf16>, vector<8x8xbf16>, vector<64x8xf32> -> vector<64x8xf32>
    %35 = arith.truncf %34 : vector<64x8xf32> to vector<64x8xbf16>
    %cst_33 = arith.constant dense<0.000000e+00> : vector<64x64xf32>
    %36 = tpu.matmul %33, %1, %cst_33 {dimension_numbers = #tpu.dot_dimension_numbers<[1], [0], [0], [1], [0, 0, 1, 1], [], []>} : vector<64x8xbf16>, vector<8x64xbf16>, vector<64x64xf32> -> vector<64x64xf32>
    %cst_34 = arith.constant dense<0.000000e+00> : vector<64x64xf32>
    %37 = tpu.matmul %35, %1, %cst_34 {dimension_numbers = #tpu.dot_dimension_numbers<[1], [0], [0], [1], [0, 0, 1, 1], [], []>} : vector<64x8xbf16>, vector<8x64xbf16>, vector<64x64xf32> -> vector<64x64xf32>
    %c0_35 = arith.constant 0 : index
    %c1_36 = arith.constant 1 : index
    %c0_37 = arith.constant 0 : index
    %c0_38 = arith.constant 0 : index
    %38 = vector.load %arg4[%c0_35, %c1_36, %c0_37, %c0_38] : memref<1x3x64x64xbf16, #tpu.memory_space<vmem>>, vector<1x1x64x64xbf16>
    %39 = vector.shape_cast %38 : vector<1x1x64x64xbf16> to vector<64x64xbf16>
    %40 = arith.extf %39 : vector<64x64xbf16> to vector<64x64xf32>
    %41 = arith.mulf %36, %40 : vector<64x64xf32>
    %42 = arith.addf %41, %37 : vector<64x64xf32>
    %cst_39 = arith.constant 0.000000e+00 : f32
    %cst_40 = arith.constant 1.000000e+00 : f32
    %43 = vector.broadcast %cst_39 : f32 to vector<64x64xf32>
    %44 = arith.maximumf %43, %42 : vector<64x64xf32>
    %45 = vector.broadcast %cst_40 : f32 to vector<64x64xf32>
    %46 = arith.minimumf %45, %44 : vector<64x64xf32>
    %c0_41 = arith.constant 0 : index
    %c1_42 = arith.constant 1 : index
    %c0_43 = arith.constant 0 : index
    %c0_44 = arith.constant 0 : index
    %47 = vector.load %arg7[%c0_41, %c1_42, %c0_43, %c0_44] : memref<1x3x64x64xf32, #tpu.memory_space<vmem>>, vector<1x1x64x64xf32>
    %48 = vector.shape_cast %47 : vector<1x1x64x64xf32> to vector<64x64xf32>
    %49 = vector.shape_cast %46 : vector<64x64xf32> to vector<1x1x64x64xf32>
    tpu.vector_store %arg7[%c0_41, %c1_42, %c0_43, %c0_44], %49 {strides = array<i32>} : memref<1x3x64x64xf32, #tpu.memory_space<vmem>>, vector<1x1x64x64xf32>,
    %c0_45 = arith.constant 0 : index
    %c2 = arith.constant 2 : index
    %c0_46 = arith.constant 0 : index
    %c0_47 = arith.constant 0 : index
    %50 = vector.load %arg2[%c0_45, %c2, %c0_46, %c0_47] : memref<1x3x8x8xf32, #tpu.memory_space<vmem>>, vector<1x1x8x8xf32>
    %51 = vector.shape_cast %50 : vector<1x1x8x8xf32> to vector<8x8xf32>
    %52 = arith.truncf %51 : vector<8x8xf32> to vector<8x8xbf16>
    %c0_48 = arith.constant 0 : index
    %c2_49 = arith.constant 2 : index
    %c0_50 = arith.constant 0 : index
    %c0_51 = arith.constant 0 : index
    %53 = vector.load %arg3[%c0_48, %c2_49, %c0_50, %c0_51] : memref<1x3x8x8xf32, #tpu.memory_space<vmem>>, vector<1x1x8x8xf32>
    %54 = vector.shape_cast %53 : vector<1x1x8x8xf32> to vector<8x8xf32>
    %55 = arith.truncf %54 : vector<8x8xf32> to vector<8x8xbf16>
    %cst_52 = arith.constant dense<0.000000e+00> : vector<64x8xf32>
    %56 = tpu.matmul %0, %52, %cst_52 {dimension_numbers = #tpu.dot_dimension_numbers<[1], [0], [0], [1], [0, 0, 1, 1], [], []>} : vector<64x8xbf16>, vector<8x8xbf16>, vector<64x8xf32> -> vector<64x8xf32>
    %57 = arith.truncf %56 : vector<64x8xf32> to vector<64x8xbf16>
    %cst_53 = arith.constant dense<0.000000e+00> : vector<64x8xf32>
    %58 = tpu.matmul %0, %55, %cst_53 {dimension_numbers = #tpu.dot_dimension_numbers<[1], [0], [0], [1], [0, 0, 1, 1], [], []>} : vector<64x8xbf16>, vector<8x8xbf16>, vector<64x8xf32> -> vector<64x8xf32>
    %59 = arith.truncf %58 : vector<64x8xf32> to vector<64x8xbf16>
    %cst_54 = arith.constant dense<0.000000e+00> : vector<64x64xf32>
    %60 = tpu.matmul %57, %1, %cst_54 {dimension_numbers = #tpu.dot_dimension_numbers<[1], [0], [0], [1], [0, 0, 1, 1], [], []>} : vector<64x8xbf16>, vector<8x64xbf16>, vector<64x64xf32> -> vector<64x64xf32>
    %cst_55 = arith.constant dense<0.000000e+00> : vector<64x64xf32>
    %61 = tpu.matmul %59, %1, %cst_55 {dimension_numbers = #tpu.dot_dimension_numbers<[1], [0], [0], [1], [0, 0, 1, 1], [], []>} : vector<64x8xbf16>, vector<8x64xbf16>, vector<64x64xf32> -> vector<64x64xf32>
    %c0_56 = arith.constant 0 : index
    %c2_57 = arith.constant 2 : index
    %c0_58 = arith.constant 0 : index
    %c0_59 = arith.constant 0 : index
    %62 = vector.load %arg4[%c0_56, %c2_57, %c0_58, %c0_59] : memref<1x3x64x64xbf16, #tpu.memory_space<vmem>>, vector<1x1x64x64xbf16>
    %63 = vector.shape_cast %62 : vector<1x1x64x64xbf16> to vector<64x64xbf16>
    %64 = arith.extf %63 : vector<64x64xbf16> to vector<64x64xf32>
    %65 = arith.mulf %60, %64 : vector<64x64xf32>
    %66 = arith.addf %65, %61 : vector<64x64xf32>
    %cst_60 = arith.constant 0.000000e+00 : f32
    %cst_61 = arith.constant 1.000000e+00 : f32
    %67 = vector.broadcast %cst_60 : f32 to vector<64x64xf32>
    %68 = arith.maximumf %67, %66 : vector<64x64xf32>
    %69 = vector.broadcast %cst_61 : f32 to vector<64x64xf32>
    %70 = arith.minimumf %69, %68 : vector<64x64xf32>
    %c0_62 = arith.constant 0 : index
    %c2_63 = arith.constant 2 : index
    %c0_64 = arith.constant 0 : index
    %c0_65 = arith.constant 0 : index
    %71 = vector.load %arg7[%c0_62, %c2_63, %c0_64, %c0_65] : memref<1x3x64x64xf32, #tpu.memory_space<vmem>>, vector<1x1x64x64xf32>
    %72 = vector.shape_cast %71 : vector<1x1x64x64xf32> to vector<64x64xf32>
    %73 = vector.shape_cast %70 : vector<64x64xf32> to vector<1x1x64x64xf32>
    tpu.vector_store %arg7[%c0_62, %c2_63, %c0_64, %c0_65], %73 {strides = array<i32>} : memref<1x3x64x64xf32, #tpu.memory_space<vmem>>, vector<1x1x64x64xf32>,
    return
  }
  func.func @transform_0(%arg0: i32, %arg1: i32) -> (i32, i32, i32, i32) {
    %c0_i32 = arith.constant 0 : i32
    %c0_i32_0 = arith.constant 0 : i32
    %c0_i32_1 = arith.constant 0 : i32
    %c0_i32_2 = arith.constant 0 : i32
    return %arg0, %c0_i32, %c0_i32_0, %c0_i32_1 : i32, i32, i32, i32
  }
  func.func @transform_1(%arg0: i32, %arg1: i32) -> (i32, i32, i32, i32) {
    %c0_i32 = arith.constant 0 : i32
    %c0_i32_0 = arith.constant 0 : i32
    %c0_i32_1 = arith.constant 0 : i32
    %c0_i32_2 = arith.constant 0 : i32
    return %arg0, %c0_i32, %c0_i32_0, %c0_i32_1 : i32, i32, i32, i32
  }
  func.func @transform_2(%arg0: i32, %arg1: i32) -> (i32, i32, i32, i32) {
    %c0_i32 = arith.constant 0 : i32
    %c0_i32_0 = arith.constant 0 : i32
    %c0_i32_1 = arith.constant 0 : i32
    return %arg0, %c0_i32, %arg1, %c0_i32_0 : i32, i32, i32, i32
  }
  func.func @transform_3(%arg0: i32, %arg1: i32) -> (i32, i32) {
    %c0_i32 = arith.constant 0 : i32
    %c0_i32_0 = arith.constant 0 : i32
    return %arg1, %c0_i32 : i32, i32
  }
  func.func @transform_4(%arg0: i32, %arg1: i32) -> (i32, i32) {
    %c0_i32 = arith.constant 0 : i32
    %c0_i32_0 = arith.constant 0 : i32
    %c0_i32_1 = arith.constant 0 : i32
    return %c0_i32, %c0_i32_0 : i32, i32
  }
  func.func @transform_5(%arg0: i32, %arg1: i32) -> (i32, i32, i32, i32) {
    %c0_i32 = arith.constant 0 : i32
    %c0_i32_0 = arith.constant 0 : i32
    %c0_i32_1 = arith.constant 0 : i32
    return %arg0, %c0_i32, %arg1, %c0_i32_0 : i32, i32, i32, i32
  }
}

</mosaic_0001>

<bundles_post_ra>
// kernel: deep_guided_filter_forward.14
= control target key start
LH: loop header
LB: loop body
LE: loop exit
PB: predicated region body
PF: predicated region fallthrough
CT: control target
= control target key end

     0   :  { %s347_s9 = smov 0   ;;  %s367_s0 = inlined_call_operand.vmem [shape: bf16[6,64,8], index: 0, kind: input, shape index: {}]   ;;  %s368_s1 = inlined_call_operand.vmem [shape: bf16[8,64], index: 1, kind: input, shape index: {}]   ;;  %s369_s2 = inlined_call_operand.vmem [shape: f32[6,8,8], index: 2, kind: output, shape index: {}]  }
   0x1 LB: > { %s275_s10 = sadd.s32 4294967295, %s328_s9   ;;  %p279_p0 = scmp.ge.s32.totalorder %s328_s9, 1  ;;  %s328_s9 = sphi %s347_s9, %s12_s9  }
   0x2   : > { %p112_p1 = scmp.lt.s32.totalorder %s328_s9, 7 }
   0x4   : > { %p113_p2 = pnand %p279_p0, %p112_p1 }
   0x5   : > { %p133_p3 = scmp.lt.s32.totalorder (!%p113_p2), %s275_s10, 5  ;;  %v330_v0 = vmov (!%p113_p2), 0.0   ;;  %vm331_vm0 = vmmov (!%p113_p2), 0   ;;  %v143_v5 = vld [vmem:[%s368_s1] sm:$0xf] (!%p113_p2)  ;;  %vm176_vm1 = vcmask (!%p113_p2), 523264  }
   0x6   : > { %116 = sbr.rel (%p113_p2) target bundleno = 247 (0xf7), region = 28  ;;  %296 = vmatprep.subr.bf16.mxu0 (!%p113_p2), %v330_v0  ;;  %304 = vmatprep.mubr.msk.bf16.mxu0 (!%p113_p2), %vm331_vm0, %v330_v0  ;;  %vm220_vm2 = vcmask (!%p113_p2), 64512  }
   0xd   : > { %s371_s10 = smov (!%p133_p3, %s275_s10), 5 }
   0xe   : > { %s290_s11 = sshll.u32 %s371_s10, 5  ;;  %s282_s17 = sshll.u32 %s371_s10, 3 }
   0xf   : > { %s137_s14 = scalar_lea.vmem %s367_s0, %s290_s11  ;;  %s141_s20 = scalar_lea.vmem %s369_s2, %s282_s17 }
  0x10   : > { %v318_v1 = vld [vmem:[%s137_s14] sm:$0xff]   ;;  %v319_v2 = vld [vmem:[%s137_s14 + $0x8] sm:$0xff]   ;;  %v320_v3 = vld [vmem:[%s137_s14 + $0x10] sm:$0xff]  }
  0x11   : > { %297 = vmatpush3.bf16.msra.mxu0 %v318_v1  ;;  %v321_v4 = vld [vmem:[%s137_s14 + $0x18] sm:$0xff]  }
  0x12   : > { %298 = vmatprep.subr.bf16.mxu0 %v330_v0 }
  0x15   : > { %299 = vmatpush3.bf16.msra.mxu0 %v319_v2 }
  0x16   : > { %300 = vmatprep.subr.bf16.mxu0 %v330_v0 }
  0x19   : > { %301 = vmatpush3.bf16.msra.mxu0 %v320_v3 }
  0x1a   : > { %302 = vmatprep.subr.bf16.mxu0 %v330_v0 }
  0x1d   : > { %303 = vmatpush3.bf16.msra.mxu0 %v321_v4 }
  0x20   : > { %305 = vmatmul.mubr.msk.bf16.vlgmr.msra.gmra.mrb[0].mxu0 %vm176_vm1, %v143_v5 }
  0xf3   : > { %v214_v6 = vpop.f32.mrb[0].mxu0 }
  0xf4   : > { %221 = vst.msk [vmem:[%s141_s20] sm:$0xff] %vm220_vm2, %v214_v6  ;;  %v306_v7 = vpop.f32.mrb[1].mxu0 }
  0xf5   : > { %v217_v8 = vpop.f32.mrb[2].mxu0 }
  0xf6   : > { %v307_v9 = vpop.f32.mrb[3].mxu0 }
  0xf7 PF: > { %s12_s9 = sadd.s32 1, %s328_s9  }
  0xf8   : > { %p9_p4 = scmp.ge.s32.totalorder %s12_s9, 8  }
  0xfa   :  { %11 = sbr.rel (!%p9_p4) target bundleno = 1 (0x1), region = 58 }

// kernel: deep_guided_filter_forward.13
= control target key start
LH: loop header
LB: loop body
LE: loop exit
PB: predicated region body
PF: predicated region fallthrough
CT: control target
= control target key end

     0   :  { %s824_s9 = smov 0   ;;  %s826_s10 = smov 0   ;;  %s961_s0 = inlined_call_operand.vmem [shape: f32[2,192,64], index: 0, kind: input, shape index: {}]   ;;  %s962_s1 = inlined_call_operand.vmem [shape: bf16[64,8], index: 1, kind: input, shape index: {}]   ;;  %s963_s2 = inlined_call_operand.vmem [shape: bf16[2,192,8], index: 2, kind: output, shape index: {}]  }
   0x1   :  { %s828_s11 = smov 0  }
   0x2 LB: > { %s24_s12 = sadd.s32 1, %s803_s10  ;;  %p630_p0 = scmp.ge.s32.totalorder %s807_s11, 1  ;;  %s807_s11 = sphi %s828_s11, %s12_s11   ;;  %s803_s10 = sphi %s826_s10, %s965_s10   ;;  %s799_s9 = sphi %s824_s9, %s964_s9  }
   0x3   : > { %p26_p1 = scmp.ge.s32.totalorder %s24_s12, 2  ;;  %p133_p2 = scmp.lt.s32.totalorder %s807_s11, 3 }
   0x5   : > { %s967_s12 = smov (%p26_p1, %s24_s12), 0  ;;  %p134_p3 = pnand %p630_p0, %p133_p2 }
   0x6   : > { %v781_v0 = vld [vmem:[%s962_s1] sm:$0xff] (!%p134_p3)   ;;  %p164_p4 = scmp.lt.s32.totalorder (!%p134_p3), %s799_s9, 1  ;;  %v782_v1 = vld [vmem:[%s962_s1 + $0x8] sm:$0xff] (!%p134_p3)   ;;  %v783_v2 = vld [vmem:[%s962_s1 + $0x10] sm:$0xff] (!%p134_p3)   ;;  %vm252_vm0 = vcmask (!%p134_p3), 523264   ;;  %vm514_vm1 = vcmask (!%p134_p3), 60416  }
   0x7   : > { %137 = sbr.rel (%p134_p3) target bundleno = 257 (0x101), region = 28  ;;  %715 = vmatprep.subr.bf16.mxu0 (!%p134_p3), %v781_v0  ;;  %747 = vmatprep.subr.bf16.mxu1 (!%p134_p3), %v781_v0  ;;  %v784_v6 = vld [vmem:[%s962_s1 + $0x18] sm:$0xff] (!%p134_p3)  }
   0x8   : > { %716 = vmatpush3.bf16.msra.mxu0 (!%p134_p3), %v781_v0  ;;  %751 = vmatpush3.bf16.msra.mxu1 (!%p134_p3), %v781_v0 }
   0x9   : > { %717 = vmatprep.subr.bf16.mxu0 (!%p134_p3), %v782_v1  ;;  %748 = vmatprep.subr.bf16.mxu1 (!%p134_p3), %v782_v1 }
   0xc   : > { %718 = vmatpush3.bf16.msra.mxu0 (!%p134_p3), %v782_v1  ;;  %752 = vmatpush3.bf16.msra.mxu1 (!%p134_p3), %v782_v1 }
   0xd   : > { %719 = vmatprep.subr.bf16.mxu0 (!%p134_p3), %v783_v2  ;;  %749 = vmatprep.subr.bf16.mxu1 (!%p134_p3), %v783_v2 }
   0xe   : > { %s969_s9 = smov (!%p164_p4, %s799_s9), 1 }
   0xf   : > { %s755_s19 = smul.u32 192, %s969_s9 }
  0x10   : > { %720 = vmatpush3.bf16.msra.mxu0 %v783_v2  ;;  %753 = vmatpush3.bf16.msra.mxu1 %v783_v2  ;;  %s756_s25 = smul.u32 96, %s969_s9 }
  0x11   : > { %s857_s22 = scalar_lea.vmem %s961_s0, %s755_s19  ;;  %721 = vmatprep.subr.bf16.mxu0 %v784_v6  ;;  %750 = vmatprep.subr.bf16.mxu1 %v784_v6 }
  0x12   : > { %v184_v3 = vld [vmem:[%s857_s22] sm:$0xff]  ;;  %v185_v4 = vld [vmem:[%s857_s22 + $0x8] sm:$0xff]  ;;  %v186_v10 = vld [vmem:[%s857_s22 + $0x10] sm:$0xff]  ;;  %s902_s28 = scalar_lea.vmem %s963_s2, %s756_s25 }
  0x13   : > { %v196_v5 = vld [vmem:[%s857_s22 + $0x60] sm:$0xff]  ;;  %v208_v7 = vpack.c.bf16 %v185_v4, %v184_v3  ;;  %v197_v8 = vld [vmem:[%s857_s22 + $0x68] sm:$0xff]  ;;  %v187_v11 = vld [vmem:[%s857_s22 + $0x18] sm:$0xff] }
  0x14   : > { %v214_v9 = vpack.c.bf16 %v197_v8, %v196_v5  ;;  %v198_v12 = vld [vmem:[%s857_s22 + $0x70] sm:$0xff]  ;;  %v199_v13 = vld [vmem:[%s857_s22 + $0x78] sm:$0xff]  ;;  %v188_v14 = vld [vmem:[%s857_s22 + $0x20] sm:$0xff]  ;;  %v209_v18 = vpack.c.bf16 %v187_v11, %v186_v10  ;;  %722 = vmatpush3.bf16.msra.mxu0 %v784_v6  ;;  %754 = vmatpush3.bf16.msra.mxu1 %v784_v6 }
  0x15   : > { %723 = vmatprep.mubr.msk.bf16.mxu0 %vm252_vm0, %v208_v7  ;;  %v189_v15 = vld [vmem:[%s857_s22 + $0x28] sm:$0xff]  ;;  %v200_v16 = vld [vmem:[%s857_s22 + $0x80] sm:$0xff]  ;;  %v215_v19 = vpack.c.bf16 %v199_v13, %v198_v12  ;;  %v190_v22 = vld [vmem:[%s857_s22 + $0x30] sm:$0xff] }
  0x16   : > { %v201_v17 = vld [vmem:[%s857_s22 + $0x88] sm:$0xff]  ;;  %735 = vmatprep.mubr.msk.bf16.mxu1 %vm252_vm0, %v214_v9  ;;  %v210_v20 = vpack.c.bf16 %v189_v15, %v188_v14  ;;  %v191_v23 = vld [vmem:[%s857_s22 + $0x38] sm:$0xff]  ;;  %v202_v24 = vld [vmem:[%s857_s22 + $0x90] sm:$0xff] }
  0x17   : > { %v216_v21 = vpack.c.bf16 %v201_v17, %v200_v16  ;;  %724 = vmatmul.mubr.msk.bf16.vlgmr.msra.gmra.mrb[0].mxu0 %vm252_vm0, %v209_v18  ;;  %736 = vmatmul.mubr.msk.bf16.vlgmr.msra.gmra.mrb[0].mxu1 %vm252_vm0, %v215_v19  ;;  %v203_v25 = vld [vmem:[%s857_s22 + $0x98] sm:$0xff]  ;;  %v192_v26 = vld [vmem:[%s857_s22 + $0x40] sm:$0xff]  ;;  %v193_v27 = vld [vmem:[%s857_s22 + $0x48] sm:$0xff]  ;;  %v211_v30 = vpack.c.bf16 %v191_v23, %v190_v22 }
  0x18   : > { %727 = vmatprep.mubr.msk.bf16.mxu0 %vm252_vm0, %v210_v20  ;;  %v204_v28 = vld [vmem:[%s857_s22 + $0xa0] sm:$0xff]  ;;  %v205_v29 = vld [vmem:[%s857_s22 + $0xa8] sm:$0xff]  ;;  %v217_v31 = vpack.c.bf16 %v203_v25, %v202_v24  ;;  %v212_v32 = vpack.c.bf16 %v193_v27, %v192_v26  ;;  %v194_v34 = vld [vmem:[%s857_s22 + $0x50] sm:$0xff] }
  0x19   : > { %739 = vmatprep.mubr.msk.bf16.mxu1 %vm252_vm0, %v216_v21  ;;  %v218_v33 = vpack.c.bf16 %v205_v29, %v204_v28  ;;  %v195_v35 = vld [vmem:[%s857_s22 + $0x58] sm:$0xff]  ;;  %v206_v36 = vld [vmem:[%s857_s22 + $0xb0] sm:$0xff] }
  0x1a   : > { %v207_v37 = vld [vmem:[%s857_s22 + $0xb8] sm:$0xff]  ;;  %v213_v38 = vpack.c.bf16 %v195_v35, %v194_v34 }
  0x1b   : > { %v219_v39 = vpack.c.bf16 %v207_v37, %v206_v36 }
  0x1f   : > { %728 = vmatmul.mubr.msk.bf16.gmra.mrb[4].mxu0 %vm252_vm0, %v211_v30  ;;  %740 = vmatmul.mubr.msk.bf16.gmra.mrb[4].mxu1 %vm252_vm0, %v217_v31 }
  0x20   : > { %731 = vmatprep.mubr.msk.bf16.mxu0 %vm252_vm0, %v212_v32  ;;  %743 = vmatprep.mubr.msk.bf16.mxu1 %vm252_vm0, %v218_v33 }
  0x27   : > { %732 = vmatmul.mubr.msk.bf16.gmra.mrb[8].mxu0 %vm252_vm0, %v213_v38  ;;  %744 = vmatmul.mubr.msk.bf16.gmra.mrb[8].mxu1 %vm252_vm0, %v219_v39 }
  0xea   : > { %v725_v40 = vpop.f32.mrb[0].mxu0  ;;  %v737_v41 = vpop.f32.mrb[0].mxu1 }
  0xeb   : > { %v677_v42 = vpack.c.bf16 %v725_v40, %v725_v40  ;;  %v689_v43 = vpack.c.bf16 %v737_v41, %v737_v41  ;;  %v323_v44 = vpop.f32.mrb[1].mxu0  ;;  %v371_v45 = vpop.f32.mrb[1].mxu1 }
  0xec   : > { %v675_v46 = vpack.c.bf16 %v323_v44, %v323_v44  ;;  %v687_v47 = vpack.c.bf16 %v371_v45, %v371_v45  ;;  %v726_v48 = vpop.f32.mrb[2].mxu0  ;;  %v738_v49 = vpop.f32.mrb[2].mxu1 }
  0xed   : > { %517 = vst.msk [vmem:[%s902_s28 + $0x8] sm:$0xf] %vm514_vm1, %v677_v42  ;;  %529 = vst.msk [vmem:[%s902_s28 + $0x38] sm:$0xf] %vm514_vm1, %v689_v43  ;;  %v678_v50 = vpack.c.bf16 %v726_v48, %v726_v48  ;;  %v690_v51 = vpack.c.bf16 %v738_v49, %v738_v49  ;;  %v326_v52 = vpop.f32.mrb[3].mxu0  ;;  %v374_v53 = vpop.f32.mrb[3].mxu1 }
  0xee   : > { %515 = vst.msk [vmem:[%s902_s28] sm:$0xf] %vm514_vm1, %v675_v46  ;;  %527 = vst.msk [vmem:[%s902_s28 + $0x30] sm:$0xf] %vm514_vm1, %v687_v47  ;;  %v676_v54 = vpack.c.bf16 %v326_v52, %v326_v52  ;;  %v688_v55 = vpack.c.bf16 %v374_v53, %v374_v53 }
  0xef   : > { %518 = vst.msk [vmem:[%s902_s28 + $0xc] sm:$0xf] %vm514_vm1, %v678_v50  ;;  %530 = vst.msk [vmem:[%s902_s28 + $0x3c] sm:$0xf] %vm514_vm1, %v690_v51 }
  0xf0   : > { %516 = vst.msk [vmem:[%s902_s28 + $0x4] sm:$0xf] %vm514_vm1, %v676_v54  ;;  %528 = vst.msk [vmem:[%s902_s28 + $0x34] sm:$0xf] %vm514_vm1, %v688_v55 }
  0xf2   : > { %v729_v56 = vpop.f32.mrb[4].mxu0  ;;  %v741_v57 = vpop.f32.mrb[4].mxu1 }
  0xf3   : > { %v681_v58 = vpack.c.bf16 %v729_v56, %v729_v56  ;;  %v693_v59 = vpack.c.bf16 %v741_v57, %v741_v57  ;;  %v339_v60 = vpop.f32.mrb[5].mxu0  ;;  %v387_v61 = vpop.f32.mrb[5].mxu1 }
  0xf4   : > { %v679_v62 = vpack.c.bf16 %v339_v60, %v339_v60  ;;  %v691_v63 = vpack.c.bf16 %v387_v61, %v387_v61  ;;  %v730_v0 = vpop.f32.mrb[6].mxu0  ;;  %v742_v1 = vpop.f32.mrb[6].mxu1 }
  0xf5   : > { %521 = vst.msk [vmem:[%s902_s28 + $0x18] sm:$0xf] %vm514_vm1, %v681_v58  ;;  %533 = vst.msk [vmem:[%s902_s28 + $0x48] sm:$0xf] %vm514_vm1, %v693_v59  ;;  %v682_v2 = vpack.c.bf16 %v730_v0, %v730_v0  ;;  %v694_v3 = vpack.c.bf16 %v742_v1, %v742_v1  ;;  %v342_v4 = vpop.f32.mrb[7].mxu0  ;;  %v390_v5 = vpop.f32.mrb[7].mxu1 }
  0xf6   : > { %519 = vst.msk [vmem:[%s902_s28 + $0x10] sm:$0xf] %vm514_vm1, %v679_v62  ;;  %531 = vst.msk [vmem:[%s902_s28 + $0x40] sm:$0xf] %vm514_vm1, %v691_v63  ;;  %v680_v6 = vpack.c.bf16 %v342_v4, %v342_v4  ;;  %v692_v7 = vpack.c.bf16 %v390_v5, %v390_v5 }
  0xf7   : > { %522 = vst.msk [vmem:[%s902_s28 + $0x1c] sm:$0xf] %vm514_vm1, %v682_v2  ;;  %534 = vst.msk [vmem:[%s902_s28 + $0x4c] sm:$0xf] %vm514_vm1, %v694_v3 }
  0xf8   : > { %520 = vst.msk [vmem:[%s902_s28 + $0x14] sm:$0xf] %vm514_vm1, %v680_v6  ;;  %532 = vst.msk [vmem:[%s902_s28 + $0x44] sm:$0xf] %vm514_vm1, %v692_v7 }
  0xfa   : > { %v733_v8 = vpop.f32.mrb[8].mxu0  ;;  %v745_v9 = vpop.f32.mrb[8].mxu1 }
  0xfb   : > { %v685_v10 = vpack.c.bf16 %v733_v8, %v733_v8  ;;  %v697_v11 = vpack.c.bf16 %v745_v9, %v745_v9  ;;  %v355_v12 = vpop.f32.mrb[9].mxu0  ;;  %v403_v13 = vpop.f32.mrb[9].mxu1 }
  0xfc   : > { %v683_v14 = vpack.c.bf16 %v355_v12, %v355_v12  ;;  %v695_v15 = vpack.c.bf16 %v403_v13, %v403_v13  ;;  %v734_v16 = vpop.f32.mrb[10].mxu0  ;;  %v746_v17 = vpop.f32.mrb[10].mxu1 }
  0xfd   : > { %525 = vst.msk [vmem:[%s902_s28 + $0x28] sm:$0xf] %vm514_vm1, %v685_v10  ;;  %537 = vst.msk [vmem:[%s902_s28 + $0x58] sm:$0xf] %vm514_vm1, %v697_v11  ;;  %v686_v18 = vpack.c.bf16 %v734_v16, %v734_v16  ;;  %v698_v19 = vpack.c.bf16 %v746_v17, %v746_v17  ;;  %v358_v20 = vpop.f32.mrb[11].mxu0  ;;  %v406_v21 = vpop.f32.mrb[11].mxu1 }
  0xfe   : > { %523 = vst.msk [vmem:[%s902_s28 + $0x20] sm:$0xf] %vm514_vm1, %v683_v14  ;;  %535 = vst.msk [vmem:[%s902_s28 + $0x50] sm:$0xf] %vm514_vm1, %v695_v15  ;;  %v684_v22 = vpack.c.bf16 %v358_v20, %v358_v20  ;;  %v696_v23 = vpack.c.bf16 %v406_v21, %v406_v21 }
  0xff   : > { %526 = vst.msk [vmem:[%s902_s28 + $0x2c] sm:$0xf] %vm514_vm1, %v686_v18  ;;  %538 = vst.msk [vmem:[%s902_s28 + $0x5c] sm:$0xf] %vm514_vm1, %v698_v19 }
 0x100   : > { %524 = vst.msk [vmem:[%s902_s28 + $0x24] sm:$0xf] %vm514_vm1, %v684_v22  ;;  %536 = vst.msk [vmem:[%s902_s28 + $0x54] sm:$0xf] %vm514_vm1, %v696_v23 }
 0x101 PF: > { %s12_s11 = sadd.s32 1, %s807_s11   ;;  %s964_s9 = smov %s803_s10 }
 0x102   : > { %p9_p5 = scmp.ge.s32.totalorder %s12_s11, 4   ;;  %s965_s10 = smov %s967_s12 }
 0x104   :  { %11 = sbr.rel (!%p9_p5) target bundleno = 2 (0x2), region = 58 }

// kernel: deep_guided_filter_forward.16
= control target key start
LH: loop header
LB: loop body
LE: loop exit
PB: predicated region body
PF: predicated region fallthrough
CT: control target
= control target key end

     0   :  { %s1244_s12 = smov 0   ;;  %s1351_s0 = inlined_call_operand.vmem [shape: bf16[2,3,110], index: 0, kind: input, shape index: {}]   ;;  %s1352_s1 = inlined_call_operand.vmem [shape: bf16[24,27], index: 1, kind: input, shape index: {}]   ;;  %s1353_s2 = inlined_call_operand.vmem [shape: f32[24,1], index: 2, kind: input, shape index: {}]   ;;  %s1354_s3 = inlined_call_operand.vmem [shape: bf16[2,24,80], index: 3, kind: output, shape index: {}]  }
   0x1 LB: > { %s1018_s13 = sadd.s32 4294967295, %s1205_s12   ;;  %p1022_p0 = scmp.ge.s32.totalorder %s1205_s12, 1  ;;  %s1205_s12 = sphi %s1244_s12, %s13_s12  }
   0x2   : > { %p136_p1 = scmp.lt.s32.totalorder %s1205_s12, 3 }
   0x4   : > { %p137_p2 = pnand %p1022_p0, %p136_p1 }
   0x5   : > { %v1183_v0 = vld [vmem:[%s1352_s1] sm:$0xff] (!%p137_p2)   ;;  %v189_v1 = vlaneseq (!%p137_p2)  ;;  %v1184_v2 = vld [vmem:[%s1352_s1 + $0x8] ss:$0 sps:$4 sm:$0xff] (!%p137_p2)   ;;  %p159_p3 = scmp.lt.s32.totalorder (!%p137_p2), %s1018_s13, 1  ;;  %s1207_s18 = smov (!%p137_p2), 125   ;;  %vm195_vm0 = vcmask (!%p137_p2), 23552  }
   0x6   : > { %140 = sbr.rel (%p137_p2) target bundleno = 400 (0x190), region = 32  ;;  %181 = vrot.lane.b32.xlu0 (!%p137_p2), %v1183_v0, %s1207_s18  ;;  %183 = vrot.lane.b32.xlu1 (!%p137_p2), %v1184_v2, %s1207_s18  ;;  %v1208_v3 = vmov (!%p137_p2), 1983009808   ;;  %s1209_s23 = smov (!%p137_p2), 126   ;;  %v1186_v10 = vld [vmem:[%s1352_s1 + $0x8] ss:$0 sps:$4 sm:$0xff] (!%p137_p2)  }
   0x7   : > { %v187_v4 = vunpack.c.l.s4 (!%p137_p2), %v1208_v3  ;;  %v190_v5 = vshrl.u32 (!%p137_p2), %v189_v1, 7  ;;  %s1210_s26 = smov (!%p137_p2), 127   ;;  %v1185_v12 = vld [vmem:[%s1352_s1] sm:$0xff] (!%p137_p2)   ;;  %s1211_s29 = smov (!%p137_p2), 122   ;;  %v1188_v13 = vld [vmem:[%s1352_s1 + $0x8] ss:$0 sps:$4 sm:$0xff] (!%p137_p2)   ;;  %1109 = vmatprep.mubr.msk.bf16.mxu1 (!%p137_p2), %vm195_vm0, %v1183_v0 }
   0x8   : > { %s1212_s30 = smov (!%p137_p2), 117   ;;  %vm202_vm1 = vcmask (!%p137_p2), 1040384   ;;  %vm203_vm2 = vcmask (!%p137_p2), 1041408   ;;  %v1213_v14 = vmov (!%p137_p2), 65535   ;;  %s1214_s6 = smov (!%p137_p2), 118   ;;  %v1187_v17 = vld [vmem:[%s1352_s1] sm:$0xff] (!%p137_p2)  }
   0x9   : > { %v188_v6 = vunpack.c.0.s8 (!%p137_p2), %v187_v4  ;;  %v204_v15 = vsel (!%p137_p2), %vm202_vm1, 4294967295, %v1213_v14  ;;  %s1215_s9 = smov (!%p137_p2), 119   ;;  %v1190_v19 = vld [vmem:[%s1352_s1 + $0x8] ss:$0 sps:$4 sm:$0xff] (!%p137_p2)   ;;  %v1189_v20 = vld [vmem:[%s1352_s1] sm:$0xff] (!%p137_p2)   ;;  %s1216_s16 = smov (!%p137_p2), 116  }
   0xa   : > { %v1274_v16 = vsel (!%p137_p2), %vm203_vm2, %v204_v15, 0  ;;  %s1217_s17 = smov (!%p137_p2), 108   ;;  %v1192_v21 = vld [vmem:[%s1352_s1 + $0x8] ss:$0 sps:$4 sm:$0xff] (!%p137_p2)   ;;  %v1191_v22 = vld [vmem:[%s1352_s1] sm:$0xff] (!%p137_p2)   ;;  %s1219_s27 = smov (!%p137_p2), 110  }
   0xb   : > { %v191_v8 = vsub.s32 (!%p137_p2), %v188_v6, %v190_v5  ;;  %v1194_v23 = vld [vmem:[%s1352_s1 + $0x8] ss:$0 sps:$4 sm:$0xff] (!%p137_p2)   ;;  %v1193_v24 = vld [vmem:[%s1352_s1] sm:$0xff] (!%p137_p2)   ;;  %s1220_s28 = smov (!%p137_p2), 106   ;;  %v1221_v26 = vmov (!%p137_p2), 0   ;;  %s1222_s4 = smov (!%p137_p2), 107  }
   0xc   : > { %v1196_v25 = vld [vmem:[%s1352_s1 + $0x8] ss:$0 sps:$4 sm:$0xff] (!%p137_p2)   ;;  %1181 = vset.pattern.permute.xlu0 (!%p137_p2), %v1221_v26  ;;  %1182 = vset.pattern.permute.xlu1 (!%p137_p2), %v1221_v26  ;;  %v1195_v27 = vld [vmem:[%s1352_s1] sm:$0xff] (!%p137_p2)   ;;  %s1223_s11 = smov (!%p137_p2), 104   ;;  %v918_v32 = vld [vmem:[%s1353_s2 + $0x10] sm:$0xff] (!%p137_p2)  ;;  %vm959_vm5 = vcmask (!%p137_p2), 650240  }
   0xd   : > { %s1356_s13 = smov (!%p159_p3, %s1018_s13), 1  ;;  %v1198_v28 = vld [vmem:[%s1352_s1 + $0x8] ss:$0 sps:$4 sm:$0xff]   ;;  %v1197_v29 = vld [vmem:[%s1352_s1] sm:$0xff]  }
   0xe   : > { %s1023_s19 = sshll.u32 %s1356_s13, 1  ;;  %v917_v30 = vld [vmem:[%s1353_s2 + $0x8] sm:$0xff]  ;;  %v916_v31 = vld [vmem:[%s1353_s2] sm:$0xff]  ;;  %s1155_s20 = smul.u32 12, %s1356_s13 }
   0xf   : > { %s162_s22 = scalar_lea.vmem %s1351_s0, %s1023_s19 }
  0x10   : > { %v169_v7 = vld [vmem:[%s162_s22] sm:$0x3] }
  0x11   : > { %v1033_v9 = vld.sshfl [vmem:[%s162_s22] sm:$0x3 pattern:$0x76325410]  ;;  %v192_v11 = vrot.slane %v169_v7, %v191_v8  ;;  %v264_v18 = vand.u32 %v1274_v16, %v169_v7  ;;  %s1218_s22 = smov 113  }
  0x12   : > { %338 = vrot.lane.b32.xlu1 %v1033_v9, %s1209_s23  ;;  %s167_s23 = scalar_lea.vmem %s1354_s3, %s1155_s20 }
  0x13   : > { %193 = vrot.lane.b32.xlu0 %v192_v11, %s1210_s26  ;;  %1107 = vmatprep.subr.bf16.mxu1 %v264_v18 }
  0x14   : > { %1108 = vmatpush3.bf16.msra.mxu1 %v264_v18 }
  0x16   : > { %328 = vrot.lane.b32.xlu1 %v1186_v10, %s1211_s29 }
  0x17   : > { %326 = vrot.lane.b32.xlu0 %v1185_v12, %s1211_s29  ;;  %1110 = vmatmul.mubr.msk.bf16.vlgmr.msra.gmra.mrb[0].mxu1 %vm195_vm0, %v1184_v2 }
  0x1a   : > { %510 = vrot.lane.b32.xlu1 %v1033_v9, %s1212_s30 }
  0x1b   : > { %424 = vrot.lane.b32.xlu0 %v1033_v9, %s1214_s6 }
  0x1e   : > { %414 = vrot.lane.b32.xlu1 %v1188_v13, %s1215_s9 }
  0x1f   : > { %412 = vrot.lane.b32.xlu0 %v1187_v17, %s1215_s9 }
  0x22   : > { %500 = vrot.lane.b32.xlu1 %v1190_v19, %s1216_s16 }
  0x23   : > { %498 = vrot.lane.b32.xlu0 %v1189_v20, %s1216_s16 }
  0x26   : > { %682 = vrot.lane.b32.xlu1 %v1033_v9, %s1217_s17 }
  0x27   : > { %596 = vrot.lane.b32.xlu0 %v1033_v9, %s1216_s16 }
  0x2a   : > { %586 = vrot.lane.b32.xlu1 %v1192_v21, %s1218_s22 }
  0x2b   : > { %584 = vrot.lane.b32.xlu0 %v1191_v22, %s1218_s22 }
  0x2e   : > { %672 = vrot.lane.b32.xlu1 %v1194_v23, %s1219_s27 }
  0x2f   : > { %670 = vrot.lane.b32.xlu0 %v1193_v24, %s1219_s27 }
  0x32   : > { %854 = vrot.lane.b32.xlu1 %v1033_v9, %s1220_s28 }
  0x33   : > { %768 = vrot.lane.b32.xlu0 %v1033_v9, %s1222_s4 }
  0x36   : > { %758 = vrot.lane.b32.xlu1 %v1196_v25, %s1222_s4 }
  0x37   : > { %756 = vrot.lane.b32.xlu0 %v1195_v27, %s1222_s4 }
  0x3a   : > { %844 = vrot.lane.b32.xlu1 %v1198_v28, %s1223_s11 }
  0x3b   : > { %842 = vrot.lane.b32.xlu0 %v1197_v29, %s1223_s11 }
  0x3e   : > { %926 = vperm.xlu1 %1182, %v917_v30  }
  0x3f   : > { %921 = vperm.xlu0 %1181, %v916_v31  }
  0x42   : > { %931 = vperm.xlu1 %1182, %v918_v32  }
  0x78   : > { %v182_v33 = vpop.permute.xlu0 %181  ;;  %v184_v34 = vpop.permute.xlu1 %183 }
  0x79   : > { %1103 = vmatprep.mubr.msk.bf16.mxu0 %vm195_vm0, %v182_v33 }
  0x84   : > { %v339_v35 = vpop.permute.xlu1 %338 }
  0x85   : > { %v194_v36 = vpop.permute.xlu0 %193  ;;  %v347_v38 = vand.u32 %v339_v35, %v1274_v16 }
  0x86   : > { %v207_v37 = vand.u32 %v1274_v16, %v194_v36 }
  0x88   : > { %v329_v39 = vpop.permute.xlu1 %328  ;;  %1101 = vmatprep.subr.bf16.mxu0 %v207_v37 }
  0x89   : > { %1102 = vmatpush3.bf16.msra.mxu0 %v207_v37  ;;  %v327_v40 = vpop.permute.xlu0 %326 }
  0x8a   : > { %1113 = vmatprep.subr.bf16.mxu0 %v347_v38 }
  0x8c   : > { %v511_v41 = vpop.permute.xlu1 %510  ;;  %1104 = vmatmul.mubr.msk.bf16.vlgmr.msra.gmra.mrb[0].mxu0 %vm195_vm0, %v184_v34 }
  0x8d   : > { %v519_v42 = vand.u32 %v511_v41, %v1274_v16  ;;  %1114 = vmatpush3.bf16.msra.mxu0 %v347_v38  ;;  %1115 = vmatprep.mubr.msk.bf16.mxu0 %vm195_vm0, %v327_v40  ;;  %v425_v43 = vpop.permute.xlu0 %424 }
  0x8e   : > { %v433_v44 = vand.u32 %v425_v43, %v1274_v16 }
  0x8f   : > { %1125 = vmatprep.subr.bf16.mxu0 %v519_v42 }
  0x90   : > { %v415_v45 = vpop.permute.xlu1 %414  ;;  %1119 = vmatprep.subr.bf16.mxu1 %v433_v44 }
  0x91   : > { %1120 = vmatpush3.bf16.msra.mxu1 %v433_v44  ;;  %v413_v46 = vpop.permute.xlu0 %412 }
  0x92   : > { %1121 = vmatprep.mubr.msk.bf16.mxu1 %vm195_vm0, %v413_v46 }
  0x94   : > { %v501_v47 = vpop.permute.xlu1 %500  ;;  %1116 = vmatmul.mubr.msk.bf16.vlgmr.msra.gmra.mrb[4].mxu0 %vm195_vm0, %v329_v39  ;;  %1122 = vmatmul.mubr.msk.bf16.vlgmr.msra.gmra.mrb[4].mxu1 %vm195_vm0, %v415_v45 }
  0x95   : > { %1126 = vmatpush3.bf16.msra.mxu0 %v519_v42  ;;  %v499_v48 = vpop.permute.xlu0 %498 }
  0x96   : > { %1127 = vmatprep.mubr.msk.bf16.mxu0 %vm195_vm0, %v499_v48 }
  0x98   : > { %v683_v49 = vpop.permute.xlu1 %682 }
  0x99   : > { %v691_v50 = vand.u32 %v683_v49, %v1274_v16  ;;  %v597_v51 = vpop.permute.xlu0 %596 }
  0x9a   : > { %v605_v52 = vand.u32 %v597_v51, %v1274_v16 }
  0x9b   : > { %1137 = vmatprep.subr.bf16.mxu0 %v691_v50 }
  0x9c   : > { %v587_v53 = vpop.permute.xlu1 %586  ;;  %1128 = vmatmul.mubr.msk.bf16.vlgmr.msra.gmra.mrb[8].mxu0 %vm195_vm0, %v501_v47  ;;  %1131 = vmatprep.subr.bf16.mxu1 %v605_v52 }
  0x9d   : > { %1132 = vmatpush3.bf16.msra.mxu1 %v605_v52  ;;  %v585_v54 = vpop.permute.xlu0 %584  ;;  %1138 = vmatpush3.bf16.msra.mxu0 %v691_v50 }
  0x9e   : > { %1133 = vmatprep.mubr.msk.bf16.mxu1 %vm195_vm0, %v585_v54 }
  0xa0   : > { %v673_v55 = vpop.permute.xlu1 %672  ;;  %1134 = vmatmul.mubr.msk.bf16.vlgmr.msra.gmra.mrb[8].mxu1 %vm195_vm0, %v587_v53 }
  0xa1   : > { %v671_v56 = vpop.permute.xlu0 %670 }
  0xa2   : > { %1139 = vmatprep.mubr.msk.bf16.mxu0 %vm195_vm0, %v671_v56 }
  0xa4   : > { %v855_v57 = vpop.permute.xlu1 %854  ;;  %1140 = vmatmul.mubr.msk.bf16.vlgmr.msra.gmra.mrb[12].mxu0 %vm195_vm0, %v673_v55 }
  0xa5   : > { %v863_v58 = vand.u32 %v855_v57, %v1274_v16  ;;  %v769_v59 = vpop.permute.xlu0 %768 }
  0xa6   : > { %v777_v60 = vand.u32 %v769_v59, %v1274_v16 }
  0xa7   : > { %1149 = vmatprep.subr.bf16.mxu0 %v863_v58 }
  0xa8   : > { %v759_v61 = vpop.permute.xlu1 %758  ;;  %1150 = vmatpush3.bf16.msra.mxu0 %v863_v58  ;;  %1143 = vmatprep.subr.bf16.mxu1 %v777_v60 }
  0xa9   : > { %1144 = vmatpush3.bf16.msra.mxu1 %v777_v60  ;;  %v757_v62 = vpop.permute.xlu0 %756 }
  0xaa   : > { %1145 = vmatprep.mubr.msk.bf16.mxu1 %vm195_vm0, %v757_v62 }
  0xac   : > { %1146 = vmatmul.mubr.msk.bf16.vlgmr.msra.gmra.mrb[12].mxu1 %vm195_vm0, %v759_v61  ;;  %v845_v63 = vpop.permute.xlu1 %844 }
  0xad   : > { %v843_v0 = vpop.permute.xlu0 %842 }
  0xae   : > { %1151 = vmatprep.mubr.msk.bf16.mxu0 %vm195_vm0, %v843_v0 }
  0xaf   : > { %1152 = vmatmul.mubr.msk.bf16.vlgmr.msra.gmra.mrb[16].mxu0 %vm195_vm0, %v845_v63 }
  0xbd   : > { %v927_v47 = vpop.permute.xlu1 %926 }
  0xbe   : > { %v922_v59 = vpop.permute.xlu0 %921 }
  0xc1   : > { %v932_v53 = vpop.permute.xlu1 %931 }
  0xea   : > { %v1111_v1 = vpop.f32.mrb[0].mxu1 }
  0xeb   : > { %v300_v2 = vpop.f32.mrb[1].mxu1 }
  0xec   : > { %v1112_v3 = vpop.f32.mrb[2].mxu1 }
  0xed   : > { %v303_v4 = vpop.f32.mrb[3].mxu1 }
 0x15f   : > { %v1105_v5 = vpop.f32.mrb[0].mxu0 }
 0x160   : > { %v309_v6 = vadd.f32 %v1111_v1, %v1105_v5  ;;  %v243_v7 = vpop.f32.mrb[1].mxu0 }
 0x161   : > { %v301_v8 = vadd.f32 %v300_v2, %v243_v7  ;;  %v1106_v9 = vpop.f32.mrb[2].mxu0 }
 0x162   : > { %v246_v10 = vpop.f32.mrb[3].mxu0 }
 0x163   : > { %v304_v11 = vadd.f32 %v303_v4, %v246_v10 }
 0x167   : > { %v1117_v12 = vpop.f32.mrb[4].mxu0  ;;  %v1123_v13 = vpop.f32.mrb[4].mxu1 }
 0x168   : > { %v399_v14 = vadd.f32 %v1117_v12, %v309_v6  ;;  %v383_v15 = vpop.f32.mrb[5].mxu0  ;;  %v469_v16 = vpop.f32.mrb[5].mxu1 }
 0x169   : > { %v397_v17 = vadd.f32 %v383_v15, %v301_v8  ;;  %v1118_v18 = vpop.f32.mrb[6].mxu0  ;;  %v1124_v19 = vpop.f32.mrb[6].mxu1 }
 0x16a   : > { %v485_v20 = vadd.f32 %v1123_v13, %v399_v14  ;;  %v386_v21 = vpop.f32.mrb[7].mxu0  ;;  %v472_v22 = vpop.f32.mrb[7].mxu1 }
 0x16b   : > { %v483_v23 = vadd.f32 %v469_v16, %v397_v17  ;;  %v398_v24 = vadd.f32 %v386_v21, %v304_v11 }
 0x16d   : > { %v484_v25 = vadd.f32 %v472_v22, %v398_v24 }
 0x16f   : > { %v1129_v26 = vpop.f32.mrb[8].mxu0 }
 0x170   : > { %v571_v27 = vadd.f32 %v1129_v26, %v485_v20  ;;  %v555_v28 = vpop.f32.mrb[9].mxu0 }
 0x171   : > { %v569_v29 = vadd.f32 %v555_v28, %v483_v23  ;;  %v1130_v30 = vpop.f32.mrb[10].mxu0 }
 0x172   : > { %v558_v31 = vpop.f32.mrb[11].mxu0 }
 0x173   : > { %v570_v32 = vadd.f32 %v558_v31, %v484_v25  ;;  %v1135_v33 = vpop.f32.mrb[8].mxu1 }
 0x174   : > { %v657_v34 = vadd.f32 %v1135_v33, %v571_v27  ;;  %v641_v35 = vpop.f32.mrb[9].mxu1 }
 0x175   : > { %v655_v36 = vadd.f32 %v641_v35, %v569_v29  ;;  %v1136_v37 = vpop.f32.mrb[10].mxu1 }
 0x176   : > { %v644_v38 = vpop.f32.mrb[11].mxu1 }
 0x177   : > { %v656_v39 = vadd.f32 %v644_v38, %v570_v32  ;;  %v1141_v40 = vpop.f32.mrb[12].mxu0 }
 0x178   : > { %v743_v41 = vadd.f32 %v1141_v40, %v657_v34  ;;  %v727_v42 = vpop.f32.mrb[13].mxu0 }
 0x179   : > { %v741_v43 = vadd.f32 %v727_v42, %v655_v36  ;;  %v1142_v44 = vpop.f32.mrb[14].mxu0 }
 0x17a   : > { %v730_v45 = vpop.f32.mrb[15].mxu0 }
 0x17b   : > { %v742_v46 = vadd.f32 %v730_v45, %v656_v39 }
 0x17f   : > { %v1147_v48 = vpop.f32.mrb[12].mxu1 }
 0x180   : > { %v829_v49 = vadd.f32 %v1147_v48, %v743_v41  ;;  %v813_v50 = vpop.f32.mrb[13].mxu1 }
 0x181   : > { %v827_v51 = vadd.f32 %v813_v50, %v741_v43  ;;  %v1148_v52 = vpop.f32.mrb[14].mxu1 }
 0x182   : > { %v816_v54 = vpop.f32.mrb[15].mxu1  ;;  %v1153_v55 = vpop.f32.mrb[16].mxu0 }
 0x183   : > { %v828_v56 = vadd.f32 %v816_v54, %v742_v46  ;;  %v915_v57 = vadd.f32 %v1153_v55, %v829_v49  ;;  %v899_v58 = vpop.f32.mrb[17].mxu0 }
 0x184   : > { %v913_v60 = vadd.f32 %v899_v58, %v827_v51  ;;  %v1154_v61 = vpop.f32.mrb[18].mxu0 }
 0x185   : > { %v936_v62 = vadd.f32 %v932_v53, %v915_v57  ;;  %v902_v63 = vpop.f32.mrb[19].mxu0 }
 0x186   : > { %v914_v0 = vadd.f32 %v902_v63, %v828_v56  ;;  %v934_v1 = vadd.f32 %v922_v59, %v913_v60 }
 0x187   : > { %vm939_vm3 = vcmp.ge.f32.partialorder %v936_v62, 0.0  ;;  %v942_v2 = vmul.f32 0.2, %v936_v62 }
 0x188   : > { %v935_v3 = vadd.f32 %v927_v47, %v914_v0  ;;  %vm937_vm4 = vcmp.ge.f32.partialorder %v934_v1, 0.0  ;;  %v940_v4 = vmul.f32 0.2, %v934_v1 }
 0x189   : > { %v945_v5 = vsel %vm939_vm3, %v936_v62, %v942_v2 }
 0x18a   : > { %v1073_v6 = vpack.c.bf16 %v945_v5, %v945_v5  ;;  %vm938_vm6 = vcmp.ge.f32.partialorder %v935_v3, 0.0  ;;  %v941_v7 = vmul.f32 0.2, %v935_v3  ;;  %v943_v8 = vsel %vm937_vm4, %v934_v1, %v940_v4 }
 0x18b   : > { %v1071_v9 = vpack.c.bf16 %v943_v8, %v943_v8 }
 0x18c   : > { %962 = vst.msk [vmem:[%s167_s23 + $0x8] sm:$0xf] %vm959_vm5, %v1073_v6  ;;  %v944_v10 = vsel %vm938_vm6, %v935_v3, %v941_v7 }
 0x18d   : > { %v1072_v11 = vpack.c.bf16 %v944_v10, %v944_v10  ;;  %960 = vst.msk [vmem:[%s167_s23] sm:$0xf] %vm959_vm5, %v1071_v9 }
 0x18f   : > { %961 = vst.msk [vmem:[%s167_s23 + $0x4] sm:$0xf] %vm959_vm5, %v1072_v11 }
 0x190 PF: > { %s13_s12 = sadd.s32 1, %s1205_s12  }
 0x191   : > { %p10_p4 = scmp.ge.s32.totalorder %s13_s12, 4  }
 0x193   :  { %12 = sbr.rel (!%p10_p4) target bundleno = 1 (0x1), region = 62 }

// kernel: deep_guided_filter_forward.17
= control target key start
LH: loop header
LB: loop body
LE: loop exit
PB: predicated region body
PF: predicated region fallthrough
CT: control target
= control target key end

     0   :  { %s1226_s12 = smov 0   ;;  %s1332_s0 = inlined_call_operand.vmem [shape: bf16[2,24,156], index: 0, kind: input, shape index: {}]   ;;  %s1333_s1 = inlined_call_operand.vmem [shape: bf16[24,216], index: 1, kind: input, shape index: {}]   ;;  %s1334_s2 = inlined_call_operand.vmem [shape: f32[24,1], index: 2, kind: input, shape index: {}]   ;;  %s1335_s3 = inlined_call_operand.vmem [shape: bf16[2,24,96], index: 3, kind: output, shape index: {}]  }
   0x1 LB: > { %s976_s13 = sadd.s32 4294967295, %s1189_s12   ;;  %p980_p0 = scmp.ge.s32.totalorder %s1189_s12, 1  ;;  %s1189_s12 = sphi %s1226_s12, %s13_s12  }
   0x2   : > { %p137_p1 = scmp.lt.s32.totalorder %s1189_s12, 3 }
   0x4   : > { %p138_p2 = pnand %p980_p0, %p137_p1 }
   0x5   : > { %v1167_v0 = vld [vmem:[%s1333_s1] ss:$8 sps:$4 sm:$0xff] (!%p138_p2)   ;;  %p161_p3 = scmp.lt.s32.totalorder (!%p138_p2), %s976_s13, 1  ;;  %s1191_s16 = smov (!%p138_p2), 104   ;;  %v1169_v1 = vld [vmem:[%s1333_s1 + $0x10] ss:$0 sps:$4 sm:$0xff] (!%p138_p2)  }
   0x6   : > { %141 = sbr.rel (%p138_p2) target bundleno = 435 (0x1b3), region = 32  ;;  %186 = vrot.lane.b32.xlu1 (!%p138_p2), %v1167_v0, %s1191_s16  ;;  %vm203_vm0 = vcmask (!%p138_p2), 195584   ;;  %vm210_vm1 = vcmask (!%p138_p2), 1043456   ;;  %s1192_s23 = smov (!%p138_p2), 126   ;;  %v1176_v9 = vld [vmem:[%s1333_s1 + $0x4] ss:$8 sps:$4 sm:$0xff] (!%p138_p2)  }
   0x7   : > { %1071 = vmatprep.mubr.msk.bf16.mxu1 (!%p138_p2), %vm203_vm0, %v1167_v0  ;;  %s1193_s24 = smov (!%p138_p2), 124   ;;  %s1194_s25 = smov (!%p138_p2), 80   ;;  %v529_v10 = vld [vmem:[%s1333_s1 + $0x10] sm:$0xff] (!%p138_p2)  ;;  %v1178_v13 = vld [vmem:[%s1333_s1] ss:$8 sps:$4 sm:$0xff] (!%p138_p2)   ;;  %v1204_v17 = vmov (!%p138_p2), 0  }
   0x8   : > { %s1195_s26 = smov (!%p138_p2), 102   ;;  %s1196_s27 = smov (!%p138_p2), 56   ;;  %v1000_v12 = vcombine.high (!%p138_p2), %v529_v10, %v529_v10  ;;  %v999_v14 = vcombine.low (!%p138_p2), %v529_v10, %v529_v10  ;;  %v1182_v15 = vld [vmem:[%s1333_s1 + $0x14] ss:$0 sps:$4 sm:$0xff] (!%p138_p2)   ;;  %v1181_v16 = vld [vmem:[%s1333_s1 + $0x4] ss:$8 sps:$4 sm:$0xff] (!%p138_p2)   ;;  %1165 = vset.pattern.permute.xlu0 (!%p138_p2), %v1204_v17  ;;  %1166 = vset.pattern.permute.xlu1 (!%p138_p2), %v1204_v17 }
   0x9   : > { %s1197_s28 = smov (!%p138_p2), 32   ;;  %s1198_s29 = smov (!%p138_p2), 100   ;;  %v875_v18 = vld [vmem:[%s1334_s2 + $0x8] sm:$0xff] (!%p138_p2)  ;;  %v876_v19 = vld [vmem:[%s1334_s2 + $0x10] sm:$0xff] (!%p138_p2)  ;;  %v874_v20 = vld [vmem:[%s1334_s2] sm:$0xff] (!%p138_p2)  ;;  %vm658_vm2 = vcmask (!%p138_p2), 654336  }
   0xa   : > { %188 = vrot.lane.b32.xlu1 (!%p138_p2), %v1169_v1, %s1191_s16  ;;  %s1199_s7 = smov (!%p138_p2), 8   ;;  %s1200_s10 = smov (!%p138_p2), 78   ;;  %vm551_vm3 = vcmask (!%p138_p2), 64512   ;;  %vm734_vm4 = vcmask (!%p138_p2), 637952   ;;  %vm810_vm5 = vcmask (!%p138_p2), 621568   ;;  %vm917_vm8 = vcmask (!%p138_p2), 781312  }
   0xb   : > { %s1201_s11 = smov (!%p138_p2), 76   ;;  %s1202_s18 = smov (!%p138_p2), 112  }
   0xc   : > { %s1205_s20 = smov (!%p138_p2), 64  }
   0xd   : > { %s1337_s13 = smov (!%p161_p3, %s976_s13), 1 }
   0xe   : > { %s1140_s19 = smul.u32 24, %s1337_s13 }
  0x10   : > { %s1248_s22 = scalar_lea.vmem %s1332_s0, %s1140_s19  ;;  %s1203_s19 = smov 88  }
  0x11   : > { %v1168_v2 = vld [vmem:[%s1248_s22] ss:$8 sps:$4 sm:$0xff]   ;;  %v1170_v3 = vld [vmem:[%s1248_s22 + $0x10] ss:$0 sps:$4 sm:$0xff]   ;;  %v1171_v5 = vld [vmem:[%s1248_s22 + $0x4] ss:$8 sps:$4 sm:$0xff]  }
  0x12   : > { %198 = vrot.lane.b32.xlu0 %v1168_v2, %s1192_s23  ;;  %1067 = vmatprep.subr.bf16.mxu1 %v1168_v2  ;;  %v270_v4 = vsel %vm210_vm1, %v1170_v3, 0  ;;  %v621_v6 = vld [vmem:[%s1248_s22 + $0x10] sm:$0xff]  ;;  %v1173_v7 = vld [vmem:[%s1248_s22] ss:$8 sps:$4 sm:$0xff]  }
  0x13   : > { %326 = vrot.lane.b32.xlu1 %v1170_v3, %s1193_s24  ;;  %1068 = vmatpush3.bf16.msra.mxu1 %v1168_v2  ;;  %v1008_v8 = vcombine.high %v621_v6, %v621_v6  ;;  %v1007_v11 = vcombine.low %v621_v6, %v621_v6 }
  0x14   : > { %1132 = vmatprep.subr.msk.bf16.mxu1 %vm210_vm1, %v1170_v3 }
  0x16   : > { %200 = vrot.lane.b32.xlu0 %v1170_v3, %s1192_s23 }
  0x17   : > { %320 = vrot.lane.b32.xlu1 %v1167_v0, %s1194_s25  ;;  %1070 = vmatpush3.bf16.msra.mxu1 %v270_v4 }
  0x1a   : > { %324 = vrot.lane.b32.xlu0 %v1168_v2, %s1193_s24  ;;  %1072 = vmatmul.mubr.msk.bf16.vlgmr.msra.gmra.mrb[0].mxu1 %vm203_vm0, %v1169_v1 }
  0x1b   : > { %462 = vrot.lane.b32.xlu1 %v1168_v2, %s1195_s26 }
  0x1e   : > { %393 = vrot.lane.b32.xlu0 %v1168_v2, %s1191_s16 }
  0x1f   : > { %464 = vrot.lane.b32.xlu1 %v1170_v3, %s1195_s26 }
  0x22   : > { %322 = vrot.lane.b32.xlu0 %v1169_v1, %s1194_s25 }
  0x23   : > { %391 = vrot.lane.b32.xlu1 %v1169_v1, %s1196_s27 }
  0x26   : > { %395 = vrot.lane.b32.xlu0 %v1170_v3, %s1191_s16 }
  0x27   : > { %458 = vrot.lane.b32.xlu1 %v1167_v0, %s1197_s28 }
  0x2a   : > { %389 = vrot.lane.b32.xlu0 %v1167_v0, %s1196_s27  ;;  %s1141_s27 = smul.u32 12, %s1337_s13 }
  0x2b   : > { %652 = vrot.lane.b32.xlu1 %v1171_v5, %s1194_s25 }
  0x2c   : > { %s170_s30 = scalar_lea.vmem %s1335_s3, %s1141_s27 }
  0x2e   : > { %554 = vrot.lane.b32.xlu0 %v1168_v2, %s1198_s29 }
  0x2f   : > { %556 = vrot.lane.b32.xlu1 %v1170_v3, %s1198_s29 }
  0x32   : > { %650 = vrot.lane.b32.xlu0 %v1173_v7, %s1194_s25 }
  0x33   : > { %656 = vrot.lane.b32.xlu1 %v1008_v8, %s1194_s25 }
  0x36   : > { %460 = vrot.lane.b32.xlu0 %v1169_v1, %s1197_s28 }
  0x37   : > { %545 = vrot.lane.b32.xlu1 %v1176_v9, %s1199_s7 }
  0x3a   : > { %654 = vrot.lane.b32.xlu0 %v1007_v11, %s1194_s25 }
  0x3b   : > { %549 = vrot.lane.b32.xlu1 %v1000_v12, %s1199_s7 }
  0x3e   : > { %543 = vrot.lane.b32.xlu0 %v1178_v13, %s1199_s7 }
  0x3f   : > { %728 = vrot.lane.b32.xlu1 %v1171_v5, %s1200_s10 }
  0x42   : > { %547 = vrot.lane.b32.xlu0 %v999_v14, %s1199_s7 }
  0x43   : > { %802 = vrot.lane.b32.xlu1 %v1173_v7, %s1201_s11 }
  0x46   : > { %726 = vrot.lane.b32.xlu0 %v1173_v7, %s1200_s10 }
  0x47   : > { %635 = vrot.lane.b32.xlu1 %v1182_v15, %s1202_s18 }
  0x4a   : > { %633 = vrot.lane.b32.xlu0 %v1181_v16, %s1202_s18 }
  0x4b   : > { %732 = vrot.lane.b32.xlu1 %v1008_v8, %s1200_s10 }
  0x4e   : > { %804 = vrot.lane.b32.xlu0 %v1171_v5, %s1201_s11 }
  0x4f   : > { %808 = vrot.lane.b32.xlu1 %v1008_v8, %s1201_s11 }
  0x52   : > { %730 = vrot.lane.b32.xlu0 %v1007_v11, %s1200_s10 }
  0x53   : > { %724 = vrot.lane.b32.xlu1 %v1182_v15, %s1203_s19 }
  0x56   : > { %806 = vrot.lane.b32.xlu0 %v1007_v11, %s1201_s11 }
  0x57   : > { %800 = vrot.lane.b32.xlu1 %v1182_v15, %s1205_s20 }
  0x5a   : > { %722 = vrot.lane.b32.xlu0 %v1181_v16, %s1203_s19 }
  0x5b   : > { %884 = vperm.xlu1 %1166, %v875_v18  }
  0x5e   : > { %798 = vrot.lane.b32.xlu0 %v1181_v16, %s1205_s20 }
  0x5f   : > { %889 = vperm.xlu1 %1166, %v876_v19  }
  0x62   : > { %879 = vperm.xlu0 %1165, %v874_v20  }
  0x78   : > { %v187_v21 = vpop.permute.xlu1 %186 }
  0x79   : > { %1063 = vmatprep.mubr.msk.bf16.mxu0 %vm203_vm0, %v187_v21 }
  0x7c   : > { %v189_v22 = vpop.permute.xlu1 %188 }
  0x84   : > { %v199_v23 = vpop.permute.xlu0 %198 }
  0x85   : > { %1059 = vmatprep.subr.bf16.mxu0 %v199_v23  ;;  %v327_v24 = vpop.permute.xlu1 %326 }
  0x86   : > { %1060 = vmatpush3.bf16.msra.mxu0 %v199_v23  ;;  %v336_v31 = vsel %vm210_vm1, %v327_v24, 0 }
  0x88   : > { %v201_v25 = vpop.permute.xlu0 %200 }
  0x89   : > { %1131 = vmatprep.subr.msk.bf16.mxu0 %vm210_vm1, %v201_v25  ;;  %v212_v26 = vsel %vm210_vm1, %v201_v25, 0  ;;  %v321_v27 = vpop.permute.xlu1 %320 }
  0x8a   : > { %1062 = vmatpush3.bf16.msra.mxu0 %v212_v26 }
  0x8c   : > { %v325_v28 = vpop.permute.xlu0 %324 }
  0x8d   : > { %1064 = vmatmul.mubr.msk.bf16.vlgmr.msra.gmra.mrb[0].mxu0 %vm203_vm0, %v189_v22  ;;  %1075 = vmatprep.subr.bf16.mxu0 %v325_v28  ;;  %v463_v29 = vpop.permute.xlu1 %462 }
  0x8e   : > { %1076 = vmatpush3.bf16.msra.mxu0 %v325_v28  ;;  %1079 = vmatprep.mubr.msk.bf16.mxu0 %vm203_vm0, %v321_v27 }
  0x8f   : > { %1133 = vmatprep.subr.msk.bf16.mxu0 %vm210_vm1, %v327_v24 }
  0x90   : > { %v394_v30 = vpop.permute.xlu0 %393 }
  0x91   : > { %1083 = vmatprep.subr.bf16.mxu1 %v394_v30  ;;  %v465_v32 = vpop.permute.xlu1 %464 }
  0x92   : > { %1078 = vmatpush3.bf16.msra.mxu0 %v336_v31  ;;  %1084 = vmatpush3.bf16.msra.mxu1 %v394_v30  ;;  %v474_v35 = vsel %vm210_vm1, %v465_v32, 0 }
  0x93   : > { %1091 = vmatprep.subr.bf16.mxu0 %v463_v29 }
  0x94   : > { %v323_v33 = vpop.permute.xlu0 %322 }
  0x95   : > { %1080 = vmatmul.mubr.msk.bf16.vlgmr.msra.gmra.mrb[4].mxu0 %vm203_vm0, %v323_v33  ;;  %v392_v34 = vpop.permute.xlu1 %391 }
  0x96   : > { %1092 = vmatpush3.bf16.msra.mxu0 %v463_v29 }
  0x97   : > { %1135 = vmatprep.subr.msk.bf16.mxu0 %vm210_vm1, %v465_v32 }
  0x98   : > { %v396_v36 = vpop.permute.xlu0 %395 }
  0x99   : > { %v405_v37 = vsel %vm210_vm1, %v396_v36, 0  ;;  %1134 = vmatprep.subr.msk.bf16.mxu1 %vm210_vm1, %v396_v36  ;;  %v459_v38 = vpop.permute.xlu1 %458 }
  0x9a   : > { %1086 = vmatpush3.bf16.msra.mxu1 %v405_v37  ;;  %1094 = vmatpush3.bf16.msra.mxu0 %v474_v35 }
  0x9b   : > { %1095 = vmatprep.mubr.msk.bf16.mxu0 %vm203_vm0, %v459_v38 }
  0x9c   : > { %v390_v39 = vpop.permute.xlu0 %389 }
  0x9d   : > { %1087 = vmatprep.mubr.msk.bf16.mxu1 %vm203_vm0, %v390_v39  ;;  %v653_v40 = vpop.permute.xlu1 %652 }
  0x9e   : > { %1088 = vmatmul.mubr.msk.bf16.vlgmr.msra.gmra.mrb[4].mxu1 %vm203_vm0, %v392_v34 }
  0xa0   : > { %v555_v41 = vpop.permute.xlu0 %554 }
  0xa1   : > { %1099 = vmatprep.subr.bf16.mxu1 %v555_v41  ;;  %v557_v42 = vpop.permute.xlu1 %556 }
  0xa2   : > { %1100 = vmatpush3.bf16.msra.mxu1 %v555_v41  ;;  %v566_v43 = vsel %vm210_vm1, %v557_v42, 0 }
  0xa3   : > { %1136 = vmatprep.subr.msk.bf16.mxu1 %vm210_vm1, %v557_v42 }
  0xa4   : > { %v651_v44 = vpop.permute.xlu0 %650 }
  0xa5   : > { %v659_v45 = vsel %vm658_vm2, %v651_v44, %v653_v40  ;;  %v657_v46 = vpop.permute.xlu1 %656 }
  0xa6   : > { %1107 = vmatprep.subr.bf16.mxu0 %v659_v45  ;;  %1102 = vmatpush3.bf16.msra.mxu1 %v566_v43 }
  0xa8   : > { %v461_v47 = vpop.permute.xlu0 %460 }
  0xa9   : > { %1096 = vmatmul.mubr.msk.bf16.vlgmr.msra.gmra.mrb[8].mxu0 %vm203_vm0, %v461_v47  ;;  %v546_v48 = vpop.permute.xlu1 %545 }
  0xaa   : > { %1108 = vmatpush3.bf16.msra.mxu0 %v659_v45 }
  0xac   : > { %v655_v49 = vpop.permute.xlu0 %654 }
  0xad   : > { %v660_v50 = vsel %vm658_vm2, %v655_v49, %v657_v46  ;;  %v550_v51 = vpop.permute.xlu1 %549 }
  0xae   : > { %v669_v52 = vsel %vm210_vm1, %v660_v50, 0  ;;  %1137 = vmatprep.subr.msk.bf16.mxu0 %vm210_vm1, %v660_v50 }
  0xaf   : > { %1110 = vmatpush3.bf16.msra.mxu0 %v669_v52 }
  0xb0   : > { %v544_v53 = vpop.permute.xlu0 %543 }
  0xb1   : > { %v552_v54 = vsel %vm551_vm3, %v544_v53, %v546_v48  ;;  %v729_v55 = vpop.permute.xlu1 %728 }
  0xb2   : > { %1103 = vmatprep.mubr.msk.bf16.mxu1 %vm203_vm0, %v552_v54 }
  0xb4   : > { %v548_v56 = vpop.permute.xlu0 %547 }
  0xb5   : > { %v553_v57 = vsel %vm551_vm3, %v548_v56, %v550_v51  ;;  %v803_v58 = vpop.permute.xlu1 %802 }
  0xb6   : > { %1104 = vmatmul.mubr.msk.bf16.vlgmr.msra.gmra.mrb[8].mxu1 %vm203_vm0, %v553_v57 }
  0xb8   : > { %v727_v59 = vpop.permute.xlu0 %726 }
  0xb9   : > { %v735_v60 = vsel %vm734_vm4, %v727_v59, %v729_v55  ;;  %v636_v61 = vpop.permute.xlu1 %635 }
  0xba   : > { %1115 = vmatprep.subr.bf16.mxu1 %v735_v60 }
  0xbb   : > { %1116 = vmatpush3.bf16.msra.mxu1 %v735_v60 }
  0xbc   : > { %v634_v62 = vpop.permute.xlu0 %633 }
  0xbd   : > { %1111 = vmatprep.mubr.msk.bf16.mxu0 %vm203_vm0, %v634_v62  ;;  %v733_v63 = vpop.permute.xlu1 %732 }
  0xbe   : > { %1112 = vmatmul.mubr.msk.bf16.vlgmr.msra.gmra.mrb[12].mxu0 %vm203_vm0, %v636_v61 }
  0xc0   : > { %v805_v0 = vpop.permute.xlu0 %804 }
  0xc1   : > { %v811_v1 = vsel %vm810_vm5, %v803_v58, %v805_v0  ;;  %v809_v2 = vpop.permute.xlu1 %808 }
  0xc2   : > { %1123 = vmatprep.subr.bf16.mxu0 %v811_v1 }
  0xc3   : > { %1124 = vmatpush3.bf16.msra.mxu0 %v811_v1 }
  0xc4   : > { %v731_v3 = vpop.permute.xlu0 %730 }
  0xc5   : > { %v736_v4 = vsel %vm734_vm4, %v731_v3, %v733_v63  ;;  %v725_v8 = vpop.permute.xlu1 %724 }
  0xc6   : > { %v745_v5 = vsel %vm210_vm1, %v736_v4, 0  ;;  %1138 = vmatprep.subr.msk.bf16.mxu1 %vm210_vm1, %v736_v4 }
  0xc7   : > { %1118 = vmatpush3.bf16.msra.mxu1 %v745_v5 }
  0xc8   : > { %v807_v6 = vpop.permute.xlu0 %806 }
  0xc9   : > { %v812_v7 = vsel %vm810_vm5, %v807_v6, %v809_v2  ;;  %v801_v11 = vpop.permute.xlu1 %800 }
  0xca   : > { %v821_v9 = vsel %vm210_vm1, %v812_v7, 0  ;;  %1139 = vmatprep.subr.msk.bf16.mxu0 %vm210_vm1, %v812_v7 }
  0xcb   : > { %1126 = vmatpush3.bf16.msra.mxu0 %v821_v9 }
  0xcc   : > { %v723_v10 = vpop.permute.xlu0 %722 }
  0xcd   : > { %1119 = vmatprep.mubr.msk.bf16.mxu1 %vm203_vm0, %v723_v10 }
  0xce   : > { %1120 = vmatmul.mubr.msk.bf16.vlgmr.msra.gmra.mrb[12].mxu1 %vm203_vm0, %v725_v8 }
  0xd0   : > { %v799_v12 = vpop.permute.xlu0 %798 }
  0xd1   : > { %1127 = vmatprep.mubr.msk.bf16.mxu0 %vm203_vm0, %v799_v12 }
  0xd2   : > { %1128 = vmatmul.mubr.msk.bf16.vlgmr.msra.gmra.mrb[16].mxu0 %vm203_vm0, %v801_v11 }
  0xda   : > { %v885_v59 = vpop.permute.xlu1 %884 }
  0xde   : > { %v890_v4 = vpop.permute.xlu1 %889 }
  0xe1   : > { %v880_v7 = vpop.permute.xlu0 %879 }
  0xed   : > { %v1073_v13 = vpop.f32.mrb[0].mxu1 }
  0xee   : > { %v306_v14 = vpop.f32.mrb[1].mxu1 }
  0xef   : > { %v1074_v15 = vpop.f32.mrb[2].mxu1 }
  0xf0   : > { %v309_v16 = vpop.f32.mrb[3].mxu1 }
 0x160   : > { %v1065_v17 = vpop.f32.mrb[0].mxu0 }
 0x161   : > { %v315_v18 = vadd.f32 %v1073_v13, %v1065_v17  ;;  %v248_v19 = vpop.f32.mrb[1].mxu0 }
 0x162   : > { %v307_v20 = vadd.f32 %v306_v14, %v248_v19  ;;  %v1066_v21 = vpop.f32.mrb[2].mxu0 }
 0x163   : > { %v251_v22 = vpop.f32.mrb[3].mxu0 }
 0x164   : > { %v310_v23 = vadd.f32 %v309_v16, %v251_v22 }
 0x168   : > { %v1081_v24 = vpop.f32.mrb[4].mxu0 }
 0x169   : > { %v388_v25 = vadd.f32 %v1081_v24, %v315_v18  ;;  %v372_v26 = vpop.f32.mrb[5].mxu0 }
 0x16a   : > { %v386_v27 = vadd.f32 %v372_v26, %v307_v20  ;;  %v1082_v28 = vpop.f32.mrb[6].mxu0 }
 0x16b   : > { %v375_v29 = vpop.f32.mrb[7].mxu0 }
 0x16c   : > { %v387_v30 = vadd.f32 %v375_v29, %v310_v23 }
 0x171   : > { %v1089_v31 = vpop.f32.mrb[4].mxu1 }
 0x172   : > { %v457_v32 = vadd.f32 %v1089_v31, %v388_v25  ;;  %v441_v33 = vpop.f32.mrb[5].mxu1 }
 0x173   : > { %v455_v34 = vadd.f32 %v441_v33, %v386_v27  ;;  %v1090_v35 = vpop.f32.mrb[6].mxu1 }
 0x174   : > { %v444_v36 = vpop.f32.mrb[7].mxu1 }
 0x175   : > { %v456_v37 = vadd.f32 %v444_v36, %v387_v30 }
 0x17c   : > { %v1097_v38 = vpop.f32.mrb[8].mxu0 }
 0x17d   : > { %v526_v39 = vadd.f32 %v1097_v38, %v457_v32  ;;  %v510_v40 = vpop.f32.mrb[9].mxu0 }
 0x17e   : > { %v524_v41 = vadd.f32 %v510_v40, %v455_v34  ;;  %v1098_v42 = vpop.f32.mrb[10].mxu0 }
 0x17f   : > { %v513_v43 = vpop.f32.mrb[11].mxu0 }
 0x180   : > { %v525_v44 = vadd.f32 %v513_v43, %v456_v37 }
 0x189   : > { %v1105_v45 = vpop.f32.mrb[8].mxu1 }
 0x18a   : > { %v618_v46 = vadd.f32 %v1105_v45, %v526_v39  ;;  %v602_v47 = vpop.f32.mrb[9].mxu1 }
 0x18b   : > { %v616_v48 = vadd.f32 %v602_v47, %v524_v41  ;;  %v1106_v49 = vpop.f32.mrb[10].mxu1 }
 0x18c   : > { %v605_v50 = vpop.f32.mrb[11].mxu1 }
 0x18d   : > { %v617_v51 = vadd.f32 %v605_v50, %v525_v44 }
 0x191   : > { %v1113_v52 = vpop.f32.mrb[12].mxu0 }
 0x192   : > { %v721_v53 = vadd.f32 %v1113_v52, %v618_v46  ;;  %v705_v54 = vpop.f32.mrb[13].mxu0 }
 0x193   : > { %v719_v55 = vadd.f32 %v705_v54, %v616_v48  ;;  %v1114_v56 = vpop.f32.mrb[14].mxu0 }
 0x194   : > { %v708_v57 = vpop.f32.mrb[15].mxu0 }
 0x195   : > { %v720_v58 = vadd.f32 %v708_v57, %v617_v51 }
 0x1a1   : > { %v1121_v60 = vpop.f32.mrb[12].mxu1 }
 0x1a2   : > { %v797_v61 = vadd.f32 %v1121_v60, %v721_v53  ;;  %v781_v62 = vpop.f32.mrb[13].mxu1 }
 0x1a3   : > { %v795_v63 = vadd.f32 %v781_v62, %v719_v55  ;;  %v1122_v0 = vpop.f32.mrb[14].mxu1 }
 0x1a4   : > { %v784_v1 = vpop.f32.mrb[15].mxu1 }
 0x1a5   : > { %v796_v2 = vadd.f32 %v784_v1, %v720_v58  ;;  %v1129_v3 = vpop.f32.mrb[16].mxu0 }
 0x1a6   : > { %v873_v5 = vadd.f32 %v1129_v3, %v797_v61  ;;  %v857_v6 = vpop.f32.mrb[17].mxu0 }
 0x1a7   : > { %v871_v8 = vadd.f32 %v857_v6, %v795_v63  ;;  %v1130_v9 = vpop.f32.mrb[18].mxu0 }
 0x1a8   : > { %v894_v10 = vadd.f32 %v890_v4, %v873_v5  ;;  %v860_v11 = vpop.f32.mrb[19].mxu0 }
 0x1a9   : > { %v872_v12 = vadd.f32 %v860_v11, %v796_v2  ;;  %v892_v13 = vadd.f32 %v880_v7, %v871_v8 }
 0x1aa   : > { %vm897_vm6 = vcmp.ge.f32.partialorder %v894_v10, 0.0  ;;  %v900_v14 = vmul.f32 0.2, %v894_v10 }
 0x1ab   : > { %v893_v15 = vadd.f32 %v885_v59, %v872_v12  ;;  %vm895_vm7 = vcmp.ge.f32.partialorder %v892_v13, 0.0  ;;  %v898_v16 = vmul.f32 0.2, %v892_v13 }
 0x1ac   : > { %v903_v17 = vsel %vm897_vm6, %v894_v10, %v900_v14 }
 0x1ad   : > { %v1022_v18 = vpack.c.bf16 %v903_v17, %v903_v17  ;;  %vm896_vm9 = vcmp.ge.f32.partialorder %v893_v15, 0.0  ;;  %v899_v19 = vmul.f32 0.2, %v893_v15  ;;  %v901_v20 = vsel %vm895_vm7, %v892_v13, %v898_v16 }
 0x1ae   : > { %v1020_v21 = vpack.c.bf16 %v901_v20, %v901_v20 }
 0x1af   : > { %920 = vst.msk [vmem:[%s170_s30 + $0x8] sm:$0xf] %vm917_vm8, %v1022_v18  ;;  %v902_v22 = vsel %vm896_vm9, %v893_v15, %v899_v19 }
 0x1b0   : > { %v1021_v23 = vpack.c.bf16 %v902_v22, %v902_v22  ;;  %918 = vst.msk [vmem:[%s170_s30] sm:$0xf] %vm917_vm8, %v1020_v21 }
 0x1b2   : > { %919 = vst.msk [vmem:[%s170_s30 + $0x4] sm:$0xf] %vm917_vm8, %v1021_v23 }
 0x1b3 PF: > { %s13_s12 = sadd.s32 1, %s1189_s12  }
 0x1b4   : > { %p10_p4 = scmp.ge.s32.totalorder %s13_s12, 4  }
 0x1b6   :  { %12 = sbr.rel (!%p10_p4) target bundleno = 1 (0x1), region = 62 }

// kernel: deep_guided_filter_forward.18
= control target key start
LH: loop header
LB: loop body
LE: loop exit
PB: predicated region body
PF: predicated region fallthrough
CT: control target
= control target key end

     0   :  { %s1286_s12 = smov 0   ;;  %s1421_s0 = inlined_call_operand.vmem [shape: bf16[2,24,272], index: 0, kind: input, shape index: {}]   ;;  %s1422_s1 = inlined_call_operand.vmem [shape: bf16[24,216], index: 1, kind: input, shape index: {}]   ;;  %s1423_s2 = inlined_call_operand.vmem [shape: f32[24,1], index: 2, kind: input, shape index: {}]   ;;  %s1424_s3 = inlined_call_operand.vmem [shape: bf16[2,24,128], index: 3, kind: output, shape index: {}]  }
   0x1 LB: > { %s1024_s13 = sadd.s32 4294967295, %s1252_s12   ;;  %p1028_p0 = scmp.ge.s32.totalorder %s1252_s12, 1  ;;  %s1252_s12 = sphi %s1286_s12, %s13_s12  }
   0x2   : > { %p137_p1 = scmp.lt.s32.totalorder %s1252_s12, 3 }
   0x4   : > { %p138_p2 = pnand %p1028_p0, %p137_p1 }
   0x5   : > { %v1223_v0 = vld [vmem:[%s1422_s1] ss:$8 sps:$4 sm:$0xff] (!%p138_p2)   ;;  %p161_p3 = scmp.lt.s32.totalorder (!%p138_p2), %s1024_s13, 1  ;;  %s1254_s16 = smov (!%p138_p2), 104   ;;  %vm218_vm0 = vcmask (!%p138_p2), 195584   ;;  %vm225_vm1 = vcmask (!%p138_p2), 1043456  }
   0x6   : > { %141 = sbr.rel (%p138_p2) target bundleno = 448 (0x1c0), region = 32  ;;  %189 = vrot.lane.b32.xlu0 (!%p138_p2), %v1223_v0, %s1254_s16  ;;  %1130 = vmatprep.mubr.msk.bf16.mxu1 (!%p138_p2), %vm218_vm0, %v1223_v0  ;;  %s1255_s21 = smov (!%p138_p2), 124   ;;  %v1229_v9 = vld [vmem:[%s1422_s1 + $0x10] ss:$0 sps:$4 sm:$0xff] (!%p138_p2)   ;;  %v1230_v10 = vld [vmem:[%s1422_s1] ss:$8 sps:$4 sm:$0xff] (!%p138_p2)  }
   0x7   : > { %s1256_s22 = smov (!%p138_p2), 120   ;;  %s1257_s25 = smov (!%p138_p2), 64   ;;  %v573_v11 = vld [vmem:[%s1422_s1 + $0x10] sm:$0xff] (!%p138_p2)  ;;  %v1232_v12 = vld [vmem:[%s1422_s1 + $0x4] ss:$8 sps:$4 sm:$0xff] (!%p138_p2)   ;;  %v1264_v22 = vmov (!%p138_p2), 0  }
   0x8   : > { %s1258_s26 = smov (!%p138_p2), 80   ;;  %s1259_s27 = smov (!%p138_p2), 60   ;;  %v1051_v13 = vcombine.low (!%p138_p2), %v573_v11, %v573_v11  ;;  %v1052_v14 = vcombine.high (!%p138_p2), %v573_v11, %v573_v11  ;;  %v1238_v17 = vld [vmem:[%s1422_s1 + $0x4] ss:$8 sps:$4 sm:$0xff] (!%p138_p2)   ;;  %v1239_v19 = vld [vmem:[%s1422_s1 + $0x14] ss:$0 sps:$4 sm:$0xff] (!%p138_p2)   ;;  %1222 = vset.pattern.permute.xlu1 (!%p138_p2), %v1264_v22  ;;  %1221 = vset.pattern.permute.xlu0 (!%p138_p2), %v1264_v22 }
   0x9   : > { %s1260_s28 = smov (!%p138_p2), 56   ;;  %s1261_s29 = smov (!%p138_p2), 32   ;;  %v923_v23 = vld [vmem:[%s1423_s2] sm:$0xff] (!%p138_p2)  ;;  %v924_v24 = vld [vmem:[%s1423_s2 + $0x8] sm:$0xff] (!%p138_p2)  ;;  %v925_v25 = vld [vmem:[%s1423_s2 + $0x10] sm:$0xff] (!%p138_p2)  ;;  %vm214_vm2 = vcmask (!%p138_p2), 1014784  }
   0xa   : > { %s1262_s7 = smov (!%p138_p2), 8   ;;  %s1263_s14 = smov (!%p138_p2), 112   ;;  %vm355_vm3 = vcmask (!%p138_p2), 982016   ;;  %vm431_vm4 = vcmask (!%p138_p2), 523264   ;;  %vm507_vm5 = vcmask (!%p138_p2), 490496   ;;  %vm606_vm6 = vcmask (!%p138_p2), 457728  }
   0xb   : > { %vm595_vm7 = vcmask (!%p138_p2), 64512  }
   0xd   : > { %s1426_s13 = smov (!%p161_p3, %s1024_s13), 1 }
   0xe   : > { %s1199_s17 = smul.u32 36, %s1426_s13 }
  0x10   : > { %s1303_s20 = scalar_lea.vmem %s1421_s0, %s1199_s17  ;;  %s1265_s17 = smov 88  }
  0x11   : > { %v180_v1 = vld [vmem:[%s1303_s20 + $0x18] sm:$0xff]  ;;  %v1225_v3 = vld [vmem:[%s1303_s20] ss:$12 sps:$4 sm:$0xff]   ;;  %v1228_v5 = vld [vmem:[%s1303_s20 + $0x4] ss:$12 sps:$4 sm:$0xff]  }
  0x12   : > { %v1035_v2 = vcombine.low %v180_v1, %v180_v1  ;;  %206 = vrot.lane.b32.xlu0 %v1225_v3, %s1255_s21  ;;  %v1036_v4 = vcombine.high %v180_v1, %v180_v1  ;;  %v1242_v6 = vld [vmem:[%s1303_s20] ss:$12 sps:$4 sm:$0xff]   ;;  %v1243_v7 = vld [vmem:[%s1303_s20 + $0x18] ss:$0 sps:$4 sm:$0xff]   ;;  %v1235_v15 = vld [vmem:[%s1303_s20 + $0x4] ss:$12 sps:$4 sm:$0xff]  }
  0x13   : > { %1126 = vmatprep.subr.bf16.mxu1 %v1242_v6  ;;  %v293_v8 = vsel %vm225_vm1, %v1243_v7, 0  ;;  %v1237_v16 = vld [vmem:[%s1303_s20 + $0x8] ss:$12 sps:$4 sm:$0xff]   ;;  %v759_v18 = vld [vmem:[%s1303_s20 + $0x1c] sm:$0xff]  ;;  %v1244_v57 = vld [vmem:[%s1303_s20 + $0x4] ss:$12 sps:$4 sm:$0xff]  }
  0x14   : > { %210 = vrot.lane.b32.xlu1 %v1035_v2, %s1255_s21  ;;  %1127 = vmatpush3.bf16.msra.mxu1 %v1242_v6  ;;  %v1063_v20 = vcombine.low %v759_v18, %v759_v18  ;;  %v1064_v21 = vcombine.high %v759_v18, %v759_v18  ;;  %v1245_v1 = vld [vmem:[%s1303_s20 + $0x1c] ss:$0 sps:$4 sm:$0xff]   ;;  %s1200_s20 = smul.u32 12, %s1426_s13 }
  0x15   : > { %1191 = vmatprep.subr.msk.bf16.mxu1 %vm225_vm1, %v1243_v7 }
  0x16   : > { %208 = vrot.lane.b32.xlu0 %v1228_v5, %s1255_s21 }
  0x18   : > { %212 = vrot.lane.b32.xlu1 %v1036_v4, %s1255_s21  ;;  %1129 = vmatpush3.bf16.msra.mxu1 %v293_v8 }
  0x1a   : > { %349 = vrot.lane.b32.xlu0 %v1228_v5, %s1256_s22 }
  0x1b   : > { %1131 = vmatmul.mubr.msk.bf16.vlgmr.msra.gmra.mrb[0].mxu1 %vm218_vm0, %v1229_v9 }
  0x1c   : > { %347 = vrot.lane.b32.xlu1 %v1225_v3, %s1256_s22 }
  0x1e   : > { %351 = vrot.lane.b32.xlu0 %v1035_v2, %s1256_s22 }
  0x20   : > { %191 = vrot.lane.b32.xlu1 %v1229_v9, %s1254_s16 }
  0x22   : > { %423 = vrot.lane.b32.xlu0 %v1225_v3, %s1257_s25 }
  0x24   : > { %353 = vrot.lane.b32.xlu1 %v1036_v4, %s1256_s22 }
  0x26   : > { %343 = vrot.lane.b32.xlu0 %v1223_v0, %s1258_s26 }
  0x28   : > { %425 = vrot.lane.b32.xlu1 %v1228_v5, %s1257_s25 }
  0x2a   : > { %501 = vrot.lane.b32.xlu0 %v1228_v5, %s1259_s27 }
  0x2c   : > { %499 = vrot.lane.b32.xlu1 %v1225_v3, %s1259_s27 }
  0x2e   : > { %427 = vrot.lane.b32.xlu0 %v1035_v2, %s1257_s25 }
  0x30   : > { %345 = vrot.lane.b32.xlu1 %v1229_v9, %s1258_s26 }
  0x32   : > { %503 = vrot.lane.b32.xlu0 %v1035_v2, %s1259_s27 }
  0x34   : > { %429 = vrot.lane.b32.xlu1 %v1036_v4, %s1257_s25 }
  0x36   : > { %419 = vrot.lane.b32.xlu0 %v1223_v0, %s1260_s28 }
  0x38   : > { %505 = vrot.lane.b32.xlu1 %v1036_v4, %s1259_s27  ;;  %s170_s27 = scalar_lea.vmem %s1424_s3, %s1200_s20 }
  0x3a   : > { %600 = vrot.lane.b32.xlu0 %v1228_v5, %s1260_s28 }
  0x3c   : > { %598 = vrot.lane.b32.xlu1 %v1225_v3, %s1260_s28 }
  0x3e   : > { %495 = vrot.lane.b32.xlu0 %v1223_v0, %s1261_s29 }
  0x40   : > { %421 = vrot.lane.b32.xlu1 %v1229_v9, %s1260_s28 }
  0x42   : > { %602 = vrot.lane.b32.xlu0 %v1035_v2, %s1260_s28 }
  0x44   : > { %497 = vrot.lane.b32.xlu1 %v1229_v9, %s1261_s29 }
  0x46   : > { %587 = vrot.lane.b32.xlu0 %v1230_v10, %s1262_s7 }
  0x48   : > { %604 = vrot.lane.b32.xlu1 %v1036_v4, %s1260_s28  ;;  %v704_v4 = vsel %vm225_vm1, %v1245_v1, 0 }
  0x4a   : > { %591 = vrot.lane.b32.xlu0 %v1051_v13, %s1262_s7 }
  0x4c   : > { %589 = vrot.lane.b32.xlu1 %v1232_v12, %s1262_s7 }
  0x4e   : > { %777 = vrot.lane.b32.xlu0 %v1235_v15, %s1255_s21 }
  0x50   : > { %593 = vrot.lane.b32.xlu1 %v1052_v14, %s1262_s7 }
  0x52   : > { %684 = vrot.lane.b32.xlu0 %v1238_v17, %s1263_s14 }
  0x54   : > { %779 = vrot.lane.b32.xlu1 %v1237_v16, %s1255_s21 }
  0x56   : > { %854 = vrot.lane.b32.xlu0 %v1237_v16, %s1256_s22 }
  0x58   : > { %852 = vrot.lane.b32.xlu1 %v1235_v15, %s1256_s22 }
  0x5a   : > { %781 = vrot.lane.b32.xlu0 %v1063_v20, %s1255_s21 }
  0x5c   : > { %686 = vrot.lane.b32.xlu1 %v1239_v19, %s1263_s14 }
  0x5e   : > { %856 = vrot.lane.b32.xlu0 %v1063_v20, %s1256_s22 }
  0x60   : > { %783 = vrot.lane.b32.xlu1 %v1064_v21, %s1255_s21 }
  0x62   : > { %760 = vrot.lane.b32.xlu0 %v1238_v17, %s1265_s17 }
  0x64   : > { %858 = vrot.lane.b32.xlu1 %v1064_v21, %s1256_s22 }
  0x66   : > { %848 = vrot.lane.b32.xlu0 %v1238_v17, %s1257_s25 }
  0x68   : > { %762 = vrot.lane.b32.xlu1 %v1239_v19, %s1265_s17 }
  0x6a   : > { %928 = vperm.xlu0 %1221, %v923_v23  }
  0x6c   : > { %850 = vrot.lane.b32.xlu1 %v1239_v19, %s1257_s25 }
  0x70   : > { %933 = vperm.xlu1 %1222, %v924_v24  }
  0x74   : > { %938 = vperm.xlu1 %1222, %v925_v25  }
  0x78   : > { %v190_v26 = vpop.permute.xlu0 %189 }
  0x79   : > { %1122 = vmatprep.mubr.msk.bf16.mxu0 %vm218_vm0, %v190_v26 }
  0x84   : > { %v207_v28 = vpop.permute.xlu0 %206 }
  0x86   : > { %v211_v27 = vpop.permute.xlu1 %210 }
  0x88   : > { %v209_v30 = vpop.permute.xlu0 %208 }
  0x89   : > { %v215_v32 = vsel %vm214_vm2, %v207_v28, %v209_v30 }
  0x8a   : > { %v213_v29 = vpop.permute.xlu1 %212  ;;  %1118 = vmatprep.subr.bf16.mxu0 %v215_v32 }
  0x8b   : > { %v216_v31 = vsel %vm214_vm2, %v211_v27, %v213_v29  ;;  %1119 = vmatpush3.bf16.msra.mxu0 %v215_v32 }
  0x8c   : > { %1190 = vmatprep.subr.msk.bf16.mxu0 %vm225_vm1, %v216_v31  ;;  %v350_v34 = vpop.permute.xlu0 %349  ;;  %v227_v36 = vsel %vm225_vm1, %v216_v31, 0 }
  0x8e   : > { %v348_v33 = vpop.permute.xlu1 %347 }
  0x8f   : > { %v356_v35 = vsel %vm355_vm3, %v348_v33, %v350_v34  ;;  %1121 = vmatpush3.bf16.msra.mxu0 %v227_v36 }
  0x90   : > { %1134 = vmatprep.subr.bf16.mxu0 %v356_v35  ;;  %v352_v38 = vpop.permute.xlu0 %351 }
  0x92   : > { %v192_v37 = vpop.permute.xlu1 %191 }
  0x93   : > { %1123 = vmatmul.mubr.msk.bf16.vlgmr.msra.gmra.mrb[0].mxu0 %vm218_vm0, %v192_v37 }
  0x94   : > { %1135 = vmatpush3.bf16.msra.mxu0 %v356_v35  ;;  %v424_v40 = vpop.permute.xlu0 %423 }
  0x96   : > { %v354_v39 = vpop.permute.xlu1 %353 }
  0x97   : > { %v357_v41 = vsel %vm355_vm3, %v352_v38, %v354_v39 }
  0x98   : > { %v366_v42 = vsel %vm225_vm1, %v357_v41, 0  ;;  %1192 = vmatprep.subr.msk.bf16.mxu0 %vm225_vm1, %v357_v41  ;;  %v344_v44 = vpop.permute.xlu0 %343 }
  0x99   : > { %1137 = vmatpush3.bf16.msra.mxu0 %v366_v42  ;;  %1138 = vmatprep.mubr.msk.bf16.mxu0 %vm218_vm0, %v344_v44 }
  0x9a   : > { %v426_v43 = vpop.permute.xlu1 %425 }
  0x9b   : > { %v432_v45 = vsel %vm431_vm4, %v424_v40, %v426_v43 }
  0x9c   : > { %1142 = vmatprep.subr.bf16.mxu1 %v432_v45  ;;  %v502_v47 = vpop.permute.xlu0 %501 }
  0x9d   : > { %1143 = vmatpush3.bf16.msra.mxu1 %v432_v45 }
  0x9e   : > { %v500_v46 = vpop.permute.xlu1 %499 }
  0x9f   : > { %v508_v48 = vsel %vm507_vm5, %v500_v46, %v502_v47 }
  0xa0   : > { %1150 = vmatprep.subr.bf16.mxu0 %v508_v48  ;;  %v428_v50 = vpop.permute.xlu0 %427 }
  0xa2   : > { %v346_v49 = vpop.permute.xlu1 %345 }
  0xa3   : > { %1139 = vmatmul.mubr.msk.bf16.vlgmr.msra.gmra.mrb[4].mxu0 %vm218_vm0, %v346_v49 }
  0xa4   : > { %1151 = vmatpush3.bf16.msra.mxu0 %v508_v48  ;;  %v504_v52 = vpop.permute.xlu0 %503 }
  0xa6   : > { %v430_v51 = vpop.permute.xlu1 %429 }
  0xa7   : > { %v433_v53 = vsel %vm431_vm4, %v428_v50, %v430_v51 }
  0xa8   : > { %v442_v54 = vsel %vm225_vm1, %v433_v53, 0  ;;  %1193 = vmatprep.subr.msk.bf16.mxu1 %vm225_vm1, %v433_v53  ;;  %v420_v56 = vpop.permute.xlu0 %419 }
  0xa9   : > { %1145 = vmatpush3.bf16.msra.mxu1 %v442_v54  ;;  %1146 = vmatprep.mubr.msk.bf16.mxu1 %vm218_vm0, %v420_v56 }
  0xaa   : > { %v506_v55 = vpop.permute.xlu1 %505 }
  0xab   : > { %v509_v58 = vsel %vm507_vm5, %v504_v52, %v506_v55 }
  0xac   : > { %v518_v59 = vsel %vm225_vm1, %v509_v58, 0  ;;  %1194 = vmatprep.subr.msk.bf16.mxu0 %vm225_vm1, %v509_v58  ;;  %v601_v61 = vpop.permute.xlu0 %600 }
  0xad   : > { %1153 = vmatpush3.bf16.msra.mxu0 %v518_v59 }
  0xae   : > { %v599_v60 = vpop.permute.xlu1 %598  ;;  %1166 = vmatprep.subr.bf16.mxu0 %v1244_v57 }
  0xaf   : > { %v607_v62 = vsel %vm606_vm6, %v599_v60, %v601_v61 }
  0xb0   : > { %1158 = vmatprep.subr.bf16.mxu1 %v607_v62  ;;  %v496_v0 = vpop.permute.xlu0 %495 }
  0xb1   : > { %1154 = vmatprep.mubr.msk.bf16.mxu0 %vm218_vm0, %v496_v0 }
  0xb2   : > { %v422_v63 = vpop.permute.xlu1 %421 }
  0xb3   : > { %1147 = vmatmul.mubr.msk.bf16.vlgmr.msra.gmra.mrb[4].mxu1 %vm218_vm0, %v422_v63 }
  0xb4   : > { %1159 = vmatpush3.bf16.msra.mxu1 %v607_v62  ;;  %v603_v3 = vpop.permute.xlu0 %602 }
  0xb6   : > { %v498_v2 = vpop.permute.xlu1 %497 }
  0xb7   : > { %1155 = vmatmul.mubr.msk.bf16.vlgmr.msra.gmra.mrb[8].mxu0 %vm218_vm0, %v498_v2 }
  0xb8   : > { %1167 = vmatpush3.bf16.msra.mxu0 %v1244_v57  ;;  %v588_v6 = vpop.permute.xlu0 %587 }
  0xb9   : > { %1196 = vmatprep.subr.msk.bf16.mxu0 %vm225_vm1, %v1245_v1 }
  0xba   : > { %v605_v5 = vpop.permute.xlu1 %604 }
  0xbb   : > { %v608_v7 = vsel %vm606_vm6, %v603_v3, %v605_v5 }
  0xbc   : > { %v617_v8 = vsel %vm225_vm1, %v608_v7, 0  ;;  %1195 = vmatprep.subr.msk.bf16.mxu1 %vm225_vm1, %v608_v7  ;;  %1169 = vmatpush3.bf16.msra.mxu0 %v704_v4  ;;  %v592_v10 = vpop.permute.xlu0 %591 }
  0xbd   : > { %1161 = vmatpush3.bf16.msra.mxu1 %v617_v8 }
  0xbe   : > { %v590_v9 = vpop.permute.xlu1 %589 }
  0xbf   : > { %v596_v11 = vsel %vm595_vm7, %v588_v6, %v590_v9 }
  0xc0   : > { %1162 = vmatprep.mubr.msk.bf16.mxu1 %vm218_vm0, %v596_v11  ;;  %v778_v13 = vpop.permute.xlu0 %777 }
  0xc2   : > { %v594_v12 = vpop.permute.xlu1 %593 }
  0xc3   : > { %v597_v14 = vsel %vm595_vm7, %v592_v10, %v594_v12 }
  0xc4   : > { %1163 = vmatmul.mubr.msk.bf16.vlgmr.msra.gmra.mrb[8].mxu1 %vm218_vm0, %v597_v14  ;;  %v685_v16 = vpop.permute.xlu0 %684 }
  0xc5   : > { %1170 = vmatprep.mubr.msk.bf16.mxu0 %vm218_vm0, %v685_v16 }
  0xc6   : > { %v780_v15 = vpop.permute.xlu1 %779 }
  0xc7   : > { %v785_v17 = vsel %vm214_vm2, %v778_v13, %v780_v15 }
  0xc8   : > { %1174 = vmatprep.subr.bf16.mxu1 %v785_v17  ;;  %v855_v19 = vpop.permute.xlu0 %854 }
  0xc9   : > { %1175 = vmatpush3.bf16.msra.mxu1 %v785_v17 }
  0xca   : > { %v853_v18 = vpop.permute.xlu1 %852 }
  0xcb   : > { %v860_v20 = vsel %vm355_vm3, %v853_v18, %v855_v19 }
  0xcc   : > { %1182 = vmatprep.subr.bf16.mxu0 %v860_v20  ;;  %v782_v22 = vpop.permute.xlu0 %781 }
  0xce   : > { %v687_v21 = vpop.permute.xlu1 %686 }
  0xcf   : > { %1171 = vmatmul.mubr.msk.bf16.vlgmr.msra.gmra.mrb[12].mxu0 %vm218_vm0, %v687_v21 }
  0xd0   : > { %1183 = vmatpush3.bf16.msra.mxu0 %v860_v20  ;;  %v857_v24 = vpop.permute.xlu0 %856 }
  0xd2   : > { %v784_v23 = vpop.permute.xlu1 %783 }
  0xd3   : > { %v786_v25 = vsel %vm214_vm2, %v782_v22, %v784_v23 }
  0xd4   : > { %v795_v26 = vsel %vm225_vm1, %v786_v25, 0  ;;  %1197 = vmatprep.subr.msk.bf16.mxu1 %vm225_vm1, %v786_v25  ;;  %v761_v28 = vpop.permute.xlu0 %760 }
  0xd5   : > { %1177 = vmatpush3.bf16.msra.mxu1 %v795_v26  ;;  %1178 = vmatprep.mubr.msk.bf16.mxu1 %vm218_vm0, %v761_v28 }
  0xd6   : > { %v859_v27 = vpop.permute.xlu1 %858 }
  0xd7   : > { %v861_v29 = vsel %vm355_vm3, %v857_v24, %v859_v27 }
  0xd8   : > { %v870_v30 = vsel %vm225_vm1, %v861_v29, 0  ;;  %1198 = vmatprep.subr.msk.bf16.mxu0 %vm225_vm1, %v861_v29  ;;  %v849_v32 = vpop.permute.xlu0 %848 }
  0xd9   : > { %1185 = vmatpush3.bf16.msra.mxu0 %v870_v30  ;;  %1186 = vmatprep.mubr.msk.bf16.mxu0 %vm218_vm0, %v849_v32 }
  0xda   : > { %v763_v31 = vpop.permute.xlu1 %762 }
  0xdb   : > { %1179 = vmatmul.mubr.msk.bf16.vlgmr.msra.gmra.mrb[12].mxu1 %vm218_vm0, %v763_v31 }
  0xde   : > { %v851_v33 = vpop.permute.xlu1 %850 }
  0xdf   : > { %1187 = vmatmul.mubr.msk.bf16.vlgmr.msra.gmra.mrb[16].mxu0 %vm218_vm0, %v851_v33 }
  0xe9   : > { %v929_v28 = vpop.permute.xlu0 %928 }
  0xee   : > { %v1132_v34 = vpop.f32.mrb[0].mxu1 }
  0xef   : > { %v329_v35 = vpop.f32.mrb[1].mxu1  ;;  %v934_v16 = vpop.permute.xlu1 %933 }
  0xf0   : > { %v1133_v36 = vpop.f32.mrb[2].mxu1 }
  0xf1   : > { %v332_v37 = vpop.f32.mrb[3].mxu1 }
  0xf3   : > { %v939_v25 = vpop.permute.xlu1 %938 }
 0x166   : > { %v1124_v38 = vpop.f32.mrb[0].mxu0 }
 0x167   : > { %v338_v39 = vadd.f32 %v1132_v34, %v1124_v38  ;;  %v263_v40 = vpop.f32.mrb[1].mxu0 }
 0x168   : > { %v330_v41 = vadd.f32 %v329_v35, %v263_v40  ;;  %v1125_v42 = vpop.f32.mrb[2].mxu0 }
 0x169   : > { %v266_v43 = vpop.f32.mrb[3].mxu0 }
 0x16a   : > { %v333_v44 = vadd.f32 %v332_v37, %v266_v43 }
 0x176   : > { %v1140_v45 = vpop.f32.mrb[4].mxu0 }
 0x177   : > { %v418_v46 = vadd.f32 %v1140_v45, %v338_v39  ;;  %v402_v47 = vpop.f32.mrb[5].mxu0 }
 0x178   : > { %v416_v48 = vadd.f32 %v402_v47, %v330_v41  ;;  %v1141_v49 = vpop.f32.mrb[6].mxu0 }
 0x179   : > { %v405_v50 = vpop.f32.mrb[7].mxu0 }
 0x17a   : > { %v417_v51 = vadd.f32 %v405_v50, %v333_v44 }
 0x186   : > { %v1148_v52 = vpop.f32.mrb[4].mxu1 }
 0x187   : > { %v494_v53 = vadd.f32 %v1148_v52, %v418_v46  ;;  %v478_v54 = vpop.f32.mrb[5].mxu1 }
 0x188   : > { %v492_v55 = vadd.f32 %v478_v54, %v416_v48  ;;  %v1149_v56 = vpop.f32.mrb[6].mxu1 }
 0x189   : > { %v481_v57 = vpop.f32.mrb[7].mxu1 }
 0x18a   : > { %v493_v58 = vadd.f32 %v481_v57, %v417_v51  ;;  %v1156_v59 = vpop.f32.mrb[8].mxu0 }
 0x18b   : > { %v570_v60 = vadd.f32 %v1156_v59, %v494_v53  ;;  %v554_v61 = vpop.f32.mrb[9].mxu0 }
 0x18c   : > { %v568_v62 = vadd.f32 %v554_v61, %v492_v55  ;;  %v1157_v63 = vpop.f32.mrb[10].mxu0 }
 0x18d   : > { %v557_v0 = vpop.f32.mrb[11].mxu0 }
 0x18e   : > { %v569_v1 = vadd.f32 %v557_v0, %v493_v58 }
 0x197   : > { %v1164_v2 = vpop.f32.mrb[8].mxu1 }
 0x198   : > { %v669_v3 = vadd.f32 %v1164_v2, %v570_v60  ;;  %v653_v4 = vpop.f32.mrb[9].mxu1 }
 0x199   : > { %v667_v5 = vadd.f32 %v653_v4, %v568_v62  ;;  %v1165_v6 = vpop.f32.mrb[10].mxu1 }
 0x19a   : > { %v656_v7 = vpop.f32.mrb[11].mxu1 }
 0x19b   : > { %v668_v8 = vadd.f32 %v656_v7, %v569_v1 }
 0x1a2   : > { %v1172_v9 = vpop.f32.mrb[12].mxu0 }
 0x1a3   : > { %v756_v10 = vadd.f32 %v1172_v9, %v669_v3  ;;  %v740_v11 = vpop.f32.mrb[13].mxu0 }
 0x1a4   : > { %v754_v12 = vadd.f32 %v740_v11, %v667_v5  ;;  %v1173_v13 = vpop.f32.mrb[14].mxu0 }
 0x1a5   : > { %v743_v14 = vpop.f32.mrb[15].mxu0 }
 0x1a6   : > { %v755_v15 = vadd.f32 %v743_v14, %v668_v8 }
 0x1ae   : > { %v1180_v17 = vpop.f32.mrb[12].mxu1 }
 0x1af   : > { %v847_v18 = vadd.f32 %v1180_v17, %v756_v10  ;;  %v831_v19 = vpop.f32.mrb[13].mxu1 }
 0x1b0   : > { %v845_v20 = vadd.f32 %v831_v19, %v754_v12  ;;  %v1181_v21 = vpop.f32.mrb[14].mxu1 }
 0x1b1   : > { %v834_v22 = vpop.f32.mrb[15].mxu1 }
 0x1b2   : > { %v846_v23 = vadd.f32 %v834_v22, %v755_v15  ;;  %v1188_v24 = vpop.f32.mrb[16].mxu0 }
 0x1b3   : > { %v922_v26 = vadd.f32 %v1188_v24, %v847_v18  ;;  %v906_v27 = vpop.f32.mrb[17].mxu0 }
 0x1b4   : > { %v920_v29 = vadd.f32 %v906_v27, %v845_v20  ;;  %v1189_v30 = vpop.f32.mrb[18].mxu0 }
 0x1b5   : > { %v943_v31 = vadd.f32 %v939_v25, %v922_v26  ;;  %v909_v32 = vpop.f32.mrb[19].mxu0 }
 0x1b6   : > { %v921_v33 = vadd.f32 %v909_v32, %v846_v23  ;;  %v941_v34 = vadd.f32 %v929_v28, %v920_v29 }
 0x1b7   : > { %vm946_vm8 = vcmp.ge.f32.partialorder %v943_v31, 0.0  ;;  %v949_v35 = vmul.f32 0.2, %v943_v31 }
 0x1b8   : > { %v942_v36 = vadd.f32 %v934_v16, %v921_v33  ;;  %v947_v37 = vmul.f32 0.2, %v941_v34  ;;  %vm944_vm9 = vcmp.ge.f32.partialorder %v941_v34, 0.0 }
 0x1b9   : > { %v952_v38 = vsel %vm946_vm8, %v943_v31, %v949_v35 }
 0x1ba   : > { %v1076_v39 = vpack.c.bf16 %v952_v38, %v952_v38  ;;  %vm945_vm10 = vcmp.ge.f32.partialorder %v942_v36, 0.0  ;;  %v948_v40 = vmul.f32 0.2, %v942_v36  ;;  %v950_v41 = vsel %vm944_vm9, %v941_v34, %v947_v37 }
 0x1bc   : > { %968 = vst [vmem:[%s170_s27 + $0x8] sm:$0xf] %v1076_v39  ;;  %v951_v42 = vsel %vm945_vm10, %v942_v36, %v948_v40 }
 0x1bd   : > { %v1080_v43 = vpack.c.bf16 %v951_v42, %v950_v41 }
 0x1bf   : > { %1081 = vst [vmem:[%s170_s27] sm:$0xff] %v1080_v43  }
 0x1c0 PF: > { %s13_s12 = sadd.s32 1, %s1252_s12  }
 0x1c1   : > { %p10_p4 = scmp.ge.s32.totalorder %s13_s12, 4  }
 0x1c3   :  { %12 = sbr.rel (!%p10_p4) target bundleno = 1 (0x1), region = 62 }

// kernel: deep_guided_filter_forward.19
= control target key start
LH: loop header
LB: loop body
LE: loop exit
PB: predicated region body
PF: predicated region fallthrough
CT: control target
= control target key end

     0   :  { %s1354_s12 = smov 0   ;;  %s1604_s0 = inlined_call_operand.vmem [shape: bf16[2,24,600], index: 0, kind: input, shape index: {}]   ;;  %s1605_s1 = inlined_call_operand.vmem [shape: bf16[24,216], index: 1, kind: input, shape index: {}]   ;;  %s1606_s2 = inlined_call_operand.vmem [shape: f32[24,1], index: 2, kind: input, shape index: {}]   ;;  %s1607_s3 = inlined_call_operand.vmem [shape: bf16[2,24,192], index: 3, kind: output, shape index: {}]  }
   0x1 LB: > { %s1162_s13 = sadd.s32 4294967295, %s1321_s12   ;;  %p1166_p0 = scmp.ge.s32.totalorder %s1321_s12, 1  ;;  %s1321_s12 = sphi %s1354_s12, %s13_s12  }
   0x2   : > { %p137_p1 = scmp.lt.s32.totalorder %s1321_s12, 3 }
   0x4   : > { %p138_p2 = pnand %p1166_p0, %p137_p1 }
   0x5   : > { %p161_p3 = scmp.lt.s32.totalorder (!%p138_p2), %s1162_s13, 1  ;;  %s1323_s18 = smov (!%p138_p2), 120   ;;  %v1324_v8 = vmov (!%p138_p2), 0   ;;  %v1407_v13 = vld [vmem:[%s1605_s1] ss:$8 sps:$4 sm:$0xff] (!%p138_p2)   ;;  %v655_v16 = vld [vmem:[%s1605_s1 + $0x10] sm:$0xff] (!%p138_p2) }
   0x6   : > { %141 = sbr.rel (%p138_p2) target bundleno = 461 (0x1cd), region = 32  ;;  %262 = vmatprep.mubr.bf16.mxu1 (!%p138_p2), %v1324_v8  ;;  %628 = vmatprep.mubr.bf16.mxu0 (!%p138_p2), %v1324_v8  ;;  %s1325_s19 = smov (!%p138_p2), 56   ;;  %v1415_v14 = vld [vmem:[%s1605_s1 + $0x10] ss:$0 sps:$4 sm:$0xff] (!%p138_p2)   ;;  %v1303_v15 = vld [vmem:[%s1605_s1] ss:$8 sps:$4 sm:$0xff] (!%p138_p2)   ;;  %v1202_v17 = vcombine.low (!%p138_p2), %v655_v16, %v655_v16  ;;  %v1203_v19 = vcombine.high (!%p138_p2), %v655_v16, %v655_v16 }
   0x7   : > { %1287 = vset.pattern.permute.xlu0 (!%p138_p2), %v1324_v8  ;;  %1288 = vset.pattern.permute.xlu1 (!%p138_p2), %v1324_v8  ;;  %s1326_s22 = smov (!%p138_p2), 32   ;;  %s1327_s23 = smov (!%p138_p2), 104   ;;  %v1306_v18 = vld [vmem:[%s1605_s1 + $0x4] ss:$8 sps:$4 sm:$0xff] (!%p138_p2)   ;;  %v1309_v21 = vld [vmem:[%s1605_s1 + $0x14] ss:$0 sps:$4 sm:$0xff] (!%p138_p2)  }
   0x8   : > { %s1328_s24 = smov (!%p138_p2), 48   ;;  %s1329_s4 = smov (!%p138_p2), 8   ;;  %v1308_v20 = vld [vmem:[%s1605_s1 + $0x4] ss:$8 sps:$4 sm:$0xff] (!%p138_p2)   ;;  %v1042_v29 = vld [vmem:[%s1606_s2 + $0x10] sm:$0xff] (!%p138_p2)  ;;  %vm211_vm0 = vcmask (!%p138_p2), 982016  }
   0x9   : > { %s1330_s7 = smov (!%p138_p2), 112   ;;  %s1331_s8 = smov (!%p138_p2), 80   ;;  %v1040_v27 = vld [vmem:[%s1606_s2] sm:$0xff] (!%p138_p2)  ;;  %v1041_v28 = vld [vmem:[%s1606_s2 + $0x8] sm:$0xff] (!%p138_p2)  ;;  %vm223_vm1 = vcmask (!%p138_p2), 1043456   ;;  %vm577_vm2 = vcmask (!%p138_p2), 457728  }
   0xa   : > { %s1332_s11 = smov (!%p138_p2), 64   ;;  %s1333_s16 = smov (!%p138_p2), 88   ;;  %vm216_vm3 = vcmask (!%p138_p2), 195584   ;;  %vm692_vm4 = vcmask (!%p138_p2), 392192   ;;  %vm677_vm5 = vcmask (!%p138_p2), 64512   ;;  %vm358_vm6 = vcmask (!%p138_p2), 916480  }
   0xb   : > { %vm460_vm7 = vcmask (!%p138_p2), 523264   ;;  %vm1102_vm8 = vcmask (!%p138_p2), 523268  }
   0xc   : > { %vm1591_vm12 = vmor (!%p138_p2), %vm1102_vm8, %vm223_vm1 }
   0xd   : > { %s1611_s13 = smov (!%p161_p3, %s1162_s13), 1 }
   0xe   : > { %s1266_s14 = smul.u32 60, %s1611_s13 }
  0x10   : > { %s1368_s17 = scalar_lea.vmem %s1604_s0, %s1266_s14 }
  0x11   : > { %v174_v0 = vld [vmem:[%s1368_s17 + $0x28] sm:$0xff]  ;;  %v1374_v2 = vld [vmem:[%s1368_s17] ss:$20 sps:$4 sm:$0xff]   ;;  %v1383_v4 = vld [vmem:[%s1368_s17 + $0x4] ss:$20 sps:$4 sm:$0xff]  }
  0x12   : > { %v1371_v1 = vcombine.low %v174_v0, %v174_v0  ;;  %203 = vrot.lane.b32.xlu0 %v1374_v2, %s1323_s18  ;;  %v1380_v3 = vcombine.high %v174_v0, %v174_v0  ;;  %v1294_v5 = vld [vmem:[%s1368_s17 + $0xc] ss:$20 sps:$4 sm:$0xff]   ;;  %v1295_v6 = vld [vmem:[%s1368_s17 + $0x8] ss:$20 sps:$4 sm:$0xff]   ;;  %v1298_v10 = vld [vmem:[%s1368_s17 + $0x4] ss:$20 sps:$4 sm:$0xff]  }
  0x13   : > { %v538_v7 = vld [vmem:[%s1368_s17 + $0x2c] sm:$0xff]  ;;  %v1299_v11 = vld [vmem:[%s1368_s17 + $0x34] ss:$0 sps:$4 sm:$0xff]  }
  0x14   : > { %207 = vrot.lane.b32.xlu1 %v1371_v1, %s1323_s18  ;;  %v1194_v9 = vcombine.low %v538_v7, %v538_v7  ;;  %v1195_v12 = vcombine.high %v538_v7, %v538_v7  ;;  %v1445_v22 = vld [vmem:[%s1368_s17 + $0xc] ss:$20 sps:$4 sm:$0xff]   ;;  %v1451_v23 = vld [vmem:[%s1368_s17 + $0x10] ss:$20 sps:$4 sm:$0xff]   ;;  %v770_v24 = vld [vmem:[%s1368_s17 + $0x34] sm:$0xff]  ;;  %v290_v52 = vsel %vm223_vm1, %v1371_v1, 0 }
  0x15   : > { %v1456_v25 = vcombine.low %v770_v24, %v770_v24  ;;  %v1460_v26 = vcombine.high %v770_v24, %v770_v24 }
  0x16   : > { %205 = vrot.lane.b32.xlu0 %v1383_v4, %s1323_s18 }
  0x18   : > { %209 = vrot.lane.b32.xlu1 %v1380_v3, %s1323_s18 }
  0x1a   : > { %567 = vrot.lane.b32.xlu0 %v1295_v6, %s1325_s19 }
  0x1c   : > { %569 = vrot.lane.b32.xlu1 %v1294_v5, %s1325_s19 }
  0x1e   : > { %565 = vrot.lane.b32.xlu0 %v1298_v10, %s1325_s19 }
  0x20   : > { %571 = vrot.lane.b32.xlu1 %v1194_v9, %s1325_s19 }
  0x22   : > { %573 = vrot.lane.b32.xlu0 %v1195_v12, %s1325_s19 }
  0x24   : > { %575 = vrot.lane.b32.xlu1 %v1299_v11, %s1325_s19 }
  0x26   : > { %186 = vrot.lane.b32.xlu0 %v1407_v13, %s1327_s23 }
  0x28   : > { %540 = vrot.lane.b32.xlu1 %v1407_v13, %s1326_s22 }
  0x2a   : > { %682 = vrot.lane.b32.xlu0 %v1295_v6, %s1328_s24 }
  0x2c   : > { %684 = vrot.lane.b32.xlu1 %v1294_v5, %s1328_s24  ;;  %v808_v5 = vsel %vm223_vm1, %v1456_v25, 0 }
  0x2e   : > { %188 = vrot.lane.b32.xlu0 %v1415_v14, %s1327_s23 }
  0x30   : > { %680 = vrot.lane.b32.xlu1 %v1298_v10, %s1328_s24 }
  0x32   : > { %686 = vrot.lane.b32.xlu0 %v1194_v9, %s1328_s24 }
  0x34   : > { %688 = vrot.lane.b32.xlu1 %v1195_v12, %s1328_s24 }
  0x36   : > { %690 = vrot.lane.b32.xlu0 %v1299_v11, %s1328_s24 }
  0x38   : > { %669 = vrot.lane.b32.xlu1 %v1303_v15, %s1329_s4 }
  0x3a   : > { %671 = vrot.lane.b32.xlu0 %v1306_v18, %s1329_s4 }
  0x3c   : > { %673 = vrot.lane.b32.xlu1 %v1202_v17, %s1329_s4 }
  0x3e   : > { %675 = vrot.lane.b32.xlu0 %v1203_v19, %s1329_s4 }
  0x40   : > { %350 = vrot.lane.b32.xlu1 %v1374_v2, %s1330_s7 }
  0x42   : > { %352 = vrot.lane.b32.xlu0 %v1383_v4, %s1330_s7 }
  0x44   : > { %354 = vrot.lane.b32.xlu1 %v1371_v1, %s1330_s7 }
  0x46   : > { %356 = vrot.lane.b32.xlu0 %v1380_v3, %s1330_s7 }
  0x48   : > { %346 = vrot.lane.b32.xlu1 %v1407_v13, %s1331_s8 }
  0x4a   : > { %782 = vrot.lane.b32.xlu0 %v1308_v20, %s1330_s7 }
  0x4c   : > { %348 = vrot.lane.b32.xlu1 %v1415_v14, %s1331_s8 }
  0x4e   : > { %452 = vrot.lane.b32.xlu0 %v1298_v10, %s1332_s11 }
  0x50   : > { %454 = vrot.lane.b32.xlu1 %v1295_v6, %s1332_s11 }
  0x52   : > { %784 = vrot.lane.b32.xlu0 %v1309_v21, %s1330_s7 }
  0x54   : > { %874 = vrot.lane.b32.xlu1 %v1445_v22, %s1323_s18 }
  0x56   : > { %876 = vrot.lane.b32.xlu0 %v1451_v23, %s1323_s18 }
  0x58   : > { %456 = vrot.lane.b32.xlu1 %v1194_v9, %s1332_s11 }
  0x5a   : > { %458 = vrot.lane.b32.xlu0 %v1195_v12, %s1332_s11 }
  0x5c   : > { %878 = vrot.lane.b32.xlu1 %v1456_v25, %s1323_s18 }
  0x5e   : > { %880 = vrot.lane.b32.xlu0 %v1460_v26, %s1323_s18 }
  0x60   : > { %435 = vrot.lane.b32.xlu1 %v1407_v13, %s1325_s19 }
  0x62   : > { %870 = vrot.lane.b32.xlu0 %v1308_v20, %s1333_s16 }
  0x64   : > { %437 = vrot.lane.b32.xlu1 %v1415_v14, %s1325_s19 }
  0x66   : > { %872 = vrot.lane.b32.xlu0 %v1309_v21, %s1333_s16 }
  0x68   : > { %959 = vrot.lane.b32.xlu1 %v1445_v22, %s1330_s7 }
  0x6a   : > { %961 = vrot.lane.b32.xlu0 %v1451_v23, %s1330_s7 }
  0x6c   : > { %963 = vrot.lane.b32.xlu1 %v1456_v25, %s1330_s7 }
  0x6e   : > { %965 = vrot.lane.b32.xlu0 %v1460_v26, %s1330_s7 }
  0x70   : > { %542 = vrot.lane.b32.xlu1 %v1415_v14, %s1326_s22  ;;  %s1267_s22 = smul.u32 24, %s1611_s13 }
  0x72   : > { %955 = vrot.lane.b32.xlu0 %v1308_v20, %s1332_s11  ;;  %s170_s26 = scalar_lea.vmem %s1607_s3, %s1267_s22 }
  0x74   : > { %957 = vrot.lane.b32.xlu1 %v1309_v21, %s1332_s11 }
  0x76   : > { %1045 = vperm.xlu0 %1287, %v1040_v27  }
  0x78   : > { %1050 = vperm.xlu1 %1288, %v1041_v28  }
  0x7c   : > { %1055 = vperm.xlu1 %1288, %v1042_v29  }
  0x84   : > { %v204_v31 = vpop.permute.xlu0 %203 }
  0x86   : > { %v208_v30 = vpop.permute.xlu1 %207 }
  0x88   : > { %v206_v33 = vpop.permute.xlu0 %205 }
  0x89   : > { %230 = vmatprep.subr.bf16.mxu1 %v206_v33  ;;  %v212_v34 = vsel %vm211_vm0, %v204_v31, %v206_v33 }
  0x8a   : > { %v210_v32 = vpop.permute.xlu1 %209  ;;  %231 = vmatpush1.bf16.msra.mxu1 %v212_v34 }
  0x8b   : > { %v213_v35 = vsel %vm211_vm0, %v208_v30, %v210_v32  ;;  %1175 = vmatprep.subr.msk.bf16.mxu1 %vm223_vm1, %v210_v32 }
  0x8c   : > { %v568_v37 = vpop.permute.xlu0 %567  ;;  %v225_v38 = vsel %vm223_vm1, %v213_v35, 0 }
  0x8e   : > { %v570_v36 = vpop.permute.xlu1 %569  ;;  %233 = vmatpush1.bf16.msra.mxu1 %v225_v38 }
  0x8f   : > { %v1492_v39 = vsel %vm577_vm2, %v568_v37, %v570_v36  ;;  %295 = vmatprep.subr.bf16.mxu1 %v1383_v4 }
  0x90   : > { %596 = vmatprep.subr.bf16.mxu0 %v1492_v39  ;;  %v566_v41 = vpop.permute.xlu0 %565 }
  0x91   : > { %v1497_v42 = vsel %vm577_vm2, %v566_v41, %v568_v37 }
  0x92   : > { %v572_v40 = vpop.permute.xlu1 %571  ;;  %597 = vmatpush1.bf16.msra.mxu0 %v1497_v42 }
  0x94   : > { %v574_v44 = vpop.permute.xlu0 %573 }
  0x95   : > { %v580_v45 = vsel %vm577_vm2, %v572_v40, %v574_v44 }
  0x96   : > { %v576_v43 = vpop.permute.xlu1 %575  ;;  %v1507_v47 = vsel %vm223_vm1, %v580_v45, 0 }
  0x97   : > { %v1502_v46 = vsel %vm577_vm2, %v574_v44, %v576_v43 }
  0x98   : > { %1197 = vmatprep.subr.msk.bf16.mxu0 %vm223_vm1, %v1502_v46  ;;  %v187_v49 = vpop.permute.xlu0 %186 }
  0x99   : > { %599 = vmatpush1.bf16.msra.mxu0 %v1507_v47  ;;  %1176 = vmatmul.mubr.msk.bf16.vlgmr.msra.gmra.mrb[0].mxu1 %vm216_vm3, %v187_v49 }
  0x9a   : > { %v541_v48 = vpop.permute.xlu1 %540  ;;  %272 = vmatprep.mubr.bf16.mxu1 %v1324_v8  ;;  %296 = vmatpush1.bf16.msra.mxu1 %v1374_v2 }
  0x9b   : > { %1178 = vmatprep.subr.msk.bf16.mxu1 %vm223_vm1, %v1380_v3 }
  0x9c   : > { %1198 = vmatmul.mubr.msk.bf16.vlgmr.msra.gmra.mrb[0].mxu0 %vm216_vm3, %v541_v48  ;;  %v683_v51 = vpop.permute.xlu0 %682 }
  0x9d   : > { %743 = vmatprep.mubr.bf16.mxu0 %v1324_v8 }
  0x9e   : > { %v685_v50 = vpop.permute.xlu1 %684  ;;  %298 = vmatpush1.bf16.msra.mxu1 %v290_v52 }
  0x9f   : > { %v694_v53 = vsel %vm692_vm4, %v683_v51, %v685_v50 }
  0xa0   : > { %711 = vmatprep.subr.bf16.mxu0 %v694_v53  ;;  %v189_v55 = vpop.permute.xlu0 %188 }
  0xa1   : > { %1177 = vmatmul.mubr.msk.bf16.gmra.mrb[4].mxu1 %vm216_vm3, %v189_v55 }
  0xa2   : > { %v681_v54 = vpop.permute.xlu1 %680  ;;  %327 = vmatprep.mubr.bf16.mxu1 %v1324_v8 }
  0xa3   : > { %v693_v56 = vsel %vm692_vm4, %v681_v54, %v683_v51 }
  0xa4   : > { %712 = vmatpush1.bf16.msra.mxu0 %v693_v56  ;;  %v687_v58 = vpop.permute.xlu0 %686 }
  0xa6   : > { %v689_v57 = vpop.permute.xlu1 %688 }
  0xa7   : > { %v695_v59 = vsel %vm692_vm4, %v687_v58, %v689_v57 }
  0xa8   : > { %v691_v61 = vpop.permute.xlu0 %690  ;;  %v706_v63 = vsel %vm223_vm1, %v695_v59, 0 }
  0xa9   : > { %v696_v62 = vsel %vm692_vm4, %v689_v57, %v691_v61  ;;  %1179 = vmatmul.mubr.msk.bf16.vlgmr.msra.gmra.mrb[0].mxu1 %vm216_vm3, %v1407_v13 }
  0xaa   : > { %v670_v60 = vpop.permute.xlu1 %669  ;;  %1204 = vmatprep.subr.msk.bf16.mxu0 %vm223_vm1, %v696_v62  ;;  %337 = vmatprep.mubr.bf16.mxu1 %v1324_v8 }
  0xab   : > { %714 = vmatpush1.bf16.msra.mxu0 %v706_v63 }
  0xac   : > { %v672_v1 = vpop.permute.xlu0 %671  ;;  %813 = vmatprep.subr.bf16.mxu0 %v1451_v23 }
  0xad   : > { %v678_v2 = vsel %vm677_vm5, %v670_v60, %v672_v1 }
  0xae   : > { %v674_v0 = vpop.permute.xlu1 %673  ;;  %1205 = vmatmul.mubr.msk.bf16.vlgmr.msra.gmra.mrb[0].mxu0 %vm216_vm3, %v678_v2 }
  0xaf   : > { %753 = vmatprep.mubr.bf16.mxu0 %v1324_v8  ;;  %814 = vmatpush1.bf16.msra.mxu0 %v1445_v22 }
  0xb0   : > { %v676_v4 = vpop.permute.xlu0 %675  ;;  %1213 = vmatprep.subr.msk.bf16.mxu0 %vm223_vm1, %v1460_v26 }
  0xb1   : > { %1180 = vmatmul.mubr.msk.bf16.gmra.mrb[8].mxu1 %vm216_vm3, %v1415_v14  ;;  %v679_v9 = vsel %vm677_vm5, %v674_v0, %v676_v4 }
  0xb2   : > { %v351_v3 = vpop.permute.xlu1 %350  ;;  %407 = vmatprep.mubr.bf16.mxu1 %v1324_v8 }
  0xb3   : > { %816 = vmatpush1.bf16.msra.mxu0 %v808_v5 }
  0xb4   : > { %v353_v7 = vpop.permute.xlu0 %352 }
  0xb5   : > { %v359_v10 = vsel %vm358_vm6, %v351_v3, %v353_v7  ;;  %375 = vmatprep.subr.bf16.mxu1 %v353_v7 }
  0xb6   : > { %v355_v6 = vpop.permute.xlu1 %354  ;;  %376 = vmatpush1.bf16.msra.mxu1 %v359_v10  ;;  %1206 = vmatmul.mubr.msk.bf16.gmra.mrb[4].mxu0 %vm216_vm3, %v679_v9 }
  0xb7   : > { %845 = vmatprep.mubr.bf16.mxu0 %v1324_v8 }
  0xb8   : > { %v357_v12 = vpop.permute.xlu0 %356 }
  0xb9   : > { %v360_v13 = vsel %vm358_vm6, %v355_v6, %v357_v12  ;;  %1181 = vmatprep.subr.msk.bf16.mxu1 %vm223_vm1, %v357_v12 }
  0xba   : > { %v347_v11 = vpop.permute.xlu1 %346  ;;  %v370_v14 = vsel %vm223_vm1, %v360_v13, 0 }
  0xbb   : > { %378 = vmatpush1.bf16.msra.mxu1 %v370_v14 }
  0xbc   : > { %v783_v16 = vpop.permute.xlu0 %782 }
  0xbe   : > { %v349_v15 = vpop.permute.xlu1 %348  ;;  %1182 = vmatmul.mubr.msk.bf16.vlgmr.msra.gmra.mrb[0].mxu1 %vm216_vm3, %v347_v11  ;;  %1214 = vmatmul.mubr.msk.bf16.vlgmr.msra.gmra.mrb[0].mxu0 %vm216_vm3, %v783_v16 }
  0xbf   : > { %417 = vmatprep.mubr.bf16.mxu1 %v1324_v8  ;;  %855 = vmatprep.mubr.bf16.mxu0 %v1324_v8 }
  0xc0   : > { %v453_v18 = vpop.permute.xlu0 %452 }
  0xc2   : > { %v455_v17 = vpop.permute.xlu1 %454 }
  0xc3   : > { %v461_v19 = vsel %vm460_vm7, %v453_v18, %v455_v17  ;;  %477 = vmatprep.subr.bf16.mxu1 %v455_v17 }
  0xc4   : > { %478 = vmatpush1.bf16.msra.mxu1 %v461_v19  ;;  %v785_v20 = vpop.permute.xlu0 %784 }
  0xc6   : > { %v875_v21 = vpop.permute.xlu1 %874  ;;  %1183 = vmatmul.mubr.msk.bf16.gmra.mrb[12].mxu1 %vm216_vm3, %v349_v15  ;;  %1215 = vmatmul.mubr.msk.bf16.gmra.mrb[8].mxu0 %vm216_vm3, %v785_v20 }
  0xc7   : > { %509 = vmatprep.mubr.bf16.mxu1 %v1324_v8  ;;  %930 = vmatprep.mubr.bf16.mxu0 %v1324_v8 }
  0xc8   : > { %v877_v22 = vpop.permute.xlu0 %876 }
  0xc9   : > { %v882_v24 = vsel %vm211_vm0, %v875_v21, %v877_v22  ;;  %898 = vmatprep.subr.bf16.mxu0 %v877_v22 }
  0xca   : > { %v457_v23 = vpop.permute.xlu1 %456  ;;  %899 = vmatpush1.bf16.msra.mxu0 %v882_v24 }
  0xcc   : > { %v459_v25 = vpop.permute.xlu0 %458 }
  0xcd   : > { %v462_v27 = vsel %vm460_vm7, %v457_v23, %v459_v25  ;;  %1188 = vmatprep.subr.msk.bf16.mxu1 %vm223_vm1, %v459_v25 }
  0xce   : > { %v879_v26 = vpop.permute.xlu1 %878  ;;  %v472_v28 = vsel %vm223_vm1, %v462_v27, 0 }
  0xcf   : > { %480 = vmatpush1.bf16.msra.mxu1 %v472_v28 }
  0xd0   : > { %1230 = vmatprep.subr.bf16.mxu1 %v1492_v39  ;;  %v881_v29 = vpop.permute.xlu0 %880 }
  0xd1   : > { %v883_v31 = vsel %vm211_vm0, %v879_v26, %v881_v29  ;;  %1216 = vmatprep.subr.msk.bf16.mxu0 %vm223_vm1, %v881_v29 }
  0xd2   : > { %v436_v30 = vpop.permute.xlu1 %435  ;;  %v893_v32 = vsel %vm223_vm1, %v883_v31, 0 }
  0xd3   : > { %1189 = vmatmul.mubr.msk.bf16.vlgmr.msra.gmra.mrb[0].mxu1 %vm216_vm3, %v436_v30  ;;  %901 = vmatpush1.bf16.msra.mxu0 %v893_v32 }
  0xd4   : > { %1232 = vmatpush1.bf16.msra.mxu1 %v1497_v42  ;;  %v871_v33 = vpop.permute.xlu0 %870  ;;  %519 = vmatprep.mubr.bf16.mxu1 %v1324_v8 }
  0xd5   : > { %1231 = vmatprep.subr.msk.bf16.mxu1 %vm223_vm1, %v1502_v46 }
  0xd6   : > { %v438_v34 = vpop.permute.xlu1 %437  ;;  %1217 = vmatmul.mubr.msk.bf16.vlgmr.msra.gmra.mrb[0].mxu0 %vm216_vm3, %v871_v33 }
  0xd7   : > { %940 = vmatprep.mubr.bf16.mxu0 %v1324_v8 }
  0xd8   : > { %1233 = vmatpush1.bf16.msra.mxu1 %v1507_v47  ;;  %v873_v35 = vpop.permute.xlu0 %872 }
  0xda   : > { %v960_v36 = vpop.permute.xlu1 %959 }
  0xdb   : > { %1190 = vmatmul.mubr.msk.bf16.gmra.mrb[16].mxu1 %vm216_vm3, %v438_v34 }
  0xdc   : > { %638 = vmatprep.mubr.bf16.mxu1 %v1324_v8  ;;  %v962_v37 = vpop.permute.xlu0 %961 }
  0xdd   : > { %v967_v39 = vsel %vm358_vm6, %v960_v36, %v962_v37  ;;  %983 = vmatprep.subr.bf16.mxu0 %v962_v37 }
  0xde   : > { %v964_v38 = vpop.permute.xlu1 %963  ;;  %1218 = vmatmul.mubr.msk.bf16.gmra.mrb[12].mxu0 %vm216_vm3, %v873_v35 }
  0xdf   : > { %984 = vmatpush1.bf16.msra.mxu0 %v967_v39  ;;  %1015 = vmatprep.mubr.bf16.mxu0 %v1324_v8 }
  0xe0   : > { %v966_v40 = vpop.permute.xlu0 %965 }
  0xe1   : > { %v968_v42 = vsel %vm358_vm6, %v964_v38, %v966_v40  ;;  %1219 = vmatprep.subr.msk.bf16.mxu0 %vm223_vm1, %v966_v40 }
  0xe2   : > { %v543_v41 = vpop.permute.xlu1 %542  ;;  %v978_v43 = vsel %vm223_vm1, %v968_v42, 0 }
  0xe3   : > { %1199 = vmatmul.mubr.msk.bf16.vlgmr.msra.gmra.mrb[20].mxu1 %vm216_vm3, %v543_v41  ;;  %986 = vmatpush1.bf16.msra.mxu0 %v978_v43 }
  0xe4   : > { %v956_v44 = vpop.permute.xlu0 %955 }
  0xe6   : > { %1220 = vmatmul.mubr.msk.bf16.vlgmr.msra.gmra.mrb[0].mxu0 %vm216_vm3, %v956_v44  ;;  %v958_v45 = vpop.permute.xlu1 %957 }
  0xe7   : > { %1025 = vmatprep.mubr.bf16.mxu0 %v1324_v8 }
  0xee   : > { %1221 = vmatmul.mubr.msk.bf16.gmra.mrb[16].mxu0 %vm216_vm3, %v958_v45 }
  0xf5   : > { %v1046_v29 = vpop.permute.xlu0 %1045 }
  0xf7   : > { %v1051_v35 = vpop.permute.xlu1 %1050 }
 0x174   : > { %v274_v46 = vpop.f32.mrb[4].mxu1 }
 0x175   : > { %v276_v47 = vpop.f32.mrb[5].mxu1 }
 0x176   : > { %v278_v48 = vpop.f32.mrb[6].mxu1 }
 0x177   : > { %v279_v49 = vpop.f32.mrb[7].mxu1 }
 0x184   : > { %v339_v50 = vpop.f32.mrb[8].mxu1 }
 0x185   : > { %v340_v51 = vadd.f32 %v339_v50, %v274_v46  ;;  %v341_v52 = vpop.f32.mrb[9].mxu1 }
 0x186   : > { %v342_v53 = vadd.f32 %v341_v52, %v276_v47  ;;  %v343_v54 = vpop.f32.mrb[10].mxu1 }
 0x187   : > { %v344_v55 = vpop.f32.mrb[11].mxu1 }
 0x189   : > { %v755_v56 = vpop.f32.mrb[4].mxu0 }
 0x18a   : > { %v757_v57 = vpop.f32.mrb[5].mxu0 }
 0x18b   : > { %v759_v58 = vpop.f32.mrb[6].mxu0 }
 0x18c   : > { %v760_v59 = vpop.f32.mrb[7].mxu0 }
 0x199   : > { %v419_v60 = vpop.f32.mrb[12].mxu1  ;;  %v857_v61 = vpop.f32.mrb[8].mxu0 }
 0x19a   : > { %v430_v8 = vadd.f32 %v419_v60, %v340_v51  ;;  %v421_v62 = vpop.f32.mrb[13].mxu1  ;;  %v859_v63 = vpop.f32.mrb[9].mxu0 }
 0x19b   : > { %v431_v0 = vadd.f32 %v421_v62, %v342_v53  ;;  %v423_v1 = vpop.f32.mrb[14].mxu1  ;;  %v861_v2 = vpop.f32.mrb[10].mxu0 }
 0x19c   : > { %v424_v3 = vpop.f32.mrb[15].mxu1  ;;  %v862_v4 = vpop.f32.mrb[11].mxu0 }
 0x19d   : > { %v1056_v60 = vpop.permute.xlu1 %1055 }
 0x1a6   : > { %v511_v5 = vpop.f32.mrb[0].mxu1 }
 0x1a7   : > { %v513_v6 = vpop.f32.mrb[1].mxu1 }
 0x1a8   : > { %v515_v7 = vpop.f32.mrb[2].mxu1 }
 0x1a9   : > { %v517_v9 = vpop.f32.mrb[3].mxu1 }
 0x1ae   : > { %v521_v10 = vpop.f32.mrb[16].mxu1 }
 0x1af   : > { %v532_v11 = vadd.f32 %v521_v10, %v430_v8  ;;  %v523_v12 = vpop.f32.mrb[17].mxu1 }
 0x1b0   : > { %v533_v13 = vadd.f32 %v523_v12, %v431_v0  ;;  %v525_v14 = vpop.f32.mrb[18].mxu1 }
 0x1b1   : > { %v526_v15 = vpop.f32.mrb[19].mxu1  ;;  %v942_v16 = vpop.f32.mrb[12].mxu0 }
 0x1b2   : > { %v944_v17 = vpop.f32.mrb[13].mxu0 }
 0x1b3   : > { %v946_v18 = vpop.f32.mrb[14].mxu0 }
 0x1b4   : > { %v947_v19 = vpop.f32.mrb[15].mxu0 }
 0x1b6   : > { %v640_v20 = vpop.f32.mrb[20].mxu1 }
 0x1b7   : > { %v651_v21 = vadd.f32 %v640_v20, %v532_v11  ;;  %v642_v22 = vpop.f32.mrb[21].mxu1 }
 0x1b8   : > { %v652_v23 = vadd.f32 %v642_v22, %v533_v13  ;;  %v644_v24 = vpop.f32.mrb[22].mxu1 }
 0x1b9   : > { %v766_v25 = vadd.f32 %v755_v56, %v651_v21  ;;  %v645_v26 = vpop.f32.mrb[23].mxu1  ;;  %v1017_v28 = vpop.f32.mrb[0].mxu0 }
 0x1ba   : > { %v767_v27 = vadd.f32 %v757_v57, %v652_v23  ;;  %v1234_v30 = vadd.f32 %v1017_v28, %v511_v5  ;;  %v1019_v31 = vpop.f32.mrb[1].mxu0 }
 0x1bb   : > { %v868_v32 = vadd.f32 %v857_v61, %v766_v25  ;;  %v1235_v33 = vadd.f32 %v1019_v31, %v513_v6  ;;  %v1021_v34 = vpop.f32.mrb[2].mxu0 }
 0x1bc   : > { %v869_v36 = vadd.f32 %v859_v63, %v767_v27  ;;  %v1236_v37 = vadd.f32 %v1021_v34, %v515_v7  ;;  %v1058_v38 = vadd.f32 %v1234_v30, %v1046_v29  ;;  %v1023_v39 = vpop.f32.mrb[3].mxu0 }
 0x1bd   : > { %v953_v40 = vadd.f32 %v942_v16, %v868_v32  ;;  %v1059_v41 = vadd.f32 %v1235_v33, %v1046_v29  ;;  %v1237_v42 = vadd.f32 %v1023_v39, %v517_v9 }
 0x1be   : > { %v954_v43 = vadd.f32 %v944_v17, %v869_v36  ;;  %vm1064_vm9 = vcmp.ge.f32.partialorder %v1058_v38, 0.0  ;;  %v1070_v44 = vmul.f32 0.2, %v1058_v38  ;;  %v1060_v45 = vadd.f32 %v1236_v37, %v1051_v35 }
 0x1bf   : > { %vm1065_vm10 = vcmp.ge.f32.partialorder %v1059_v41, 0.0  ;;  %v1071_v46 = vmul.f32 0.2, %v1059_v41  ;;  %v1061_v47 = vadd.f32 %v1237_v42, %v1051_v35 }
 0x1c0   : > { %v1076_v48 = vsel %vm1064_vm9, %v1058_v38, %v1070_v44  ;;  %vm1066_vm11 = vcmp.ge.f32.partialorder %v1060_v45, 0.0  ;;  %v1072_v49 = vmul.f32 0.2, %v1060_v45 }
 0x1c1   : > { %v1077_v51 = vsel %vm1065_vm10, %v1059_v41, %v1071_v46  ;;  %vm1067_vm13 = vcmp.ge.f32.partialorder %v1061_v47, 0.0  ;;  %v1073_v52 = vmul.f32 0.2, %v1061_v47  ;;  %v1027_v53 = vpop.f32.mrb[16].mxu0 }
 0x1c2   : > { %v1227_v54 = vpack.c.bf16 %v1077_v51, %v1076_v48  ;;  %v1078_v55 = vsel %vm1066_vm11, %v1060_v45, %v1072_v49  ;;  %v1038_v56 = vadd.f32 %v1027_v53, %v953_v40  ;;  %v1029_v57 = vpop.f32.mrb[17].mxu0 }
 0x1c3   : > { %v1079_v58 = vsel %vm1067_vm13, %v1061_v47, %v1073_v52  ;;  %v1039_v59 = vadd.f32 %v1029_v57, %v954_v43  ;;  %v1031_v61 = vpop.f32.mrb[18].mxu0 }
 0x1c4   : > { %1104 = vst.msk [vmem:[%s170_s26] sm:$0xff] %vm1591_vm12, %v1227_v54  ;;  %v1228_v8 = vpack.c.bf16 %v1079_v58, %v1078_v55  ;;  %v1062_v62 = vadd.f32 %v1056_v60, %v1038_v56  ;;  %v1032_v63 = vpop.f32.mrb[19].mxu0 }
 0x1c5   : > { %v1063_v0 = vadd.f32 %v1056_v60, %v1039_v59 }
 0x1c6   : > { %1105 = vst.msk [vmem:[%s170_s26 + $0x8] sm:$0xff] %vm1591_vm12, %v1228_v8  ;;  %vm1068_vm14 = vcmp.ge.f32.partialorder %v1062_v62, 0.0  ;;  %v1074_v1 = vmul.f32 0.2, %v1062_v62 }
 0x1c7   : > { %vm1069_vm15 = vcmp.ge.f32.partialorder %v1063_v0, 0.0  ;;  %v1075_v2 = vmul.f32 0.2, %v1063_v0 }
 0x1c8   : > { %v1080_v3 = vsel %vm1068_vm14, %v1062_v62, %v1074_v1 }
 0x1c9   : > { %v1081_v4 = vsel %vm1069_vm15, %v1063_v0, %v1075_v2 }
 0x1ca   : > { %v1229_v5 = vpack.c.bf16 %v1081_v4, %v1080_v3 }
 0x1cc   : > { %1106 = vst.msk [vmem:[%s170_s26 + $0x10] sm:$0xff] %vm1591_vm12, %v1229_v5 }
 0x1cd PF: > { %s13_s12 = sadd.s32 1, %s1321_s12  }
 0x1ce   : > { %p10_p4 = scmp.ge.s32.totalorder %s13_s12, 4  }
 0x1d0   :  { %12 = sbr.rel (!%p10_p4) target bundleno = 1 (0x1), region = 62 }

// kernel: deep_guided_filter_forward.20
= control target key start
LH: loop header
LB: loop body
LE: loop exit
PB: predicated region body
PF: predicated region fallthrough
CT: control target
= control target key end

     0   :  { %s2026_s12 = smov 0   ;;  %s2454_s0 = inlined_call_operand.vmem [shape: bf16[2,24,1640], index: 0, kind: input, shape index: {}]   ;;  %s2455_s1 = inlined_call_operand.vmem [shape: bf16[24,216], index: 1, kind: input, shape index: {}]   ;;  %s2456_s2 = inlined_call_operand.vmem [shape: f32[24,1], index: 2, kind: input, shape index: {}]   ;;  %s2457_s3 = inlined_call_operand.vmem [shape: bf16[2,24,320], index: 3, kind: output, shape index: {}]  }
   0x1 LB: > { %s1695_s13 = sadd.s32 4294967295, %s1994_s12   ;;  %p1699_p0 = scmp.ge.s32.totalorder %s1994_s12, 1  ;;  %s1994_s12 = sphi %s2026_s12, %s13_s12  }
   0x2   : > { %p137_p1 = scmp.lt.s32.totalorder %s1994_s12, 3 }
   0x4   : > { %p138_p2 = pnand %p1699_p0, %p137_p1 }
   0x5   : > { %p161_p3 = scmp.lt.s32.totalorder (!%p138_p2), %s1695_s13, 1  ;;  %s1996_s18 = smov (!%p138_p2), 96   ;;  %v1997_v7 = vmov (!%p138_p2), 0   ;;  %v2082_v8 = vld [vmem:[%s2455_s1] ss:$8 sps:$4 sm:$0xff] (!%p138_p2)   ;;  %v919_v19 = vld [vmem:[%s2455_s1 + $0x10] sm:$0xff] (!%p138_p2) }
   0x6   : > { %141 = sbr.rel (%p138_p2) target bundleno = 484 (0x1e4), region = 32  ;;  %538 = vmatprep.mubr.bf16.mxu0 (!%p138_p2), %v1997_v7  ;;  %283 = vmatprep.mubr.bf16.mxu1 (!%p138_p2), %v1997_v7  ;;  %s1998_s19 = smov (!%p138_p2), 112   ;;  %v2096_v9 = vld [vmem:[%s2455_s1 + $0x10] ss:$0 sps:$4 sm:$0xff] (!%p138_p2)   ;;  %v1974_v17 = vld [vmem:[%s2455_s1] ss:$8 sps:$4 sm:$0xff] (!%p138_p2)   ;;  %v1743_v20 = vcombine.low (!%p138_p2), %v919_v19, %v919_v19  ;;  %v1744_v21 = vcombine.high (!%p138_p2), %v919_v19, %v919_v19 }
   0x7   : > { %1956 = vset.pattern.permute.xlu0 (!%p138_p2), %v1997_v7  ;;  %1957 = vset.pattern.permute.xlu1 (!%p138_p2), %v1997_v7  ;;  %s1999_s22 = smov (!%p138_p2), 80   ;;  %s2000_s25 = smov (!%p138_p2), 104   ;;  %v1976_v18 = vld [vmem:[%s2455_s1 + $0x4] ss:$8 sps:$4 sm:$0xff] (!%p138_p2)   ;;  %v1984_v25 = vld [vmem:[%s2455_s1 + $0x14] ss:$0 sps:$4 sm:$0xff] (!%p138_p2)  }
   0x8   : > { %s2001_s26 = smov (!%p138_p2), 56   ;;  %s2002_s27 = smov (!%p138_p2), 32   ;;  %v1978_v22 = vld [vmem:[%s2455_s1 + $0x4] ss:$8 sps:$4 sm:$0xff] (!%p138_p2)   ;;  %v1548_v34 = vld [vmem:[%s2456_s2 + $0x10] sm:$0xff] (!%p138_p2)  ;;  %vm483_vm0 = vcmask (!%p138_p2), 785408  }
   0x9   : > { %s2003_s7 = smov (!%p138_p2), 8   ;;  %s2005_s15 = smov (!%p138_p2), 64   ;;  %v1546_v31 = vld [vmem:[%s2456_s2] sm:$0xff] (!%p138_p2)  ;;  %v1547_v32 = vld [vmem:[%s2456_s2 + $0x8] sm:$0xff] (!%p138_p2)  ;;  %vm241_vm1 = vcmask (!%p138_p2), 1043456   ;;  %vm226_vm2 = vcmask (!%p138_p2), 916480  }
   0xa   : > { %vm234_vm3 = vcmask (!%p138_p2), 195584   ;;  %vm941_vm4 = vcmask (!%p138_p2), 64512   ;;  %vm1634_vm13 = vcmask (!%p138_p2), 519168  }
   0xd   : > { %s2459_s13 = smov (!%p161_p3, %s1695_s13), 1 }
   0xe   : > { %s1936_s14 = smul.u32 156, %s2459_s13 }
  0x10   : > { %s2040_s17 = scalar_lea.vmem %s2454_s0, %s1936_s14  ;;  %s2004_s14 = smov 88  }
  0x11   : > { %v2043_v0 = vld [vmem:[%s2040_s17 + $0x4] ss:$52 sps:$4 sm:$0xff]   ;;  %v2046_v1 = vld [vmem:[%s2040_s17] ss:$52 sps:$4 sm:$0xff]   ;;  %v2051_v2 = vld [vmem:[%s2040_s17 + $0x8] ss:$52 sps:$4 sm:$0xff]  }
  0x12   : > { %473 = vrot.lane.b32.xlu0 %v2043_v0, %s1996_s18  ;;  %v176_v3 = vld [vmem:[%s2040_s17 + $0x68] sm:$0xff]  ;;  %471 = vrot.lane.b32.xlu1 %v2046_v1, %s1996_s18  ;;  %v2065_v6 = vld [vmem:[%s2040_s17 + $0x70] ss:$0 sps:$4 sm:$0xff]  }
  0x13   : > { %v2056_v4 = vcombine.low %v176_v3, %v176_v3  ;;  %v2060_v5 = vcombine.high %v176_v3, %v176_v3  ;;  %v2102_v10 = vld [vmem:[%s2040_s17 + $0x18] ss:$52 sps:$4 sm:$0xff]   ;;  %v2106_v11 = vld [vmem:[%s2040_s17 + $0x1c] ss:$52 sps:$4 sm:$0xff]   ;;  %v2114_v13 = vld [vmem:[%s2040_s17 + $0x14] ss:$52 sps:$4 sm:$0xff]  }
  0x14   : > { %v618_v12 = vld [vmem:[%s2040_s17 + $0x7c] sm:$0xff]  ;;  %v2126_v16 = vld [vmem:[%s2040_s17 + $0x84] ss:$0 sps:$4 sm:$0xff]   ;;  %v1090_v26 = vld [vmem:[%s2040_s17 + $0x90] sm:$0xff] }
  0x15   : > { %v2117_v14 = vcombine.low %v618_v12, %v618_v12  ;;  %v2121_v15 = vcombine.high %v618_v12, %v618_v12  ;;  %v2159_v23 = vld [vmem:[%s2040_s17 + $0x2c] ss:$52 sps:$4 sm:$0xff]   ;;  %v2163_v24 = vld [vmem:[%s2040_s17 + $0x30] ss:$52 sps:$4 sm:$0xff]   ;;  %v2174_v27 = vld [vmem:[%s2040_s17 + $0x28] ss:$52 sps:$4 sm:$0xff]   ;;  %v2177_v28 = vcombine.low %v1090_v26, %v1090_v26  ;;  %v2181_v29 = vcombine.high %v1090_v26, %v1090_v26 }
  0x16   : > { %475 = vrot.lane.b32.xlu0 %v2051_v2, %s1996_s18  ;;  %477 = vrot.lane.b32.xlu1 %v2056_v4, %s1996_s18  ;;  %v2186_v30 = vld [vmem:[%s2040_s17 + $0x98] ss:$0 sps:$4 sm:$0xff]  }
  0x17   : > { %v655_v52 = vsel %vm241_vm1, %v2117_v14, 0 }
  0x1a   : > { %479 = vrot.lane.b32.xlu0 %v2060_v5, %s1996_s18  ;;  %481 = vrot.lane.b32.xlu1 %v2065_v6, %s1996_s18 }
  0x1e   : > { %216 = vrot.lane.b32.xlu0 %v2043_v0, %s1998_s19  ;;  %218 = vrot.lane.b32.xlu1 %v2051_v2, %s1998_s19 }
  0x22   : > { %214 = vrot.lane.b32.xlu0 %v2046_v1, %s1998_s19  ;;  %467 = vrot.lane.b32.xlu1 %v2082_v8, %s1999_s22 }
  0x26   : > { %220 = vrot.lane.b32.xlu0 %v2056_v4, %s1998_s19  ;;  %222 = vrot.lane.b32.xlu1 %v2060_v5, %s1998_s19 }
  0x2a   : > { %224 = vrot.lane.b32.xlu0 %v2065_v6, %s1998_s19  ;;  %189 = vrot.lane.b32.xlu1 %v2082_v8, %s2000_s25 }
  0x2e   : > { %469 = vrot.lane.b32.xlu0 %v2096_v9, %s1999_s22  ;;  %191 = vrot.lane.b32.xlu1 %v2096_v9, %s2000_s25 }
  0x32   : > { %620 = vrot.lane.b32.xlu0 %v2082_v8, %s2001_s26  ;;  %777 = vrot.lane.b32.xlu1 %v2102_v10, %s1998_s19 }
  0x36   : > { %779 = vrot.lane.b32.xlu0 %v2106_v11, %s1998_s19  ;;  %622 = vrot.lane.b32.xlu1 %v2096_v9, %s2001_s26 }
  0x3a   : > { %775 = vrot.lane.b32.xlu0 %v2114_v13, %s1998_s19  ;;  %781 = vrot.lane.b32.xlu1 %v2117_v14, %s1998_s19 }
  0x3e   : > { %783 = vrot.lane.b32.xlu0 %v2121_v15, %s1998_s19  ;;  %785 = vrot.lane.b32.xlu1 %v2126_v16, %s1998_s19 }
  0x42   : > { %771 = vrot.lane.b32.xlu0 %v2082_v8, %s2002_s27  ;;  %946 = vrot.lane.b32.xlu1 %v2102_v10, %s1996_s18 }
  0x46   : > { %948 = vrot.lane.b32.xlu0 %v2106_v11, %s1996_s18  ;;  %773 = vrot.lane.b32.xlu1 %v2096_v9, %s2002_s27 }
  0x4a   : > { %944 = vrot.lane.b32.xlu0 %v2114_v13, %s1996_s18  ;;  %950 = vrot.lane.b32.xlu1 %v2117_v14, %s1996_s18 }
  0x4e   : > { %952 = vrot.lane.b32.xlu0 %v2121_v15, %s1996_s18  ;;  %954 = vrot.lane.b32.xlu1 %v2126_v16, %s1996_s18 }
  0x52   : > { %933 = vrot.lane.b32.xlu0 %v1974_v17, %s2003_s7  ;;  %935 = vrot.lane.b32.xlu1 %v1976_v18, %s2003_s7 }
  0x56   : > { %937 = vrot.lane.b32.xlu0 %v1743_v20, %s2003_s7  ;;  %939 = vrot.lane.b32.xlu1 %v1744_v21, %s2003_s7 }
  0x5a   : > { %1103 = vrot.lane.b32.xlu0 %v1978_v22, %s1998_s19  ;;  %1260 = vrot.lane.b32.xlu1 %v2159_v23, %s1998_s19 }
  0x5e   : > { %1262 = vrot.lane.b32.xlu0 %v2163_v24, %s1998_s19  ;;  %1105 = vrot.lane.b32.xlu1 %v1984_v25, %s1998_s19 }
  0x62   : > { %1258 = vrot.lane.b32.xlu0 %v2174_v27, %s1998_s19  ;;  %1264 = vrot.lane.b32.xlu1 %v2177_v28, %s1998_s19 }
  0x66   : > { %1266 = vrot.lane.b32.xlu0 %v2181_v29, %s1998_s19  ;;  %1268 = vrot.lane.b32.xlu1 %v2186_v30, %s1998_s19 }
  0x6a   : > { %1254 = vrot.lane.b32.xlu0 %v1978_v22, %s2004_s14  ;;  %1406 = vrot.lane.b32.xlu1 %v2159_v23, %s1996_s18 }
  0x6e   : > { %1408 = vrot.lane.b32.xlu0 %v2163_v24, %s1996_s18  ;;  %1256 = vrot.lane.b32.xlu1 %v1984_v25, %s2004_s14 }
  0x72   : > { %1404 = vrot.lane.b32.xlu0 %v2174_v27, %s1996_s18  ;;  %1410 = vrot.lane.b32.xlu1 %v2177_v28, %s1996_s18 }
  0x76   : > { %1412 = vrot.lane.b32.xlu0 %v2181_v29, %s1996_s18  ;;  %1414 = vrot.lane.b32.xlu1 %v2186_v30, %s1996_s18  ;;  %s1937_s18 = smul.u32 36, %s2459_s13 }
  0x78   : > { %s2442_s13 = scalar_lea.vmem %s2457_s3, %s1937_s18 }
  0x7a   : > { %1400 = vrot.lane.b32.xlu0 %v1978_v22, %s2005_s15  ;;  %1402 = vrot.lane.b32.xlu1 %v1984_v25, %s2005_s15  ;;  %v360_v22 = vsel %vm241_vm1, %v2056_v4, 0 }
  0x7e   : > { %1551 = vperm.xlu0 %1956, %v1546_v31   ;;  %1556 = vperm.xlu1 %1957, %v1547_v32  }
  0x82   : > { %1561 = vperm.xlu1 %1957, %v1548_v34  }
  0x84   : > { %v474_v33 = vpop.permute.xlu0 %473  ;;  %v472_v35 = vpop.permute.xlu1 %471 }
  0x85   : > { %v484_v39 = vsel %vm483_vm0, %v472_v35, %v474_v33 }
  0x88   : > { %v2213_v36 = vpop.permute.xlu0 %475  ;;  %v478_v37 = vpop.permute.xlu1 %477 }
  0x89   : > { %v485_v38 = vsel %vm483_vm0, %v474_v33, %v2213_v36 }
  0x8a   : > { %506 = vmatprep.subr.bf16.mxu0 %v485_v38 }
  0x8b   : > { %507 = vmatpush1.bf16.msra.mxu0 %v484_v39 }
  0x8c   : > { %v480_v40 = vpop.permute.xlu0 %479  ;;  %v2219_v42 = vpop.permute.xlu1 %481 }
  0x8d   : > { %v486_v41 = vsel %vm483_vm0, %v478_v37, %v480_v40  ;;  %v487_v43 = vsel %vm483_vm0, %v480_v40, %v2219_v42 }
  0x8e   : > { %v498_v44 = vsel %vm241_vm1, %v486_v41, 0  ;;  %1720 = vmatprep.subr.msk.bf16.mxu0 %vm241_vm1, %v487_v43 }
  0x8f   : > { %509 = vmatpush1.bf16.msra.mxu0 %v498_v44 }
  0x90   : > { %v217_v45 = vpop.permute.xlu0 %216  ;;  %v219_v46 = vpop.permute.xlu1 %218  ;;  %663 = vmatprep.subr.bf16.mxu0 %v2102_v10 }
  0x91   : > { %v228_v47 = vsel %vm226_vm2, %v217_v45, %v219_v46 }
  0x92   : > { %251 = vmatprep.subr.bf16.mxu1 %v228_v47 }
  0x94   : > { %v215_v48 = vpop.permute.xlu0 %214  ;;  %v2227_v49 = vpop.permute.xlu1 %467 }
  0x95   : > { %v227_v50 = vsel %vm226_vm2, %v215_v48, %v217_v45  ;;  %1721 = vmatmul.mubr.msk.bf16.vlgmr.msra.gmra.mrb[0].mxu0 %vm234_vm3, %v2227_v49 }
  0x96   : > { %252 = vmatpush1.bf16.msra.mxu1 %v227_v50  ;;  %664 = vmatpush1.bf16.msra.mxu0 %v2114_v13 }
  0x97   : > { %548 = vmatprep.mubr.bf16.mxu0 %v1997_v7  ;;  %1731 = vmatprep.subr.msk.bf16.mxu0 %vm241_vm1, %v2121_v15 }
  0x98   : > { %v221_v51 = vpop.permute.xlu0 %220  ;;  %v223_v53 = vpop.permute.xlu1 %222 }
  0x99   : > { %v229_v54 = vsel %vm226_vm2, %v221_v51, %v223_v53 }
  0x9a   : > { %666 = vmatpush1.bf16.msra.mxu0 %v655_v52  ;;  %v243_v58 = vsel %vm241_vm1, %v229_v54, 0 }
  0x9c   : > { %v225_v55 = vpop.permute.xlu0 %224  ;;  %v190_v56 = vpop.permute.xlu1 %189 }
  0x9d   : > { %v230_v57 = vsel %vm226_vm2, %v223_v53, %v225_v55  ;;  %v249_v63 = vsel %vm241_vm1, %v225_v55, 0 }
  0x9e   : > { %1710 = vmatprep.subr.msk.bf16.mxu1 %vm241_vm1, %v230_v57 }
  0x9f   : > { %254 = vmatpush1.bf16.msra.mxu1 %v243_v58 }
  0xa0   : > { %v2242_v59 = vpop.permute.xlu0 %469  ;;  %1823 = vmatprep.subr.bf16.mxu1 %v219_v46  ;;  %v192_v60 = vpop.permute.xlu1 %191 }
  0xa1   : > { %1722 = vmatmul.mubr.msk.bf16.gmra.mrb[4].mxu0 %vm234_vm3, %v2242_v59 }
  0xa2   : > { %1711 = vmatmul.mubr.msk.bf16.vlgmr.msra.gmra.mrb[0].mxu1 %vm234_vm3, %v190_v56  ;;  %695 = vmatprep.mubr.bf16.mxu0 %v1997_v7 }
  0xa3   : > { %1824 = vmatpush3.bf16.msra.mxu1 %v219_v46  ;;  %293 = vmatprep.mubr.bf16.mxu1 %v1997_v7 }
  0xa4   : > { %v2249_v61 = vpop.permute.xlu0 %620  ;;  %1927 = vmatprep.subr.msk.bf16.mxu1 %vm241_vm1, %v225_v55  ;;  %v778_v62 = vpop.permute.xlu1 %777 }
  0xa7   : > { %1826 = vmatpush3.bf16.msra.mxu1 %v249_v63 }
  0xa8   : > { %v2253_v3 = vpop.permute.xlu0 %779  ;;  %368 = vmatprep.subr.bf16.mxu1 %v2043_v0  ;;  %v2256_v10 = vpop.permute.xlu1 %622 }
  0xa9   : > { %1732 = vmatmul.mubr.msk.bf16.vlgmr.msra.gmra.mrb[0].mxu0 %vm234_vm3, %v2249_v61  ;;  %v788_v12 = vsel %vm226_vm2, %v778_v62, %v2253_v3 }
  0xaa   : > { %1712 = vmatmul.mubr.msk.bf16.gmra.mrb[4].mxu1 %vm234_vm3, %v192_v60  ;;  %809 = vmatprep.subr.bf16.mxu0 %v788_v12  ;;  %v1144_v12 = vsel %vm241_vm1, %v2186_v30, 0 }
  0xab   : > { %1827 = vmatprep.mubr.msk.bf16.mxu1 %vm234_vm3, %v190_v56  ;;  %705 = vmatprep.mubr.bf16.mxu0 %v1997_v7 }
  0xac   : > { %v776_v13 = vpop.permute.xlu0 %775  ;;  %v782_v15 = vpop.permute.xlu1 %781 }
  0xad   : > { %v787_v14 = vsel %vm226_vm2, %v776_v13, %v778_v62 }
  0xae   : > { %810 = vmatpush1.bf16.msra.mxu0 %v787_v14 }
  0xb0   : > { %v784_v0 = vpop.permute.xlu0 %783  ;;  %v2267_v18 = vpop.permute.xlu1 %785 }
  0xb1   : > { %v789_v17 = vsel %vm226_vm2, %v782_v15, %v784_v0  ;;  %1733 = vmatmul.mubr.msk.bf16.gmra.mrb[8].mxu0 %vm234_vm3, %v2256_v10  ;;  %v790_v20 = vsel %vm226_vm2, %v784_v0, %v2267_v18  ;;  %v807_v53 = vsel %vm241_vm1, %v2267_v18, 0 }
  0xb2   : > { %v801_v19 = vsel %vm241_vm1, %v789_v17, 0  ;;  %1828 = vmatmul.mubr.msk.bf16.vlgmr.msra.gmra.mrb[8].mxu1 %vm234_vm3, %v192_v60  ;;  %841 = vmatprep.mubr.bf16.mxu0 %v1997_v7 }
  0xb3   : > { %369 = vmatpush1.bf16.msra.mxu1 %v2046_v1  ;;  %1736 = vmatprep.subr.msk.bf16.mxu0 %vm241_vm1, %v790_v20 }
  0xb4   : > { %812 = vmatpush1.bf16.msra.mxu0 %v801_v19  ;;  %v2278_v21 = vpop.permute.xlu0 %771  ;;  %1715 = vmatprep.subr.msk.bf16.mxu1 %vm241_vm1, %v2060_v5  ;;  %v947_v25 = vpop.permute.xlu1 %946  ;;  %v366_v5 = vsel %vm241_vm1, %v2065_v6, 0 }
  0xb5   : > { %400 = vmatprep.mubr.bf16.mxu1 %v1997_v7 }
  0xb7   : > { %371 = vmatpush1.bf16.msra.mxu1 %v360_v22 }
  0xb8   : > { %v2285_v26 = vpop.permute.xlu0 %948  ;;  %1831 = vmatprep.subr.bf16.mxu1 %v2051_v2  ;;  %v2288_v1 = vpop.permute.xlu1 %773 }
  0xb9   : > { %1737 = vmatmul.mubr.msk.bf16.vlgmr.msra.gmra.mrb[0].mxu0 %vm234_vm3, %v2278_v21  ;;  %v957_v31 = vsel %vm483_vm0, %v947_v25, %v2285_v26 }
  0xba   : > { %1716 = vmatmul.mubr.msk.bf16.vlgmr.msra.gmra.mrb[0].mxu1 %vm234_vm3, %v2082_v8  ;;  %978 = vmatprep.subr.bf16.mxu0 %v957_v31 }
  0xbb   : > { %1832 = vmatpush3.bf16.msra.mxu1 %v2051_v2  ;;  %851 = vmatprep.mubr.bf16.mxu0 %v1997_v7 }
  0xbc   : > { %v945_v4 = vpop.permute.xlu0 %944  ;;  %1928 = vmatprep.subr.msk.bf16.mxu1 %vm241_vm1, %v2065_v6  ;;  %410 = vmatprep.mubr.bf16.mxu1 %v1997_v7  ;;  %v951_v33 = vpop.permute.xlu1 %950 }
  0xbd   : > { %v956_v32 = vsel %vm483_vm0, %v945_v4, %v947_v25 }
  0xbe   : > { %979 = vmatpush1.bf16.msra.mxu0 %v956_v32 }
  0xbf   : > { %1834 = vmatpush3.bf16.msra.mxu1 %v366_v5 }
  0xc0   : > { %1839 = vmatprep.subr.bf16.mxu1 %v2213_v36  ;;  %v953_v34 = vpop.permute.xlu0 %952  ;;  %v2306_v35 = vpop.permute.xlu1 %954 }
  0xc1   : > { %v958_v2 = vsel %vm483_vm0, %v951_v33, %v953_v34  ;;  %1738 = vmatmul.mubr.msk.bf16.gmra.mrb[12].mxu0 %vm234_vm3, %v2288_v1  ;;  %v959_v6 = vsel %vm483_vm0, %v953_v34, %v2306_v35 }
  0xc2   : > { %v970_v37 = vsel %vm241_vm1, %v958_v2, 0  ;;  %1717 = vmatmul.mubr.msk.bf16.gmra.mrb[12].mxu1 %vm234_vm3, %v2096_v9  ;;  %1010 = vmatprep.mubr.bf16.mxu0 %v1997_v7 }
  0xc3   : > { %1745 = vmatprep.subr.msk.bf16.mxu0 %vm241_vm1, %v959_v6  ;;  %1835 = vmatprep.mubr.msk.bf16.mxu1 %vm234_vm3, %v2082_v8  ;;  %v1138_v8 = vsel %vm241_vm1, %v2177_v28, 0 }
  0xc4   : > { %981 = vmatpush1.bf16.msra.mxu0 %v970_v37  ;;  %v934_v38 = vpop.permute.xlu0 %933  ;;  %v936_v39 = vpop.permute.xlu1 %935 }
  0xc5   : > { %1146 = vmatprep.subr.bf16.mxu0 %v2159_v23  ;;  %v942_v40 = vsel %vm941_vm4, %v934_v38, %v936_v39 }
  0xc8   : > { %v938_v41 = vpop.permute.xlu0 %937  ;;  %v940_v43 = vpop.permute.xlu1 %939 }
  0xc9   : > { %1746 = vmatmul.mubr.msk.bf16.vlgmr.msra.gmra.mrb[0].mxu0 %vm234_vm3, %v942_v40 }
  0xca   : > { %1836 = vmatmul.mubr.msk.bf16.vlgmr.msra.gmra.mrb[16].mxu1 %vm234_vm3, %v2096_v9  ;;  %1147 = vmatpush1.bf16.msra.mxu0 %v2174_v27  ;;  %v504_v9 = vsel %vm241_vm1, %v2219_v42, 0  ;;  %v943_v27 = vsel %vm941_vm4, %v938_v41, %v940_v43 }
  0xcb   : > { %1840 = vmatpush3.bf16.msra.mxu1 %v2213_v36  ;;  %1843 = vmatprep.mubr.msk.bf16.mxu1 %vm234_vm3, %v2227_v49 }
  0xcc   : > { %1929 = vmatprep.subr.msk.bf16.mxu1 %vm241_vm1, %v2219_v42  ;;  %v2332_v23 = vpop.permute.xlu0 %1103  ;;  %1020 = vmatprep.mubr.bf16.mxu0 %v1997_v7  ;;  %v1261_v44 = vpop.permute.xlu1 %1260 }
  0xcd   : > { %1758 = vmatprep.subr.msk.bf16.mxu0 %vm241_vm1, %v2181_v29  ;;  %v661_v29 = vsel %vm241_vm1, %v2126_v16, 0 }
  0xce   : > { %1149 = vmatpush1.bf16.msra.mxu0 %v1138_v8 }
  0xcf   : > { %1842 = vmatpush3.bf16.msra.mxu1 %v504_v9 }
  0xd0   : > { %1847 = vmatprep.subr.bf16.mxu1 %v2106_v11  ;;  %v2341_v28 = vpop.permute.xlu0 %1262  ;;  %v2344_v36 = vpop.permute.xlu1 %1105 }
  0xd1   : > { %1747 = vmatmul.mubr.msk.bf16.gmra.mrb[16].mxu0 %vm234_vm3, %v943_v27  ;;  %v1271_v45 = vsel %vm226_vm2, %v1261_v44, %v2341_v28 }
  0xd2   : > { %1844 = vmatmul.mubr.msk.bf16.vlgmr.msra.gmra.mrb[20].mxu1 %vm234_vm3, %v2242_v59  ;;  %1178 = vmatprep.mubr.bf16.mxu0 %v1997_v7  ;;  %v976_v59 = vsel %vm241_vm1, %v2306_v35, 0 }
  0xd3   : > { %1848 = vmatpush3.bf16.msra.mxu1 %v2106_v11  ;;  %1851 = vmatprep.mubr.msk.bf16.mxu1 %vm234_vm3, %v2249_v61 }
  0xd4   : > { %1930 = vmatprep.subr.msk.bf16.mxu1 %vm241_vm1, %v2126_v16  ;;  %v1259_v42 = vpop.permute.xlu0 %1258  ;;  %1292 = vmatprep.subr.bf16.mxu0 %v1271_v45  ;;  %v1265_v46 = vpop.permute.xlu1 %1264 }
  0xd5   : > { %v1270_v47 = vsel %vm226_vm2, %v1259_v42, %v1261_v44 }
  0xd7   : > { %1850 = vmatpush3.bf16.msra.mxu1 %v661_v29 }
  0xd8   : > { %1855 = vmatprep.subr.bf16.mxu1 %v2253_v3  ;;  %v1267_v48 = vpop.permute.xlu0 %1266  ;;  %v1269_v49 = vpop.permute.xlu1 %1268 }
  0xd9   : > { %1759 = vmatmul.mubr.msk.bf16.vlgmr.msra.gmra.mrb[0].mxu0 %vm234_vm3, %v2332_v23  ;;  %v1272_v11 = vsel %vm226_vm2, %v1265_v46, %v1267_v48  ;;  %v1273_v16 = vsel %vm226_vm2, %v1267_v48, %v1269_v49 }
  0xda   : > { %1293 = vmatpush1.bf16.msra.mxu0 %v1270_v47  ;;  %1852 = vmatmul.mubr.msk.bf16.vlgmr.msra.gmra.mrb[24].mxu1 %vm234_vm3, %v2256_v10  ;;  %v1284_v50 = vsel %vm241_vm1, %v1272_v11, 0 }
  0xdb   : > { %1856 = vmatpush3.bf16.msra.mxu1 %v2253_v3  ;;  %1859 = vmatprep.mubr.msk.bf16.mxu1 %vm234_vm3, %v2278_v21 }
  0xdc   : > { %1931 = vmatprep.subr.msk.bf16.mxu1 %vm241_vm1, %v2267_v18  ;;  %v1255_v51 = vpop.permute.xlu0 %1254  ;;  %1188 = vmatprep.mubr.bf16.mxu0 %v1997_v7  ;;  %v1407_v52 = vpop.permute.xlu1 %1406 }
  0xdd   : > { %1763 = vmatprep.subr.msk.bf16.mxu0 %vm241_vm1, %v1273_v16 }
  0xde   : > { %1295 = vmatpush1.bf16.msra.mxu0 %v1284_v50 }
  0xdf   : > { %1858 = vmatpush3.bf16.msra.mxu1 %v807_v53 }
  0xe0   : > { %1863 = vmatprep.subr.bf16.mxu1 %v2285_v26  ;;  %v1409_v54 = vpop.permute.xlu0 %1408  ;;  %v1257_v55 = vpop.permute.xlu1 %1256 }
  0xe1   : > { %1760 = vmatmul.mubr.msk.bf16.gmra.mrb[20].mxu0 %vm234_vm3, %v2344_v36  ;;  %v1417_v56 = vsel %vm483_vm0, %v1407_v52, %v1409_v54 }
  0xe2   : > { %1860 = vmatmul.mubr.msk.bf16.vlgmr.msra.gmra.mrb[28].mxu1 %vm234_vm3, %v2288_v1  ;;  %1324 = vmatprep.mubr.bf16.mxu0 %v1997_v7 }
  0xe3   : > { %1864 = vmatpush3.bf16.msra.mxu1 %v2285_v26  ;;  %1867 = vmatprep.mubr.msk.bf16.mxu1 %vm234_vm3, %v942_v40 }
  0xe4   : > { %1932 = vmatprep.subr.msk.bf16.mxu1 %vm241_vm1, %v2306_v35  ;;  %v1405_v57 = vpop.permute.xlu0 %1404  ;;  %1438 = vmatprep.subr.bf16.mxu0 %v1417_v56  ;;  %v1411_v58 = vpop.permute.xlu1 %1410 }
  0xe5   : > { %v1416_v60 = vsel %vm483_vm0, %v1405_v57, %v1407_v52 }
  0xe7   : > { %1866 = vmatpush3.bf16.msra.mxu1 %v976_v59 }
  0xe8   : > { %1871 = vmatprep.subr.bf16.mxu1 %v2163_v24  ;;  %v1413_v61 = vpop.permute.xlu0 %1412  ;;  %v1415_v63 = vpop.permute.xlu1 %1414 }
  0xe9   : > { %1764 = vmatmul.mubr.msk.bf16.vlgmr.msra.gmra.mrb[0].mxu0 %vm234_vm3, %v1255_v51  ;;  %v1418_v62 = vsel %vm483_vm0, %v1411_v58, %v1413_v61  ;;  %v1419_v3 = vsel %vm483_vm0, %v1413_v61, %v1415_v63  ;;  %v1436_v13 = vsel %vm241_vm1, %v1415_v63, 0 }
  0xea   : > { %1439 = vmatpush1.bf16.msra.mxu0 %v1416_v60  ;;  %1868 = vmatmul.mubr.msk.bf16.vlgmr.msra.gmra.mrb[32].mxu1 %vm234_vm3, %v943_v27  ;;  %v1430_v10 = vsel %vm241_vm1, %v1418_v62, 0 }
  0xeb   : > { %1872 = vmatpush3.bf16.msra.mxu1 %v2163_v24  ;;  %1875 = vmatprep.mubr.msk.bf16.mxu1 %vm234_vm3, %v2332_v23  ;;  %v1290_v24 = vsel %vm241_vm1, %v1269_v49, 0 }
  0xec   : > { %1933 = vmatprep.subr.msk.bf16.mxu1 %vm241_vm1, %v2186_v30  ;;  %1334 = vmatprep.mubr.bf16.mxu0 %v1997_v7  ;;  %v1401_v30 = vpop.permute.xlu0 %1400  ;;  %v1403_v14 = vpop.permute.xlu1 %1402 }
  0xed   : > { %1768 = vmatprep.subr.msk.bf16.mxu0 %vm241_vm1, %v1419_v3 }
  0xee   : > { %1441 = vmatpush1.bf16.msra.mxu0 %v1430_v10 }
  0xef   : > { %1874 = vmatpush3.bf16.msra.mxu1 %v1144_v12 }
  0xf0   : > { %1879 = vmatprep.subr.bf16.mxu1 %v2341_v28 }
  0xf1   : > { %1765 = vmatmul.mubr.msk.bf16.gmra.mrb[24].mxu0 %vm234_vm3, %v1257_v55 }
  0xf2   : > { %1876 = vmatmul.mubr.msk.bf16.vlgmr.msra.gmra.mrb[36].mxu1 %vm234_vm3, %v2344_v36  ;;  %1470 = vmatprep.mubr.bf16.mxu0 %v1997_v7 }
  0xf3   : > { %1880 = vmatpush3.bf16.msra.mxu1 %v2341_v28  ;;  %1883 = vmatprep.mubr.msk.bf16.mxu1 %vm234_vm3, %v1255_v51 }
  0xf4   : > { %1934 = vmatprep.subr.msk.bf16.mxu1 %vm241_vm1, %v1269_v49 }
  0xf7   : > { %1882 = vmatpush3.bf16.msra.mxu1 %v1290_v24 }
  0xf8   : > { %1887 = vmatprep.subr.bf16.mxu1 %v1409_v54 }
  0xf9   : > { %1769 = vmatmul.mubr.msk.bf16.vlgmr.msra.gmra.mrb[0].mxu0 %vm234_vm3, %v1401_v30 }
  0xfa   : > { %1884 = vmatmul.mubr.msk.bf16.vlgmr.msra.gmra.mrb[40].mxu1 %vm234_vm3, %v1257_v55  ;;  %1480 = vmatprep.mubr.bf16.mxu0 %v1997_v7 }
  0xfb   : > { %1888 = vmatpush3.bf16.msra.mxu1 %v1409_v54  ;;  %1891 = vmatprep.mubr.msk.bf16.mxu1 %vm234_vm3, %v1401_v30 }
  0xfc   : > { %1935 = vmatprep.subr.msk.bf16.mxu1 %vm241_vm1, %v1415_v63 }
  0xff   : > { %1890 = vmatpush3.bf16.msra.mxu1 %v1436_v13 }
 0x101   : > { %1770 = vmatmul.mubr.msk.bf16.gmra.mrb[28].mxu0 %vm234_vm3, %v1403_v14 }
 0x102   : > { %1892 = vmatmul.mubr.msk.bf16.vlgmr.msra.gmra.mrb[44].mxu1 %vm234_vm3, %v1403_v14 }
 0x174   : > { %v550_v15 = vpop.f32.mrb[4].mxu0 }
 0x175   : > { %v552_v0 = vpop.f32.mrb[5].mxu0 }
 0x176   : > { %v554_v17 = vpop.f32.mrb[6].mxu0 }
 0x177   : > { %v555_v18 = vpop.f32.mrb[7].mxu0 }
 0x17d   : > { %v295_v19 = vpop.f32.mrb[4].mxu1 }
 0x17e   : > { %v297_v20 = vpop.f32.mrb[5].mxu1 }
 0x17f   : > { %v299_v7 = vpop.f32.mrb[6].mxu1 }
 0x180   : > { %v300_v21 = vpop.f32.mrb[7].mxu1 }
 0x184   : > { %v707_v22 = vpop.f32.mrb[8].mxu0 }
 0x185   : > { %v1829_v25 = vpop.f32.mrb[8].mxu1  ;;  %v709_v26 = vpop.f32.mrb[9].mxu0 }
 0x186   : > { %v336_v1 = vpop.f32.mrb[9].mxu1  ;;  %v711_v31 = vpop.f32.mrb[10].mxu0 }
 0x187   : > { %v1830_v4 = vpop.f32.mrb[10].mxu1  ;;  %v712_v5 = vpop.f32.mrb[11].mxu0 }
 0x188   : > { %v339_v32 = vpop.f32.mrb[11].mxu1 }
 0x18d   : > { %v2422_v33 = vpop.f32.mrb[0].mxu1 }
 0x18e   : > { %v2424_v34 = vpop.f32.mrb[1].mxu1 }
 0x18f   : > { %v2426_v2 = vpop.f32.mrb[2].mxu1 }
 0x190   : > { %v2428_v35 = vpop.f32.mrb[3].mxu1 }
 0x194   : > { %v853_v37 = vpop.f32.mrb[12].mxu0 }
 0x195   : > { %v412_v6 = vpop.f32.mrb[12].mxu1  ;;  %v855_v38 = vpop.f32.mrb[13].mxu0 }
 0x196   : > { %v413_v39 = vadd.f32 %v412_v6, %v295_v19  ;;  %v414_v40 = vpop.f32.mrb[13].mxu1  ;;  %v857_v41 = vpop.f32.mrb[14].mxu0 }
 0x197   : > { %v415_v43 = vadd.f32 %v414_v40, %v297_v20  ;;  %v416_v8 = vpop.f32.mrb[14].mxu1  ;;  %v858_v23 = vpop.f32.mrb[15].mxu0 }
 0x198   : > { %v611_v44 = vadd.f32 %v550_v15, %v413_v39  ;;  %v417_v9 = vpop.f32.mrb[15].mxu1 }
 0x199   : > { %v612_v27 = vadd.f32 %v552_v0, %v415_v43 }
 0x19a   : > { %v768_v28 = vadd.f32 %v707_v22, %v611_v44 }
 0x19b   : > { %v769_v36 = vadd.f32 %v709_v26, %v612_v27 }
 0x19c   : > { %v914_v45 = vadd.f32 %v853_v37, %v768_v28 }
 0x19d   : > { %v1837_v29 = vpop.f32.mrb[16].mxu1  ;;  %v915_v42 = vadd.f32 %v855_v38, %v769_v36 }
 0x19e   : > { %v462_v46 = vadd.f32 %v1837_v29, %v1829_v25  ;;  %v453_v47 = vpop.f32.mrb[17].mxu1 }
 0x19f   : > { %v454_v48 = vadd.f32 %v453_v47, %v336_v1  ;;  %v1838_v11 = vpop.f32.mrb[18].mxu1  ;;  %v2430_v47 = vpop.permute.xlu1 %1556 }
 0x1a0   : > { %v456_v49 = vpop.f32.mrb[19].mxu1 }
 0x1a1   : > { %v457_v16 = vadd.f32 %v456_v49, %v339_v32 }
 0x1a4   : > { %v1022_v50 = vpop.f32.mrb[16].mxu0 }
 0x1a5   : > { %v1083_v51 = vadd.f32 %v1022_v50, %v914_v45  ;;  %v1845_v52 = vpop.f32.mrb[20].mxu1  ;;  %v1024_v53 = vpop.f32.mrb[17].mxu0 }
 0x1a6   : > { %v613_v54 = vadd.f32 %v1845_v52, %v462_v46  ;;  %v1084_v55 = vadd.f32 %v1024_v53, %v915_v42  ;;  %v591_v56 = vpop.f32.mrb[21].mxu1  ;;  %v1026_v57 = vpop.f32.mrb[18].mxu0 }
 0x1a7   : > { %v607_v58 = vadd.f32 %v591_v56, %v454_v48  ;;  %v1846_v59 = vpop.f32.mrb[22].mxu1  ;;  %v1027_v60 = vpop.f32.mrb[19].mxu0 }
 0x1a8   : > { %v594_v61 = vpop.f32.mrb[23].mxu1  ;;  %v1552_v42 = vpop.permute.xlu0 %1551 }
 0x1a9   : > { %v610_v62 = vadd.f32 %v594_v61, %v457_v16 }
 0x1ad   : > { %v1853_v63 = vpop.f32.mrb[24].mxu1 }
 0x1ae   : > { %v770_v3 = vadd.f32 %v1853_v63, %v613_v54  ;;  %v748_v10 = vpop.f32.mrb[25].mxu1 }
 0x1af   : > { %v764_v12 = vadd.f32 %v748_v10, %v607_v58  ;;  %v1854_v24 = vpop.f32.mrb[26].mxu1 }
 0x1b0   : > { %v751_v30 = vpop.f32.mrb[27].mxu1  ;;  %v1562_v24 = vpop.permute.xlu1 %1561 }
 0x1b1   : > { %v767_v13 = vadd.f32 %v751_v30, %v610_v62 }
 0x1b4   : > { %v1190_v14 = vpop.f32.mrb[20].mxu0 }
 0x1b5   : > { %v1251_v15 = vadd.f32 %v1190_v14, %v1083_v51  ;;  %v1861_v0 = vpop.f32.mrb[28].mxu1  ;;  %v1192_v17 = vpop.f32.mrb[21].mxu0 }
 0x1b6   : > { %v916_v18 = vadd.f32 %v1861_v0, %v770_v3  ;;  %v1252_v19 = vadd.f32 %v1192_v17, %v1084_v55  ;;  %v894_v20 = vpop.f32.mrb[29].mxu1  ;;  %v1194_v7 = vpop.f32.mrb[22].mxu0 }
 0x1b7   : > { %v910_v21 = vadd.f32 %v894_v20, %v764_v12  ;;  %v1862_v22 = vpop.f32.mrb[30].mxu1  ;;  %v1195_v25 = vpop.f32.mrb[23].mxu0 }
 0x1b8   : > { %v897_v26 = vpop.f32.mrb[31].mxu1 }
 0x1b9   : > { %v913_v1 = vadd.f32 %v897_v26, %v767_v13 }
 0x1bd   : > { %v1869_v31 = vpop.f32.mrb[32].mxu1 }
 0x1be   : > { %v1085_v4 = vadd.f32 %v1869_v31, %v916_v18  ;;  %v1063_v5 = vpop.f32.mrb[33].mxu1 }
 0x1bf   : > { %v1079_v32 = vadd.f32 %v1063_v5, %v910_v21  ;;  %v1870_v37 = vpop.f32.mrb[34].mxu1 }
 0x1c0   : > { %v1066_v6 = vpop.f32.mrb[35].mxu1 }
 0x1c1   : > { %v1082_v38 = vadd.f32 %v1066_v6, %v913_v1 }
 0x1c4   : > { %v1336_v39 = vpop.f32.mrb[24].mxu0 }
 0x1c5   : > { %v1397_v40 = vadd.f32 %v1336_v39, %v1251_v15  ;;  %v1877_v41 = vpop.f32.mrb[36].mxu1  ;;  %v1338_v43 = vpop.f32.mrb[25].mxu0 }
 0x1c6   : > { %v1253_v8 = vadd.f32 %v1877_v41, %v1085_v4  ;;  %v1398_v23 = vadd.f32 %v1338_v43, %v1252_v19  ;;  %v1231_v44 = vpop.f32.mrb[37].mxu1  ;;  %v1340_v9 = vpop.f32.mrb[26].mxu0 }
 0x1c7   : > { %v1247_v27 = vadd.f32 %v1231_v44, %v1079_v32  ;;  %v1878_v28 = vpop.f32.mrb[38].mxu1  ;;  %v1341_v36 = vpop.f32.mrb[27].mxu0 }
 0x1c8   : > { %v1234_v45 = vpop.f32.mrb[39].mxu1 }
 0x1c9   : > { %v1250_v29 = vadd.f32 %v1234_v45, %v1082_v38 }
 0x1cc   : > { %v1472_v46 = vpop.f32.mrb[0].mxu0 }
 0x1cd   : > { %v1895_v48 = vadd.f32 %v1472_v46, %v2422_v33  ;;  %v1885_v11 = vpop.f32.mrb[40].mxu1  ;;  %v1474_v49 = vpop.f32.mrb[1].mxu0 }
 0x1ce   : > { %v1399_v16 = vadd.f32 %v1885_v11, %v1253_v8  ;;  %v1896_v50 = vadd.f32 %v1474_v49, %v2424_v34  ;;  %v1377_v51 = vpop.f32.mrb[41].mxu1  ;;  %v1476_v52 = vpop.f32.mrb[2].mxu0 }
 0x1cf   : > { %v1564_v53 = vadd.f32 %v1895_v48, %v1552_v42  ;;  %v1393_v54 = vadd.f32 %v1377_v51, %v1247_v27  ;;  %v1897_v55 = vadd.f32 %v1476_v52, %v2426_v2  ;;  %v1886_v56 = vpop.f32.mrb[42].mxu1  ;;  %v1478_v57 = vpop.f32.mrb[3].mxu0 }
 0x1d0   : > { %v1565_v58 = vadd.f32 %v1896_v50, %v1552_v42  ;;  %v1898_v59 = vadd.f32 %v1478_v57, %v2428_v35  ;;  %v1380_v60 = vpop.f32.mrb[43].mxu1 }
 0x1d1   : > { %vm1573_vm5 = vcmp.ge.f32.partialorder %v1564_v53, 0.0  ;;  %v1582_v33 = vmul.f32 0.2, %v1564_v53  ;;  %v1396_v61 = vadd.f32 %v1380_v60, %v1250_v29  ;;  %v1567_v62 = vadd.f32 %v1897_v55, %v2430_v47 }
 0x1d2   : > { %vm1574_vm6 = vcmp.ge.f32.partialorder %v1565_v58, 0.0  ;;  %v1583_v34 = vmul.f32 0.2, %v1565_v58  ;;  %v1568_v63 = vadd.f32 %v1898_v59, %v2430_v47 }
 0x1d3   : > { %v1591_v3 = vsel %vm1573_vm5, %v1564_v53, %v1582_v33  ;;  %vm1576_vm7 = vcmp.ge.f32.partialorder %v1567_v62, 0.0  ;;  %v1585_v10 = vmul.f32 0.2, %v1567_v62 }
 0x1d4   : > { %v1592_v2 = vsel %vm1574_vm6, %v1565_v58, %v1583_v34  ;;  %vm1577_vm8 = vcmp.ge.f32.partialorder %v1568_v63, 0.0  ;;  %v1586_v35 = vmul.f32 0.2, %v1568_v63  ;;  %v1482_v12 = vpop.f32.mrb[28].mxu0 }
 0x1d5   : > { %v1781_v30 = vpack.c.bf16 %v1592_v2, %v1591_v3  ;;  %v1594_v13 = vsel %vm1576_vm7, %v1567_v62, %v1585_v10  ;;  %v1543_v14 = vadd.f32 %v1482_v12, %v1397_v40  ;;  %v1484_v15 = vpop.f32.mrb[29].mxu0  ;;  %v1893_v0 = vpop.f32.mrb[44].mxu1 }
 0x1d6   : > { %v1595_v17 = vsel %vm1577_vm8, %v1568_v63, %v1586_v35  ;;  %v1544_v18 = vadd.f32 %v1484_v15, %v1398_v23  ;;  %v1545_v19 = vadd.f32 %v1893_v0, %v1399_v16  ;;  %v1486_v20 = vpop.f32.mrb[30].mxu0  ;;  %v1523_v7 = vpop.f32.mrb[45].mxu1 }
 0x1d7   : > { %1633 = vst [vmem:[%s2442_s13] sm:$0xff] %v1781_v30  ;;  %v1783_v21 = vpack.c.bf16 %v1595_v17, %v1594_v13  ;;  %v1539_v22 = vadd.f32 %v1523_v7, %v1393_v54  ;;  %v1570_v25 = vadd.f32 %v1562_v24, %v1543_v14  ;;  %v1487_v26 = vpop.f32.mrb[31].mxu0  ;;  %v1894_v1 = vpop.f32.mrb[46].mxu1 }
 0x1d8   : > { %v1571_v31 = vadd.f32 %v1562_v24, %v1544_v18  ;;  %v1572_v4 = vadd.f32 %v1562_v24, %v1545_v19  ;;  %v1526_v5 = vpop.f32.mrb[47].mxu1 }
 0x1d9   : > { %1636 = vst [vmem:[%s2442_s13 + $0xc] sm:$0xff] %v1783_v21  ;;  %v1566_v32 = vadd.f32 %v1552_v42, %v1539_v22  ;;  %vm1579_vm9 = vcmp.ge.f32.partialorder %v1570_v25, 0.0  ;;  %v1588_v37 = vmul.f32 0.2, %v1570_v25  ;;  %v1542_v6 = vadd.f32 %v1526_v5, %v1396_v61 }
 0x1da   : > { %vm1580_vm10 = vcmp.ge.f32.partialorder %v1571_v31, 0.0  ;;  %vm1581_vm11 = vcmp.ge.f32.partialorder %v1572_v4, 0.0  ;;  %v1589_v38 = vmul.f32 0.2, %v1571_v31  ;;  %v1590_v39 = vmul.f32 0.2, %v1572_v4 }
 0x1db   : > { %vm1575_vm12 = vcmp.ge.f32.partialorder %v1566_v32, 0.0  ;;  %v1584_v40 = vmul.f32 0.2, %v1566_v32  ;;  %v1597_v41 = vsel %vm1579_vm9, %v1570_v25, %v1588_v37  ;;  %v1569_v43 = vadd.f32 %v2430_v47, %v1542_v6 }
 0x1dc   : > { %v1598_v8 = vsel %vm1580_vm10, %v1571_v31, %v1589_v38  ;;  %v1599_v23 = vsel %vm1581_vm11, %v1572_v4, %v1590_v39 }
 0x1dd   : > { %v1593_v44 = vsel %vm1575_vm12, %v1566_v32, %v1584_v40  ;;  %v1785_v9 = vpack.c.bf16 %v1598_v8, %v1597_v41  ;;  %v1786_v27 = vpack.c.bf16 %v1599_v23, %v1599_v23  ;;  %vm1578_vm14 = vcmp.ge.f32.partialorder %v1569_v43, 0.0 }
 0x1de   : > { %v1782_v28 = vpack.c.bf16 %v1593_v44, %v1593_v44  ;;  %v1587_v36 = vmul.f32 0.2, %v1569_v43 }
 0x1df   : > { %1638 = vst [vmem:[%s2442_s13 + $0x18] sm:$0xff] %v1785_v9  ;;  %1639 = vst.msk [vmem:[%s2442_s13 + $0x20] sm:$0xf] %vm1634_vm13, %v1786_v27 }
 0x1e0   : > { %1635 = vst.msk [vmem:[%s2442_s13 + $0x8] sm:$0xf] %vm1634_vm13, %v1782_v28  ;;  %v1596_v45 = vsel %vm1578_vm14, %v1569_v43, %v1587_v36 }
 0x1e1   : > { %v1784_v29 = vpack.c.bf16 %v1596_v45, %v1596_v45 }
 0x1e3   : > { %1637 = vst.msk [vmem:[%s2442_s13 + $0x14] sm:$0xf] %vm1634_vm13, %v1784_v29 }
 0x1e4 PF: > { %s13_s12 = sadd.s32 1, %s1994_s12  }
 0x1e5   : > { %p10_p4 = scmp.ge.s32.totalorder %s13_s12, 4  }
 0x1e7   :  { %12 = sbr.rel (!%p10_p4) target bundleno = 1 (0x1), region = 62 }

// kernel: deep_guided_filter_forward.21
= control target key start
LH: loop header
LB: loop body
LE: loop exit
PB: predicated region body
PF: predicated region fallthrough
CT: control target
= control target key end

     0   :  { %s1183_s12 = smov 0   ;;  %s1273_s0 = inlined_call_operand.vmem [shape: bf16[2,24,110], index: 0, kind: input, shape index: {}]   ;;  %s1274_s1 = inlined_call_operand.vmem [shape: bf16[24,216], index: 1, kind: input, shape index: {}]   ;;  %s1275_s2 = inlined_call_operand.vmem [shape: f32[24,1], index: 2, kind: input, shape index: {}]   ;;  %s1276_s3 = inlined_call_operand.vmem [shape: bf16[2,24,80], index: 3, kind: output, shape index: {}]  }
   0x1 LB: > { %s939_s13 = sadd.s32 4294967295, %s1144_s12   ;;  %p943_p0 = scmp.ge.s32.totalorder %s1144_s12, 1  ;;  %s1144_s12 = sphi %s1183_s12, %s13_s12  }
   0x2   : > { %p137_p1 = scmp.lt.s32.totalorder %s1144_s12, 3 }
   0x4   : > { %p138_p2 = pnand %p943_p0, %p137_p1 }
   0x5   : > { %v1127_v0 = vld [vmem:[%s1274_s1] ss:$8 sps:$4 sm:$0xff] (!%p138_p2)   ;;  %p161_p3 = scmp.lt.s32.totalorder (!%p138_p2), %s939_s13, 1  ;;  %s1146_s16 = smov (!%p138_p2), 104   ;;  %v1129_v1 = vld [vmem:[%s1274_s1 + $0x10] ss:$0 sps:$4 sm:$0xff] (!%p138_p2)  }
   0x6   : > { %141 = sbr.rel (%p138_p2) target bundleno = 423 (0x1a7), region = 32  ;;  %186 = vrot.lane.b32.xlu1 (!%p138_p2), %v1127_v0, %s1146_s16  ;;  %vm203_vm0 = vcmask (!%p138_p2), 195584   ;;  %vm210_vm1 = vcmask (!%p138_p2), 1043456   ;;  %s1147_s23 = smov (!%p138_p2), 127   ;;  %v1131_v5 = vld [vmem:[%s1274_s1] ss:$8 sps:$4 sm:$0xff] (!%p138_p2)  }
   0x7   : > { %1030 = vmatprep.mubr.msk.bf16.mxu1 (!%p138_p2), %vm203_vm0, %v1127_v0  ;;  %s1148_s24 = smov (!%p138_p2), 126   ;;  %s1149_s25 = smov (!%p138_p2), 80   ;;  %v529_v6 = vld [vmem:[%s1274_s1 + $0x10] sm:$0xff] (!%p138_p2)  ;;  %v1133_v8 = vld [vmem:[%s1274_s1 + $0x4] ss:$8 sps:$4 sm:$0xff] (!%p138_p2)   ;;  %v1161_v12 = vmov (!%p138_p2), 0  }
   0x8   : > { %s1150_s26 = smov (!%p138_p2), 117   ;;  %s1151_s27 = smov (!%p138_p2), 118   ;;  %v963_v7 = vcombine.high (!%p138_p2), %v529_v6, %v529_v6  ;;  %v1136_v9 = vld [vmem:[%s1274_s1 + $0x4] ss:$8 sps:$4 sm:$0xff] (!%p138_p2)   ;;  %v962_v10 = vcombine.low (!%p138_p2), %v529_v6, %v529_v6  ;;  %v1137_v11 = vld [vmem:[%s1274_s1 + $0x14] ss:$0 sps:$4 sm:$0xff] (!%p138_p2)   ;;  %1125 = vset.pattern.permute.xlu0 (!%p138_p2), %v1161_v12  ;;  %1126 = vset.pattern.permute.xlu1 (!%p138_p2), %v1161_v12 }
   0x9   : > { %s1152_s28 = smov (!%p138_p2), 56   ;;  %s1153_s29 = smov (!%p138_p2), 32   ;;  %v838_v13 = vld [vmem:[%s1275_s2 + $0x8] sm:$0xff] (!%p138_p2)  ;;  %v839_v14 = vld [vmem:[%s1275_s2 + $0x10] sm:$0xff] (!%p138_p2)  ;;  %v837_v15 = vld [vmem:[%s1275_s2] sm:$0xff] (!%p138_p2)  ;;  %vm551_vm2 = vcmask (!%p138_p2), 64512  }
   0xa   : > { %188 = vrot.lane.b32.xlu1 (!%p138_p2), %v1129_v1, %s1146_s16  ;;  %s1154_s30 = smov (!%p138_p2), 108   ;;  %s1155_s6 = smov (!%p138_p2), 116   ;;  %vm880_vm5 = vcmask (!%p138_p2), 650240  }
   0xb   : > { %s1156_s7 = smov (!%p138_p2), 8   ;;  %s1157_s16 = smov (!%p138_p2), 112  }
   0xc   : > { %s1158_s17 = smov (!%p138_p2), 106   ;;  %s1159_s18 = smov (!%p138_p2), 107  }
   0xd   : > { %s1278_s13 = smov (!%p161_p3, %s939_s13), 1 }
   0xe   : > { %s1099_s19 = smul.u32 12, %s1278_s13 }
  0x10   : > { %s165_s22 = scalar_lea.vmem %s1273_s0, %s1099_s19  ;;  %s170_s5 = scalar_lea.vmem %s1276_s3, %s1099_s19 }
  0x11   : > { %v1128_v2 = vld [vmem:[%s165_s22] sm:$0xff]   ;;  %v1130_v3 = vld [vmem:[%s165_s22 + $0x8] ss:$0 sps:$4 sm:$0xff]   ;;  %s1160_s22 = smov 88  }
  0x12   : > { %198 = vrot.lane.b32.xlu0 %v1128_v2, %s1147_s23  ;;  %1026 = vmatprep.subr.bf16.mxu1 %v1128_v2  ;;  %v270_v4 = vsel %vm210_vm1, %v1130_v3, 0 }
  0x13   : > { %326 = vrot.lane.b32.xlu1 %v1130_v3, %s1148_s24  ;;  %1027 = vmatpush3.bf16.msra.mxu1 %v1128_v2 }
  0x14   : > { %1091 = vmatprep.subr.msk.bf16.mxu1 %vm210_vm1, %v1130_v3 }
  0x16   : > { %200 = vrot.lane.b32.xlu0 %v1130_v3, %s1147_s23  ;;  %s1162_s23 = smov 64  }
  0x17   : > { %320 = vrot.lane.b32.xlu1 %v1127_v0, %s1149_s25  ;;  %1029 = vmatpush3.bf16.msra.mxu1 %v270_v4 }
  0x1a   : > { %324 = vrot.lane.b32.xlu0 %v1128_v2, %s1148_s24  ;;  %1031 = vmatmul.mubr.msk.bf16.vlgmr.msra.gmra.mrb[0].mxu1 %vm203_vm0, %v1129_v1 }
  0x1b   : > { %462 = vrot.lane.b32.xlu1 %v1128_v2, %s1150_s26 }
  0x1e   : > { %393 = vrot.lane.b32.xlu0 %v1128_v2, %s1151_s27 }
  0x1f   : > { %464 = vrot.lane.b32.xlu1 %v1130_v3, %s1150_s26 }
  0x22   : > { %322 = vrot.lane.b32.xlu0 %v1129_v1, %s1149_s25 }
  0x23   : > { %391 = vrot.lane.b32.xlu1 %v1129_v1, %s1152_s28 }
  0x26   : > { %395 = vrot.lane.b32.xlu0 %v1130_v3, %s1151_s27 }
  0x27   : > { %458 = vrot.lane.b32.xlu1 %v1127_v0, %s1153_s29 }
  0x2a   : > { %389 = vrot.lane.b32.xlu0 %v1127_v0, %s1152_s28 }
  0x2b   : > { %634 = vrot.lane.b32.xlu1 %v1128_v2, %s1154_s30 }
  0x2e   : > { %554 = vrot.lane.b32.xlu0 %v1128_v2, %s1155_s6 }
  0x2f   : > { %543 = vrot.lane.b32.xlu1 %v1131_v5, %s1156_s7 }
  0x32   : > { %460 = vrot.lane.b32.xlu0 %v1129_v1, %s1153_s29 }
  0x33   : > { %636 = vrot.lane.b32.xlu1 %v1130_v3, %s1154_s30 }
  0x36   : > { %556 = vrot.lane.b32.xlu0 %v1130_v3, %s1155_s6 }
  0x37   : > { %549 = vrot.lane.b32.xlu1 %v963_v7, %s1156_s7 }
  0x3a   : > { %545 = vrot.lane.b32.xlu0 %v1133_v8, %s1156_s7 }
  0x3b   : > { %630 = vrot.lane.b32.xlu1 %v1136_v9, %s1157_s16 }
  0x3e   : > { %547 = vrot.lane.b32.xlu0 %v962_v10, %s1156_s7 }
  0x3f   : > { %772 = vrot.lane.b32.xlu1 %v1128_v2, %s1158_s17 }
  0x42   : > { %703 = vrot.lane.b32.xlu0 %v1128_v2, %s1159_s18 }
  0x43   : > { %774 = vrot.lane.b32.xlu1 %v1130_v3, %s1158_s17 }
  0x46   : > { %632 = vrot.lane.b32.xlu0 %v1137_v11, %s1157_s16 }
  0x47   : > { %701 = vrot.lane.b32.xlu1 %v1137_v11, %s1160_s22 }
  0x4a   : > { %705 = vrot.lane.b32.xlu0 %v1130_v3, %s1159_s18 }
  0x4b   : > { %770 = vrot.lane.b32.xlu1 %v1137_v11, %s1162_s23 }
  0x4e   : > { %699 = vrot.lane.b32.xlu0 %v1136_v9, %s1160_s22 }
  0x4f   : > { %847 = vperm.xlu1 %1126, %v838_v13  }
  0x52   : > { %768 = vrot.lane.b32.xlu0 %v1136_v9, %s1162_s23 }
  0x53   : > { %852 = vperm.xlu1 %1126, %v839_v14  }
  0x56   : > { %842 = vperm.xlu0 %1125, %v837_v15  }
  0x78   : > { %v187_v16 = vpop.permute.xlu1 %186 }
  0x79   : > { %1022 = vmatprep.mubr.msk.bf16.mxu0 %vm203_vm0, %v187_v16 }
  0x7c   : > { %v189_v17 = vpop.permute.xlu1 %188 }
  0x84   : > { %v199_v18 = vpop.permute.xlu0 %198 }
  0x85   : > { %1018 = vmatprep.subr.bf16.mxu0 %v199_v18  ;;  %v327_v19 = vpop.permute.xlu1 %326 }
  0x86   : > { %1019 = vmatpush3.bf16.msra.mxu0 %v199_v18  ;;  %v336_v26 = vsel %vm210_vm1, %v327_v19, 0 }
  0x88   : > { %v201_v20 = vpop.permute.xlu0 %200 }
  0x89   : > { %1090 = vmatprep.subr.msk.bf16.mxu0 %vm210_vm1, %v201_v20  ;;  %v212_v21 = vsel %vm210_vm1, %v201_v20, 0  ;;  %v321_v22 = vpop.permute.xlu1 %320 }
  0x8a   : > { %1021 = vmatpush3.bf16.msra.mxu0 %v212_v21 }
  0x8c   : > { %v325_v23 = vpop.permute.xlu0 %324 }
  0x8d   : > { %1023 = vmatmul.mubr.msk.bf16.vlgmr.msra.gmra.mrb[0].mxu0 %vm203_vm0, %v189_v17  ;;  %1034 = vmatprep.subr.bf16.mxu0 %v325_v23  ;;  %v463_v24 = vpop.permute.xlu1 %462 }
  0x8e   : > { %1035 = vmatpush3.bf16.msra.mxu0 %v325_v23  ;;  %1038 = vmatprep.mubr.msk.bf16.mxu0 %vm203_vm0, %v321_v22 }
  0x8f   : > { %1092 = vmatprep.subr.msk.bf16.mxu0 %vm210_vm1, %v327_v19 }
  0x90   : > { %v394_v25 = vpop.permute.xlu0 %393 }
  0x91   : > { %1042 = vmatprep.subr.bf16.mxu1 %v394_v25  ;;  %v465_v27 = vpop.permute.xlu1 %464 }
  0x92   : > { %1037 = vmatpush3.bf16.msra.mxu0 %v336_v26  ;;  %1043 = vmatpush3.bf16.msra.mxu1 %v394_v25  ;;  %v474_v30 = vsel %vm210_vm1, %v465_v27, 0 }
  0x93   : > { %1050 = vmatprep.subr.bf16.mxu0 %v463_v24 }
  0x94   : > { %v323_v28 = vpop.permute.xlu0 %322 }
  0x95   : > { %1039 = vmatmul.mubr.msk.bf16.vlgmr.msra.gmra.mrb[4].mxu0 %vm203_vm0, %v323_v28  ;;  %v392_v29 = vpop.permute.xlu1 %391 }
  0x96   : > { %1051 = vmatpush3.bf16.msra.mxu0 %v463_v24 }
  0x97   : > { %1094 = vmatprep.subr.msk.bf16.mxu0 %vm210_vm1, %v465_v27 }
  0x98   : > { %v396_v31 = vpop.permute.xlu0 %395 }
  0x99   : > { %v405_v32 = vsel %vm210_vm1, %v396_v31, 0  ;;  %1093 = vmatprep.subr.msk.bf16.mxu1 %vm210_vm1, %v396_v31  ;;  %v459_v33 = vpop.permute.xlu1 %458 }
  0x9a   : > { %1045 = vmatpush3.bf16.msra.mxu1 %v405_v32  ;;  %1053 = vmatpush3.bf16.msra.mxu0 %v474_v30 }
  0x9b   : > { %1054 = vmatprep.mubr.msk.bf16.mxu0 %vm203_vm0, %v459_v33 }
  0x9c   : > { %v390_v34 = vpop.permute.xlu0 %389 }
  0x9d   : > { %1046 = vmatprep.mubr.msk.bf16.mxu1 %vm203_vm0, %v390_v34  ;;  %v635_v35 = vpop.permute.xlu1 %634 }
  0x9e   : > { %1047 = vmatmul.mubr.msk.bf16.vlgmr.msra.gmra.mrb[4].mxu1 %vm203_vm0, %v392_v29  ;;  %1066 = vmatprep.subr.bf16.mxu0 %v635_v35 }
  0xa0   : > { %v555_v36 = vpop.permute.xlu0 %554 }
  0xa1   : > { %1058 = vmatprep.subr.bf16.mxu1 %v555_v36  ;;  %v544_v37 = vpop.permute.xlu1 %543 }
  0xa2   : > { %1059 = vmatpush3.bf16.msra.mxu1 %v555_v36 }
  0xa4   : > { %v461_v38 = vpop.permute.xlu0 %460 }
  0xa5   : > { %1055 = vmatmul.mubr.msk.bf16.vlgmr.msra.gmra.mrb[8].mxu0 %vm203_vm0, %v461_v38  ;;  %v637_v39 = vpop.permute.xlu1 %636 }
  0xa6   : > { %1067 = vmatpush3.bf16.msra.mxu0 %v635_v35  ;;  %v646_v40 = vsel %vm210_vm1, %v637_v39, 0 }
  0xa7   : > { %1096 = vmatprep.subr.msk.bf16.mxu0 %vm210_vm1, %v637_v39 }
  0xa8   : > { %v557_v41 = vpop.permute.xlu0 %556 }
  0xa9   : > { %v566_v42 = vsel %vm210_vm1, %v557_v41, 0  ;;  %1095 = vmatprep.subr.msk.bf16.mxu1 %vm210_vm1, %v557_v41  ;;  %v550_v43 = vpop.permute.xlu1 %549 }
  0xaa   : > { %1061 = vmatpush3.bf16.msra.mxu1 %v566_v42  ;;  %1069 = vmatpush3.bf16.msra.mxu0 %v646_v40 }
  0xac   : > { %v546_v44 = vpop.permute.xlu0 %545 }
  0xad   : > { %v552_v45 = vsel %vm551_vm2, %v544_v37, %v546_v44  ;;  %v631_v46 = vpop.permute.xlu1 %630 }
  0xae   : > { %1062 = vmatprep.mubr.msk.bf16.mxu1 %vm203_vm0, %v552_v45  ;;  %1070 = vmatprep.mubr.msk.bf16.mxu0 %vm203_vm0, %v631_v46 }
  0xb0   : > { %v548_v47 = vpop.permute.xlu0 %547 }
  0xb1   : > { %v553_v48 = vsel %vm551_vm2, %v548_v47, %v550_v43  ;;  %v773_v49 = vpop.permute.xlu1 %772 }
  0xb2   : > { %1063 = vmatmul.mubr.msk.bf16.vlgmr.msra.gmra.mrb[8].mxu1 %vm203_vm0, %v553_v48  ;;  %1082 = vmatprep.subr.bf16.mxu0 %v773_v49 }
  0xb4   : > { %v704_v50 = vpop.permute.xlu0 %703 }
  0xb5   : > { %1074 = vmatprep.subr.bf16.mxu1 %v704_v50  ;;  %v775_v51 = vpop.permute.xlu1 %774 }
  0xb6   : > { %1075 = vmatpush3.bf16.msra.mxu1 %v704_v50  ;;  %v784_v53 = vsel %vm210_vm1, %v775_v51, 0 }
  0xb8   : > { %v633_v52 = vpop.permute.xlu0 %632 }
  0xb9   : > { %1071 = vmatmul.mubr.msk.bf16.vlgmr.msra.gmra.mrb[12].mxu0 %vm203_vm0, %v633_v52  ;;  %v702_v56 = vpop.permute.xlu1 %701 }
  0xba   : > { %1083 = vmatpush3.bf16.msra.mxu0 %v773_v49 }
  0xbb   : > { %1098 = vmatprep.subr.msk.bf16.mxu0 %vm210_vm1, %v775_v51 }
  0xbc   : > { %v706_v54 = vpop.permute.xlu0 %705 }
  0xbd   : > { %v715_v55 = vsel %vm210_vm1, %v706_v54, 0  ;;  %1097 = vmatprep.subr.msk.bf16.mxu1 %vm210_vm1, %v706_v54  ;;  %v771_v58 = vpop.permute.xlu1 %770 }
  0xbe   : > { %1077 = vmatpush3.bf16.msra.mxu1 %v715_v55  ;;  %1085 = vmatpush3.bf16.msra.mxu0 %v784_v53 }
  0xc0   : > { %v700_v57 = vpop.permute.xlu0 %699 }
  0xc1   : > { %1078 = vmatprep.mubr.msk.bf16.mxu1 %vm203_vm0, %v700_v57 }
  0xc2   : > { %1079 = vmatmul.mubr.msk.bf16.vlgmr.msra.gmra.mrb[12].mxu1 %vm203_vm0, %v702_v56 }
  0xc4   : > { %v769_v59 = vpop.permute.xlu0 %768 }
  0xc5   : > { %1086 = vmatprep.mubr.msk.bf16.mxu0 %vm203_vm0, %v769_v59 }
  0xc6   : > { %1087 = vmatmul.mubr.msk.bf16.vlgmr.msra.gmra.mrb[16].mxu0 %vm203_vm0, %v771_v58 }
  0xce   : > { %v848_v42 = vpop.permute.xlu1 %847 }
  0xd2   : > { %v853_v51 = vpop.permute.xlu1 %852 }
  0xd5   : > { %v843_v54 = vpop.permute.xlu0 %842 }
  0xed   : > { %v1032_v60 = vpop.f32.mrb[0].mxu1 }
  0xee   : > { %v306_v61 = vpop.f32.mrb[1].mxu1 }
  0xef   : > { %v1033_v62 = vpop.f32.mrb[2].mxu1 }
  0xf0   : > { %v309_v63 = vpop.f32.mrb[3].mxu1 }
 0x160   : > { %v1024_v0 = vpop.f32.mrb[0].mxu0 }
 0x161   : > { %v315_v1 = vadd.f32 %v1032_v60, %v1024_v0  ;;  %v248_v2 = vpop.f32.mrb[1].mxu0 }
 0x162   : > { %v307_v3 = vadd.f32 %v306_v61, %v248_v2  ;;  %v1025_v4 = vpop.f32.mrb[2].mxu0 }
 0x163   : > { %v251_v5 = vpop.f32.mrb[3].mxu0 }
 0x164   : > { %v310_v6 = vadd.f32 %v309_v63, %v251_v5 }
 0x168   : > { %v1040_v7 = vpop.f32.mrb[4].mxu0 }
 0x169   : > { %v388_v8 = vadd.f32 %v1040_v7, %v315_v1  ;;  %v372_v9 = vpop.f32.mrb[5].mxu0 }
 0x16a   : > { %v386_v10 = vadd.f32 %v372_v9, %v307_v3  ;;  %v1041_v11 = vpop.f32.mrb[6].mxu0 }
 0x16b   : > { %v375_v12 = vpop.f32.mrb[7].mxu0 }
 0x16c   : > { %v387_v13 = vadd.f32 %v375_v12, %v310_v6 }
 0x171   : > { %v1048_v14 = vpop.f32.mrb[4].mxu1 }
 0x172   : > { %v457_v15 = vadd.f32 %v1048_v14, %v388_v8  ;;  %v441_v16 = vpop.f32.mrb[5].mxu1 }
 0x173   : > { %v455_v17 = vadd.f32 %v441_v16, %v386_v10  ;;  %v1049_v18 = vpop.f32.mrb[6].mxu1 }
 0x174   : > { %v444_v19 = vpop.f32.mrb[7].mxu1 }
 0x175   : > { %v456_v20 = vadd.f32 %v444_v19, %v387_v13 }
 0x178   : > { %v1056_v21 = vpop.f32.mrb[8].mxu0 }
 0x179   : > { %v526_v22 = vadd.f32 %v1056_v21, %v457_v15  ;;  %v510_v23 = vpop.f32.mrb[9].mxu0 }
 0x17a   : > { %v524_v24 = vadd.f32 %v510_v23, %v455_v17  ;;  %v1057_v25 = vpop.f32.mrb[10].mxu0 }
 0x17b   : > { %v513_v26 = vpop.f32.mrb[11].mxu0 }
 0x17c   : > { %v525_v27 = vadd.f32 %v513_v26, %v456_v20 }
 0x185   : > { %v1064_v28 = vpop.f32.mrb[8].mxu1 }
 0x186   : > { %v618_v29 = vadd.f32 %v1064_v28, %v526_v22  ;;  %v602_v30 = vpop.f32.mrb[9].mxu1 }
 0x187   : > { %v616_v31 = vadd.f32 %v602_v30, %v524_v24  ;;  %v1065_v32 = vpop.f32.mrb[10].mxu1 }
 0x188   : > { %v605_v33 = vpop.f32.mrb[11].mxu1 }
 0x189   : > { %v617_v34 = vadd.f32 %v605_v33, %v525_v27 }
 0x18c   : > { %v1072_v35 = vpop.f32.mrb[12].mxu0 }
 0x18d   : > { %v698_v36 = vadd.f32 %v1072_v35, %v618_v29  ;;  %v682_v37 = vpop.f32.mrb[13].mxu0 }
 0x18e   : > { %v696_v38 = vadd.f32 %v682_v37, %v616_v31  ;;  %v1073_v39 = vpop.f32.mrb[14].mxu0 }
 0x18f   : > { %v685_v40 = vpop.f32.mrb[15].mxu0 }
 0x190   : > { %v697_v41 = vadd.f32 %v685_v40, %v617_v34 }
 0x195   : > { %v1080_v43 = vpop.f32.mrb[12].mxu1 }
 0x196   : > { %v767_v44 = vadd.f32 %v1080_v43, %v698_v36  ;;  %v751_v45 = vpop.f32.mrb[13].mxu1 }
 0x197   : > { %v765_v46 = vadd.f32 %v751_v45, %v696_v38  ;;  %v1081_v47 = vpop.f32.mrb[14].mxu1 }
 0x198   : > { %v754_v48 = vpop.f32.mrb[15].mxu1 }
 0x199   : > { %v766_v49 = vadd.f32 %v754_v48, %v697_v41  ;;  %v1088_v50 = vpop.f32.mrb[16].mxu0 }
 0x19a   : > { %v836_v52 = vadd.f32 %v1088_v50, %v767_v44  ;;  %v820_v53 = vpop.f32.mrb[17].mxu0 }
 0x19b   : > { %v834_v55 = vadd.f32 %v820_v53, %v765_v46  ;;  %v1089_v56 = vpop.f32.mrb[18].mxu0 }
 0x19c   : > { %v857_v57 = vadd.f32 %v853_v51, %v836_v52  ;;  %v823_v58 = vpop.f32.mrb[19].mxu0 }
 0x19d   : > { %v835_v59 = vadd.f32 %v823_v58, %v766_v49  ;;  %v855_v60 = vadd.f32 %v843_v54, %v834_v55 }
 0x19e   : > { %vm860_vm3 = vcmp.ge.f32.partialorder %v857_v57, 0.0  ;;  %v863_v61 = vmul.f32 0.2, %v857_v57 }
 0x19f   : > { %v856_v62 = vadd.f32 %v848_v42, %v835_v59  ;;  %vm858_vm4 = vcmp.ge.f32.partialorder %v855_v60, 0.0  ;;  %v861_v63 = vmul.f32 0.2, %v855_v60 }
 0x1a0   : > { %v866_v0 = vsel %vm860_vm3, %v857_v57, %v863_v61 }
 0x1a1   : > { %v981_v1 = vpack.c.bf16 %v866_v0, %v866_v0  ;;  %vm859_vm6 = vcmp.ge.f32.partialorder %v856_v62, 0.0  ;;  %v862_v2 = vmul.f32 0.2, %v856_v62  ;;  %v864_v3 = vsel %vm858_vm4, %v855_v60, %v861_v63 }
 0x1a2   : > { %v979_v4 = vpack.c.bf16 %v864_v3, %v864_v3 }
 0x1a3   : > { %883 = vst.msk [vmem:[%s170_s5 + $0x8] sm:$0xf] %vm880_vm5, %v981_v1  ;;  %v865_v5 = vsel %vm859_vm6, %v856_v62, %v862_v2 }
 0x1a4   : > { %v980_v6 = vpack.c.bf16 %v865_v5, %v865_v5  ;;  %881 = vst.msk [vmem:[%s170_s5] sm:$0xf] %vm880_vm5, %v979_v4 }
 0x1a6   : > { %882 = vst.msk [vmem:[%s170_s5 + $0x4] sm:$0xf] %vm880_vm5, %v980_v6 }
 0x1a7 PF: > { %s13_s12 = sadd.s32 1, %s1144_s12  }
 0x1a8   : > { %p10_p4 = scmp.ge.s32.totalorder %s13_s12, 4  }
 0x1aa   :  { %12 = sbr.rel (!%p10_p4) target bundleno = 1 (0x1), region = 62 }

// kernel: deep_guided_filter_forward.22
= control target key start
LH: loop header
LB: loop body
LE: loop exit
PB: predicated region body
PF: predicated region fallthrough
CT: control target
= control target key end

     0   :  { %s448_s12 = smov 0   ;;  %s450_s13 = smov 0   ;;  %s487_s0 = inlined_call_operand.vmem [shape: bf16[2,24,64], index: 0, kind: input, shape index: {}]   ;;  %s488_s1 = inlined_call_operand.vmem [shape: bf16[3,24], index: 1, kind: input, shape index: {}]   ;;  %s489_s2 = inlined_call_operand.vmem [shape: f32[3,1], index: 2, kind: input, shape index: {}]   ;;  %s490_s3 = inlined_call_operand.vmem [shape: f32[2,3,64], index: 3, kind: output, shape index: {}]  }
   0x1   :  { %s452_s14 = smov 0  }
   0x2 LB: > { %s25_s15 = sadd.s32 1, %s419_s13  ;;  %p351_p0 = scmp.ge.s32.totalorder %s423_s14, 1  ;;  %s423_s14 = sphi %s452_s14, %s13_s14   ;;  %s419_s13 = sphi %s450_s13, %s492_s13   ;;  %s415_s12 = sphi %s448_s12, %s491_s12  }
   0x3   : > { %p27_p1 = scmp.ge.s32.totalorder %s25_s15, 2  ;;  %p156_p2 = scmp.lt.s32.totalorder %s423_s14, 3 }
   0x5   : > { %s494_s15 = smov (%p27_p1, %s25_s15), 0  ;;  %p157_p3 = pnand %p351_p0, %p156_p2 }
   0x6   : > { %p185_p4 = scmp.lt.s32.totalorder (!%p157_p3), %s415_s12, 1  ;;  %v425_v0 = vmov (!%p157_p3), 0.0   ;;  %vm426_vm0 = vmmov (!%p157_p3), 0   ;;  %v205_v1 = vld [vmem:[%s489_s2] sm:$0x7] (!%p157_p3)  ;;  %v427_v2 = vmov (!%p157_p3), 0  }
   0x7   : > { %160 = sbr.rel (%p157_p3) target bundleno = 241 (0xf1), region = 32  ;;  %362 = vmatprep.subr.bf16.mxu0 (!%p157_p3), %v425_v0  ;;  %366 = vmatprep.mubr.msk.bf16.mxu0 (!%p157_p3), %vm426_vm0, %v425_v0  ;;  %vm224_vm1 = vcmask (!%p157_p3), 1043456   ;;  %v201_v6 = vld [vmem:[%s488_s1] sm:$0x3] (!%p157_p3)  ;;  %vm220_vm2 = vcmask (!%p157_p3), 195584   ;;  %vm268_vm3 = vcmask (!%p157_p3), 518144  }
   0x8   : > { %398 = vset.pattern.permute.xlu0 (!%p157_p3), %v427_v2 }
   0x9   : > { %208 = vperm.xlu0 (!%p157_p3), %398, %v205_v1  }
   0xe   : > { %s496_s12 = smov (!%p185_p4, %s415_s12), 1 }
   0xf   : > { %s370_s18 = smul.u32 12, %s496_s12  ;;  %s353_s24 = sshll.u32 %s496_s12, 2 }
  0x10   : > { %s199_s27 = scalar_lea.vmem %s490_s3, %s353_s24 }
  0x11   : > { %s192_s21 = scalar_lea.vmem %s487_s0, %s370_s18 }
  0x12   : > { %v399_v3 = vld [vmem:[%s192_s21] sm:$0xff]   ;;  %v400_v4 = vld [vmem:[%s192_s21 + $0x8] ss:$0 sps:$4 sm:$0xff]  }
  0x13   : > { %363 = vmatpush3.bf16.msra.mxu0 %v399_v3  ;;  %v226_v5 = vsel %vm224_vm1, %v400_v4, 0 }
  0x14   : > { %364 = vmatprep.subr.bf16.mxu0 %v425_v0 }
  0x17   : > { %365 = vmatpush3.bf16.msra.mxu0 %v226_v5 }
  0x1a   : > { %367 = vmatmul.mubr.msk.bf16.vlgmr.msra.gmra.mrb[0].mxu0 %vm220_vm2, %v201_v6 }
  0x88   : > { %v209_v7 = vpop.permute.xlu0 %208 }
  0xed   : > { %v262_v8 = vpop.f32.mrb[0].mxu0 }
  0xee   : > { %v263_v9 = vadd.f32 %v262_v8, %v209_v7  ;;  %v368_v10 = vpop.f32.mrb[1].mxu0 }
  0xef   : > { %v265_v11 = vpop.f32.mrb[2].mxu0 }
  0xf0   : > { %269 = vst.msk [vmem:[%s199_s27] sm:$0x7] %vm268_vm3, %v263_v9  ;;  %v369_v12 = vpop.f32.mrb[3].mxu0 }
  0xf1 PF: > { %s13_s14 = sadd.s32 1, %s423_s14   ;;  %s491_s12 = smov %s419_s13 }
  0xf2   : > { %p10_p5 = scmp.ge.s32.totalorder %s13_s14, 4   ;;  %s492_s13 = smov %s494_s15 }
  0xf4   :  { %12 = sbr.rel (!%p10_p5) target bundleno = 2 (0x2), region = 62 }

// kernel: deep_guided_filter_forward.15
= control target key start
LH: loop header
LB: loop body
LE: loop exit
PB: predicated region body
PF: predicated region fallthrough
CT: control target
= control target key end

     0   :  { %s583_s18 = smov 0   ;;  %s585_s19 = smov 0   ;;  %s638_s0 = inlined_call_operand.vmem [shape: f32[2,3,64], index: 0, kind: input, shape index: {}]   ;;  %s639_s1 = inlined_call_operand.vmem [shape: bf16[15,3], index: 1, kind: input, shape index: {}]   ;;  %s640_s2 = inlined_call_operand.vmem [shape: f32[15,1], index: 2, kind: input, shape index: {}]   ;;  %s641_s3 = inlined_call_operand.vmem [shape: bf16[3,15], index: 3, kind: input, shape index: {}]   ;;  %s642_s4 = inlined_call_operand.vmem [shape: f32[3,1], index: 4, kind: input, shape index: {}]   ;;  %s643_s5 = inlined_call_operand.vmem [shape: f32[2,3,64], index: 5, kind: output, shape index: {}]  }
   0x1   :  { %s587_s20 = smov 0  }
   0x2 LB: > { %s27_s21 = sadd.s32 1, %s543_s19  ;;  %p470_p0 = scmp.ge.s32.totalorder %s547_s20, 1  ;;  %s547_s20 = sphi %s587_s20, %s15_s20   ;;  %s543_s19 = sphi %s585_s19, %s645_s19   ;;  %s539_s18 = sphi %s583_s18, %s644_s18  }
   0x3   : > { %p29_p1 = scmp.ge.s32.totalorder %s27_s21, 2  ;;  %p205_p2 = scmp.lt.s32.totalorder %s547_s20, 3 }
   0x5   : > { %s647_s21 = smov (%p29_p1, %s27_s21), 0  ;;  %p206_p3 = pnand %p470_p0, %p205_p2 }
   0x6   : > { %p237_p4 = scmp.lt.s32.totalorder (!%p206_p3), %s539_s18, 1  ;;  %vm277_vm0 = vcmask (!%p206_p3), 1040384   ;;  %v549_v0 = vmov (!%p206_p3), 0.0   ;;  %vm550_vm1 = vmmov (!%p206_p3), 0   ;;  %v256_v1 = vld [vmem:[%s640_s2] sm:$0xff] (!%p206_p3)  ;;  %vm278_vm2 = vcmask (!%p206_p3), 1041408  }
   0x7   : > { %209 = sbr.rel (%p206_p3) target bundleno = 466 (0x1d2), region = 40  ;;  %482 = vmatprep.subr.bf16.mxu0 (!%p206_p3), %v549_v0  ;;  %488 = vmatprep.subr.bf16.mxu1 (!%p206_p3), %v549_v0  ;;  %v551_v2 = vmov (!%p206_p3), 65535   ;;  %v552_v4 = vmov (!%p206_p3), 0   ;;  %v257_v5 = vld [vmem:[%s640_s2 + $0x8] sm:$0x7f] (!%p206_p3)  ;;  %v524_v10 = vld [vmem:[%s639_s1] sm:$0xff] (!%p206_p3)  }
   0x8   : > { %484 = vmatprep.mubr.msk.bf16.mxu0 (!%p206_p3), %vm550_vm1, %v549_v0  ;;  %490 = vmatprep.mubr.msk.bf16.mxu1 (!%p206_p3), %vm550_vm1, %v549_v0  ;;  %v279_v3 = vsel (!%p206_p3), %vm277_vm0, 4294967295, %v551_v2  ;;  %vm273_vm3 = vcmask (!%p206_p3), 23552   ;;  %v333_v11 = vld [vmem:[%s642_s4] sm:$0x7] (!%p206_p3)  ;;  %vm343_vm4 = vcmask (!%p206_p3), 1046528   ;;  %vm344_vm6 = vcmask (!%p206_p3), 1047552  }
   0x9   : > { %522 = vset.pattern.permute.xlu0 (!%p206_p3), %v552_v4  ;;  %523 = vset.pattern.permute.xlu1 (!%p206_p3), %v552_v4  ;;  %v280_v7 = vsel (!%p206_p3), %vm278_vm2, %v279_v3, 0  ;;  %v345_v21 = vsel (!%p206_p3), %vm343_vm4, 4294967295, %v551_v2  ;;  %v332_v28 = vld [vmem:[%s641_s3] sm:$0x3] (!%p206_p3)  ;;  %vm339_vm8 = vcmask (!%p206_p3), 121856   ;;  %vm390_vm9 = vcmask (!%p206_p3), 518144  }
   0xa   : > { %260 = vperm.xlu0 (!%p206_p3), %522, %v256_v1   ;;  %336 = vperm.xlu1 (!%p206_p3), %523, %v333_v11   ;;  %v346_v25 = vsel (!%p206_p3), %vm344_vm6, %v345_v21, 0 }
   0xe   : > { %s649_s18 = smov (!%p237_p4, %s539_s18), 1  ;;  %265 = vperm.xlu0 %522, %v257_v5  }
   0xf   : > { %s471_s24 = sshll.u32 %s649_s18, 2 }
  0x10   : > { %s243_s27 = scalar_lea.vmem %s638_s0, %s471_s24  ;;  %s250_s13 = scalar_lea.vmem %s643_s5, %s471_s24 }
  0x11   : > { %v252_v6 = vld [vmem:[%s243_s27] sm:$0x7] }
  0x12   : > { %v253_v8 = vpack.c.bf16 %v252_v6, %v252_v6 }
  0x14   : > { %v282_v9 = vand.u32 %v280_v7, %v253_v8 }
  0x16   : > { %483 = vmatpush3.bf16.msra.mxu0 %v282_v9 }
  0x19   : > { %485 = vmatmul.mubr.msk.bf16.vlgmr.msra.gmra.mrb[0].mxu0 %vm273_vm3, %v524_v10 }
  0x89   : > { %v261_v12 = vpop.permute.xlu0 %260  ;;  %v337_v29 = vpop.permute.xlu1 %336 }
  0x8d   : > { %v266_v16 = vpop.permute.xlu0 %265 }
  0xec   : > { %v318_v13 = vpop.f32.mrb[0].mxu0 }
  0xed   : > { %v319_v14 = vadd.f32 %v318_v13, %v261_v12  ;;  %v486_v15 = vpop.f32.mrb[1].mxu0 }
  0xee   : > { %v321_v17 = vpop.f32.mrb[2].mxu0 }
  0xef   : > { %v327_v18 = vmul.f32 0.2, %v319_v14  ;;  %v322_v19 = vadd.f32 %v321_v17, %v266_v16  ;;  %v487_v20 = vpop.f32.mrb[3].mxu0  ;;  %vm325_vm5 = vcmp.ge.f32.partialorder %v319_v14, 0.0 }
  0xf1   : > { %vm326_vm7 = vcmp.ge.f32.partialorder %v322_v19, 0.0  ;;  %v328_v22 = vmul.f32 0.2, %v322_v19  ;;  %v329_v23 = vsel %vm325_vm5, %v319_v14, %v327_v18 }
  0xf3   : > { %v330_v24 = vsel %vm326_vm7, %v322_v19, %v328_v22 }
  0xf4   : > { %v331_v26 = vpack.c.bf16 %v330_v24, %v329_v23 }
  0xf6   : > { %v348_v27 = vand.u32 %v346_v25, %v331_v26 }
  0xf8   : > { %489 = vmatpush3.bf16.msra.mxu1 %v348_v27 }
  0xfb   : > { %491 = vmatmul.mubr.msk.bf16.vlgmr.msra.gmra.mrb[0].mxu1 %vm339_vm8, %v332_v28 }
 0x1ce   : > { %v384_v30 = vpop.f32.mrb[0].mxu1 }
 0x1cf   : > { %v385_v31 = vadd.f32 %v384_v30, %v337_v29  ;;  %v492_v32 = vpop.f32.mrb[1].mxu1 }
 0x1d0   : > { %v387_v33 = vpop.f32.mrb[2].mxu1 }
 0x1d1   : > { %391 = vst.msk [vmem:[%s250_s13] sm:$0x7] %vm390_vm9, %v385_v31  ;;  %v493_v34 = vpop.f32.mrb[3].mxu1 }
 0x1d2 PF: > { %s15_s20 = sadd.s32 1, %s547_s20   ;;  %s644_s18 = smov %s543_s19 }
 0x1d3   : > { %p12_p5 = scmp.ge.s32.totalorder %s15_s20, 4   ;;  %s645_s19 = smov %s647_s21 }
 0x1d5   :  { %14 = sbr.rel (!%p12_p5) target bundleno = 2 (0x2), region = 70 }

// kernel: deep_guided_filter_forward.23
= control target key start
LH: loop header
LB: loop body
LE: loop exit
PB: predicated region body
PF: predicated region fallthrough
CT: control target
= control target key end

     0   :  { %s2662_s18 = smov 0   ;;  %s2664_s19 = smov 0   ;;  %s3301_s0 = inlined_call_operand.vmem [shape: f32[2,3,4096], index: 0, kind: input, shape index: {}]   ;;  %s3302_s1 = inlined_call_operand.vmem [shape: bf16[15,3], index: 1, kind: input, shape index: {}]   ;;  %s3303_s2 = inlined_call_operand.vmem [shape: f32[15,1], index: 2, kind: input, shape index: {}]   ;;  %s3304_s3 = inlined_call_operand.vmem [shape: bf16[3,15], index: 3, kind: input, shape index: {}]   ;;  %s3305_s4 = inlined_call_operand.vmem [shape: f32[3,1], index: 4, kind: input, shape index: {}]   ;;  %s3306_s5 = inlined_call_operand.vmem [shape: bf16[2,3,4096], index: 5, kind: output, shape index: {}]  }
   0x1   :  { %s2666_s20 = smov 0  }
   0x2 LB: > { %s27_s21 = sadd.s32 1, %s2623_s19  ;;  %p2501_p0 = scmp.ge.s32.totalorder %s2627_s20, 1  ;;  %s2627_s20 = sphi %s2666_s20, %s15_s20   ;;  %s2623_s19 = sphi %s2664_s19, %s3314_s19   ;;  %s2619_s18 = sphi %s2662_s18, %s3313_s18  }
   0x3   : > { %p29_p1 = scmp.ge.s32.totalorder %s27_s21, 2  ;;  %p208_p2 = scmp.lt.s32.totalorder %s2627_s20, 3 }
   0x5   : > { %s3316_s21 = smov (%p29_p1, %s27_s21), 0  ;;  %p209_p3 = pnand %p2501_p0, %p208_p2 }
   0x6   : > { %p245_p4 = scmp.lt.s32.totalorder (!%p209_p3), %s2619_s18, 1  ;;  %vm384_vm0 = vcmask (!%p209_p3), 1040384   ;;  %vm385_vm1 = vcmask (!%p209_p3), 1041408   ;;  %v2629_v0 = vmov (!%p209_p3), 65535   ;;  %v2630_v2 = vmov (!%p209_p3), 0   ;;  %v363_v3 = vld [vmem:[%s3303_s2] sm:$0xff] (!%p209_p3) }
   0x7   : > { %212 = sbr.rel (%p209_p3) target bundleno = 556 (0x22c), region = 40  ;;  %v386_v1 = vsel (!%p209_p3), %vm384_vm0, 4294967295, %v2629_v0  ;;  %516 = vmatprep.mubr.bf16.mxu0 (!%p209_p3), %v2630_v2  ;;  %559 = vmatprep.mubr.bf16.mxu1 (!%p209_p3), %v2630_v2  ;;  %v364_v5 = vld [vmem:[%s3303_s2 + $0x8] sm:$0x7f] (!%p209_p3)  ;;  %v2717_v32 = vld [vmem:[%s3302_s1] sm:$0xff] (!%p209_p3)   ;;  %vm380_vm2 = vcmask (!%p209_p3), 23552  }
   0x8   : > { %2586 = vset.pattern.permute.xlu0 (!%p209_p3), %v2630_v2  ;;  %2587 = vset.pattern.permute.xlu1 (!%p209_p3), %v2630_v2  ;;  %v2697_v4 = vsel (!%p209_p3), %vm385_vm1, %v386_v1, 0  ;;  %vm1407_vm3 = vcmask (!%p209_p3), 1046528   ;;  %vm1408_vm7 = vcmask (!%p209_p3), 1047552   ;;  %vm1403_vm15 = vcmask (!%p209_p3), 121856  }
   0x9   : > { %367 = vperm.xlu0 (!%p209_p3), %2586, %v363_v3  }
   0xd   : > { %372 = vperm.xlu0 (!%p209_p3), %2586, %v364_v5  }
   0xe   : > { %s3318_s18 = smov (!%p245_p4, %s2619_s18), 1 }
   0xf   : > { %s2557_s24 = sshll.u32 %s3318_s18, 7  ;;  %s2558_s11 = sshll.u32 %s3318_s18, 6 }
  0x10   : > { %s2694_s27 = scalar_lea.vmem %s3301_s0, %s2557_s24  ;;  %s3210_s14 = scalar_lea.vmem %s3306_s5, %s2558_s11 }
  0x11   : > { %v265_v6 = vld [vmem:[%s2694_s27] sm:$0x77]  ;;  %v266_v7 = vld [vmem:[%s2694_s27 + $0x8] sm:$0x77]  ;;  %v267_v8 = vld [vmem:[%s2694_s27 + $0x10] sm:$0x77] }
  0x12   : > { %v297_v9 = vcombine.high %v265_v6, %v265_v6  ;;  %v298_v10 = vcombine.high %v266_v7, %v266_v7  ;;  %v329_v11 = vpack.c.bf16 %v265_v6, %v265_v6  ;;  %v331_v12 = vpack.c.bf16 %v266_v7, %v266_v7  ;;  %v268_v13 = vld [vmem:[%s2694_s27 + $0x18] sm:$0x77]  ;;  %v269_v16 = vld [vmem:[%s2694_s27 + $0x20] sm:$0x77]  ;;  %v270_v21 = vld [vmem:[%s2694_s27 + $0x28] sm:$0x77] }
  0x13   : > { %v299_v14 = vcombine.high %v267_v8, %v267_v8  ;;  %v300_v15 = vcombine.high %v268_v13, %v268_v13  ;;  %v333_v19 = vpack.c.bf16 %v267_v8, %v267_v8  ;;  %v335_v20 = vpack.c.bf16 %v268_v13, %v268_v13  ;;  %v271_v34 = vld [vmem:[%s2694_s27 + $0x30] sm:$0x77]  ;;  %v272_v35 = vld [vmem:[%s2694_s27 + $0x38] sm:$0x77]  ;;  %v273_v47 = vld [vmem:[%s2694_s27 + $0x40] sm:$0x77] }
  0x14   : > { %v330_v17 = vpack.c.bf16 %v297_v9, %v297_v9  ;;  %v332_v18 = vpack.c.bf16 %v298_v10, %v298_v10  ;;  %v389_v22 = vand.u32 %v2697_v4, %v329_v11  ;;  %v395_v23 = vand.u32 %v2697_v4, %v331_v12  ;;  %v274_v48 = vld [vmem:[%s2694_s27 + $0x48] sm:$0x77]  ;;  %v275_v59 = vld [vmem:[%s2694_s27 + $0x50] sm:$0x77]  ;;  %v276_v60 = vld [vmem:[%s2694_s27 + $0x58] sm:$0x77] }
  0x15   : > { %v334_v24 = vpack.c.bf16 %v299_v14, %v299_v14  ;;  %v336_v25 = vpack.c.bf16 %v300_v15, %v300_v15  ;;  %v301_v28 = vcombine.high %v269_v16, %v269_v16  ;;  %v302_v31 = vcombine.high %v270_v21, %v270_v21  ;;  %v277_v10 = vld [vmem:[%s2694_s27 + $0x60] sm:$0x77]  ;;  %v278_v11 = vld [vmem:[%s2694_s27 + $0x68] sm:$0x77] }
  0x16   : > { %v392_v26 = vand.u32 %v2697_v4, %v330_v17  ;;  %v398_v27 = vand.u32 %v2697_v4, %v332_v18  ;;  %v401_v36 = vand.u32 %v2697_v4, %v333_v19  ;;  %v407_v37 = vand.u32 %v2697_v4, %v335_v20 }
  0x17   : > { %v404_v29 = vand.u32 %v2697_v4, %v334_v24  ;;  %v410_v30 = vand.u32 %v2697_v4, %v336_v25  ;;  %v338_v33 = vpack.c.bf16 %v301_v28, %v301_v28  ;;  %v340_v38 = vpack.c.bf16 %v302_v31, %v302_v31 }
  0x18   : > { %484 = vmatprep.subr.bf16.mxu0 %v392_v26  ;;  %527 = vmatprep.subr.bf16.mxu1 %v398_v27  ;;  %v303_v41 = vcombine.high %v271_v34, %v271_v34  ;;  %v304_v42 = vcombine.high %v272_v35, %v272_v35  ;;  %v337_v43 = vpack.c.bf16 %v269_v16, %v269_v16 }
  0x19   : > { %485 = vmatpush1.bf16.msra.mxu0 %v389_v22  ;;  %528 = vmatpush1.bf16.msra.mxu1 %v395_v23  ;;  %v416_v39 = vand.u32 %v2697_v4, %v338_v33  ;;  %v422_v40 = vand.u32 %v2697_v4, %v340_v38  ;;  %v339_v44 = vpack.c.bf16 %v270_v21, %v270_v21  ;;  %v279_v22 = vld [vmem:[%s2694_s27 + $0x70] sm:$0x77]  ;;  %v280_v23 = vld [vmem:[%s2694_s27 + $0x78] sm:$0x77] }
  0x1a   : > { %570 = vmatprep.subr.bf16.mxu0 %v404_v29  ;;  %613 = vmatprep.subr.bf16.mxu1 %v410_v30  ;;  %v342_v45 = vpack.c.bf16 %v303_v41, %v303_v41  ;;  %v344_v46 = vpack.c.bf16 %v304_v42, %v304_v42  ;;  %v413_v49 = vand.u32 %v2697_v4, %v337_v43 }
  0x1b   : > { %v419_v50 = vand.u32 %v2697_v4, %v339_v44  ;;  %v305_v53 = vcombine.high %v273_v47, %v273_v47  ;;  %v306_v54 = vcombine.high %v274_v48, %v274_v48  ;;  %v341_v55 = vpack.c.bf16 %v271_v34, %v271_v34 }
  0x1c   : > { %2507 = vmatmul.mubr.msk.bf16.vlgmr.msra.gmra.mrb[0].mxu0 %vm380_vm2, %v2717_v32  ;;  %2508 = vmatmul.mubr.msk.bf16.vlgmr.msra.gmra.mrb[0].mxu1 %vm380_vm2, %v2717_v32  ;;  %v428_v51 = vand.u32 %v2697_v4, %v342_v45  ;;  %v434_v52 = vand.u32 %v2697_v4, %v344_v46  ;;  %v343_v56 = vpack.c.bf16 %v272_v35, %v272_v35 }
  0x1d   : > { %571 = vmatpush1.bf16.msra.mxu0 %v401_v36  ;;  %614 = vmatpush1.bf16.msra.mxu1 %v407_v37  ;;  %v346_v57 = vpack.c.bf16 %v305_v53, %v305_v53  ;;  %v348_v58 = vpack.c.bf16 %v306_v54, %v306_v54  ;;  %v425_v61 = vand.u32 %v2697_v4, %v341_v55  ;;  %v1409_v55 = vsel %vm1407_vm3, 4294967295, %v2629_v0 }
  0x1e   : > { %602 = vmatprep.mubr.bf16.mxu0 %v2630_v2  ;;  %645 = vmatprep.mubr.bf16.mxu1 %v2630_v2  ;;  %v431_v62 = vand.u32 %v2697_v4, %v343_v56  ;;  %v307_v3 = vcombine.high %v275_v59, %v275_v59  ;;  %v308_v5 = vcombine.high %v276_v60, %v276_v60 }
  0x1f   : > { %656 = vmatprep.subr.bf16.mxu0 %v416_v39  ;;  %699 = vmatprep.subr.bf16.mxu1 %v422_v40  ;;  %v440_v63 = vand.u32 %v2697_v4, %v346_v57  ;;  %v446_v1 = vand.u32 %v2697_v4, %v348_v58  ;;  %v345_v6 = vpack.c.bf16 %v273_v47, %v273_v47 }
  0x20   : > { %v347_v7 = vpack.c.bf16 %v274_v48, %v274_v48  ;;  %v350_v8 = vpack.c.bf16 %v307_v3, %v307_v3  ;;  %v352_v9 = vpack.c.bf16 %v308_v5, %v308_v5  ;;  %v309_v16 = vcombine.high %v277_v10, %v277_v10 }
  0x21   : > { %v437_v12 = vand.u32 %v2697_v4, %v345_v6  ;;  %v310_v17 = vcombine.high %v278_v11, %v278_v11  ;;  %v349_v18 = vpack.c.bf16 %v275_v59, %v275_v59  ;;  %v351_v19 = vpack.c.bf16 %v276_v60, %v276_v60 }
  0x22   : > { %v443_v13 = vand.u32 %v2697_v4, %v347_v7  ;;  %v452_v14 = vand.u32 %v2697_v4, %v350_v8  ;;  %v458_v15 = vand.u32 %v2697_v4, %v352_v9  ;;  %v354_v20 = vpack.c.bf16 %v309_v16, %v309_v16 }
  0x23   : > { %v356_v21 = vpack.c.bf16 %v310_v17, %v310_v17  ;;  %v449_v24 = vand.u32 %v2697_v4, %v349_v18  ;;  %v455_v25 = vand.u32 %v2697_v4, %v351_v19  ;;  %v311_v28 = vcombine.high %v279_v22, %v279_v22 }
  0x24   : > { %2509 = vmatmul.mubr.msk.bf16.vlgmr.msra.gmra.mrb[4].mxu0 %vm380_vm2, %v2717_v32  ;;  %2510 = vmatmul.mubr.msk.bf16.vlgmr.msra.gmra.mrb[4].mxu1 %vm380_vm2, %v2717_v32  ;;  %v464_v26 = vand.u32 %v2697_v4, %v354_v20  ;;  %v312_v29 = vcombine.high %v280_v23, %v280_v23  ;;  %v353_v30 = vpack.c.bf16 %v277_v10, %v277_v10 }
  0x25   : > { %657 = vmatpush1.bf16.msra.mxu0 %v413_v49  ;;  %700 = vmatpush1.bf16.msra.mxu1 %v419_v50  ;;  %v470_v27 = vand.u32 %v2697_v4, %v356_v21  ;;  %v355_v31 = vpack.c.bf16 %v278_v11, %v278_v11  ;;  %v358_v33 = vpack.c.bf16 %v311_v28, %v311_v28 }
  0x26   : > { %688 = vmatprep.mubr.bf16.mxu0 %v2630_v2  ;;  %731 = vmatprep.mubr.bf16.mxu1 %v2630_v2  ;;  %v360_v34 = vpack.c.bf16 %v312_v29, %v312_v29  ;;  %v461_v35 = vand.u32 %v2697_v4, %v353_v30  ;;  %v357_v39 = vpack.c.bf16 %v279_v22, %v279_v22 }
  0x27   : > { %742 = vmatprep.subr.bf16.mxu0 %v428_v51  ;;  %785 = vmatprep.subr.bf16.mxu1 %v434_v52  ;;  %v467_v36 = vand.u32 %v2697_v4, %v355_v31  ;;  %v476_v37 = vand.u32 %v2697_v4, %v358_v33  ;;  %v359_v40 = vpack.c.bf16 %v280_v23, %v280_v23 }
  0x28   : > { %v482_v38 = vand.u32 %v2697_v4, %v360_v34  ;;  %v473_v41 = vand.u32 %v2697_v4, %v357_v39 }
  0x29   : > { %v479_v42 = vand.u32 %v2697_v4, %v359_v40  ;;  %v1397_v4 = vld [vmem:[%s3305_s4] sm:$0x7] }
  0x2a   : > { %1400 = vperm.xlu1 %2587, %v1397_v4  }
  0x2c   : > { %2511 = vmatmul.mubr.msk.bf16.vlgmr.msra.gmra.mrb[8].mxu0 %vm380_vm2, %v2717_v32  ;;  %2512 = vmatmul.mubr.msk.bf16.vlgmr.msra.gmra.mrb[8].mxu1 %vm380_vm2, %v2717_v32 }
  0x2d   : > { %743 = vmatpush1.bf16.msra.mxu0 %v425_v61  ;;  %786 = vmatpush1.bf16.msra.mxu1 %v431_v62 }
  0x2e   : > { %774 = vmatprep.mubr.bf16.mxu0 %v2630_v2  ;;  %817 = vmatprep.mubr.bf16.mxu1 %v2630_v2 }
  0x2f   : > { %828 = vmatprep.subr.bf16.mxu0 %v440_v63  ;;  %871 = vmatprep.subr.bf16.mxu1 %v446_v1 }
  0x34   : > { %2513 = vmatmul.mubr.msk.bf16.vlgmr.msra.gmra.mrb[12].mxu0 %vm380_vm2, %v2717_v32  ;;  %2514 = vmatmul.mubr.msk.bf16.vlgmr.msra.gmra.mrb[12].mxu1 %vm380_vm2, %v2717_v32 }
  0x35   : > { %829 = vmatpush1.bf16.msra.mxu0 %v437_v12  ;;  %872 = vmatpush1.bf16.msra.mxu1 %v443_v13 }
  0x36   : > { %860 = vmatprep.mubr.bf16.mxu0 %v2630_v2  ;;  %903 = vmatprep.mubr.bf16.mxu1 %v2630_v2 }
  0x37   : > { %914 = vmatprep.subr.bf16.mxu0 %v452_v14  ;;  %957 = vmatprep.subr.bf16.mxu1 %v458_v15 }
  0x3c   : > { %2515 = vmatmul.mubr.msk.bf16.vlgmr.msra.gmra.mrb[16].mxu0 %vm380_vm2, %v2717_v32  ;;  %2516 = vmatmul.mubr.msk.bf16.vlgmr.msra.gmra.mrb[16].mxu1 %vm380_vm2, %v2717_v32 }
  0x3d   : > { %915 = vmatpush1.bf16.msra.mxu0 %v449_v24  ;;  %958 = vmatpush1.bf16.msra.mxu1 %v455_v25 }
  0x3e   : > { %946 = vmatprep.mubr.bf16.mxu0 %v2630_v2  ;;  %989 = vmatprep.mubr.bf16.mxu1 %v2630_v2 }
  0x3f   : > { %1000 = vmatprep.subr.bf16.mxu0 %v464_v26  ;;  %1043 = vmatprep.subr.bf16.mxu1 %v470_v27 }
  0x44   : > { %2517 = vmatmul.mubr.msk.bf16.vlgmr.msra.gmra.mrb[20].mxu0 %vm380_vm2, %v2717_v32  ;;  %2518 = vmatmul.mubr.msk.bf16.vlgmr.msra.gmra.mrb[20].mxu1 %vm380_vm2, %v2717_v32 }
  0x45   : > { %1001 = vmatpush1.bf16.msra.mxu0 %v461_v35  ;;  %1044 = vmatpush1.bf16.msra.mxu1 %v467_v36 }
  0x46   : > { %1032 = vmatprep.mubr.bf16.mxu0 %v2630_v2  ;;  %1075 = vmatprep.mubr.bf16.mxu1 %v2630_v2 }
  0x47   : > { %1086 = vmatprep.subr.bf16.mxu0 %v476_v37  ;;  %1129 = vmatprep.subr.bf16.mxu1 %v482_v38  ;;  %v2834_v37 = vsel %vm1408_vm7, %v1409_v55, 0 }
  0x4c   : > { %2519 = vmatmul.mubr.msk.bf16.vlgmr.msra.gmra.mrb[24].mxu0 %vm380_vm2, %v2717_v32  ;;  %2520 = vmatmul.mubr.msk.bf16.vlgmr.msra.gmra.mrb[24].mxu1 %vm380_vm2, %v2717_v32 }
  0x4d   : > { %1087 = vmatpush1.bf16.msra.mxu0 %v473_v41  ;;  %1130 = vmatpush1.bf16.msra.mxu1 %v479_v42 }
  0x4e   : > { %1118 = vmatprep.mubr.bf16.mxu0 %v2630_v2  ;;  %1161 = vmatprep.mubr.bf16.mxu1 %v2630_v2 }
  0x54   : > { %2521 = vmatmul.mubr.msk.bf16.vlgmr.msra.gmra.mrb[28].mxu0 %vm380_vm2, %v2717_v32  ;;  %2522 = vmatmul.mubr.msk.bf16.vlgmr.msra.gmra.mrb[28].mxu1 %vm380_vm2, %v2717_v32 }
  0x55   : > { %1539 = vmatprep.mubr.bf16.mxu0 %v2630_v2  ;;  %1580 = vmatprep.mubr.bf16.mxu1 %v2630_v2 }
  0x88   : > { %v2806_v43 = vpop.permute.xlu0 %367 }
  0x8c   : > { %v2813_v56 = vpop.permute.xlu0 %372 }
  0xef   : > { %v518_v44 = vpop.f32.mrb[0].mxu0  ;;  %v561_v45 = vpop.f32.mrb[0].mxu1 }
  0xf0   : > { %v519_v46 = vadd.f32 %v518_v44, %v2806_v43  ;;  %v562_v47 = vadd.f32 %v561_v45, %v2806_v43  ;;  %v520_v48 = vpop.f32.mrb[1].mxu0  ;;  %v563_v32 = vpop.f32.mrb[1].mxu1 }
  0xf1   : > { %v521_v49 = vadd.f32 %v520_v48, %v2806_v43  ;;  %v564_v50 = vadd.f32 %v563_v32, %v2806_v43  ;;  %v522_v51 = vpop.f32.mrb[2].mxu0  ;;  %v565_v52 = vpop.f32.mrb[2].mxu1 }
  0xf2   : > { %vm1172_vm4 = vcmp.ge.f32.partialorder %v519_v46, 0.0  ;;  %v1236_v53 = vmul.f32 0.2, %v519_v46  ;;  %vm1174_vm5 = vcmp.ge.f32.partialorder %v562_v47, 0.0  ;;  %v1238_v54 = vmul.f32 0.2, %v562_v47 }
  0xf3   : > { %vm1173_vm6 = vcmp.ge.f32.partialorder %v521_v49, 0.0  ;;  %v1237_v57 = vmul.f32 0.2, %v521_v49  ;;  %vm1175_vm8 = vcmp.ge.f32.partialorder %v564_v50, 0.0  ;;  %v1239_v58 = vmul.f32 0.2, %v564_v50 }
  0xf4   : > { %v523_v59 = vadd.f32 %v522_v51, %v2813_v56  ;;  %v566_v60 = vadd.f32 %v565_v52, %v2813_v56  ;;  %v524_v61 = vpop.f32.mrb[3].mxu0  ;;  %v567_v62 = vpop.f32.mrb[3].mxu1  ;;  %v2817_v63 = vsel %vm1172_vm4, %v519_v46, %v1236_v53  ;;  %v2819_v1 = vsel %vm1174_vm5, %v562_v47, %v1238_v54 }
  0xf5   : > { %v525_v3 = vadd.f32 %v524_v61, %v2813_v56  ;;  %v568_v0 = vadd.f32 %v567_v62, %v2813_v56  ;;  %v1301_v9 = vsel %vm1173_vm6, %v521_v49, %v1237_v57  ;;  %v1303_v10 = vsel %vm1175_vm8, %v564_v50, %v1239_v58 }
  0xf6   : > { %vm1204_vm9 = vcmp.ge.f32.partialorder %v523_v59, 0.0  ;;  %v1268_v5 = vmul.f32 0.2, %v523_v59  ;;  %vm1206_vm10 = vcmp.ge.f32.partialorder %v566_v60, 0.0  ;;  %v1270_v6 = vmul.f32 0.2, %v566_v60 }
  0xf7   : > { %vm1205_vm11 = vcmp.ge.f32.partialorder %v525_v3, 0.0  ;;  %v1269_v7 = vmul.f32 0.2, %v525_v3  ;;  %vm1207_vm12 = vcmp.ge.f32.partialorder %v568_v0, 0.0  ;;  %v1271_v8 = vmul.f32 0.2, %v568_v0 }
  0xf8   : > { %v1332_v11 = vsel %vm1204_vm9, %v523_v59, %v1268_v5  ;;  %v1334_v12 = vsel %vm1206_vm10, %v566_v60, %v1270_v6  ;;  %v604_v13 = vpop.f32.mrb[4].mxu0  ;;  %v647_v14 = vpop.f32.mrb[4].mxu1 }
  0xf9   : > { %v1364_v15 = vpack.c.bf16 %v1332_v11, %v2817_v63  ;;  %v1366_v16 = vpack.c.bf16 %v1334_v12, %v2819_v1  ;;  %v1333_v17 = vsel %vm1205_vm11, %v525_v3, %v1269_v7  ;;  %v1335_v18 = vsel %vm1207_vm12, %v568_v0, %v1271_v8  ;;  %v606_v19 = vpop.f32.mrb[5].mxu0  ;;  %v649_v20 = vpop.f32.mrb[5].mxu1  ;;  %v2859_v3 = vld [vmem:[%s3304_s3] sm:$0x3] }
  0xfa   : > { %v605_v21 = vadd.f32 %v604_v13, %v2806_v43  ;;  %v648_v22 = vadd.f32 %v647_v14, %v2806_v43  ;;  %v607_v23 = vadd.f32 %v606_v19, %v2806_v43  ;;  %v650_v24 = vadd.f32 %v649_v20, %v2806_v43  ;;  %v608_v25 = vpop.f32.mrb[6].mxu0  ;;  %v651_v26 = vpop.f32.mrb[6].mxu1 }
  0xfb   : > { %v609_v27 = vadd.f32 %v608_v25, %v2813_v56  ;;  %v652_v28 = vadd.f32 %v651_v26, %v2813_v56  ;;  %v610_v29 = vpop.f32.mrb[7].mxu0  ;;  %v653_v30 = vpop.f32.mrb[7].mxu1  ;;  %v1365_v31 = vpack.c.bf16 %v1333_v17, %v1301_v9  ;;  %v1367_v33 = vpack.c.bf16 %v1335_v18, %v1303_v10 }
  0xfc   : > { %vm1176_vm13 = vcmp.ge.f32.partialorder %v605_v21, 0.0  ;;  %v1240_v34 = vmul.f32 0.2, %v605_v21  ;;  %vm1178_vm14 = vcmp.ge.f32.partialorder %v648_v22, 0.0  ;;  %v1242_v35 = vmul.f32 0.2, %v648_v22 }
  0xfd   : > { %v1241_v36 = vmul.f32 0.2, %v607_v23  ;;  %vm1177_vm0 = vcmp.ge.f32.partialorder %v607_v23, 0.0  ;;  %v1243_v38 = vmul.f32 0.2, %v650_v24  ;;  %vm1208_vm2 = vcmp.ge.f32.partialorder %v609_v27, 0.0 }
  0xfe   : > { %v1272_v39 = vmul.f32 0.2, %v609_v27  ;;  %v2836_v40 = vsel %vm1176_vm13, %v605_v21, %v1240_v34  ;;  %v2838_v41 = vsel %vm1178_vm14, %v648_v22, %v1242_v35  ;;  %vm1210_vm3 = vcmp.ge.f32.partialorder %v652_v28, 0.0 }
  0xff   : > { %v1274_v42 = vmul.f32 0.2, %v652_v28  ;;  %v690_v4 = vpop.f32.mrb[8].mxu0  ;;  %v733_v44 = vpop.f32.mrb[8].mxu1  ;;  %v611_v46 = vadd.f32 %v610_v29, %v2813_v56  ;;  %v654_v47 = vadd.f32 %v653_v30, %v2813_v56  ;;  %v1415_v48 = vand.u32 %v2834_v37, %v1365_v31 }
 0x100   : > { %v2840_v45 = vsel %vm1208_vm2, %v609_v27, %v1272_v39  ;;  %v692_v32 = vpop.f32.mrb[9].mxu0  ;;  %v735_v49 = vpop.f32.mrb[9].mxu1  ;;  %v1421_v52 = vand.u32 %v2834_v37, %v1367_v33  ;;  %v1412_v53 = vand.u32 %v2834_v37, %v1364_v15  ;;  %vm1179_vm4 = vcmp.ge.f32.partialorder %v650_v24, 0.0 }
 0x101   : > { %v1368_v50 = vpack.c.bf16 %v2840_v45, %v2836_v40  ;;  %v2847_v51 = vsel %vm1210_vm3, %v652_v28, %v1274_v42  ;;  %v694_v54 = vpop.f32.mrb[10].mxu0  ;;  %v737_v55 = vpop.f32.mrb[10].mxu1  ;;  %vm1209_vm5 = vcmp.ge.f32.partialorder %v611_v46, 0.0  ;;  %v1273_v58 = vmul.f32 0.2, %v611_v46  ;;  %1507 = vmatprep.subr.bf16.mxu0 %v1415_v48 }
 0x102   : > { %v1370_v57 = vpack.c.bf16 %v2847_v51, %v2838_v41  ;;  %v696_v59 = vpop.f32.mrb[11].mxu0  ;;  %v739_v60 = vpop.f32.mrb[11].mxu1  ;;  %v1275_v61 = vmul.f32 0.2, %v654_v47  ;;  %1548 = vmatprep.subr.bf16.mxu1 %v1421_v52  ;;  %1508 = vmatpush1.bf16.msra.mxu0 %v1412_v53  ;;  %v1418_v62 = vand.u32 %v2834_v37, %v1366_v16  ;;  %v691_v63 = vadd.f32 %v690_v4, %v2806_v43 }
 0x103   : > { %v734_v1 = vadd.f32 %v733_v44, %v2806_v43  ;;  %vm1211_vm6 = vcmp.ge.f32.partialorder %v654_v47, 0.0  ;;  %v693_v0 = vadd.f32 %v692_v32, %v2806_v43  ;;  %v2863_v5 = vadd.f32 %v735_v49, %v2806_v43 }
 0x104   : > { %v695_v6 = vadd.f32 %v694_v54, %v2813_v56  ;;  %v1305_v7 = vsel %vm1177_vm0, %v607_v23, %v1241_v36  ;;  %v1307_v8 = vsel %vm1179_vm4, %v650_v24, %v1243_v38  ;;  %1549 = vmatpush1.bf16.msra.mxu1 %v1418_v62  ;;  %vm1180_vm7 = vcmp.ge.f32.partialorder %v691_v63, 0.0 }
 0x105   : > { %v1244_v9 = vmul.f32 0.2, %v691_v63  ;;  %v1337_v10 = vsel %vm1209_vm5, %v611_v46, %v1273_v58  ;;  %vm1182_vm8 = vcmp.ge.f32.partialorder %v734_v1, 0.0  ;;  %v1246_v11 = vmul.f32 0.2, %v734_v1  ;;  %2523 = vmatmul.mubr.msk.bf16.vlgmr.msra.gmra.mrb[32].mxu0 %vm1403_vm15, %v2859_v3 }
 0x106   : > { %vm1181_vm9 = vcmp.ge.f32.partialorder %v693_v0, 0.0  ;;  %v1339_v12 = vsel %vm1211_vm6, %v654_v47, %v1275_v61  ;;  %v1245_v13 = vmul.f32 0.2, %v693_v0  ;;  %vm1212_vm10 = vcmp.ge.f32.partialorder %v695_v6, 0.0  ;;  %1621 = vmatprep.mubr.bf16.mxu0 %v2630_v2 }
 0x107   : > { %v1276_v14 = vmul.f32 0.2, %v695_v6  ;;  %v776_v15 = vpop.f32.mrb[12].mxu0  ;;  %v2872_v16 = vsel %vm1180_vm7, %v691_v63, %v1244_v9  ;;  %vm1183_vm11 = vcmp.ge.f32.partialorder %v2863_v5, 0.0  ;;  %v738_v17 = vadd.f32 %v737_v55, %v2813_v56  ;;  %2524 = vmatmul.mubr.msk.bf16.vlgmr.msra.gmra.mrb[32].mxu1 %vm1403_vm15, %v2859_v3  ;;  %v819_v19 = vpop.f32.mrb[12].mxu1 }
 0x108   : > { %v697_v18 = vadd.f32 %v696_v59, %v2813_v56  ;;  %v778_v20 = vpop.f32.mrb[13].mxu0  ;;  %v1247_v21 = vmul.f32 0.2, %v2863_v5  ;;  %v740_v23 = vadd.f32 %v739_v60, %v2813_v56  ;;  %v1369_v24 = vpack.c.bf16 %v1337_v10, %v1305_v7  ;;  %v821_v25 = vpop.f32.mrb[13].mxu1  ;;  %1662 = vmatprep.mubr.bf16.mxu1 %v2630_v2 }
 0x109   : > { %v2880_v22 = vsel %vm1212_vm10, %v695_v6, %v1276_v14  ;;  %v780_v26 = vpop.f32.mrb[14].mxu0  ;;  %v2885_v27 = vsel %vm1182_vm8, %v734_v1, %v1246_v11  ;;  %vm1214_vm12 = vcmp.ge.f32.partialorder %v738_v17, 0.0  ;;  %v1278_v29 = vmul.f32 0.2, %v738_v17  ;;  %v823_v30 = vpop.f32.mrb[14].mxu1 }
 0x10a   : > { %v1372_v28 = vpack.c.bf16 %v2880_v22, %v2872_v16  ;;  %v782_v31 = vpop.f32.mrb[15].mxu0  ;;  %v2890_v33 = vsel %vm1181_vm9, %v693_v0, %v1245_v13  ;;  %vm1213_vm13 = vcmp.ge.f32.partialorder %v697_v18, 0.0  ;;  %v1277_v34 = vmul.f32 0.2, %v697_v18  ;;  %v825_v36 = vpop.f32.mrb[15].mxu1 }
 0x10b   : > { %v1427_v35 = vand.u32 %v2834_v37, %v1369_v24  ;;  %v2893_v38 = vsel %vm1214_vm12, %v738_v17, %v1278_v29  ;;  %vm1215_vm14 = vcmp.ge.f32.partialorder %v740_v23, 0.0  ;;  %v1371_v39 = vpack.c.bf16 %v1339_v12, %v1307_v8 }
 0x10c   : > { %v1424_v42 = vand.u32 %v2834_v37, %v1368_v50  ;;  %v1374_v4 = vpack.c.bf16 %v2893_v38, %v2885_v27  ;;  %v1279_v44 = vmul.f32 0.2, %v740_v23  ;;  %v1430_v46 = vand.u32 %v2834_v37, %v1370_v57 }
 0x10d   : > { %1589 = vmatprep.subr.bf16.mxu0 %v1427_v35  ;;  %v777_v47 = vadd.f32 %v776_v15, %v2806_v43  ;;  %v1433_v48 = vand.u32 %v2834_v37, %v1371_v39  ;;  %v820_v32 = vadd.f32 %v819_v19, %v2806_v43  ;;  %v779_v40 = vadd.f32 %v778_v20, %v2806_v43 }
 0x10e   : > { %1590 = vmatpush1.bf16.msra.mxu0 %v1424_v42  ;;  %v2910_v45 = vadd.f32 %v821_v25, %v2806_v43  ;;  %v781_v50 = vadd.f32 %v780_v26, %v2813_v56  ;;  %v824_v41 = vadd.f32 %v823_v30, %v2813_v56  ;;  %v1311_v53 = vsel %vm1183_vm11, %v2863_v5, %v1247_v21 }
 0x10f   : > { %vm1184_vm0 = vcmp.ge.f32.partialorder %v777_v47, 0.0  ;;  %v1248_v49 = vmul.f32 0.2, %v777_v47  ;;  %v862_v51 = vpop.f32.mrb[16].mxu0  ;;  %v905_v52 = vpop.f32.mrb[16].mxu1  ;;  %v1341_v54 = vsel %vm1213_vm13, %v697_v18, %v1277_v34  ;;  %1630 = vmatprep.subr.bf16.mxu1 %v1433_v48  ;;  %vm1186_vm2 = vcmp.ge.f32.partialorder %v820_v32, 0.0 }
 0x110   : > { %v1250_v55 = vmul.f32 0.2, %v820_v32  ;;  %v1343_v57 = vsel %vm1215_vm14, %v740_v23, %v1279_v44  ;;  %1631 = vmatpush1.bf16.msra.mxu1 %v1430_v46  ;;  %vm1185_vm3 = vcmp.ge.f32.partialorder %v779_v40, 0.0  ;;  %v1249_v58 = vmul.f32 0.2, %v779_v40  ;;  %v864_v59 = vpop.f32.mrb[17].mxu0 }
 0x111   : > { %vm1216_vm4 = vcmp.ge.f32.partialorder %v781_v50, 0.0  ;;  %2525 = vmatmul.mubr.msk.bf16.vlgmr.msra.gmra.mrb[36].mxu0 %vm1403_vm15, %v2859_v3  ;;  %v907_v60 = vpop.f32.mrb[17].mxu1  ;;  %v2922_v61 = vsel %vm1184_vm0, %v777_v47, %v1248_v49  ;;  %vm1187_vm5 = vcmp.ge.f32.partialorder %v2910_v45, 0.0  ;;  %v1280_v62 = vmul.f32 0.2, %v781_v50  ;;  %v866_v63 = vpop.f32.mrb[18].mxu0 }
 0x112   : > { %vm1218_vm6 = vcmp.ge.f32.partialorder %v824_v41, 0.0  ;;  %v909_v1 = vpop.f32.mrb[18].mxu1  ;;  %1703 = vmatprep.mubr.bf16.mxu0 %v2630_v2  ;;  %v1251_v0 = vmul.f32 0.2, %v2910_v45  ;;  %v1282_v5 = vmul.f32 0.2, %v824_v41  ;;  %v783_v6 = vadd.f32 %v782_v31, %v2813_v56 }
 0x113   : > { %v826_v7 = vadd.f32 %v825_v36, %v2813_v56  ;;  %v868_v8 = vpop.f32.mrb[19].mxu0  ;;  %v911_v9 = vpop.f32.mrb[19].mxu1  ;;  %v2930_v10 = vsel %vm1186_vm2, %v820_v32, %v1250_v55  ;;  %v2933_v11 = vsel %vm1216_vm4, %v781_v50, %v1280_v62  ;;  %2526 = vmatmul.mubr.msk.bf16.vlgmr.msra.gmra.mrb[36].mxu1 %vm1403_vm15, %v2859_v3  ;;  %v1373_v12 = vpack.c.bf16 %v1341_v54, %v2890_v33 }
 0x114   : > { %v1375_v13 = vpack.c.bf16 %v1343_v57, %v1311_v53  ;;  %v2939_v14 = vsel %vm1185_vm3, %v779_v40, %v1249_v58  ;;  %v1376_v15 = vpack.c.bf16 %v2933_v11, %v2922_v61  ;;  %v2944_v17 = vsel %vm1218_vm6, %v824_v41, %v1282_v5  ;;  %1744 = vmatprep.mubr.bf16.mxu1 %v2630_v2 }
 0x115   : > { %v1436_v18 = vand.u32 %v2834_v37, %v1372_v28  ;;  %v1378_v19 = vpack.c.bf16 %v2944_v17, %v2930_v10  ;;  %vm1217_vm7 = vcmp.ge.f32.partialorder %v783_v6, 0.0  ;;  %v1281_v20 = vmul.f32 0.2, %v783_v6 }
 0x116   : > { %v1439_v21 = vand.u32 %v2834_v37, %v1373_v12  ;;  %vm1219_vm8 = vcmp.ge.f32.partialorder %v826_v7, 0.0  ;;  %v1283_v23 = vmul.f32 0.2, %v826_v7  ;;  %v1445_v24 = vand.u32 %v2834_v37, %v1375_v13 }
 0x117   : > { %v863_v25 = vadd.f32 %v862_v51, %v2806_v43  ;;  %v948_v26 = vpop.f32.mrb[20].mxu0  ;;  %v2956_v29 = vpop.f32.mrb[20].mxu1  ;;  %v1442_v16 = vand.u32 %v2834_v37, %v1374_v4  ;;  %v906_v22 = vadd.f32 %v905_v52, %v2806_v43  ;;  %v865_v28 = vadd.f32 %v864_v59, %v2806_v43 }
 0x118   : > { %1671 = vmatprep.subr.bf16.mxu0 %v1439_v21  ;;  %v2965_v30 = vadd.f32 %v907_v60, %v2806_v43  ;;  %v950_v31 = vpop.f32.mrb[21].mxu0  ;;  %v993_v33 = vpop.f32.mrb[21].mxu1  ;;  %1712 = vmatprep.subr.bf16.mxu1 %v1445_v24  ;;  %v867_v35 = vadd.f32 %v866_v63, %v2813_v56  ;;  %v910_v36 = vadd.f32 %v909_v1, %v2813_v56 }
 0x119   : > { %1672 = vmatpush1.bf16.msra.mxu0 %v1436_v18  ;;  %vm1188_vm9 = vcmp.ge.f32.partialorder %v863_v25, 0.0  ;;  %v1252_v34 = vmul.f32 0.2, %v863_v25  ;;  %v952_v27 = vpop.f32.mrb[22].mxu0  ;;  %v995_v38 = vpop.f32.mrb[22].mxu1  ;;  %v1315_v39 = vsel %vm1187_vm5, %v2910_v45, %v1251_v0  ;;  %v1345_v42 = vsel %vm1217_vm7, %v783_v6, %v1281_v20  ;;  %1713 = vmatpush1.bf16.msra.mxu1 %v1442_v16 }
 0x11a   : > { %vm1190_vm10 = vcmp.ge.f32.partialorder %v906_v22, 0.0  ;;  %v1254_v4 = vmul.f32 0.2, %v906_v22  ;;  %v1347_v44 = vsel %vm1219_vm8, %v826_v7, %v1283_v23  ;;  %vm1189_vm11 = vcmp.ge.f32.partialorder %v865_v28, 0.0  ;;  %v2974_v47 = vpop.f32.mrb[23].mxu0  ;;  %v2976_v48 = vpop.f32.mrb[23].mxu1 }
 0x11b   : > { %v1253_v46 = vmul.f32 0.2, %v865_v28  ;;  %vm1220_vm12 = vcmp.ge.f32.partialorder %v867_v35, 0.0  ;;  %v2979_v32 = vsel %vm1188_vm9, %v863_v25, %v1252_v34  ;;  %vm1191_vm13 = vcmp.ge.f32.partialorder %v2965_v30, 0.0 }
 0x11c   : > { %v1284_v40 = vmul.f32 0.2, %v867_v35  ;;  %vm1222_vm14 = vcmp.ge.f32.partialorder %v910_v36, 0.0  ;;  %2527 = vmatmul.mubr.msk.bf16.vlgmr.msra.gmra.mrb[40].mxu0 %vm1403_vm15, %v2859_v3  ;;  %v1255_v45 = vmul.f32 0.2, %v2965_v30  ;;  %v869_v50 = vadd.f32 %v868_v8, %v2813_v56  ;;  %2528 = vmatmul.mubr.msk.bf16.vlgmr.msra.gmra.mrb[40].mxu1 %vm1403_vm15, %v2859_v3 }
 0x11d   : > { %v1286_v49 = vmul.f32 0.2, %v910_v36  ;;  %v912_v41 = vadd.f32 %v911_v9, %v2813_v56  ;;  %1785 = vmatprep.mubr.bf16.mxu0 %v2630_v2  ;;  %v2991_v51 = vsel %vm1190_vm10, %v906_v22, %v1254_v4  ;;  %v1377_v53 = vpack.c.bf16 %v1345_v42, %v2939_v14  ;;  %1826 = vmatprep.mubr.bf16.mxu1 %v2630_v2 }
 0x11e   : > { %v2993_v52 = vsel %vm1220_vm12, %v867_v35, %v1284_v40  ;;  %v1379_v54 = vpack.c.bf16 %v1347_v44, %v1315_v39  ;;  %v2998_v55 = vsel %vm1189_vm11, %v865_v28, %v1253_v46  ;;  %v1448_v59 = vand.u32 %v2834_v37, %v1376_v15 }
 0x11f   : > { %v1380_v57 = vpack.c.bf16 %v2993_v52, %v2979_v32  ;;  %v3002_v58 = vsel %vm1222_vm14, %v910_v36, %v1286_v49  ;;  %v3005_v60 = vpop.f32.mrb[24].mxu0  ;;  %v3007_v61 = vpop.f32.mrb[24].mxu1  ;;  %v1285_v63 = vmul.f32 0.2, %v869_v50  ;;  %v1287_v1 = vmul.f32 0.2, %v912_v41 }
 0x120   : > { %v1382_v62 = vpack.c.bf16 %v3002_v58, %v2991_v51  ;;  %v1451_v0 = vand.u32 %v2834_v37, %v1377_v53  ;;  %v3012_v5 = vpop.f32.mrb[25].mxu0  ;;  %v3014_v6 = vpop.f32.mrb[25].mxu1  ;;  %vm1221_vm0 = vcmp.ge.f32.partialorder %v869_v50, 0.0  ;;  %vm1223_vm2 = vcmp.ge.f32.partialorder %v912_v41, 0.0 }
 0x121   : > { %v1457_v7 = vand.u32 %v2834_v37, %v1379_v54  ;;  %v949_v8 = vadd.f32 %v948_v26, %v2806_v43  ;;  %v3018_v9 = vpop.f32.mrb[26].mxu0  ;;  %v3020_v11 = vpop.f32.mrb[26].mxu1  ;;  %v1454_v12 = vand.u32 %v2834_v37, %v1378_v19  ;;  %v992_v13 = vadd.f32 %v2956_v29, %v2806_v43 }
 0x122   : > { %1753 = vmatprep.subr.bf16.mxu0 %v1451_v0  ;;  %v951_v14 = vadd.f32 %v950_v31, %v2806_v43  ;;  %v3030_v15 = vadd.f32 %v993_v33, %v2806_v43  ;;  %v3032_v18 = vpop.f32.mrb[27].mxu0  ;;  %v3034_v20 = vpop.f32.mrb[27].mxu1  ;;  %v953_v10 = vadd.f32 %v952_v27, %v2813_v56  ;;  %v996_v17 = vadd.f32 %v995_v38, %v2813_v56 }
 0x123   : > { %1794 = vmatprep.subr.bf16.mxu1 %v1457_v7  ;;  %1754 = vmatpush1.bf16.msra.mxu0 %v1448_v59  ;;  %vm1192_vm3 = vcmp.ge.f32.partialorder %v949_v8, 0.0  ;;  %v1256_v21 = vmul.f32 0.2, %v949_v8  ;;  %v1319_v19 = vsel %vm1191_vm13, %v2965_v30, %v1255_v45  ;;  %v1349_v23 = vsel %vm1221_vm0, %v869_v50, %v1285_v63 }
 0x124   : > { %v1351_v24 = vsel %vm1223_vm2, %v912_v41, %v1287_v1  ;;  %1795 = vmatpush1.bf16.msra.mxu1 %v1454_v12  ;;  %v1258_v25 = vmul.f32 0.2, %v992_v13  ;;  %vm1194_vm4 = vcmp.ge.f32.partialorder %v992_v13, 0.0  ;;  %vm1193_vm5 = vcmp.ge.f32.partialorder %v951_v14, 0.0 }
 0x125   : > { %v1257_v26 = vmul.f32 0.2, %v951_v14  ;;  %vm1224_vm6 = vcmp.ge.f32.partialorder %v953_v10, 0.0  ;;  %v3043_v29 = vsel %vm1192_vm3, %v949_v8, %v1256_v21  ;;  %vm1195_vm7 = vcmp.ge.f32.partialorder %v3030_v15, 0.0 }
 0x126   : > { %v1288_v16 = vmul.f32 0.2, %v953_v10  ;;  %vm1226_vm8 = vcmp.ge.f32.partialorder %v996_v17, 0.0  ;;  %2529 = vmatmul.mubr.msk.bf16.vlgmr.msra.gmra.mrb[44].mxu0 %vm1403_vm15, %v2859_v3  ;;  %v1259_v22 = vmul.f32 0.2, %v3030_v15  ;;  %v955_v30 = vadd.f32 %v2974_v47, %v2813_v56 }
 0x127   : > { %v1290_v28 = vmul.f32 0.2, %v996_v17  ;;  %v998_v31 = vadd.f32 %v2976_v48, %v2813_v56  ;;  %2530 = vmatmul.mubr.msk.bf16.vlgmr.msra.gmra.mrb[44].mxu1 %vm1403_vm15, %v2859_v3  ;;  %1867 = vmatprep.mubr.bf16.mxu0 %v2630_v2  ;;  %v3056_v33 = vpop.f32.mrb[28].mxu0  ;;  %v3058_v34 = vpop.f32.mrb[28].mxu1  ;;  %v3061_v35 = vsel %vm1194_vm4, %v992_v13, %v1258_v25  ;;  %v1381_v27 = vpack.c.bf16 %v1349_v23, %v2998_v55 }
 0x128   : > { %v1352_v36 = vsel %vm1224_vm6, %v953_v10, %v1288_v16  ;;  %v1383_v38 = vpack.c.bf16 %v1351_v24, %v1319_v19  ;;  %1908 = vmatprep.mubr.bf16.mxu1 %v2630_v2  ;;  %v3065_v39 = vpop.f32.mrb[29].mxu0  ;;  %v3067_v42 = vpop.f32.mrb[29].mxu1  ;;  %v1321_v4 = vsel %vm1193_vm5, %v951_v14, %v1257_v26  ;;  %v1460_v47 = vand.u32 %v2834_v37, %v1380_v57 }
 0x129   : > { %v1384_v44 = vpack.c.bf16 %v1352_v36, %v3043_v29  ;;  %v3072_v46 = vsel %vm1226_vm8, %v996_v17, %v1290_v28  ;;  %v3078_v48 = vpop.f32.mrb[30].mxu0  ;;  %v3080_v40 = vpop.f32.mrb[30].mxu1  ;;  %v1289_v49 = vmul.f32 0.2, %v955_v30  ;;  %v1291_v50 = vmul.f32 0.2, %v998_v31 }
 0x12a   : > { %v1386_v45 = vpack.c.bf16 %v3072_v46, %v3061_v35  ;;  %v1463_v41 = vand.u32 %v2834_v37, %v1381_v27  ;;  %v3085_v53 = vpop.f32.mrb[31].mxu0  ;;  %v3087_v54 = vpop.f32.mrb[31].mxu1  ;;  %vm1225_vm9 = vcmp.ge.f32.partialorder %v955_v30, 0.0  ;;  %vm1227_vm10 = vcmp.ge.f32.partialorder %v998_v31, 0.0 }
 0x12b   : > { %v1469_v32 = vand.u32 %v2834_v37, %v1383_v38  ;;  %v1035_v52 = vadd.f32 %v3005_v60, %v2806_v43  ;;  %v1466_v55 = vand.u32 %v2834_v37, %v1382_v62  ;;  %v1078_v57 = vadd.f32 %v3007_v61, %v2806_v43 }
 0x12c   : > { %1835 = vmatprep.subr.bf16.mxu0 %v1463_v41  ;;  %v1037_v59 = vadd.f32 %v3012_v5, %v2806_v43  ;;  %v1080_v63 = vadd.f32 %v3014_v6, %v2806_v43  ;;  %v1039_v60 = vadd.f32 %v3018_v9, %v2813_v56  ;;  %v1082_v51 = vadd.f32 %v3020_v11, %v2813_v56 }
 0x12d   : > { %1876 = vmatprep.subr.bf16.mxu1 %v1469_v32  ;;  %1836 = vmatpush1.bf16.msra.mxu0 %v1460_v47  ;;  %vm1196_vm11 = vcmp.ge.f32.partialorder %v1035_v52, 0.0  ;;  %v1260_v1 = vmul.f32 0.2, %v1035_v52  ;;  %v1323_v58 = vsel %vm1195_vm7, %v3030_v15, %v1259_v22  ;;  %v1353_v61 = vsel %vm1225_vm9, %v955_v30, %v1289_v49 }
 0x12e   : > { %v1355_v62 = vsel %vm1227_vm10, %v998_v31, %v1291_v50  ;;  %1877 = vmatpush1.bf16.msra.mxu1 %v1466_v55  ;;  %v1262_v0 = vmul.f32 0.2, %v1078_v57  ;;  %vm1198_vm12 = vcmp.ge.f32.partialorder %v1078_v57, 0.0  ;;  %vm1197_vm13 = vcmp.ge.f32.partialorder %v1037_v59, 0.0 }
 0x12f   : > { %v1261_v5 = vmul.f32 0.2, %v1037_v59  ;;  %vm1228_vm14 = vcmp.ge.f32.partialorder %v1039_v60, 0.0  ;;  %v3111_v6 = vsel %vm1196_vm11, %v1035_v52, %v1260_v1  ;;  %vm1199_vm0 = vcmp.ge.f32.partialorder %v1080_v63, 0.0 }
 0x130   : > { %v1292_v7 = vmul.f32 0.2, %v1039_v60  ;;  %vm1230_vm2 = vcmp.ge.f32.partialorder %v1082_v51, 0.0  ;;  %2531 = vmatmul.mubr.msk.bf16.vlgmr.msra.gmra.mrb[48].mxu0 %vm1403_vm15, %v2859_v3  ;;  %v1263_v8 = vmul.f32 0.2, %v1080_v63  ;;  %v1041_v11 = vadd.f32 %v3032_v18, %v2813_v56 }
 0x131   : > { %v1294_v9 = vmul.f32 0.2, %v1082_v51  ;;  %v1084_v12 = vadd.f32 %v3034_v20, %v2813_v56  ;;  %2532 = vmatmul.mubr.msk.bf16.vlgmr.msra.gmra.mrb[48].mxu1 %vm1403_vm15, %v2859_v3  ;;  %1949 = vmatprep.mubr.bf16.mxu0 %v2630_v2  ;;  %v3122_v13 = vsel %vm1198_vm12, %v1078_v57, %v1262_v0  ;;  %v1385_v15 = vpack.c.bf16 %v1353_v61, %v1321_v4 }
 0x132   : > { %v3124_v14 = vsel %vm1228_vm14, %v1039_v60, %v1292_v7  ;;  %v1387_v21 = vpack.c.bf16 %v1355_v62, %v1323_v58  ;;  %1990 = vmatprep.mubr.bf16.mxu1 %v2630_v2  ;;  %v1325_v10 = vsel %vm1197_vm13, %v1037_v59, %v1261_v5  ;;  %v1472_v20 = vand.u32 %v2834_v37, %v1384_v44 }
 0x133   : > { %v1388_v18 = vpack.c.bf16 %v3124_v14, %v3111_v6  ;;  %v1358_v17 = vsel %vm1230_vm2, %v1082_v51, %v1294_v9  ;;  %v1293_v23 = vmul.f32 0.2, %v1041_v11  ;;  %v1295_v24 = vmul.f32 0.2, %v1084_v12  ;;  %v3185_v9 = vpop.permute.xlu1 %1400 }
 0x134   : > { %v1390_v19 = vpack.c.bf16 %v1358_v17, %v3122_v13  ;;  %v1475_v25 = vand.u32 %v2834_v37, %v1385_v15  ;;  %vm1229_vm3 = vcmp.ge.f32.partialorder %v1041_v11, 0.0  ;;  %vm1231_vm4 = vcmp.ge.f32.partialorder %v1084_v12, 0.0 }
 0x135   : > { %v1481_v26 = vand.u32 %v2834_v37, %v1387_v21  ;;  %v1121_v29 = vadd.f32 %v3056_v33, %v2806_v43  ;;  %v1478_v16 = vand.u32 %v2834_v37, %v1386_v45  ;;  %v1164_v22 = vadd.f32 %v3058_v34, %v2806_v43 }
 0x136   : > { %1917 = vmatprep.subr.bf16.mxu0 %v1475_v25  ;;  %v1123_v28 = vadd.f32 %v3065_v39, %v2806_v43  ;;  %v1166_v30 = vadd.f32 %v3067_v42, %v2806_v43  ;;  %v1125_v35 = vadd.f32 %v3078_v48, %v2813_v56  ;;  %v1168_v33 = vadd.f32 %v3080_v40, %v2813_v56 }
 0x137   : > { %1958 = vmatprep.subr.bf16.mxu1 %v1481_v26  ;;  %1918 = vmatpush1.bf16.msra.mxu0 %v1472_v20  ;;  %vm1200_vm5 = vcmp.ge.f32.partialorder %v1121_v29, 0.0  ;;  %v1264_v31 = vmul.f32 0.2, %v1121_v29  ;;  %v1327_v36 = vsel %vm1199_vm0, %v1080_v63, %v1263_v8  ;;  %v1357_v34 = vsel %vm1229_vm3, %v1041_v11, %v1293_v23 }
 0x138   : > { %v1359_v27 = vsel %vm1231_vm4, %v1084_v12, %v1295_v24  ;;  %1959 = vmatpush1.bf16.msra.mxu1 %v1478_v16  ;;  %v1266_v38 = vmul.f32 0.2, %v1164_v22  ;;  %vm1202_vm6 = vcmp.ge.f32.partialorder %v1164_v22, 0.0  ;;  %vm1201_vm7 = vcmp.ge.f32.partialorder %v1123_v28, 0.0 }
 0x139   : > { %v1265_v43 = vmul.f32 0.2, %v1123_v28  ;;  %vm1232_vm8 = vcmp.ge.f32.partialorder %v1125_v35, 0.0  ;;  %v1328_v39 = vsel %vm1200_vm5, %v1121_v29, %v1264_v31  ;;  %vm1203_vm9 = vcmp.ge.f32.partialorder %v1166_v30, 0.0 }
 0x13a   : > { %v1296_v42 = vmul.f32 0.2, %v1125_v35  ;;  %vm1234_vm10 = vcmp.ge.f32.partialorder %v1168_v33, 0.0  ;;  %2533 = vmatmul.mubr.msk.bf16.vlgmr.msra.gmra.mrb[52].mxu0 %vm1403_vm15, %v2859_v3  ;;  %v1267_v4 = vmul.f32 0.2, %v1166_v30  ;;  %v1127_v46 = vadd.f32 %v3085_v53, %v2813_v56 }
 0x13b   : > { %v1298_v44 = vmul.f32 0.2, %v1168_v33  ;;  %v1170_v47 = vadd.f32 %v3087_v54, %v2813_v56  ;;  %2534 = vmatmul.mubr.msk.bf16.vlgmr.msra.gmra.mrb[52].mxu1 %vm1403_vm15, %v2859_v3  ;;  %2031 = vmatprep.mubr.bf16.mxu0 %v2630_v2  ;;  %v1330_v48 = vsel %vm1202_vm6, %v1164_v22, %v1266_v38  ;;  %v1389_v45 = vpack.c.bf16 %v1357_v34, %v1325_v10 }
 0x13c   : > { %v1360_v40 = vsel %vm1232_vm8, %v1125_v35, %v1296_v42  ;;  %v1391_v49 = vpack.c.bf16 %v1359_v27, %v1327_v36  ;;  %2072 = vmatprep.mubr.bf16.mxu1 %v2630_v2  ;;  %vm1233_vm11 = vcmp.ge.f32.partialorder %v1127_v46, 0.0  ;;  %v1297_v32 = vmul.f32 0.2, %v1127_v46 }
 0x13d   : > { %v1392_v50 = vpack.c.bf16 %v1360_v40, %v1328_v39  ;;  %v1362_v41 = vsel %vm1234_vm10, %v1168_v33, %v1298_v44  ;;  %vm1235_vm12 = vcmp.ge.f32.partialorder %v1170_v47, 0.0  ;;  %v1299_v53 = vmul.f32 0.2, %v1170_v47 }
 0x13e   : > { %v1394_v52 = vpack.c.bf16 %v1362_v41, %v1330_v48  ;;  %v1487_v56 = vand.u32 %v2834_v37, %v1389_v45  ;;  %v1329_v54 = vsel %vm1201_vm7, %v1123_v28, %v1265_v43  ;;  %v1361_v55 = vsel %vm1233_vm11, %v1127_v46, %v1297_v32 }
 0x13f   : > { %v1493_v57 = vand.u32 %v2834_v37, %v1391_v49  ;;  %v1484_v59 = vand.u32 %v2834_v37, %v1388_v18  ;;  %v1331_v63 = vsel %vm1203_vm9, %v1166_v30, %v1267_v4  ;;  %v1363_v1 = vsel %vm1235_vm12, %v1170_v47, %v1299_v53  ;;  %v2386_v30 = vld [vmem:[%s3210_s14] sm:$0xff] }
 0x140   : > { %1999 = vmatprep.subr.bf16.mxu0 %v1487_v56  ;;  %v1490_v60 = vand.u32 %v2834_v37, %v1390_v19  ;;  %v1393_v51 = vpack.c.bf16 %v1361_v55, %v1329_v54  ;;  %v1395_v58 = vpack.c.bf16 %v1363_v1, %v1331_v63  ;;  %v1496_v0 = vand.u32 %v2834_v37, %v1392_v50  ;;  %v2389_v50 = vld [vmem:[%s3210_s14 + $0x8] sm:$0xff] }
 0x141   : > { %2040 = vmatprep.subr.bf16.mxu1 %v1493_v57  ;;  %2000 = vmatpush1.bf16.msra.mxu0 %v1484_v59  ;;  %v1502_v5 = vand.u32 %v2834_v37, %v1394_v52  ;;  %v2631_v6 = vmov 1983009808   ;;  %v2232_v8 = vlaneseq  ;;  %vm2372_vm13 = vsmask.f32 1280 }
 0x142   : > { %2041 = vmatpush1.bf16.msra.mxu1 %v1490_v60  ;;  %v1499_v61 = vand.u32 %v2834_v37, %v1393_v51  ;;  %v1505_v62 = vand.u32 %v2834_v37, %v1395_v58  ;;  %v2230_v7 = vunpack.c.l.s4 %v2631_v6  ;;  %vm2374_vm14 = vcmask 1043458   ;;  %vm3181_vm2 = vmand %vm385_vm1, %vm2372_vm13  ;;  %v2392_v6 = vld [vmem:[%s3210_s14 + $0x10] sm:$0xff] }
 0x143   : > { %vm2375_vm0 = vsmask.f32 3328  ;;  %v2233_v11 = vshrl.u32 %v2232_v8, 7  ;;  %vm2379_vm4 = vsmask.f32 5376  ;;  %vm2382_vm6 = vcmask 1047558  }
 0x144   : > { %2535 = vmatmul.mubr.msk.bf16.vlgmr.msra.gmra.mrb[56].mxu0 %vm1403_vm15, %v2859_v3  ;;  %2081 = vmatprep.subr.bf16.mxu0 %v1499_v61  ;;  %vm3187_vm3 = vmand %vm2374_vm14, %vm2375_vm0  ;;  %vm2383_vm7 = vsmask.f32 7424 }
 0x145   : > { %2536 = vmatmul.mubr.msk.bf16.vlgmr.msra.gmra.mrb[56].mxu1 %vm1403_vm15, %v2859_v3  ;;  %2122 = vmatprep.subr.bf16.mxu1 %v1505_v62  ;;  %vm2377_vm1 = vmor %vm3187_vm3, %vm3181_vm2 }
 0x146   : > { %2082 = vmatpush1.bf16.msra.mxu0 %v1496_v0  ;;  %2123 = vmatpush1.bf16.msra.mxu1 %v1502_v5  ;;  %vm2384_vm9 = vmand %vm2382_vm6, %vm2383_vm7 }
 0x147   : > { %2113 = vmatprep.mubr.bf16.mxu0 %v2630_v2  ;;  %2154 = vmatprep.mubr.bf16.mxu1 %v2630_v2  ;;  %v2231_v2 = vunpack.c.0.s8 %v2230_v7 }
 0x149   : > { %v3196_v10 = vsub.s32 %v2231_v2, %v2233_v11 }
 0x14c   : > { %2537 = vmatmul.mubr.msk.bf16.vlgmr.msra.gmra.mrb[60].mxu0 %vm1403_vm15, %v2859_v3 }
 0x14d   : > { %2538 = vmatmul.mubr.msk.bf16.vlgmr.msra.gmra.mrb[60].mxu1 %vm1403_vm15, %v2859_v3  ;;  %vm2378_vm15 = vcmask 1045508  }
 0x14e   : > { %vm2380_vm5 = vmand %vm2378_vm15, %vm2379_vm4 }
 0x14f   : > { %vm2381_vm8 = vmor %vm2380_vm5, %vm2377_vm1 }
 0x150   : > { %vm3214_vm10 = vmor %vm2384_vm9, %vm2381_vm8 }
 0x1d8   : > { %v1541_v3 = vpop.f32.mrb[32].mxu0 }
 0x1d9   : > { %v1543_v13 = vpop.f32.mrb[33].mxu0  ;;  %v1542_v14 = vadd.f32 %v1541_v3, %v3185_v9 }
 0x1da   : > { %v1582_v15 = vpop.f32.mrb[32].mxu1  ;;  %v1545_v21 = vpop.f32.mrb[34].mxu0  ;;  %v1544_v18 = vadd.f32 %v1543_v13, %v3185_v9 }
 0x1db   : > { %v1584_v17 = vpop.f32.mrb[33].mxu1  ;;  %v1546_v20 = vpop.f32.mrb[35].mxu0  ;;  %v1583_v19 = vadd.f32 %v1582_v15, %v3185_v9 }
 0x1dc   : > { %v1586_v23 = vpop.f32.mrb[34].mxu1  ;;  %v1585_v24 = vadd.f32 %v1584_v17, %v3185_v9  ;;  %v2539_v25 = vpack.c.bf16 %v1544_v18, %v1542_v14 }
 0x1dd   : > { %v1587_v26 = vpop.f32.mrb[35].mxu1 }
 0x1de   : > { %v2540_v29 = vpack.c.bf16 %v1585_v24, %v1583_v19  ;;  %v2235_v16 = vrot.slane %v2539_v25, %v3196_v10  ;;  %v2395_v26 = vld [vmem:[%s3210_s14 + $0x18] sm:$0xff] }
 0x1e0   : > { %v2242_v22 = vrot.slane %v2540_v29, %v3196_v10 }
 0x1e2   : > { %v2243_v31 = vcombine.low %v2235_v16, %v2242_v22 }
 0x1e4   : > { %v1623_v35 = vpop.f32.mrb[36].mxu0  ;;  %v2387_v34 = vsel %vm3214_vm10, %v2243_v31, %v2386_v30 }
 0x1e5   : > { %v1624_v33 = vadd.f32 %v1623_v35, %v3185_v9  ;;  %v1625_v36 = vpop.f32.mrb[37].mxu0  ;;  %2388 = vst [vmem:[%s3210_s14] sm:$0xff] %v2387_v34 }
 0x1e6   : > { %v1626_v27 = vadd.f32 %v1625_v36, %v3185_v9  ;;  %v1627_v38 = vpop.f32.mrb[38].mxu0  ;;  %v1664_v43 = vpop.f32.mrb[36].mxu1 }
 0x1e7   : > { %v1628_v39 = vpop.f32.mrb[39].mxu0  ;;  %v1665_v42 = vadd.f32 %v1664_v43, %v3185_v9  ;;  %v1666_v44 = vpop.f32.mrb[37].mxu1 }
 0x1e8   : > { %v2541_v4 = vpack.c.bf16 %v1626_v27, %v1624_v33  ;;  %v1667_v46 = vadd.f32 %v1666_v44, %v3185_v9  ;;  %v1668_v47 = vpop.f32.mrb[38].mxu1 }
 0x1e9   : > { %v1669_v48 = vpop.f32.mrb[39].mxu1 }
 0x1ea   : > { %v2252_v40 = vrot.slane %v2541_v4, %v3196_v10  ;;  %v2542_v45 = vpack.c.bf16 %v1667_v46, %v1665_v42  ;;  %v2398_v48 = vld [vmem:[%s3210_s14 + $0x20] sm:$0xff] }
 0x1ec   : > { %v2259_v49 = vrot.slane %v2542_v45, %v3196_v10 }
 0x1ee   : > { %v2260_v41 = vcombine.low %v2252_v40, %v2259_v49 }
 0x1ef   : > { %v1705_v32 = vpop.f32.mrb[40].mxu0  ;;  %v1746_v53 = vpop.f32.mrb[40].mxu1 }
 0x1f0   : > { %v1706_v52 = vadd.f32 %v1705_v32, %v3185_v9  ;;  %v1707_v56 = vpop.f32.mrb[41].mxu0  ;;  %v2390_v54 = vsel %vm3214_vm10, %v2260_v41, %v2389_v50  ;;  %v1747_v55 = vadd.f32 %v1746_v53, %v3185_v9  ;;  %v1748_v59 = vpop.f32.mrb[41].mxu1 }
 0x1f1   : > { %v1708_v57 = vadd.f32 %v1707_v56, %v3185_v9  ;;  %v1709_v63 = vpop.f32.mrb[42].mxu0  ;;  %2391 = vst [vmem:[%s3210_s14 + $0x8] sm:$0xff] %v2390_v54  ;;  %v1749_v1 = vadd.f32 %v1748_v59, %v3185_v9  ;;  %v1750_v60 = vpop.f32.mrb[42].mxu1 }
 0x1f2   : > { %v1710_v51 = vpop.f32.mrb[43].mxu0  ;;  %v1751_v61 = vpop.f32.mrb[43].mxu1 }
 0x1f3   : > { %v2543_v58 = vpack.c.bf16 %v1708_v57, %v1706_v52  ;;  %v2544_v62 = vpack.c.bf16 %v1749_v1, %v1747_v55  ;;  %v2401_v61 = vld [vmem:[%s3210_s14 + $0x28] sm:$0xff] }
 0x1f5   : > { %v2269_v0 = vrot.slane %v2543_v58, %v3196_v10  ;;  %v2276_v5 = vrot.slane %v2544_v62, %v3196_v10 }
 0x1f7   : > { %v2277_v7 = vcombine.low %v2269_v0, %v2276_v5 }
 0x1f9   : > { %v1787_v8 = vpop.f32.mrb[44].mxu0  ;;  %v2393_v37 = vsel %vm3214_vm10, %v2277_v7, %v2392_v6 }
 0x1fa   : > { %v1788_v2 = vadd.f32 %v1787_v8, %v3185_v9  ;;  %v1828_v11 = vpop.f32.mrb[44].mxu1  ;;  %v1789_v12 = vpop.f32.mrb[45].mxu0  ;;  %2394 = vst [vmem:[%s3210_s14 + $0x10] sm:$0xff] %v2393_v37 }
 0x1fb   : > { %v1829_v3 = vadd.f32 %v1828_v11, %v3185_v9  ;;  %v1790_v13 = vadd.f32 %v1789_v12, %v3185_v9  ;;  %v1830_v14 = vpop.f32.mrb[45].mxu1  ;;  %v1791_v15 = vpop.f32.mrb[46].mxu0 }
 0x1fc   : > { %v1831_v21 = vadd.f32 %v1830_v14, %v3185_v9  ;;  %v1832_v18 = vpop.f32.mrb[46].mxu1  ;;  %v1792_v17 = vpop.f32.mrb[47].mxu0 }
 0x1fd   : > { %v2545_v20 = vpack.c.bf16 %v1790_v13, %v1788_v2  ;;  %v1833_v19 = vpop.f32.mrb[47].mxu1 }
 0x1fe   : > { %v2546_v23 = vpack.c.bf16 %v1831_v21, %v1829_v3  ;;  %v2404_v19 = vld [vmem:[%s3210_s14 + $0x30] sm:$0xff] }
 0x1ff   : > { %v2286_v24 = vrot.slane %v2545_v20, %v3196_v10 }
 0x200   : > { %v2293_v25 = vrot.slane %v2546_v23, %v3196_v10 }
 0x202   : > { %v2294_v29 = vcombine.low %v2286_v24, %v2293_v25 }
 0x203   : > { %v1869_v16 = vpop.f32.mrb[48].mxu0 }
 0x204   : > { %v2396_v22 = vsel %vm3214_vm10, %v2294_v29, %v2395_v26  ;;  %v1870_v30 = vadd.f32 %v1869_v16, %v3185_v9  ;;  %v1910_v31 = vpop.f32.mrb[48].mxu1  ;;  %v1871_v35 = vpop.f32.mrb[49].mxu0 }
 0x205   : > { %2397 = vst [vmem:[%s3210_s14 + $0x18] sm:$0xff] %v2396_v22  ;;  %v1911_v33 = vadd.f32 %v1910_v31, %v3185_v9  ;;  %v1872_v36 = vadd.f32 %v1871_v35, %v3185_v9  ;;  %v1912_v34 = vpop.f32.mrb[49].mxu1  ;;  %v1873_v27 = vpop.f32.mrb[50].mxu0 }
 0x206   : > { %v1913_v38 = vadd.f32 %v1912_v34, %v3185_v9  ;;  %v1914_v43 = vpop.f32.mrb[50].mxu1  ;;  %v1874_v39 = vpop.f32.mrb[51].mxu0 }
 0x207   : > { %v2547_v42 = vpack.c.bf16 %v1872_v36, %v1870_v30  ;;  %v1915_v4 = vpop.f32.mrb[51].mxu1 }
 0x208   : > { %v2548_v44 = vpack.c.bf16 %v1913_v38, %v1911_v33  ;;  %v2407_v4 = vld [vmem:[%s3210_s14 + $0x38] sm:$0xff] }
 0x209   : > { %v2303_v46 = vrot.slane %v2547_v42, %v3196_v10 }
 0x20a   : > { %v2310_v47 = vrot.slane %v2548_v44, %v3196_v10 }
 0x20c   : > { %v2311_v40 = vcombine.low %v2303_v46, %v2310_v47 }
 0x20d   : > { %v1951_v45 = vpop.f32.mrb[52].mxu0 }
 0x20e   : > { %v2399_v49 = vsel %vm3214_vm10, %v2311_v40, %v2398_v48  ;;  %v1952_v50 = vadd.f32 %v1951_v45, %v3185_v9  ;;  %v1992_v41 = vpop.f32.mrb[52].mxu1  ;;  %v1953_v32 = vpop.f32.mrb[53].mxu0 }
 0x20f   : > { %2400 = vst [vmem:[%s3210_s14 + $0x20] sm:$0xff] %v2399_v49  ;;  %v1993_v52 = vadd.f32 %v1992_v41, %v3185_v9  ;;  %v1954_v53 = vadd.f32 %v1953_v32, %v3185_v9  ;;  %v1994_v56 = vpop.f32.mrb[53].mxu1  ;;  %v1955_v54 = vpop.f32.mrb[54].mxu0 }
 0x210   : > { %v1995_v55 = vadd.f32 %v1994_v56, %v3185_v9  ;;  %v1996_v57 = vpop.f32.mrb[54].mxu1  ;;  %v1956_v59 = vpop.f32.mrb[55].mxu0 }
 0x211   : > { %v2549_v63 = vpack.c.bf16 %v1954_v53, %v1952_v50  ;;  %v1997_v1 = vpop.f32.mrb[55].mxu1 }
 0x212   : > { %v2550_v60 = vpack.c.bf16 %v1995_v55, %v1993_v52 }
 0x213   : > { %v2320_v51 = vrot.slane %v2549_v63, %v3196_v10 }
 0x214   : > { %v2327_v58 = vrot.slane %v2550_v60, %v3196_v10 }
 0x216   : > { %v2328_v62 = vcombine.low %v2320_v51, %v2327_v58 }
 0x217   : > { %v2033_v0 = vpop.f32.mrb[56].mxu0 }
 0x218   : > { %v2402_v5 = vsel %vm3214_vm10, %v2328_v62, %v2401_v61  ;;  %v2034_v6 = vadd.f32 %v2033_v0, %v3185_v9  ;;  %v2074_v7 = vpop.f32.mrb[56].mxu1  ;;  %v2035_v8 = vpop.f32.mrb[57].mxu0 }
 0x219   : > { %2403 = vst [vmem:[%s3210_s14 + $0x28] sm:$0xff] %v2402_v5  ;;  %v2075_v37 = vadd.f32 %v2074_v7, %v3185_v9  ;;  %v2036_v2 = vadd.f32 %v2035_v8, %v3185_v9  ;;  %v2076_v11 = vpop.f32.mrb[57].mxu1  ;;  %v2037_v12 = vpop.f32.mrb[58].mxu0 }
 0x21a   : > { %v2077_v3 = vadd.f32 %v2076_v11, %v3185_v9  ;;  %v2078_v13 = vpop.f32.mrb[58].mxu1  ;;  %v2038_v14 = vpop.f32.mrb[59].mxu0 }
 0x21b   : > { %v2551_v15 = vpack.c.bf16 %v2036_v2, %v2034_v6  ;;  %v2079_v21 = vpop.f32.mrb[59].mxu1 }
 0x21c   : > { %v2552_v18 = vpack.c.bf16 %v2077_v3, %v2075_v37 }
 0x21d   : > { %v2337_v17 = vrot.slane %v2551_v15, %v3196_v10 }
 0x21e   : > { %v2344_v20 = vrot.slane %v2552_v18, %v3196_v10 }
 0x21f   : > { %v2115_v23 = vpop.f32.mrb[60].mxu0 }
 0x220   : > { %v2345_v24 = vcombine.low %v2337_v17, %v2344_v20  ;;  %v2116_v25 = vadd.f32 %v2115_v23, %v3185_v9  ;;  %v2156_v26 = vpop.f32.mrb[60].mxu1  ;;  %v2117_v29 = vpop.f32.mrb[61].mxu0 }
 0x221   : > { %v2157_v16 = vadd.f32 %v2156_v26, %v3185_v9  ;;  %v2118_v22 = vadd.f32 %v2117_v29, %v3185_v9  ;;  %v2158_v30 = vpop.f32.mrb[61].mxu1  ;;  %v2119_v31 = vpop.f32.mrb[62].mxu0 }
 0x222   : > { %v2405_v35 = vsel %vm3214_vm10, %v2345_v24, %v2404_v19  ;;  %v2159_v33 = vadd.f32 %v2158_v30, %v3185_v9  ;;  %v2160_v36 = vpop.f32.mrb[62].mxu1  ;;  %v2120_v34 = vpop.f32.mrb[63].mxu0 }
 0x223   : > { %2406 = vst [vmem:[%s3210_s14 + $0x30] sm:$0xff] %v2405_v35  ;;  %v2553_v27 = vpack.c.bf16 %v2118_v22, %v2116_v25  ;;  %v2161_v38 = vpop.f32.mrb[63].mxu1 }
 0x224   : > { %v2554_v43 = vpack.c.bf16 %v2159_v33, %v2157_v16 }
 0x225   : > { %v2354_v39 = vrot.slane %v2553_v27, %v3196_v10 }
 0x226   : > { %v2361_v42 = vrot.slane %v2554_v43, %v3196_v10 }
 0x228   : > { %v2362_v44 = vcombine.low %v2354_v39, %v2361_v42 }
 0x22a   : > { %v2408_v46 = vsel %vm3214_vm10, %v2362_v44, %v2407_v4 }
 0x22b   : > { %2409 = vst [vmem:[%s3210_s14 + $0x38] sm:$0xff] %v2408_v46 }
 0x22c PF: > { %s15_s20 = sadd.s32 1, %s2627_s20   ;;  %s3313_s18 = smov %s2623_s19 }
 0x22d   : > { %p12_p5 = scmp.ge.s32.totalorder %s15_s20, 4   ;;  %s3314_s19 = smov %s3316_s21 }
 0x22f   :  { %14 = sbr.rel (!%p12_p5) target bundleno = 2 (0x2), region = 70 }

// kernel: deep_guided_filter_forward.24
= control target key start
LH: loop header
LB: loop body
LE: loop exit
PB: predicated region body
PF: predicated region fallthrough
CT: control target
= control target key end

     0   :  { %s720_s15 = smov 0   ;;  %s945_s0 = inlined_call_operand.vmem [shape: f32[2,3,10,10], index: 0, kind: input, shape index: {}]   ;;  %s946_s1 = inlined_call_operand.vmem [shape: f32[2,3,10,10], index: 1, kind: input, shape index: {}]   ;;  %s947_s2 = inlined_call_operand.vmem [shape: f32[8,8], index: 2, kind: input, shape index: {}]   ;;  %s948_s3 = inlined_call_operand.vmem [shape: f32[2,3,8,8], index: 3, kind: output, shape index: {0}]   ;;  %s949_s4 = inlined_call_operand.vmem [shape: f32[2,3,8,8], index: 4, kind: output, shape index: {1}]  }
   0x1 LB: > { %s656_s16 = sadd.s32 4294967295, %s691_s15   ;;  %p660_p0 = scmp.ge.s32.totalorder %s691_s15, 1  ;;  %s691_s15 = sphi %s720_s15, %s15_s15  }
   0x2   : > { %p175_p1 = scmp.lt.s32.totalorder %s691_s15, 3 }
   0x4   : > { %p176_p2 = pnand %p660_p0, %p175_p1 }
   0x5   : > { %p211_p3 = scmp.lt.s32.totalorder (!%p176_p2), %s656_s16, 1  ;;  %vm250_vm0 = vcmask (!%p176_p2), 1046528   ;;  %vm266_vm1 = vcmask (!%p176_p2), 1045504   ;;  %s693_s21 = smov (!%p176_p2), 127   ;;  %vm543_vm2 = vcmask (!%p176_p2), 64512  }
   0x6   : > { %179 = sbr.rel (%p176_p2) target bundleno = 199 (0xc7), region = 32  ;;  %s694_s25 = smov (!%p176_p2), 126  }
   0xd   : > { %s951_s16 = smov (!%p211_p3, %s656_s16), 1 }
   0xe   : > { %s667_s17 = smul.u32 48, %s951_s16 }
   0xf   : > { %s668_s28 = smul.u32 24, %s951_s16 }
  0x10   : > { %s215_s20 = scalar_lea.vmem %s945_s0, %s667_s17  ;;  %s220_s24 = scalar_lea.vmem %s946_s1, %s667_s17 }
  0x11   : > { %v736_v0 = vld [vmem:[%s215_s20 + $0x20] sm:$0xff]  ;;  %v738_v1 = vld [vmem:[%s215_s20 + $0x28] sm:$0x3]  ;;  %v752_v12 = vld [vmem:[%s215_s20 + $0x10] sm:$0xff]  ;;  %s225_s5 = scalar_lea.vmem %s948_s3, %s668_s28  ;;  %s230_s8 = scalar_lea.vmem %s949_s4, %s668_s28 }
  0x12   : > { %v740_v2 = vld [vmem:[%s215_s20] sm:$0xff]  ;;  %v257_v3 = vrot.slane %v736_v0, 1  ;;  %v258_v4 = vrot.slane %v738_v1, 1  ;;  %v273_v5 = vrot.slane %v736_v0, 2  ;;  %v274_v6 = vrot.slane %v738_v1, 2  ;;  %v239_v51 = vld [vmem:[%s220_s24 + $0x10] sm:$0xff] }
  0x13   : > { %v746_v7 = vld [vmem:[%s215_s20 + $0x8] sm:$0x3]  ;;  %v251_v8 = vrot.slane %v740_v2, 1  ;;  %v267_v10 = vrot.slane %v740_v2, 2  ;;  %v756_v15 = vld [vmem:[%s215_s20 + $0x18] sm:$0x3]  ;;  %v458_v24 = vmul.f32 %v752_v12, %v752_v12  ;;  %v456_v28 = vmul.f32 %v740_v2, %v740_v2 }
  0x14   : > { %v252_v9 = vrot.slane %v746_v7, 1  ;;  %v268_v11 = vrot.slane %v746_v7, 2  ;;  %v259_v13 = vsel %vm250_vm0, %v257_v3, %v258_v4  ;;  %v275_v14 = vsel %vm266_vm1, %v273_v5, %v274_v6  ;;  %v240_v52 = vld [vmem:[%s220_s24 + $0x18] sm:$0x3]  ;;  %v237_v57 = vld [vmem:[%s220_s24] sm:$0xff] }
  0x15   : > { %v254_v16 = vrot.slane %v752_v12, 1  ;;  %v270_v17 = vrot.slane %v752_v12, 2  ;;  %v265_v18 = vadd.f32 %v259_v13, %v736_v0  ;;  %v255_v21 = vrot.slane %v756_v15, 1  ;;  %v238_v58 = vld [vmem:[%s220_s24 + $0x8] sm:$0x3]  ;;  %v241_v6 = vld [vmem:[%s220_s24 + $0x20] sm:$0xff] }
  0x16   : > { %v253_v19 = vsel %vm250_vm0, %v251_v8, %v252_v9  ;;  %v269_v20 = vsel %vm266_vm1, %v267_v10, %v268_v11  ;;  %v271_v23 = vrot.slane %v756_v15, 2  ;;  %v459_v25 = vmul.f32 %v756_v15, %v756_v15  ;;  %v242_v8 = vld [vmem:[%s220_s24 + $0x28] sm:$0x3] }
  0x17   : > { %v263_v22 = vadd.f32 %v253_v19, %v740_v2  ;;  %v770_v26 = vadd.f32 %v275_v14, %v265_v18  ;;  %v256_v27 = vsel %vm250_vm0, %v254_v16, %v255_v21  ;;  %v457_v29 = vmul.f32 %v746_v7, %v746_v7 }
  0x18   : > { %v264_v31 = vadd.f32 %v256_v27, %v752_v12  ;;  %v272_v32 = vsel %vm266_vm1, %v270_v17, %v271_v23  ;;  %v471_v33 = vrot.slane %v458_v24, 1  ;;  %v472_v34 = vrot.slane %v459_v25, 1 }
  0x19   : > { %v777_v30 = vadd.f32 %v269_v20, %v263_v22  ;;  %289 = vrot.lane.b32.xlu1 %v770_v26, %s693_s21  ;;  %v486_v35 = vrot.slane %v458_v24, 2  ;;  %v468_v36 = vrot.slane %v456_v28, 1  ;;  %v487_v38 = vrot.slane %v459_v25, 2 }
  0x1a   : > { %v785_v37 = vadd.f32 %v272_v32, %v264_v31  ;;  %v469_v39 = vrot.slane %v457_v29, 1  ;;  %v483_v40 = vrot.slane %v456_v28, 2  ;;  %v473_v41 = vsel %vm250_vm0, %v471_v33, %v472_v34 }
  0x1b   : > { %285 = vrot.lane.b32.xlu0 %v777_v30, %s693_s21  ;;  %v484_v42 = vrot.slane %v457_v29, 2  ;;  %v460_v43 = vmul.f32 %v736_v0, %v736_v0  ;;  %v461_v44 = vmul.f32 %v738_v1, %v738_v1  ;;  %v481_v46 = vadd.f32 %v473_v41, %v458_v24 }
  0x1c   : > { %v470_v45 = vsel %vm250_vm0, %v468_v36, %v469_v39  ;;  %v488_v49 = vsel %vm266_vm1, %v486_v35, %v487_v38  ;;  %v321_v60 = vrot.slane %v239_v51, 1  ;;  %v322_v61 = vrot.slane %v240_v52, 1 }
  0x1d   : > { %297 = vrot.lane.b32.xlu1 %v777_v30, %s694_s25  ;;  %v474_v47 = vrot.slane %v460_v43, 1  ;;  %v475_v48 = vrot.slane %v461_v44, 1  ;;  %v480_v50 = vadd.f32 %v470_v45, %v456_v28  ;;  %v485_v53 = vsel %vm266_vm1, %v483_v40, %v484_v42 }
  0x1e   : > { %v489_v55 = vrot.slane %v460_v43, 2  ;;  %v490_v56 = vrot.slane %v461_v44, 2  ;;  %v807_v59 = vadd.f32 %v488_v49, %v481_v46  ;;  %v318_v3 = vrot.slane %v237_v57, 1 }
  0x1f   : > { %287 = vrot.lane.b32.xlu0 %v785_v37, %s693_s21  ;;  %v476_v54 = vsel %vm250_vm0, %v474_v47, %v475_v48  ;;  %v811_v62 = vadd.f32 %v485_v53, %v480_v50  ;;  %v319_v4 = vrot.slane %v238_v58, 1  ;;  %v336_v9 = vrot.slane %v239_v51, 2 }
  0x20   : > { %v482_v63 = vadd.f32 %v476_v54, %v460_v43  ;;  %v491_v5 = vsel %vm266_vm1, %v489_v55, %v490_v56  ;;  %v337_v10 = vrot.slane %v240_v52, 2  ;;  %v333_v11 = vrot.slane %v237_v57, 2 }
  0x21   : > { %301 = vrot.lane.b32.xlu1 %v770_v26, %s694_s25  ;;  %v334_v13 = vrot.slane %v238_v58, 2  ;;  %v323_v16 = vsel %vm250_vm0, %v321_v60, %v322_v61  ;;  %v320_v17 = vsel %vm250_vm0, %v318_v3, %v319_v4  ;;  %v324_v18 = vrot.slane %v241_v6, 1 }
  0x22   : > { %v818_v14 = vadd.f32 %v491_v5, %v482_v63  ;;  %v325_v19 = vrot.slane %v242_v8, 1  ;;  %v331_v20 = vadd.f32 %v323_v16, %v239_v51  ;;  %v338_v21 = vsel %vm266_vm1, %v336_v9, %v337_v10 }
  0x23   : > { %299 = vrot.lane.b32.xlu0 %v785_v37, %s694_s25  ;;  %v330_v22 = vadd.f32 %v320_v17, %v237_v57  ;;  %v335_v23 = vsel %vm266_vm1, %v333_v11, %v334_v13  ;;  %v339_v24 = vrot.slane %v241_v6, 2  ;;  %v340_v25 = vrot.slane %v242_v8, 2  ;;  %v887_v17 = vld [vmem:[%s947_s2] sm:$0xff] }
  0x24   : > { %v380_v27 = vmul.f32 %v239_v51, %v752_v12  ;;  %v381_v28 = vmul.f32 %v240_v52, %v756_v15  ;;  %v326_v29 = vsel %vm250_vm0, %v324_v18, %v325_v19  ;;  %v378_v31 = vmul.f32 %v237_v57, %v740_v2 }
  0x25   : > { %503 = vrot.lane.b32.xlu1 %v807_v59, %s693_s21  ;;  %v379_v32 = vmul.f32 %v238_v58, %v746_v7  ;;  %v835_v33 = vadd.f32 %v338_v21, %v331_v20  ;;  %v837_v34 = vadd.f32 %v335_v23, %v330_v22  ;;  %v332_v35 = vadd.f32 %v326_v29, %v241_v6 }
  0x26   : > { %v341_v12 = vsel %vm266_vm1, %v339_v24, %v340_v25  ;;  %v393_v15 = vrot.slane %v380_v27, 1  ;;  %v394_v36 = vrot.slane %v381_v28, 1  ;;  %v390_v38 = vrot.slane %v378_v31, 1 }
  0x27   : > { %501 = vrot.lane.b32.xlu0 %v811_v62, %s693_s21  ;;  %v391_v39 = vrot.slane %v379_v32, 1  ;;  %v382_v2 = vmul.f32 %v241_v6, %v736_v0  ;;  %v383_v7 = vmul.f32 %v242_v8, %v738_v1  ;;  %v408_v40 = vrot.slane %v380_v27, 2 }
  0x28   : > { %v848_v41 = vadd.f32 %v341_v12, %v332_v35  ;;  %v395_v42 = vsel %vm250_vm0, %v393_v15, %v394_v36  ;;  %v409_v43 = vrot.slane %v381_v28, 2  ;;  %v405_v44 = vrot.slane %v378_v31, 2 }
  0x29   : > { %513 = vrot.lane.b32.xlu1 %v811_v62, %s694_s25  ;;  %v392_v45 = vsel %vm250_vm0, %v390_v38, %v391_v39  ;;  %v406_v46 = vrot.slane %v379_v32, 2  ;;  %v396_v47 = vrot.slane %v382_v2, 1  ;;  %v397_v0 = vrot.slane %v383_v7, 1 }
  0x2a   : > { %v403_v1 = vadd.f32 %v395_v42, %v380_v27  ;;  %v410_v48 = vsel %vm266_vm1, %v408_v40, %v409_v43  ;;  %v402_v49 = vadd.f32 %v392_v45, %v378_v31  ;;  %v411_v52 = vrot.slane %v382_v2, 2 }
  0x2b   : > { %505 = vrot.lane.b32.xlu0 %v818_v14, %s693_s21  ;;  %v407_v50 = vsel %vm266_vm1, %v405_v44, %v406_v46  ;;  %v398_v51 = vsel %vm250_vm0, %v396_v47, %v397_v0  ;;  %v412_v53 = vrot.slane %v383_v7, 2 }
  0x2c   : > { %v861_v54 = vadd.f32 %v410_v48, %v403_v1  ;;  %v865_v55 = vadd.f32 %v407_v50, %v402_v49  ;;  %v404_v56 = vadd.f32 %v398_v51, %v382_v2 }
  0x2d   : > { %517 = vrot.lane.b32.xlu1 %v818_v14, %s694_s25  ;;  %v413_v57 = vsel %vm266_vm1, %v411_v52, %v412_v53 }
  0x2e   : > { %v872_v58 = vadd.f32 %v413_v57, %v404_v56 }
  0x2f   : > { %515 = vrot.lane.b32.xlu0 %v807_v59, %s694_s25 }
  0x31   : > { %353 = vrot.lane.b32.xlu1 %v835_v33, %s693_s21 }
  0x33   : > { %351 = vrot.lane.b32.xlu0 %v837_v34, %s693_s21 }
  0x35   : > { %363 = vrot.lane.b32.xlu1 %v837_v34, %s694_s25 }
  0x37   : > { %355 = vrot.lane.b32.xlu0 %v848_v41, %s693_s21 }
  0x39   : > { %367 = vrot.lane.b32.xlu1 %v848_v41, %s694_s25 }
  0x3b   : > { %365 = vrot.lane.b32.xlu0 %v835_v33, %s694_s25 }
  0x3d   : > { %425 = vrot.lane.b32.xlu1 %v861_v54, %s693_s21 }
  0x3f   : > { %423 = vrot.lane.b32.xlu0 %v865_v55, %s693_s21 }
  0x41   : > { %435 = vrot.lane.b32.xlu1 %v865_v55, %s694_s25 }
  0x43   : > { %427 = vrot.lane.b32.xlu0 %v872_v58, %s693_s21 }
  0x45   : > { %439 = vrot.lane.b32.xlu1 %v872_v58, %s694_s25 }
  0x47   : > { %437 = vrot.lane.b32.xlu0 %v861_v54, %s694_s25 }
  0x8b   : > { %v290_v60 = vpop.permute.xlu1 %289 }
  0x8c   : > { %v296_v18 = vadd.f32 %v290_v60, %v770_v26 }
  0x8d   : > { %v286_v61 = vpop.permute.xlu0 %285 }
  0x8e   : > { %v294_v9 = vadd.f32 %v286_v61, %v777_v30 }
  0x8f   : > { %v298_v63 = vpop.permute.xlu1 %297 }
  0x90   : > { %v306_v13 = vadd.f32 %v298_v63, %v294_v9 }
  0x91   : > { %v288_v3 = vpop.permute.xlu0 %287 }
  0x92   : > { %v295_v21 = vadd.f32 %v288_v3, %v785_v37  ;;  %v892_v23 = vmul.f32 %v306_v13, %v887_v17 }
  0x93   : > { %v302_v4 = vpop.permute.xlu1 %301 }
  0x94   : > { %v308_v30 = vadd.f32 %v302_v4, %v296_v18  ;;  %v528_v37 = vmul.f32 %v892_v23, %v892_v23 }
  0x95   : > { %v300_v5 = vpop.permute.xlu0 %299 }
  0x96   : > { %v307_v25 = vadd.f32 %v300_v5, %v295_v21  ;;  %v898_v32 = vmul.f32 %v308_v30, %v887_v17 }
  0x97   : > { %v504_v6 = vpop.permute.xlu1 %503 }
  0x98   : > { %v903_v35 = vmul.f32 %v307_v25, %v887_v17  ;;  %v530_v38 = vmul.f32 %v898_v32, %v898_v32 }
  0x99   : > { %v502_v8 = vpop.permute.xlu0 %501 }
  0x9a   : > { %v510_v16 = vadd.f32 %v502_v8, %v811_v62  ;;  %v511_v62 = vadd.f32 %v504_v6, %v807_v59  ;;  %v529_v39 = vmul.f32 %v903_v35, %v903_v35 }
  0x9b   : > { %v514_v10 = vpop.permute.xlu1 %513 }
  0x9c   : > { %v522_v19 = vadd.f32 %v514_v10, %v510_v16 }
  0x9d   : > { %v506_v11 = vpop.permute.xlu0 %505 }
  0x9e   : > { %v512_v24 = vadd.f32 %v506_v11, %v818_v14  ;;  %v525_v27 = vmul.f32 %v522_v19, %v887_v17 }
  0x9f   : > { %v518_v20 = vpop.permute.xlu1 %517 }
  0xa0   : > { %v524_v28 = vadd.f32 %v518_v20, %v512_v24  ;;  %v531_v12 = vsub.f32 %v525_v27, %v528_v37 }
  0xa1   : > { %v516_v22 = vpop.permute.xlu0 %515 }
  0xa2   : > { %v523_v31 = vadd.f32 %v516_v22, %v511_v62  ;;  %v527_v14 = vmul.f32 %v524_v28, %v887_v17  ;;  %v534_v2 = vadd.f32 1e-05, %v531_v12 }
  0xa3   : > { %v354_v29 = vpop.permute.xlu1 %353 }
  0xa4   : > { %v526_v59 = vmul.f32 %v523_v31, %v887_v17  ;;  %v533_v7 = vsub.f32 %v527_v14, %v530_v38  ;;  %679 = vrcp.f32 %v534_v2  ;;  %v361_v49 = vadd.f32 %v354_v29, %v835_v33 }
  0xa5   : > { %v352_v26 = vpop.permute.xlu0 %351 }
  0xa6   : > { %v532_v42 = vsub.f32 %v526_v59, %v529_v39  ;;  %v360_v43 = vadd.f32 %v352_v26, %v837_v34  ;;  %v536_v46 = vadd.f32 1e-05, %v533_v7 }
  0xa7   : > { %v364_v15 = vpop.permute.xlu1 %363 }
  0xa8   : > { %v372_v45 = vadd.f32 %v364_v15, %v360_v43  ;;  %v535_v0 = vadd.f32 1e-05, %v532_v42  ;;  %681 = vrcp.f32 %v536_v46 }
  0xa9   : > { %v356_v36 = vpop.permute.xlu0 %355 }
  0xaa   : > { %v362_v1 = vadd.f32 %v356_v36, %v848_v41  ;;  %v375_v50 = vmul.f32 %v372_v45, %v887_v17  ;;  %683 = vrcp.f32 %v535_v0 }
  0xab   : > { %v368_v40 = vpop.permute.xlu1 %367 }
  0xac   : > { %v374_v51 = vadd.f32 %v368_v40, %v362_v1  ;;  %v450_v60 = vmul.f32 %v375_v50, %v892_v23 }
  0xad   : > { %v366_v44 = vpop.permute.xlu0 %365 }
  0xae   : > { %v373_v53 = vadd.f32 %v366_v44, %v361_v49  ;;  %v377_v61 = vmul.f32 %v374_v51, %v887_v17  ;;  %v680_v8 = vpop.eup %679 }
  0xaf   : > { %v426_v47 = vpop.permute.xlu1 %425 }
  0xb0   : > { %v376_v63 = vmul.f32 %v373_v53, %v887_v17  ;;  %v433_v3 = vadd.f32 %v426_v47, %v861_v54  ;;  %v452_v10 = vmul.f32 %v377_v61, %v898_v32 }
  0xb1   : > { %v424_v48 = vpop.permute.xlu0 %423 }
  0xb2   : > { %v432_v52 = vadd.f32 %v424_v48, %v865_v55  ;;  %v451_v13 = vmul.f32 %v376_v63, %v903_v35  ;;  %v682_v19 = vpop.eup %681 }
  0xb3   : > { %v436_v34 = vpop.permute.xlu1 %435 }
  0xb4   : > { %v444_v56 = vadd.f32 %v436_v34, %v432_v52  ;;  %v684_v21 = vpop.eup %683 }
  0xb5   : > { %v428_v57 = vpop.permute.xlu0 %427 }
  0xb6   : > { %v447_v41 = vmul.f32 %v444_v56, %v887_v17  ;;  %v434_v33 = vadd.f32 %v428_v57, %v872_v58 }
  0xb7   : > { %v440_v55 = vpop.permute.xlu1 %439 }
  0xb8   : > { %v453_v4 = vsub.f32 %v447_v41, %v450_v60  ;;  %v446_v5 = vadd.f32 %v440_v55, %v434_v33 }
  0xb9   : > { %v438_v6 = vpop.permute.xlu0 %437 }
  0xba   : > { %v445_v9 = vadd.f32 %v438_v6, %v433_v3  ;;  %v538_v11 = vmul.f32 %v680_v8, %v453_v4  ;;  %v449_v58 = vmul.f32 %v446_v5, %v887_v17 }
  0xbc   : > { %v448_v54 = vmul.f32 %v445_v9, %v887_v17  ;;  %544 = vst.msk [vmem:[%s225_s5] sm:$0xff] %vm543_vm2, %v538_v11  ;;  %v547_v16 = vmul.f32 %v538_v11, %v892_v23  ;;  %v455_v18 = vsub.f32 %v449_v58, %v452_v10 }
  0xbe   : > { %v454_v20 = vsub.f32 %v448_v54, %v451_v13  ;;  %v550_v22 = vsub.f32 %v375_v50, %v547_v16  ;;  %v542_v30 = vmul.f32 %v682_v19, %v455_v18 }
  0xc0   : > { %v540_v24 = vmul.f32 %v684_v21, %v454_v20  ;;  %553 = vst.msk [vmem:[%s230_s8] sm:$0xff] %vm543_vm2, %v550_v22  ;;  %546 = vst.msk [vmem:[%s225_s5 + $0x10] sm:$0xff] %vm543_vm2, %v542_v30  ;;  %v549_v17 = vmul.f32 %v542_v30, %v898_v32 }
  0xc2   : > { %545 = vst.msk [vmem:[%s225_s5 + $0x8] sm:$0xff] %vm543_vm2, %v540_v24  ;;  %v548_v23 = vmul.f32 %v540_v24, %v903_v35  ;;  %v552_v25 = vsub.f32 %v377_v61, %v549_v17 }
  0xc4   : > { %v551_v62 = vsub.f32 %v376_v63, %v548_v23  ;;  %555 = vst.msk [vmem:[%s230_s8 + $0x10] sm:$0xff] %vm543_vm2, %v552_v25 }
  0xc6   : > { %554 = vst.msk [vmem:[%s230_s8 + $0x8] sm:$0xff] %vm543_vm2, %v551_v62 }
  0xc7 PF: > { %s15_s15 = sadd.s32 1, %s691_s15  }
  0xc8   : > { %p12_p4 = scmp.ge.s32.totalorder %s15_s15, 4  }
  0xca   :  { %14 = sbr.rel (!%p12_p4) target bundleno = 1 (0x1), region = 77 }

// kernel: deep_guided_filter_forward.25
= control target key start
LH: loop header
LB: loop body
LE: loop exit
PB: predicated region body
PF: predicated region fallthrough
CT: control target
= control target key end

     0   :  { %10 = vsyncpa [#allocation3], 0  ;;  %s2452_s0 = inlined_call_operand.vmem [shape: f32[2,3,8,8], index: 0, kind: input, shape index: {}]   ;;  %s2453_s1 = inlined_call_operand.vmem [shape: f32[2,3,8,8], index: 1, kind: input, shape index: {}]   ;;  %s2454_s2 = inlined_call_operand.vmem [shape: bf16[2,3,64,64], index: 2, kind: input, shape index: {}]   ;;  %s2455_s3 = inlined_call_operand.vmem [shape: bf16[64,8], index: 3, kind: input, shape index: {}]   ;;  %s2456_s4 = inlined_call_operand.vmem [shape: bf16[8,64], index: 4, kind: input, shape index: {}]   ;;  %s2457_s5 = inlined_call_operand.hbm [shape: f32[2,3,64,64], index: 5, kind: output, shape index: {}]  }
   0x1   :  { %12 = vsyncpa [#allocation3 + $0x1], 0  ;;  %s2109_s18 = smov 0   ;;  %s2111_s19 = smov 0  }
   0x2   :  { %s2113_s20 = smov 0   ;;  %s2115_s21 = smov 0  }
   0x3   :  { %s2117_s22 = smov 0   ;;  %s2119_s23 = smov 0  }
   0x4 LB: > { %s1580_s24 = sadd.s32 4294967295, %s2074_s23   ;;  %s1581_s25 = sadd.s32 4294967294, %s2074_s23   ;;  %s2074_s23 = sphi %s2119_s23, %s18_s23   ;;  %s2070_s22 = sphi %s2117_s22, %s2464_s22   ;;  %s2066_s21 = sphi %s2115_s21, %s2463_s21   ;;  %s2062_s20 = sphi %s2113_s20, %s2462_s20   ;;  %s2058_s19 = sphi %s2111_s19, %s2461_s19   ;;  %s2054_s18 = sphi %s2109_s18, %s2460_s18  }
   0x5   : > { %s30_s26 = sadd.s32 1, %s2070_s22  ;;  %s166_s27 = sadd.s32 1, %s2062_s20 }
   0x6   : > { %p32_p0 = scmp.ge.s32.totalorder %s30_s26, 2  ;;  %p176_p1 = scmp.ne.s32.totalorder %s2062_s20, %s2058_s19 }
   0x7   : > { %p177_p2 = scmp.eq.s32.totalorder %s1580_s24, 1  ;;  %p182_p3 = scmp.ne.s32.totalorder %s2058_s19, %s2054_s18 }
   0x8   : > { %s2466_s26 = smov (%p32_p0, %s30_s26), 0  ;;  %p183_p5 = scmp.eq.s32.totalorder %s1581_s25, 1 }
   0x9   : > { %p2149_p4 = por %p177_p2, %p176_p1  ;;  %s161_s29 = ssub.s32 %s2070_s22, %s2466_s26 }
   0xa   : > { %p1585_p6 = scmp.ge.s32.totalorder %s2074_s23, 1  ;;  %p164_p7 = scmp.eq.s32.totalorder %s161_s29, 0 }
   0xb   : > { %p2156_p8 = por %p183_p5, %p182_p3  ;;  %p242_p9 = scmp.lt.s32.totalorder %s2074_s23, 3 }
   0xc   : > { %s2162_s6 = scalar_select %p164_p7, %s2062_s20, %s166_s27  }
   0xd   : > { %p243_p10 = pnand %p1585_p6, %p242_p9 }
   0xe   : > { %p289_p11 = scmp.lt.s32.totalorder (!%p243_p10), %s2066_s21, 1  ;;  %v2168_v0 = vld [vmem:[%s2455_s3] sm:$0xff] (!%p243_p10)   ;;  %vm350_vm0 = vcmask (!%p243_p10), 64512   ;;  %vm363_vm1 = vcmask (!%p243_p10), 1043456   ;;  %v2201_v8 = vld [vmem:[%s2455_s3 + $0x8] sm:$0xff] (!%p243_p10)   ;;  %v2209_v11 = vld [vmem:[%s2455_s3 + $0x10] sm:$0xff] (!%p243_p10)  }
   0xf   : > { %246 = sbr.rel (%p243_p10) target bundleno = 966 (0x3c6), region = 40  ;;  %1801 = vmatprep.mubr.msk.bf16.mxu0 (!%p243_p10), %vm350_vm0, %v2168_v0  ;;  %1811 = vmatprep.mubr.msk.bf16.mxu1 (!%p243_p10), %vm350_vm0, %v2168_v0  ;;  %v2193_v5 = vld [vmem:[%s2456_s4] sm:$0xf] (!%p243_p10)  ;;  %v2233_v15 = vld [vmem:[%s2455_s3 + $0x18] sm:$0xff] (!%p243_p10)   ;;  %s286_s15 = sand.u32 (!%p243_p10), 1, %s2058_s19   ;;  %vm713_vm2 = vcmask (!%p243_p10), 523264  }
  0x10   : > { %v2215_v13 = vsel (!%p243_p10), %vm363_vm1, %v2193_v5, 0  ;;  %s1934_s17 = smul.u32 (!%p243_p10), 3072, %s2066_s21  ;;  %s2076_s8 = smov (!%p243_p10), [#allocation2]  }
  0x12   : > { %s2394_s29 = scalar_lea.hbm (!%p243_p10), %s2457_s5, %s1934_s17 }
  0x16   : > { %s2171_s9 = scalar_select %p289_p11, %s2066_s21, 1 }
  0x17   : > { %s2406_s21 = scalar_lea.sflag [#allocation3], %s286_s15 }
  0x18   : > { %s1932_s10 = smul.u32 24, %s2171_s9 }
  0x19   : > { %s1933_s11 = smul.u32 96, %s2171_s9 }
  0x1a   : > { %s2181_s13 = scalar_lea.vmem %s2452_s0, %s1932_s10  ;;  %s2186_s16 = scalar_lea.vmem %s2453_s1, %s1932_s10 }
  0x1b   : > { %v326_v1 = vld [vmem:[%s2181_s13] sm:$0xff]  ;;  %v1609_v6 = vld [vmem:[%s2181_s13 + $0x8] sm:$0xff]  ;;  %v1643_v42 = vld [vmem:[%s2181_s13 + $0x10] sm:$0xff]  ;;  %s2286_s14 = scalar_lea.vmem %s2454_s2, %s1933_s11  ;;  %s1931_s9 = smul.u32 192, %s286_s15 }
  0x1c   : > { %v327_v2 = vpack.c.bf16 %v326_v1, %v326_v1  ;;  %v328_v3 = vld [vmem:[%s2186_s16] sm:$0xff]  ;;  %v1610_v9 = vld [vmem:[%s2186_s16 + $0x8] sm:$0xff]  ;;  %v724_v12 = vpack.c.bf16 %v1609_v6, %v1609_v6  ;;  %v1644_v43 = vld [vmem:[%s2186_s16 + $0x10] sm:$0xff]  ;;  %v2260_v44 = vpack.c.bf16 %v1643_v42, %v1643_v42  ;;  %s2000_s10 = sshll.u32 %s2076_s8, 4  ;;  %s2001_s10 = int_to_ptr.vmem [resolvable:$false] %s2000_s10 }
  0x1d   : > { %v329_v4 = vpack.c.bf16 %v328_v3, %v328_v3  ;;  %v727_v14 = vpack.c.bf16 %v1610_v9, %v1610_v9  ;;  %v2262_v45 = vpack.c.bf16 %v1644_v43, %v1644_v43  ;;  %v1728_v46 = vld [vmem:[%s2286_s14 + $0x8] sm:$0xff]   ;;  %v1681_v47 = vld [vmem:[%s2286_s14] sm:$0xff]   ;;  %v1730_v59 = vld [vmem:[%s2286_s14 + $0x18] sm:$0xff]   ;;  %s2295_s16 = scalar_lea.vmem [#allocation2], %s1931_s9  ;;  %s2002_s11 = scalar_lea.vmem %s2001_s10, 6144 }
  0x1e   : > { %1919 = vmatprep.subr.msk.bf16.mxu0 %vm363_vm1, %v327_v2  ;;  %v365_v7 = vsel %vm363_vm1, %v327_v2, 0  ;;  %v729_v28 = vsel %vm363_vm1, %v724_v12, 0  ;;  %v1686_v48 = vunpack.c.l.bf16 %v1728_v46  ;;  %v1682_v49 = vunpack.c.l.bf16 %v1681_v47  ;;  %v1729_v1 = vld [vmem:[%s2286_s14 + $0x10] sm:$0xff]   ;;  %s1462_s24 = sshll.u32 %s2295_s16, 4  ;;  %s2398_s24 = int_to_ptr.vmem [resolvable:$true] %s1462_s24 }
  0x1f   : > { %1920 = vmatprep.subr.msk.bf16.mxu1 %vm363_vm1, %v329_v4  ;;  %1800 = vmatpush3.bf16.msra.mxu0 %v365_v7  ;;  %v437_v10 = vsel %vm363_vm1, %v329_v4, 0  ;;  %v801_v29 = vsel %vm363_vm1, %v727_v14, 0  ;;  %v1687_v50 = vunpack.c.h.bf16 %v1728_v46  ;;  %v1683_v52 = vunpack.c.h.bf16 %v1681_v47  ;;  %s1996_s7 = scalar_lea.vmem %s2398_s24, 3072  ;;  %p2003_p1 = scmp.lt.s32.totalorder %s2398_s24, %s2001_s10 }
  0x20   : > { %1810 = vmatpush3.bf16.msra.mxu1 %v437_v10  ;;  %1921 = vmatprep.subr.msk.bf16.mxu0 %vm363_vm1, %v2193_v5  ;;  %v1694_v9 = vunpack.c.l.bf16 %v1730_v59  ;;  %p1997_p12 = scmp.ne.s32.totalorder %s2398_s24, %s1996_s7  ;;  %p2004_p2 = scmp.lt.s32.totalorder %s2002_s11, %s1996_s7 }
  0x21   : > { %1922 = vmatprep.subr.msk.bf16.mxu1 %vm363_vm1, %v2193_v5 }
  0x22   : > { %1802 = vmatmul.mubr.msk.bf16.vlgmr.msra.gmra.mrb[0].mxu0 %vm350_vm0, %v2201_v8  ;;  %p1998_p13 = pnand %p1997_p12, %p2149_p4  ;;  %p2005_p3 = por %p2004_p2, %p2003_p1 }
  0x23   : > { %1812 = vmatmul.mubr.msk.bf16.vlgmr.msra.gmra.mrb[0].mxu1 %vm350_vm0, %v2201_v8  ;;  %1805 = vmatprep.mubr.msk.bf16.mxu0 %vm350_vm0, %v2209_v11 }
  0x24   : > { %1815 = vmatprep.mubr.msk.bf16.mxu1 %vm350_vm0, %v2209_v11  ;;  %1820 = vmatpush3.bf16.msra.mxu0 %v2215_v13  ;;  %p1999_p0 = pneg %p1998_p13 }
  0x25   : > { %1830 = vmatpush3.bf16.msra.mxu1 %v2215_v13  ;;  %1923 = vmatprep.subr.msk.bf16.mxu0 %vm363_vm1, %v724_v12 }
  0x26   : > { %1924 = vmatprep.subr.msk.bf16.mxu1 %vm363_vm1, %v727_v14  ;;  %v1690_v14 = vunpack.c.l.bf16 %v1729_v1  ;;  %p2006_p5 = pnand %p2005_p3, %p1999_p0 }
  0x2a   : > { %1806 = vmatmul.mubr.msk.bf16.gmra.mrb[4].mxu0 %vm350_vm0, %v2233_v15 }
  0x2b   : > { %1816 = vmatmul.mubr.msk.bf16.gmra.mrb[4].mxu1 %vm350_vm0, %v2233_v15 }
  0xf5   : > { %v1803_v16 = vpop.f32.mrb[0].mxu0 }
  0xf6   : > { %v1813_v17 = vpop.f32.mrb[0].mxu1  ;;  %v401_v18 = vpop.f32.mrb[1].mxu0 }
  0xf7   : > { %v473_v19 = vpop.f32.mrb[1].mxu1  ;;  %v1804_v20 = vpop.f32.mrb[2].mxu0 }
  0xf8   : > { %v433_v21 = vpack.c.bf16 %v1804_v20, %v1803_v16  ;;  %v1814_v22 = vpop.f32.mrb[2].mxu1  ;;  %v404_v23 = vpop.f32.mrb[3].mxu0 }
  0xf9   : > { %v505_v24 = vpack.c.bf16 %v1814_v22, %v1813_v17  ;;  %v432_v25 = vpack.c.bf16 %v404_v23, %v401_v18  ;;  %v476_v26 = vpop.f32.mrb[3].mxu1  ;;  %v1695_v18 = vunpack.c.h.bf16 %v1730_v59  ;;  %v1691_v22 = vunpack.c.h.bf16 %v1729_v1 }
  0xfa   : > { %v504_v27 = vpack.c.bf16 %v476_v26, %v473_v19 }
  0xfb   : > { %1821 = vmatprep.mubr.msk.bf16.mxu0 %vm350_vm0, %v432_v25 }
  0xfc   : > { %1831 = vmatprep.mubr.msk.bf16.mxu1 %vm350_vm0, %v504_v27  ;;  %1822 = vmatmul.mubr.msk.bf16.vlgmr.msra.gmra.mrb[8].mxu0 %vm350_vm0, %v433_v21 }
  0xfd   : > { %1832 = vmatmul.mubr.msk.bf16.vlgmr.msra.gmra.mrb[8].mxu1 %vm350_vm0, %v505_v24  ;;  %1840 = vmatpush3.bf16.msra.mxu0 %v729_v28  ;;  %v1807_v30 = vpop.f32.mrb[4].mxu0 }
  0xfe   : > { %v1817_v31 = vpop.f32.mrb[4].mxu1  ;;  %v417_v32 = vpop.f32.mrb[5].mxu0  ;;  %1850 = vmatpush3.bf16.msra.mxu1 %v801_v29  ;;  %1925 = vmatprep.subr.msk.bf16.mxu0 %vm363_vm1, %v2193_v5 }
  0xff   : > { %v489_v33 = vpop.f32.mrb[5].mxu1  ;;  %v1808_v34 = vpop.f32.mrb[6].mxu0  ;;  %1926 = vmatprep.subr.msk.bf16.mxu1 %vm363_vm1, %v2193_v5 }
 0x100   : > { %v435_v35 = vpack.c.bf16 %v1808_v34, %v1807_v30  ;;  %v1818_v36 = vpop.f32.mrb[6].mxu1  ;;  %v420_v37 = vpop.f32.mrb[7].mxu0 }
 0x101   : > { %v507_v38 = vpack.c.bf16 %v1818_v36, %v1817_v31  ;;  %v434_v39 = vpack.c.bf16 %v420_v37, %v417_v32  ;;  %v492_v40 = vpop.f32.mrb[7].mxu1 }
 0x102   : > { %v506_v41 = vpack.c.bf16 %v492_v40, %v489_v33 }
 0x103   : > { %1825 = vmatprep.mubr.msk.bf16.mxu0 %vm350_vm0, %v434_v39 }
 0x104   : > { %1835 = vmatprep.mubr.msk.bf16.mxu1 %vm350_vm0, %v506_v41  ;;  %1826 = vmatmul.mubr.msk.bf16.gmra.mrb[12].mxu0 %vm350_vm0, %v435_v35 }
 0x105   : > { %1836 = vmatmul.mubr.msk.bf16.gmra.mrb[12].mxu1 %vm350_vm0, %v507_v38  ;;  %1841 = vmatprep.mubr.msk.bf16.mxu0 %vm350_vm0, %v2168_v0 }
 0x106   : > { %1851 = vmatprep.mubr.msk.bf16.mxu1 %vm350_vm0, %v2168_v0 }
 0x10c   : > { %1842 = vmatmul.mubr.msk.bf16.vlgmr.msra.gmra.mrb[16].mxu0 %vm350_vm0, %v2201_v8 }
 0x10d   : > { %1852 = vmatmul.mubr.msk.bf16.vlgmr.msra.gmra.mrb[16].mxu1 %vm350_vm0, %v2201_v8  ;;  %1845 = vmatprep.mubr.msk.bf16.mxu0 %vm350_vm0, %v2209_v11 }
 0x10e   : > { %1855 = vmatprep.mubr.msk.bf16.mxu1 %vm350_vm0, %v2209_v11  ;;  %1860 = vmatpush3.bf16.msra.mxu0 %v2215_v13 }
 0x10f   : > { %1870 = vmatpush3.bf16.msra.mxu1 %v2215_v13  ;;  %1927 = vmatprep.subr.msk.bf16.mxu0 %vm363_vm1, %v2260_v44 }
 0x110   : > { %1928 = vmatprep.subr.msk.bf16.mxu1 %vm363_vm1, %v2262_v45 }
 0x114   : > { %1846 = vmatmul.mubr.msk.bf16.gmra.mrb[20].mxu0 %vm350_vm0, %v2233_v15 }
 0x115   : > { %1856 = vmatmul.mubr.msk.bf16.gmra.mrb[20].mxu1 %vm350_vm0, %v2233_v15 }
 0x1cf   : > { %v1823_v51 = vpop.f32.mrb[8].mxu0 }
 0x1d0   : > { %v683_v53 = vmul.f32 %v1823_v51, %v1686_v48  ;;  %v1833_v54 = vpop.f32.mrb[8].mxu1  ;;  %v557_v55 = vpop.f32.mrb[9].mxu0 }
 0x1d1   : > { %v681_v56 = vmul.f32 %v1682_v49, %v557_v55  ;;  %v634_v57 = vpop.f32.mrb[9].mxu1  ;;  %v1824_v58 = vpop.f32.mrb[10].mxu0 }
 0x1d2   : > { %v691_v60 = vadd.f32 %v1833_v54, %v683_v53  ;;  %v684_v61 = vmul.f32 %v1824_v58, %v1687_v50  ;;  %v1834_v62 = vpop.f32.mrb[10].mxu1  ;;  %v560_v63 = vpop.f32.mrb[11].mxu0 }
 0x1d3   : > { %v689_v2 = vadd.f32 %v681_v56, %v634_v57  ;;  %v682_v3 = vmul.f32 %v1683_v52, %v560_v63  ;;  %v637_v4 = vpop.f32.mrb[11].mxu1  ;;  %v1163_v63 = vsel %vm363_vm1, %v2262_v45, 0 }
 0x1d4   : > { %v699_v6 = vmax.f32 %v691_v60, 0.0  ;;  %v692_v7 = vadd.f32 %v1834_v62, %v684_v61  ;;  %v1091_v62 = vsel %vm363_vm1, %v2260_v44, 0 }
 0x1d5   : > { %v697_v10 = vmax.f32 %v689_v2, 0.0  ;;  %v690_v12 = vadd.f32 %v682_v3, %v637_v4 }
 0x1d6   : > { %v707_v16 = vmin.f32 %v699_v6, 1.0  ;;  %v700_v17 = vmax.f32 %v692_v7, 0.0 }
 0x1d7   : > { %v705_v19 = vmin.f32 %v697_v10, 1.0  ;;  %v698_v20 = vmax.f32 %v690_v12, 0.0  ;;  %v1827_v21 = vpop.f32.mrb[12].mxu0 }
 0x1d8   : > { %716 = vst.msk [vmem:[%s2295_s16 + $0x10] sm:$0xff] %vm713_vm2, %v707_v16  ;;  %v708_v23 = vmin.f32 %v700_v17, 1.0  ;;  %v687_v24 = vmul.f32 %v1827_v21, %v1694_v9  ;;  %v1837_v25 = vpop.f32.mrb[12].mxu1  ;;  %v573_v26 = vpop.f32.mrb[13].mxu0 }
 0x1d9   : > { %714 = vst.msk [vmem:[%s2295_s16] sm:$0xff] %vm713_vm2, %v705_v19  ;;  %v706_v27 = vmin.f32 %v698_v20, 1.0  ;;  %v685_v28 = vmul.f32 %v1690_v14, %v573_v26  ;;  %v650_v29 = vpop.f32.mrb[13].mxu1  ;;  %v1828_v30 = vpop.f32.mrb[14].mxu0 }
 0x1da   : > { %717 = vst.msk [vmem:[%s2295_s16 + $0x18] sm:$0xff] %vm713_vm2, %v708_v23  ;;  %v695_v31 = vadd.f32 %v1837_v25, %v687_v24  ;;  %v688_v32 = vmul.f32 %v1828_v30, %v1695_v18  ;;  %v1838_v33 = vpop.f32.mrb[14].mxu1  ;;  %v576_v34 = vpop.f32.mrb[15].mxu0  ;;  %v1734_v24 = vld [vmem:[%s2286_s14 + $0x38] sm:$0xff]  }
 0x1db   : > { %715 = vst.msk [vmem:[%s2295_s16 + $0x8] sm:$0xff] %vm713_vm2, %v706_v27  ;;  %v693_v35 = vadd.f32 %v685_v28, %v650_v29  ;;  %v686_v36 = vmul.f32 %v1691_v22, %v576_v34  ;;  %v653_v37 = vpop.f32.mrb[15].mxu1  ;;  %v1710_v34 = vunpack.c.l.bf16 %v1734_v24 }
 0x1dc   : > { %v703_v38 = vmax.f32 %v695_v31, 0.0  ;;  %v696_v39 = vadd.f32 %v1838_v33, %v688_v32 }
 0x1dd   : > { %v701_v40 = vmax.f32 %v693_v35, 0.0  ;;  %v694_v41 = vadd.f32 %v686_v36, %v653_v37 }
 0x1de   : > { %v711_v42 = vmin.f32 %v703_v38, 1.0  ;;  %v704_v43 = vmax.f32 %v696_v39, 0.0 }
 0x1df   : > { %v709_v46 = vmin.f32 %v701_v40, 1.0  ;;  %v702_v47 = vmax.f32 %v694_v41, 0.0  ;;  %v1843_v48 = vpop.f32.mrb[16].mxu0  ;;  %v1711_v40 = vunpack.c.h.bf16 %v1734_v24 }
 0x1e0   : > { %720 = vst.msk [vmem:[%s2295_s16 + $0x30] sm:$0xff] %vm713_vm2, %v711_v42  ;;  %v712_v49 = vmin.f32 %v704_v43, 1.0  ;;  %v1853_v50 = vpop.f32.mrb[16].mxu1  ;;  %v765_v51 = vpop.f32.mrb[17].mxu0 }
 0x1e1   : > { %718 = vst.msk [vmem:[%s2295_s16 + $0x20] sm:$0xff] %vm713_vm2, %v709_v46  ;;  %v710_v52 = vmin.f32 %v702_v47, 1.0  ;;  %v837_v53 = vpop.f32.mrb[17].mxu1  ;;  %v1844_v54 = vpop.f32.mrb[18].mxu0 }
 0x1e2   : > { %721 = vst.msk [vmem:[%s2295_s16 + $0x38] sm:$0xff] %vm713_vm2, %v712_v49  ;;  %v797_v55 = vpack.c.bf16 %v1844_v54, %v1843_v48  ;;  %v1854_v56 = vpop.f32.mrb[18].mxu1  ;;  %v768_v57 = vpop.f32.mrb[19].mxu0 }
 0x1e3   : > { %719 = vst.msk [vmem:[%s2295_s16 + $0x28] sm:$0xff] %vm713_vm2, %v710_v52  ;;  %v869_v58 = vpack.c.bf16 %v1854_v56, %v1853_v50  ;;  %v796_v59 = vpack.c.bf16 %v768_v57, %v765_v51  ;;  %v840_v60 = vpop.f32.mrb[19].mxu1 }
 0x1e4   : > { %v868_v61 = vpack.c.bf16 %v840_v60, %v837_v53 }
 0x1e5   : > { %1861 = vmatprep.mubr.msk.bf16.mxu0 %vm350_vm0, %v796_v59 }
 0x1e6   : > { %1871 = vmatprep.mubr.msk.bf16.mxu1 %vm350_vm0, %v868_v61  ;;  %1862 = vmatmul.mubr.msk.bf16.vlgmr.msra.gmra.mrb[24].mxu0 %vm350_vm0, %v797_v55 }
 0x1e7   : > { %1872 = vmatmul.mubr.msk.bf16.vlgmr.msra.gmra.mrb[24].mxu1 %vm350_vm0, %v869_v58  ;;  %1880 = vmatpush3.bf16.msra.mxu0 %v1091_v62  ;;  %v1847_v1 = vpop.f32.mrb[20].mxu0 }
 0x1e8   : > { %v1857_v2 = vpop.f32.mrb[20].mxu1  ;;  %v781_v3 = vpop.f32.mrb[21].mxu0  ;;  %1890 = vmatpush3.bf16.msra.mxu1 %v1163_v63  ;;  %1929 = vmatprep.subr.msk.bf16.mxu0 %vm363_vm1, %v2193_v5 }
 0x1e9   : > { %v853_v44 = vpop.f32.mrb[21].mxu1  ;;  %v1848_v4 = vpop.f32.mrb[22].mxu0  ;;  %1930 = vmatprep.subr.msk.bf16.mxu1 %vm363_vm1, %v2193_v5  ;;  %v1731_v5 = vld [vmem:[%s2286_s14 + $0x20] sm:$0xff]  }
 0x1ea   : > { %v799_v45 = vpack.c.bf16 %v1848_v4, %v1847_v1  ;;  %v1858_v6 = vpop.f32.mrb[22].mxu1  ;;  %v784_v7 = vpop.f32.mrb[23].mxu0  ;;  %v1698_v16 = vunpack.c.l.bf16 %v1731_v5  ;;  %v1699_v19 = vunpack.c.h.bf16 %v1731_v5 }
 0x1eb   : > { %v871_v9 = vpack.c.bf16 %v1858_v6, %v1857_v2  ;;  %v798_v10 = vpack.c.bf16 %v784_v7, %v781_v3  ;;  %v856_v12 = vpop.f32.mrb[23].mxu1 }
 0x1ec   : > { %v870_v14 = vpack.c.bf16 %v856_v12, %v853_v44 }
 0x1ed   : > { %1865 = vmatprep.mubr.msk.bf16.mxu0 %vm350_vm0, %v798_v10 }
 0x1ee   : > { %1875 = vmatprep.mubr.msk.bf16.mxu1 %vm350_vm0, %v870_v14  ;;  %1866 = vmatmul.mubr.msk.bf16.gmra.mrb[28].mxu0 %vm350_vm0, %v799_v45 }
 0x1ef   : > { %1876 = vmatmul.mubr.msk.bf16.gmra.mrb[28].mxu1 %vm350_vm0, %v871_v9  ;;  %1881 = vmatprep.mubr.msk.bf16.mxu0 %vm350_vm0, %v2168_v0 }
 0x1f0   : > { %1891 = vmatprep.mubr.msk.bf16.mxu1 %vm350_vm0, %v2168_v0  ;;  %v1732_v0 = vld [vmem:[%s2286_s14 + $0x28] sm:$0xff]  }
 0x1f1   : > { %v1703_v17 = vunpack.c.h.bf16 %v1732_v0 }
 0x1f6   : > { %1882 = vmatmul.mubr.msk.bf16.vlgmr.msra.gmra.mrb[32].mxu0 %vm350_vm0, %v2201_v8 }
 0x1f7   : > { %1892 = vmatmul.mubr.msk.bf16.vlgmr.msra.gmra.mrb[32].mxu1 %vm350_vm0, %v2201_v8  ;;  %1885 = vmatprep.mubr.msk.bf16.mxu0 %vm350_vm0, %v2209_v11  ;;  %v1702_v8 = vunpack.c.l.bf16 %v1732_v0 }
 0x1f8   : > { %1895 = vmatprep.mubr.msk.bf16.mxu1 %vm350_vm0, %v2209_v11  ;;  %1900 = vmatpush3.bf16.msra.mxu0 %v2215_v13 }
 0x1f9   : > { %1910 = vmatpush3.bf16.msra.mxu1 %v2215_v13 }
 0x1fe   : > { %1886 = vmatmul.mubr.msk.bf16.gmra.mrb[36].mxu0 %vm350_vm0, %v2233_v15 }
 0x1ff   : > { %1896 = vmatmul.mubr.msk.bf16.gmra.mrb[36].mxu1 %vm350_vm0, %v2233_v15  ;;  %v1733_v15 = vld [vmem:[%s2286_s14 + $0x30] sm:$0xff]  }
 0x200   : > { %v1706_v37 = vunpack.c.l.bf16 %v1733_v15  ;;  %v1707_v46 = vunpack.c.h.bf16 %v1733_v15 }
 0x2b9   : > { %v1863_v18 = vpop.f32.mrb[24].mxu0 }
 0x2ba   : > { %v1045_v11 = vmul.f32 %v1863_v18, %v1702_v8  ;;  %v1873_v20 = vpop.f32.mrb[24].mxu1  ;;  %v918_v21 = vpop.f32.mrb[25].mxu0 }
 0x2bb   : > { %v1043_v22 = vmul.f32 %v1698_v16, %v918_v21  ;;  %v995_v13 = vpop.f32.mrb[25].mxu1  ;;  %v1864_v23 = vpop.f32.mrb[26].mxu0 }
 0x2bc   : > { %v1053_v25 = vadd.f32 %v1873_v20, %v1045_v11  ;;  %v1046_v26 = vmul.f32 %v1864_v23, %v1703_v17  ;;  %v1874_v27 = vpop.f32.mrb[26].mxu1  ;;  %v921_v28 = vpop.f32.mrb[27].mxu0 }
 0x2bd   : > { %v1051_v29 = vadd.f32 %v1043_v22, %v995_v13  ;;  %v1044_v30 = vmul.f32 %v1699_v19, %v921_v28  ;;  %v998_v31 = vpop.f32.mrb[27].mxu1 }
 0x2be   : > { %v1061_v32 = vmax.f32 %v1053_v25, 0.0  ;;  %v1054_v33 = vadd.f32 %v1874_v27, %v1046_v26 }
 0x2bf   : > { %v1059_v35 = vmax.f32 %v1051_v29, 0.0  ;;  %v1052_v36 = vadd.f32 %v1044_v30, %v998_v31  ;;  %v1736_v30 = vld [vmem:[%s2286_s14 + $0x48] sm:$0xff]   ;;  %v1735_v31 = vld [vmem:[%s2286_s14 + $0x40] sm:$0xff]  }
 0x2c0   : > { %v1069_v38 = vmin.f32 %v1061_v32, 1.0  ;;  %v1062_v39 = vmax.f32 %v1054_v33, 0.0  ;;  %v1718_v32 = vunpack.c.l.bf16 %v1736_v30  ;;  %v1714_v33 = vunpack.c.l.bf16 %v1735_v31 }
 0x2c1   : > { %v1067_v41 = vmin.f32 %v1059_v35, 1.0  ;;  %v1060_v42 = vmax.f32 %v1052_v36, 0.0  ;;  %v1867_v43 = vpop.f32.mrb[28].mxu0  ;;  %v1715_v36 = vunpack.c.h.bf16 %v1735_v31 }
 0x2c2   : > { %1637 = vst.msk [vmem:[%s2295_s16 + $0x50] sm:$0xff] %vm713_vm2, %v1069_v38  ;;  %v1070_v47 = vmin.f32 %v1062_v39, 1.0  ;;  %v1049_v48 = vmul.f32 %v1867_v43, %v1710_v34  ;;  %v1877_v49 = vpop.f32.mrb[28].mxu1  ;;  %v934_v50 = vpop.f32.mrb[29].mxu0  ;;  %v1719_v34 = vunpack.c.h.bf16 %v1736_v30  ;;  %v1738_v43 = vld [vmem:[%s2286_s14 + $0x58] sm:$0xff]  }
 0x2c3   : > { %1635 = vst.msk [vmem:[%s2295_s16 + $0x40] sm:$0xff] %vm713_vm2, %v1067_v41  ;;  %v1068_v51 = vmin.f32 %v1060_v42, 1.0  ;;  %v1047_v52 = vmul.f32 %v1706_v37, %v934_v50  ;;  %v1011_v53 = vpop.f32.mrb[29].mxu1  ;;  %v1868_v54 = vpop.f32.mrb[30].mxu0  ;;  %v1737_v50 = vld [vmem:[%s2286_s14 + $0x50] sm:$0xff]  }
 0x2c4   : > { %1638 = vst.msk [vmem:[%s2295_s16 + $0x58] sm:$0xff] %vm713_vm2, %v1070_v47  ;;  %v1057_v55 = vadd.f32 %v1877_v49, %v1049_v48  ;;  %v1050_v56 = vmul.f32 %v1868_v54, %v1711_v40  ;;  %v1878_v57 = vpop.f32.mrb[30].mxu1  ;;  %v937_v58 = vpop.f32.mrb[31].mxu0 }
 0x2c5   : > { %1636 = vst.msk [vmem:[%s2295_s16 + $0x48] sm:$0xff] %vm713_vm2, %v1068_v51  ;;  %v1055_v59 = vadd.f32 %v1047_v52, %v1011_v53  ;;  %v1048_v60 = vmul.f32 %v1707_v46, %v937_v58  ;;  %v1014_v61 = vpop.f32.mrb[31].mxu1 }
 0x2c6   : > { %v1065_v62 = vmax.f32 %v1057_v55, 0.0  ;;  %v1058_v63 = vadd.f32 %v1878_v57, %v1050_v56  ;;  %v1726_v56 = vunpack.c.l.bf16 %v1738_v43 }
 0x2c7   : > { %v1063_v1 = vmax.f32 %v1055_v59, 0.0  ;;  %v1056_v2 = vadd.f32 %v1048_v60, %v1014_v61  ;;  %v1722_v59 = vunpack.c.l.bf16 %v1737_v50 }
 0x2c8   : > { %v1073_v3 = vmin.f32 %v1065_v62, 1.0  ;;  %v1066_v44 = vmax.f32 %v1058_v63, 0.0  ;;  %v1727_v62 = vunpack.c.h.bf16 %v1738_v43 }
 0x2c9   : > { %v1071_v4 = vmin.f32 %v1063_v1, 1.0  ;;  %v1064_v45 = vmax.f32 %v1056_v2, 0.0  ;;  %v1883_v6 = vpop.f32.mrb[32].mxu0 }
 0x2ca   : > { %1641 = vst.msk [vmem:[%s2295_s16 + $0x70] sm:$0xff] %vm713_vm2, %v1073_v3  ;;  %v1074_v7 = vmin.f32 %v1066_v44, 1.0  ;;  %v1893_v9 = vpop.f32.mrb[32].mxu1  ;;  %v1127_v10 = vpop.f32.mrb[33].mxu0  ;;  %v1723_v3 = vunpack.c.h.bf16 %v1737_v50 }
 0x2cb   : > { %1639 = vst.msk [vmem:[%s2295_s16 + $0x60] sm:$0xff] %vm713_vm2, %v1071_v4  ;;  %v1072_v12 = vmin.f32 %v1064_v45, 1.0  ;;  %v1199_v14 = vpop.f32.mrb[33].mxu1  ;;  %v1884_v0 = vpop.f32.mrb[34].mxu0 }
 0x2cc   : > { %1642 = vst.msk [vmem:[%s2295_s16 + $0x78] sm:$0xff] %vm713_vm2, %v1074_v7  ;;  %v1159_v5 = vpack.c.bf16 %v1884_v0, %v1883_v6  ;;  %v1894_v8 = vpop.f32.mrb[34].mxu1  ;;  %v1130_v16 = vpop.f32.mrb[35].mxu0 }
 0x2cd   : > { %1640 = vst.msk [vmem:[%s2295_s16 + $0x68] sm:$0xff] %vm713_vm2, %v1072_v12  ;;  %v1231_v17 = vpack.c.bf16 %v1894_v8, %v1893_v9  ;;  %v1158_v18 = vpack.c.bf16 %v1130_v16, %v1127_v10  ;;  %v1202_v19 = vpop.f32.mrb[35].mxu1 }
 0x2ce   : > { %v1230_v11 = vpack.c.bf16 %v1202_v19, %v1199_v14 }
 0x2cf   : > { %1901 = vmatprep.mubr.msk.bf16.mxu0 %vm350_vm0, %v1158_v18 }
 0x2d0   : > { %1911 = vmatprep.mubr.msk.bf16.mxu1 %vm350_vm0, %v1230_v11  ;;  %1902 = vmatmul.mubr.msk.bf16.vlgmr.msra.gmra.mrb[40].mxu0 %vm350_vm0, %v1159_v5 }
 0x2d1   : > { %1912 = vmatmul.mubr.msk.bf16.vlgmr.msra.gmra.mrb[40].mxu1 %vm350_vm0, %v1231_v17  ;;  %v1887_v20 = vpop.f32.mrb[36].mxu0 }
 0x2d2   : > { %v1897_v21 = vpop.f32.mrb[36].mxu1  ;;  %v1143_v22 = vpop.f32.mrb[37].mxu0 }
 0x2d3   : > { %v1215_v13 = vpop.f32.mrb[37].mxu1  ;;  %v1888_v23 = vpop.f32.mrb[38].mxu0 }
 0x2d4   : > { %v1161_v24 = vpack.c.bf16 %v1888_v23, %v1887_v20  ;;  %v1898_v25 = vpop.f32.mrb[38].mxu1  ;;  %v1146_v26 = vpop.f32.mrb[39].mxu0 }
 0x2d5   : > { %v1233_v27 = vpack.c.bf16 %v1898_v25, %v1897_v21  ;;  %v1160_v28 = vpack.c.bf16 %v1146_v26, %v1143_v22  ;;  %v1218_v15 = vpop.f32.mrb[39].mxu1 }
 0x2d6   : > { %v1232_v29 = vpack.c.bf16 %v1218_v15, %v1215_v13 }
 0x2d7   : > { %1905 = vmatprep.mubr.msk.bf16.mxu0 %vm350_vm0, %v1160_v28 }
 0x2d8   : > { %1915 = vmatprep.mubr.msk.bf16.mxu1 %vm350_vm0, %v1232_v29  ;;  %1906 = vmatmul.mubr.msk.bf16.gmra.mrb[44].mxu0 %vm350_vm0, %v1161_v24 }
 0x2d9   : > { %1916 = vmatmul.mubr.msk.bf16.gmra.mrb[44].mxu1 %vm350_vm0, %v1233_v27 }
 0x3a3   : > { %v1903_v35 = vpop.f32.mrb[40].mxu0 }
 0x3a4   : > { %v1407_v37 = vmul.f32 %v1903_v35, %v1718_v32  ;;  %v1913_v38 = vpop.f32.mrb[40].mxu1  ;;  %v1280_v39 = vpop.f32.mrb[41].mxu0 }
 0x3a5   : > { %v1405_v40 = vmul.f32 %v1714_v33, %v1280_v39  ;;  %v1357_v41 = vpop.f32.mrb[41].mxu1  ;;  %v1904_v42 = vpop.f32.mrb[42].mxu0 }
 0x3a6   : > { %v1415_v46 = vadd.f32 %v1913_v38, %v1407_v37  ;;  %v1408_v47 = vmul.f32 %v1904_v42, %v1719_v34  ;;  %v1914_v48 = vpop.f32.mrb[42].mxu1  ;;  %v1283_v49 = vpop.f32.mrb[43].mxu0 }
 0x3a7   : > { %v1413_v51 = vadd.f32 %v1405_v40, %v1357_v41  ;;  %v1406_v52 = vmul.f32 %v1715_v36, %v1283_v49  ;;  %v1360_v53 = vpop.f32.mrb[43].mxu1 }
 0x3a8   : > { %v1423_v54 = vmax.f32 %v1415_v46, 0.0  ;;  %v1416_v55 = vadd.f32 %v1914_v48, %v1408_v47 }
 0x3a9   : > { %v1421_v57 = vmax.f32 %v1413_v51, 0.0  ;;  %v1414_v58 = vadd.f32 %v1406_v52, %v1360_v53 }
 0x3aa   : > { %v1431_v60 = vmin.f32 %v1423_v54, 1.0  ;;  %v1424_v61 = vmax.f32 %v1416_v55, 0.0 }
 0x3ab   : > { %v1429_v63 = vmin.f32 %v1421_v57, 1.0  ;;  %v1422_v1 = vmax.f32 %v1414_v58, 0.0  ;;  %v1907_v2 = vpop.f32.mrb[44].mxu0 }
 0x3ac   : > { %1671 = vst.msk [vmem:[%s2295_s16 + $0x90] sm:$0xff] %vm713_vm2, %v1431_v60  ;;  %v1432_v44 = vmin.f32 %v1424_v61, 1.0  ;;  %v1411_v4 = vmul.f32 %v1907_v2, %v1726_v56  ;;  %v1917_v45 = vpop.f32.mrb[44].mxu1  ;;  %v1296_v6 = vpop.f32.mrb[45].mxu0 }
 0x3ad   : > { %1669 = vst.msk [vmem:[%s2295_s16 + $0x80] sm:$0xff] %vm713_vm2, %v1429_v63  ;;  %v1430_v7 = vmin.f32 %v1422_v1, 1.0  ;;  %v1409_v9 = vmul.f32 %v1722_v59, %v1296_v6  ;;  %v1373_v10 = vpop.f32.mrb[45].mxu1  ;;  %v1908_v12 = vpop.f32.mrb[46].mxu0 }
 0x3ae   : > { %1672 = vst.msk [vmem:[%s2295_s16 + $0x98] sm:$0xff] %vm713_vm2, %v1432_v44  ;;  %v1419_v14 = vadd.f32 %v1917_v45, %v1411_v4  ;;  %v1412_v0 = vmul.f32 %v1908_v12, %v1727_v62  ;;  %v1918_v5 = vpop.f32.mrb[46].mxu1  ;;  %v1299_v8 = vpop.f32.mrb[47].mxu0 }
 0x3af   : > { %1670 = vst.msk [vmem:[%s2295_s16 + $0x88] sm:$0xff] %vm713_vm2, %v1430_v7  ;;  %v1417_v16 = vadd.f32 %v1409_v9, %v1373_v10  ;;  %v1410_v17 = vmul.f32 %v1723_v3, %v1299_v8  ;;  %v1376_v18 = vpop.f32.mrb[47].mxu1 }
 0x3b0   : > { %v1427_v19 = vmax.f32 %v1419_v14, 0.0  ;;  %v1420_v11 = vadd.f32 %v1918_v5, %v1412_v0 }
 0x3b1   : > { %v1425_v20 = vmax.f32 %v1417_v16, 0.0  ;;  %v1418_v21 = vadd.f32 %v1410_v17, %v1376_v18 }
 0x3b2   : > { %v1435_v22 = vmin.f32 %v1427_v19, 1.0  ;;  %v1428_v13 = vmax.f32 %v1420_v11, 0.0 }
 0x3b3   : > { %v1433_v23 = vmin.f32 %v1425_v20, 1.0  ;;  %v1426_v24 = vmax.f32 %v1418_v21, 0.0 }
 0x3b4   : > { %1675 = vst.msk [vmem:[%s2295_s16 + $0xb0] sm:$0xff] %vm713_vm2, %v1435_v22  ;;  %v1436_v25 = vmin.f32 %v1428_v13, 1.0 }
 0x3b5   : > { %1673 = vst.msk [vmem:[%s2295_s16 + $0xa0] sm:$0xff] %vm713_vm2, %v1433_v23  ;;  %v1434_v26 = vmin.f32 %v1426_v24, 1.0 }
 0x3b6   : > { %1676 = vst.msk [vmem:[%s2295_s16 + $0xb8] sm:$0xff] %vm713_vm2, %v1436_v25 }
 0x3b7   : > { %1674 = vst.msk [vmem:[%s2295_s16 + $0xa8] sm:$0xff] %vm713_vm2, %v1434_v26 }
 0x3b8   : > { %2009 = shalt.err (!%p2006_p5)
}
 0x3b9   : > { %s2010_s12 = scalar_lea.hbm %s2394_s29, 3072  ;;  %s2014_s15 = scalar_lea.hbm %s2457_s5, 6144 }
 0x3ba   : > { %p2011_p6 = scmp.ne.s32.totalorder %s2394_s29, %s2010_s12  ;;  %p2015_p10 = scmp.lt.u32.totalorder %s2394_s29, %s2457_s5 }
 0x3bb   : > { %p2016_p11 = scmp.lt.u32.totalorder %s2014_s15, %s2010_s12  ;;  %p2018_p13 = scmp.lt.u32.totalorder %s2010_s12, %s2394_s29 }
 0x3bc   : > { %p2012_p7 = pnand %p2011_p6, %p2149_p4 }
 0x3bd   : > { %p2017_p12 = por %p2016_p11, %p2015_p10 }
 0x3be   : > { %p2013_p9 = pneg %p2012_p7 }
 0x3bf   : > { %p2019_p0 = por %p2018_p13, %p2017_p12 }
 0x3c1   : > { %p2020_p1 = pnand %p2019_p0, %p2013_p9 }
 0x3c3   : > { %2023 = shalt.err (!%p2020_p1)
}
 0x3c4   : > { %s2077_s17 = smov 128   ;;  %s2078_s25 = smov 8  }
 0x3c5   : > { %1935 = dma.vmem_to_hbm [thread:$0]  (%p2149_p4), %s2398_s24, 3072, %s2394_s29, %s2406_s21, %s2077_s17, %s2077_s17, %s2078_s25  }
 0x3c6 PF: > { %p1941_p2 = scmp.ge.s32.totalorder %s2074_s23, 2  ;;  %s1477_s27 = sand.u32 1, %s2054_s18  }
 0x3c7   : > { %s1478_s7 = scalar_lea.sflag [#allocation3], %s1477_s27 }
 0x3c8   : > { %p1938_p3 = pnand %p1941_p2, %p2156_p8 }
 0x3ca   : > { %2049 = dma.done.wait (!%p1938_p3), %s1478_s7, 3072  }
 0x3cb   : > { %2051 = vsyncadd (!%p1938_p3), %s1478_s7, 4294964224  ;;  %s18_s23 = sadd.s32 1, %s2074_s23   ;;  %s2460_s18 = smov %s2058_s19 }
 0x3cc   : > { %p15_p5 = scmp.ge.s32.totalorder %s18_s23, 4   ;;  %s2461_s19 = smov %s2062_s20 }
 0x3cd   : > { %s2462_s20 = smov %s2162_s6  ;;  %s2463_s21 = smov %s2070_s22 }
 0x3ce   : > { %s2464_s22 = smov %s2466_s26  ;;  %17 = sbr.rel (!%p15_p5) target bundleno = 4 (0x4), region = 92 }
 0x3d5   :  { %1483 = vsyncpa [#allocation3], 1 }
 0x3d6   :  { %1485 = vsyncpa [#allocation3 + $0x1], 1 }

</bundles_post_ra>
